<compile_context>
chip_gen: v7x
topology: tpu7x:2x2x1
jax: 0.10.0
libtpu: 0.0.40
codegen_flags: <defaults>
</compile_context>

<pallas_src>
import jax
import jax.numpy as jnp
from jax import lax
from jax.experimental import pallas as pl
from jax.experimental.pallas import tpu as pltpu

IN = 1280
H1 = 1024
H2 = 256
H3 = 128
H4 = 64
OUT = 2
LN_EPS = 1e-5


def _round_up(n, m):
    return ((n + m - 1) // m) * m


def _mm_t(a_bf16, w_ref):
    """(tB, K) x (N, K) -> (tB, N), contracting the shared K axis, f32 accumulation on the MXU."""
    return lax.dot_general(
        a_bf16,
        w_ref[...],
        dimension_numbers=(((1,), (1,)), ((), ())),
        preferred_element_type=jnp.float32,
    )


def continue_model_kernel(
    x_ref,
    w1_ref, b1_ref, g_ref, beta_ref,
    w2_ref, b2_ref,
    w3_ref, b3_ref,
    w4_ref, b4_ref,
    w5d_ref, b5d_ref,
    probs_ref, inter_ref,
):
    # dropout(x): eval-mode identity.  Cast f32 -> bf16 in-kernel (x read from HBM once).
    x = x_ref[...].astype(jnp.bfloat16)                  # (tB, 1280)

    # layer1: Linear(1280 -> 1024) + LayerNorm(1024) + ReLU   (f32 epilogue)
    h = _mm_t(x, w1_ref) + b1_ref[...]                   # (tB, 1024) f32
    # one-pass LN stats: var = E[h^2] - mean^2 (no separate centered temporary pass)
    mean = jnp.mean(h, axis=-1, keepdims=True)
    msq = jnp.mean(h * h, axis=-1, keepdims=True)
    inv = lax.rsqrt(msq - mean * mean + LN_EPS)
    h1 = jnp.maximum((h - mean) * inv * g_ref[...] + beta_ref[...], 0.0)   # "inter"
    inter_ref[...] = h1.astype(inter_ref.dtype)

    # layer2: Linear(1024 -> 256) + ReLU, then dropout (eval-mode identity)
    h2 = jnp.maximum(_mm_t(h1.astype(jnp.bfloat16), w2_ref) + b2_ref[...], 0.0)
    # layer3: Linear(256 -> 128) + ReLU
    h3 = jnp.maximum(_mm_t(h2.astype(jnp.bfloat16), w3_ref) + b3_ref[...], 0.0)
    # layer4: Linear(128 -> 64) + ReLU
    h4 = jnp.maximum(_mm_t(h3.astype(jnp.bfloat16), w4_ref) + b4_ref[...], 0.0)

    # layer5 (64 -> 2) + softmax: only d = l1 - l0 matters, so one VPU multiply + lane reduce
    # against (w5[1]-w5[0]) and the sigmoid identity softmax([l0,l1]) = [sig(l0-l1), sig(l1-l0)].
    d = jnp.sum(h4 * w5d_ref[...], axis=-1, keepdims=True) + b5d_ref[...]     # (tB, 1)
    col = lax.broadcasted_iota(jnp.int32, probs_ref.shape, 1)                 # (tB, 2)
    probs_ref[...] = jax.nn.sigmoid(jnp.where(col == 0, -d, d)).astype(probs_ref.dtype)


def _pick_tiling(B, block_b):
    """Generation-aware batch tile + scoped-VMEM limit (conservative unless big VMEM detected)."""
    vmem_bytes = 64 << 20          # conservative default = v7x per-TensorCore VMEM
    try:
        vmem_bytes = int(getattr(pltpu.get_tpu_info(), "vmem_capacity_bytes", vmem_bytes))
    except Exception:
        pass
    big_vmem = vmem_bytes >= (100 << 20)       # v5e / v6e: 128 MiB
    if block_b is None:
        block_b = 2048 if big_vmem else 1024
    vmem_limit = (96 << 20) if big_vmem else (48 << 20)

    tile_b = min(block_b, _round_up(max(B, 1), 8))
    # Keep >=2 grid steps for large B so the "parallel" batch axis can use both v7x TensorCores.
    if B > 512 and (B + tile_b - 1) // tile_b < 2:
        tile_b = _round_up((B + 1) // 2, 8)
    return tile_b, vmem_limit


def continue_model_forward(params, x, *, block_b=None, inter_dtype=jnp.float32):
    """x: (B, 1280) f32 -> (softmax probs (B, 2), inter (B, 1024)), matching ContinueModel.forward."""
    B = x.shape[0]
    tile_b, vmem_limit = _pick_tiling(B, block_b)
    grid = ((B + tile_b - 1) // tile_b,)

    b1 = params["b1"].reshape(1, H1).astype(jnp.float32)
    g = params["ln_g"].reshape(1, H1).astype(jnp.float32)
    be = params["ln_b"].reshape(1, H1).astype(jnp.float32)
    b2 = params["b2"].reshape(1, H2).astype(jnp.float32)
    b3 = params["b3"].reshape(1, H3).astype(jnp.float32)
    b4 = params["b4"].reshape(1, H4).astype(jnp.float32)
    w5f = params["w5"].astype(jnp.float32)
    b5f = params["b5"].astype(jnp.float32)
    w5d = (w5f[1] - w5f[0]).reshape(1, H4)               # (1, 64)  f32
    b5d = (b5f[1] - b5f[0]).reshape(1, 1)                # (1, 1)   f32

    out_shape = (
        jax.ShapeDtypeStruct((B, OUT), jnp.float32),
        jax.ShapeDtypeStruct((B, H1), inter_dtype),
    )

    def build(single_buffer_residents):
        def resident(shape):
            # Same block every grid step -> stays resident in VMEM; single-buffer it
            # (double-buffering a constant-index block just wastes VMEM; w1 alone is 2.5 MiB).
            if single_buffer_residents and hasattr(pl, "Buffered"):
                try:
                    return pl.BlockSpec(shape, lambda i: (0, 0), pipeline_mode=pl.Buffered(1))
                except TypeError:
                    pass
            return pl.BlockSpec(shape, lambda i: (0, 0))

        return pl.pallas_call(
            continue_model_kernel,
            out_shape=out_shape,
            grid=grid,
            in_specs=[
                pl.BlockSpec((tile_b, IN), lambda i: (i, 0)),   # x, f32, batch-tiled (ragged OK)
                resident((H1, IN)), resident((1, H1)), resident((1, H1)), resident((1, H1)),
                resident((H2, H1)), resident((1, H2)),
                resident((H3, H2)), resident((1, H3)),
                resident((H4, H3)), resident((1, H4)),
                resident((1, H4)), resident((1, 1)),
            ],
            out_specs=(
                pl.BlockSpec((tile_b, OUT), lambda i: (i, 0)),
                pl.BlockSpec((tile_b, H1), lambda i: (i, 0)),
            ),
            compiler_params=pltpu.CompilerParams(
                dimension_semantics=("parallel",),
                vmem_limit_bytes=vmem_limit,
            ),
        )

    args = (
        x,
        params["w1"], b1, g, be,
        params["w2"], b2,
        params["w3"], b3,
        params["w4"], b4,
        w5d, b5d,
    )
    try:
        probs, inter = build(True)(*args)
    except Exception:
        # Fallback: this JAX/Mosaic version rejected single-buffered resident blocks.
        probs, inter = build(False)(*args)
    return probs, inter


def reference_forward(params, x):
    """Pure-JAX reference with the same mixed-precision path as the kernel."""
    def mm(a, w):
        return lax.dot_general(
            a.astype(jnp.bfloat16), w,
            dimension_numbers=(((1,), (1,)), ((), ())),
            preferred_element_type=jnp.float32,
        )

    h = mm(x, params["w1"]) + params["b1"][None, :]
    mean = jnp.mean(h, axis=-1, keepdims=True)
    var = jnp.mean((h - mean) ** 2, axis=-1, keepdims=True)
    h = (h - mean) * lax.rsqrt(var + LN_EPS)
    h = h * params["ln_g"][None, :] + params["ln_b"][None, :]
    inter = jnp.maximum(h, 0.0)

    h = jnp.maximum(mm(inter, params["w2"]) + params["b2"][None, :], 0.0)
    h = jnp.maximum(mm(h, params["w3"]) + params["b3"][None, :], 0.0)
    h = jnp.maximum(mm(h, params["w4"]) + params["b4"][None, :], 0.0)

    logits = h @ params["w5"].astype(jnp.float32).T + params["b5"][None, :]
    probs = jax.nn.softmax(logits, axis=-1)
    return probs, inter


if __name__ == "__main__":
    key = jax.random.PRNGKey(0)
    ks = jax.random.split(key, 13)

    B = 16  # small batch for the smoke test
    x = jax.random.normal(ks[0], (B, IN), dtype=jnp.float32)

    def linear_init(kw, kb, fan_in, fan_out):
        bound = 1.0 / (fan_in ** 0.5)
        w = jax.random.uniform(kw, (fan_out, fan_in), jnp.float32, -bound, bound)
        b = jax.random.uniform(kb, (fan_out,), jnp.float32, -bound, bound)
        return w, b

    w1, b1 = linear_init(ks[1], ks[2], IN, H1)
    w2, b2 = linear_init(ks[3], ks[4], H1, H2)
    w3, b3 = linear_init(ks[5], ks[6], H2, H3)
    w4, b4 = linear_init(ks[7], ks[8], H3, H4)
    w5, b5 = linear_init(ks[9], ks[10], H4, OUT)
    ln_g = 1.0 + 0.1 * jax.random.normal(ks[11], (H1,), jnp.float32)
    ln_b = 0.1 * jax.random.normal(ks[12], (H1,), jnp.float32)

    params = dict(
        w1=w1.astype(jnp.bfloat16), b1=b1, ln_g=ln_g, ln_b=ln_b,
        w2=w2.astype(jnp.bfloat16), b2=b2,
        w3=w3.astype(jnp.bfloat16), b3=b3,
        w4=w4.astype(jnp.bfloat16), b4=b4,
        w5=w5.astype(jnp.bfloat16), b5=b5,
    )

    probs, inter = continue_model_forward(params, x)
    jax.block_until_ready((probs, inter))

    ref_probs, ref_inter = reference_forward(params, x)

    assert probs.shape == (B, OUT) and inter.shape == (B, H1)
    assert jnp.allclose(jnp.sum(probs, axis=-1), 1.0, atol=1e-3)
    assert jnp.allclose(probs, ref_probs, atol=1e-2, rtol=1e-2)
    assert jnp.allclose(inter, ref_inter, atol=1e-2, rtol=1e-2)

    print("KERNEL_OK")
</pallas_src>

<mosaic_0001>
module attributes {stable_mosaic.version = 11 : i64} {
  func.func @continue_model_kernel(%arg0: i32, %arg1: memref<16x1280xf32, #tpu.memory_space<vmem>>, %arg2: memref<1024x1280xbf16, #tpu.memory_space<vmem>>, %arg3: memref<1x1024xf32, #tpu.memory_space<vmem>>, %arg4: memref<1x1024xf32, #tpu.memory_space<vmem>>, %arg5: memref<1x1024xf32, #tpu.memory_space<vmem>>, %arg6: memref<256x1024xbf16, #tpu.memory_space<vmem>>, %arg7: memref<1x256xf32, #tpu.memory_space<vmem>>, %arg8: memref<128x256xbf16, #tpu.memory_space<vmem>>, %arg9: memref<1x128xf32, #tpu.memory_space<vmem>>, %arg10: memref<64x128xbf16, #tpu.memory_space<vmem>>, %arg11: memref<1x64xf32, #tpu.memory_space<vmem>>, %arg12: memref<1x64xf32, #tpu.memory_space<vmem>>, %arg13: memref<1x1xf32, #tpu.memory_space<vmem>>, %arg14: memref<16x2xf32, #tpu.memory_space<vmem>>, %arg15: memref<16x1024xf32, #tpu.memory_space<vmem>>) attributes {dimension_semantics = [#tpu.dimension_semantics<parallel>], iteration_bounds = array<i64: 1>, scalar_prefetch = 0 : i64, scratch_operands = 0 : i64, tpu.core_type = #tpu.core_type<tc>, window_params = [{transform_indices = @transform_0, window_bounds = array<i64: 16, 1280>}, {pipeline_mode = #tpu.pipeline_mode<synchronous>, transform_indices = @transform_1, window_bounds = array<i64: 1024, 1280>}, {pipeline_mode = #tpu.pipeline_mode<synchronous>, transform_indices = @transform_2, window_bounds = array<i64: 1, 1024>}, {pipeline_mode = #tpu.pipeline_mode<synchronous>, transform_indices = @transform_3, window_bounds = array<i64: 1, 1024>}, {pipeline_mode = #tpu.pipeline_mode<synchronous>, transform_indices = @transform_4, window_bounds = array<i64: 1, 1024>}, {pipeline_mode = #tpu.pipeline_mode<synchronous>, transform_indices = @transform_5, window_bounds = array<i64: 256, 1024>}, {pipeline_mode = #tpu.pipeline_mode<synchronous>, transform_indices = @transform_6, window_bounds = array<i64: 1, 256>}, {pipeline_mode = #tpu.pipeline_mode<synchronous>, transform_indices = @transform_7, window_bounds = array<i64: 128, 256>}, {pipeline_mode = #tpu.pipeline_mode<synchronous>, transform_indices = @transform_8, window_bounds = array<i64: 1, 128>}, {pipeline_mode = #tpu.pipeline_mode<synchronous>, transform_indices = @transform_9, window_bounds = array<i64: 64, 128>}, {pipeline_mode = #tpu.pipeline_mode<synchronous>, transform_indices = @transform_10, window_bounds = array<i64: 1, 64>}, {pipeline_mode = #tpu.pipeline_mode<synchronous>, transform_indices = @transform_11, window_bounds = array<i64: 1, 64>}, {pipeline_mode = #tpu.pipeline_mode<synchronous>, transform_indices = @transform_12, window_bounds = array<i64: 1, 1>}, {transform_indices = @transform_13, window_bounds = array<i64: 16, 2>}, {transform_indices = @transform_14, window_bounds = array<i64: 16, 1024>}]} {
    %c0 = arith.constant 0 : index
    %c0_0 = arith.constant 0 : index
    %0 = vector.load %arg1[%c0, %c0_0] : memref<16x1280xf32, #tpu.memory_space<vmem>>, vector<16x1280xf32>
    %1 = arith.truncf %0 : vector<16x1280xf32> to vector<16x1280xbf16>
    %c0_1 = arith.constant 0 : index
    %c0_2 = arith.constant 0 : index
    %2 = vector.load %arg2[%c0_1, %c0_2] : memref<1024x1280xbf16, #tpu.memory_space<vmem>>, vector<1024x1280xbf16>
    %cst = arith.constant dense<0.000000e+00> : vector<16x1024xf32>
    %3 = tpu.matmul %1, %2, %cst {dimension_numbers = #tpu.dot_dimension_numbers<[1], [1], [0], [0], [0, 0, 1, 0], [], []>} : vector<16x1280xbf16>, vector<1024x1280xbf16>, vector<16x1024xf32> -> vector<16x1024xf32>
    %c0_3 = arith.constant 0 : index
    %c0_4 = arith.constant 0 : index
    %4 = vector.load %arg3[%c0_3, %c0_4] : memref<1x1024xf32, #tpu.memory_space<vmem>>, vector<1x1024xf32>
    %5 = vector.broadcast %4 : vector<1x1024xf32> to vector<16x1024xf32>
    %6 = arith.addf %3, %5 : vector<16x1024xf32>
    %cst_5 = arith.constant dense<0.000000e+00> : vector<16xf32>
    %7 = vector.multi_reduction <add>, %6, %cst_5 [1] : vector<16x1024xf32> to vector<16xf32>
    %8 = vector.shape_cast %7 : vector<16xf32> to vector<16x1xf32>
    %cst_6 = arith.constant 1.024000e+03 : f32
    %9 = vector.broadcast %cst_6 : f32 to vector<16x1xf32>
    %10 = arith.divf %8, %9 : vector<16x1xf32>
    %11 = arith.mulf %6, %6 : vector<16x1024xf32>
    %cst_7 = arith.constant dense<0.000000e+00> : vector<16xf32>
    %12 = vector.multi_reduction <add>, %11, %cst_7 [1] : vector<16x1024xf32> to vector<16xf32>
    %13 = vector.shape_cast %12 : vector<16xf32> to vector<16x1xf32>
    %cst_8 = arith.constant 1.024000e+03 : f32
    %14 = vector.broadcast %cst_8 : f32 to vector<16x1xf32>
    %15 = arith.divf %13, %14 : vector<16x1xf32>
    %16 = arith.mulf %10, %10 : vector<16x1xf32>
    %17 = arith.subf %15, %16 : vector<16x1xf32>
    %cst_9 = arith.constant 9.99999974E-6 : f32
    %18 = vector.broadcast %cst_9 : f32 to vector<16x1xf32>
    %19 = arith.addf %17, %18 : vector<16x1xf32>
    %20 = math.rsqrt %19 : vector<16x1xf32>
    %21 = vector.broadcast %10 : vector<16x1xf32> to vector<16x1024xf32>
    %22 = arith.subf %6, %21 : vector<16x1024xf32>
    %23 = vector.broadcast %20 : vector<16x1xf32> to vector<16x1024xf32>
    %24 = arith.mulf %22, %23 : vector<16x1024xf32>
    %c0_10 = arith.constant 0 : index
    %c0_11 = arith.constant 0 : index
    %25 = vector.load %arg4[%c0_10, %c0_11] : memref<1x1024xf32, #tpu.memory_space<vmem>>, vector<1x1024xf32>
    %26 = vector.broadcast %25 : vector<1x1024xf32> to vector<16x1024xf32>
    %27 = arith.mulf %24, %26 : vector<16x1024xf32>
    %c0_12 = arith.constant 0 : index
    %c0_13 = arith.constant 0 : index
    %28 = vector.load %arg5[%c0_12, %c0_13] : memref<1x1024xf32, #tpu.memory_space<vmem>>, vector<1x1024xf32>
    %29 = vector.broadcast %28 : vector<1x1024xf32> to vector<16x1024xf32>
    %30 = arith.addf %27, %29 : vector<16x1024xf32>
    %cst_14 = arith.constant 0.000000e+00 : f32
    %31 = vector.broadcast %cst_14 : f32 to vector<16x1024xf32>
    %32 = arith.maximumf %30, %31 : vector<16x1024xf32>
    %c0_15 = arith.constant 0 : index
    %c0_16 = arith.constant 0 : index
    %33 = vector.load %arg15[%c0_15, %c0_16] : memref<16x1024xf32, #tpu.memory_space<vmem>>, vector<16x1024xf32>
    tpu.vector_store %arg15[%c0_15, %c0_16], %32 {strides = array<i32>} : memref<16x1024xf32, #tpu.memory_space<vmem>>, vector<16x1024xf32>,
    %34 = arith.truncf %32 : vector<16x1024xf32> to vector<16x1024xbf16>
    %c0_17 = arith.constant 0 : index
    %c0_18 = arith.constant 0 : index
    %35 = vector.load %arg6[%c0_17, %c0_18] : memref<256x1024xbf16, #tpu.memory_space<vmem>>, vector<256x1024xbf16>
    %cst_19 = arith.constant dense<0.000000e+00> : vector<16x256xf32>
    %36 = tpu.matmul %34, %35, %cst_19 {dimension_numbers = #tpu.dot_dimension_numbers<[1], [1], [0], [0], [0, 0, 1, 0], [], []>} : vector<16x1024xbf16>, vector<256x1024xbf16>, vector<16x256xf32> -> vector<16x256xf32>
    %c0_20 = arith.constant 0 : index
    %c0_21 = arith.constant 0 : index
    %37 = vector.load %arg7[%c0_20, %c0_21] : memref<1x256xf32, #tpu.memory_space<vmem>>, vector<1x256xf32>
    %38 = vector.broadcast %37 : vector<1x256xf32> to vector<16x256xf32>
    %39 = arith.addf %36, %38 : vector<16x256xf32>
    %cst_22 = arith.constant 0.000000e+00 : f32
    %40 = vector.broadcast %cst_22 : f32 to vector<16x256xf32>
    %41 = arith.maximumf %39, %40 : vector<16x256xf32>
    %42 = arith.truncf %41 : vector<16x256xf32> to vector<16x256xbf16>
    %c0_23 = arith.constant 0 : index
    %c0_24 = arith.constant 0 : index
    %43 = vector.load %arg8[%c0_23, %c0_24] : memref<128x256xbf16, #tpu.memory_space<vmem>>, vector<128x256xbf16>
    %cst_25 = arith.constant dense<0.000000e+00> : vector<16x128xf32>
    %44 = tpu.matmul %42, %43, %cst_25 {dimension_numbers = #tpu.dot_dimension_numbers<[1], [1], [0], [0], [0, 0, 1, 0], [], []>} : vector<16x256xbf16>, vector<128x256xbf16>, vector<16x128xf32> -> vector<16x128xf32>
    %c0_26 = arith.constant 0 : index
    %c0_27 = arith.constant 0 : index
    %45 = vector.load %arg9[%c0_26, %c0_27] : memref<1x128xf32, #tpu.memory_space<vmem>>, vector<1x128xf32>
    %46 = vector.broadcast %45 : vector<1x128xf32> to vector<16x128xf32>
    %47 = arith.addf %44, %46 : vector<16x128xf32>
    %cst_28 = arith.constant 0.000000e+00 : f32
    %48 = vector.broadcast %cst_28 : f32 to vector<16x128xf32>
    %49 = arith.maximumf %47, %48 : vector<16x128xf32>
    %50 = arith.truncf %49 : vector<16x128xf32> to vector<16x128xbf16>
    %c0_29 = arith.constant 0 : index
    %c0_30 = arith.constant 0 : index
    %51 = vector.load %arg10[%c0_29, %c0_30] : memref<64x128xbf16, #tpu.memory_space<vmem>>, vector<64x128xbf16>
    %cst_31 = arith.constant dense<0.000000e+00> : vector<16x64xf32>
    %52 = tpu.matmul %50, %51, %cst_31 {dimension_numbers = #tpu.dot_dimension_numbers<[1], [1], [0], [0], [0, 0, 1, 0], [], []>} : vector<16x128xbf16>, vector<64x128xbf16>, vector<16x64xf32> -> vector<16x64xf32>
    %c0_32 = arith.constant 0 : index
    %c0_33 = arith.constant 0 : index
    %53 = vector.load %arg11[%c0_32, %c0_33] : memref<1x64xf32, #tpu.memory_space<vmem>>, vector<1x64xf32>
    %54 = vector.broadcast %53 : vector<1x64xf32> to vector<16x64xf32>
    %55 = arith.addf %52, %54 : vector<16x64xf32>
    %cst_34 = arith.constant 0.000000e+00 : f32
    %56 = vector.broadcast %cst_34 : f32 to vector<16x64xf32>
    %57 = arith.maximumf %55, %56 : vector<16x64xf32>
    %c0_35 = arith.constant 0 : index
    %c0_36 = arith.constant 0 : index
    %58 = vector.load %arg12[%c0_35, %c0_36] : memref<1x64xf32, #tpu.memory_space<vmem>>, vector<1x64xf32>
    %59 = vector.broadcast %58 : vector<1x64xf32> to vector<16x64xf32>
    %60 = arith.mulf %57, %59 : vector<16x64xf32>
    %cst_37 = arith.constant dense<0.000000e+00> : vector<16xf32>
    %61 = vector.multi_reduction <add>, %60, %cst_37 [1] : vector<16x64xf32> to vector<16xf32>
    %62 = vector.shape_cast %61 : vector<16xf32> to vector<16x1xf32>
    %c0_38 = arith.constant 0 : index
    %c0_39 = arith.constant 0 : index
    %63 = vector.load %arg13[%c0_38, %c0_39] : memref<1x1xf32, #tpu.memory_space<vmem>>, vector<1x1xf32>
    %64 = vector.broadcast %63 : vector<1x1xf32> to vector<16x1xf32>
    %65 = arith.addf %62, %64 : vector<16x1xf32>
    %66 = tpu.iota {dimensions = array<i32: 1>} : vector<16x2xi32>
    %c0_i32 = arith.constant 0 : i32
    %67 = vector.broadcast %c0_i32 : i32 to vector<16x2xi32>
    %68 = arith.cmpi eq, %66, %67 : vector<16x2xi32>
    %cst_40 = arith.constant 0.000000e+00 : f32
    %69 = vector.broadcast %cst_40 : f32 to vector<16x1xf32>
    %70 = arith.subf %69, %65 : vector<16x1xf32>
    %71 = vector.shape_cast %70 : vector<16x1xf32> to vector<16x1xf32>
    %72 = vector.broadcast %71 : vector<16x1xf32> to vector<16x2xf32>
    %73 = vector.shape_cast %65 : vector<16x1xf32> to vector<16x1xf32>
    %74 = vector.broadcast %73 : vector<16x1xf32> to vector<16x2xf32>
    %75 = arith.select %68, %72, %74 : vector<16x2xi1>, vector<16x2xf32>
    %76 = arith.negf %75 : vector<16x2xf32>
    %77 = math.exp %76 : vector<16x2xf32>
    %cst_41 = arith.constant 1.000000e+00 : f32
    %78 = vector.broadcast %cst_41 : f32 to vector<16x2xf32>
    %79 = arith.addf %78, %77 : vector<16x2xf32>
    %80 = arith.divf %78, %79 : vector<16x2xf32>
    %c0_42 = arith.constant 0 : index
    %c0_43 = arith.constant 0 : index
    %81 = vector.load %arg14[%c0_42, %c0_43] : memref<16x2xf32, #tpu.memory_space<vmem>>, vector<16x2xf32>
    tpu.vector_store %arg14[%c0_42, %c0_43], %80 {strides = array<i32>} : memref<16x2xf32, #tpu.memory_space<vmem>>, vector<16x2xf32>,
    return
  }
  func.func @transform_0(%arg0: i32) -> (i32, i32) {
    %c0_i32 = arith.constant 0 : i32
    %c0_i32_0 = arith.constant 0 : i32
    return %arg0, %c0_i32 : i32, i32
  }
  func.func @transform_1(%arg0: i32) -> (i32, i32) {
    %c0_i32 = arith.constant 0 : i32
    %c0_i32_0 = arith.constant 0 : i32
    %c0_i32_1 = arith.constant 0 : i32
    return %c0_i32, %c0_i32_0 : i32, i32
  }
  func.func @transform_2(%arg0: i32) -> (i32, i32) {
    %c0_i32 = arith.constant 0 : i32
    %c0_i32_0 = arith.constant 0 : i32
    %c0_i32_1 = arith.constant 0 : i32
    return %c0_i32, %c0_i32_0 : i32, i32
  }
  func.func @transform_3(%arg0: i32) -> (i32, i32) {
    %c0_i32 = arith.constant 0 : i32
    %c0_i32_0 = arith.constant 0 : i32
    %c0_i32_1 = arith.constant 0 : i32
    return %c0_i32, %c0_i32_0 : i32, i32
  }
  func.func @transform_4(%arg0: i32) -> (i32, i32) {
    %c0_i32 = arith.constant 0 : i32
    %c0_i32_0 = arith.constant 0 : i32
    %c0_i32_1 = arith.constant 0 : i32
    return %c0_i32, %c0_i32_0 : i32, i32
  }
  func.func @transform_5(%arg0: i32) -> (i32, i32) {
    %c0_i32 = arith.constant 0 : i32
    %c0_i32_0 = arith.constant 0 : i32
    %c0_i32_1 = arith.constant 0 : i32
    return %c0_i32, %c0_i32_0 : i32, i32
  }
  func.func @transform_6(%arg0: i32) -> (i32, i32) {
    %c0_i32 = arith.constant 0 : i32
    %c0_i32_0 = arith.constant 0 : i32
    %c0_i32_1 = arith.constant 0 : i32
    return %c0_i32, %c0_i32_0 : i32, i32
  }
  func.func @transform_7(%arg0: i32) -> (i32, i32) {
    %c0_i32 = arith.constant 0 : i32
    %c0_i32_0 = arith.constant 0 : i32
    %c0_i32_1 = arith.constant 0 : i32
    return %c0_i32, %c0_i32_0 : i32, i32
  }
  func.func @transform_8(%arg0: i32) -> (i32, i32) {
    %c0_i32 = arith.constant 0 : i32
    %c0_i32_0 = arith.constant 0 : i32
    %c0_i32_1 = arith.constant 0 : i32
    return %c0_i32, %c0_i32_0 : i32, i32
  }
  func.func @transform_9(%arg0: i32) -> (i32, i32) {
    %c0_i32 = arith.constant 0 : i32
    %c0_i32_0 = arith.constant 0 : i32
    %c0_i32_1 = arith.constant 0 : i32
    return %c0_i32, %c0_i32_0 : i32, i32
  }
  func.func @transform_10(%arg0: i32) -> (i32, i32) {
    %c0_i32 = arith.constant 0 : i32
    %c0_i32_0 = arith.constant 0 : i32
    %c0_i32_1 = arith.constant 0 : i32
    return %c0_i32, %c0_i32_0 : i32, i32
  }
  func.func @transform_11(%arg0: i32) -> (i32, i32) {
    %c0_i32 = arith.constant 0 : i32
    %c0_i32_0 = arith.constant 0 : i32
    %c0_i32_1 = arith.constant 0 : i32
    return %c0_i32, %c0_i32_0 : i32, i32
  }
  func.func @transform_12(%arg0: i32) -> (i32, i32) {
    %c0_i32 = arith.constant 0 : i32
    %c0_i32_0 = arith.constant 0 : i32
    %c0_i32_1 = arith.constant 0 : i32
    return %c0_i32, %c0_i32_0 : i32, i32
  }
  func.func @transform_13(%arg0: i32) -> (i32, i32) {
    %c0_i32 = arith.constant 0 : i32
    %c0_i32_0 = arith.constant 0 : i32
    return %arg0, %c0_i32 : i32, i32
  }
  func.func @transform_14(%arg0: i32) -> (i32, i32) {
    %c0_i32 = arith.constant 0 : i32
    %c0_i32_0 = arith.constant 0 : i32
    return %arg0, %c0_i32 : i32, i32
  }
}

module attributes {stable_mosaic.version = 11 : i64} {
  func.func @continue_model_kernel(%arg0: i32, %arg1: memref<16x1280xf32, #tpu.memory_space<vmem>>, %arg2: memref<1024x1280xbf16, #tpu.memory_space<vmem>>, %arg3: memref<1x1024xf32, #tpu.memory_space<vmem>>, %arg4: memref<1x1024xf32, #tpu.memory_space<vmem>>, %arg5: memref<1x1024xf32, #tpu.memory_space<vmem>>, %arg6: memref<256x1024xbf16, #tpu.memory_space<vmem>>, %arg7: memref<1x256xf32, #tpu.memory_space<vmem>>, %arg8: memref<128x256xbf16, #tpu.memory_space<vmem>>, %arg9: memref<1x128xf32, #tpu.memory_space<vmem>>, %arg10: memref<64x128xbf16, #tpu.memory_space<vmem>>, %arg11: memref<1x64xf32, #tpu.memory_space<vmem>>, %arg12: memref<1x64xf32, #tpu.memory_space<vmem>>, %arg13: memref<1x1xf32, #tpu.memory_space<vmem>>, %arg14: memref<16x2xf32, #tpu.memory_space<vmem>>, %arg15: memref<16x1024xf32, #tpu.memory_space<vmem>>) attributes {dimension_semantics = [#tpu.dimension_semantics<parallel>], iteration_bounds = array<i64: 1>, scalar_prefetch = 0 : i64, scratch_operands = 0 : i64, tpu.core_type = #tpu.core_type<tc>, window_params = [{transform_indices = @transform_0, window_bounds = array<i64: 16, 1280>}, {pipeline_mode = #tpu.pipeline_mode<synchronous>, transform_indices = @transform_1, window_bounds = array<i64: 1024, 1280>}, {pipeline_mode = #tpu.pipeline_mode<synchronous>, transform_indices = @transform_2, window_bounds = array<i64: 1, 1024>}, {pipeline_mode = #tpu.pipeline_mode<synchronous>, transform_indices = @transform_3, window_bounds = array<i64: 1, 1024>}, {pipeline_mode = #tpu.pipeline_mode<synchronous>, transform_indices = @transform_4, window_bounds = array<i64: 1, 1024>}, {pipeline_mode = #tpu.pipeline_mode<synchronous>, transform_indices = @transform_5, window_bounds = array<i64: 256, 1024>}, {pipeline_mode = #tpu.pipeline_mode<synchronous>, transform_indices = @transform_6, window_bounds = array<i64: 1, 256>}, {pipeline_mode = #tpu.pipeline_mode<synchronous>, transform_indices = @transform_7, window_bounds = array<i64: 128, 256>}, {pipeline_mode = #tpu.pipeline_mode<synchronous>, transform_indices = @transform_8, window_bounds = array<i64: 1, 128>}, {pipeline_mode = #tpu.pipeline_mode<synchronous>, transform_indices = @transform_9, window_bounds = array<i64: 64, 128>}, {pipeline_mode = #tpu.pipeline_mode<synchronous>, transform_indices = @transform_10, window_bounds = array<i64: 1, 64>}, {pipeline_mode = #tpu.pipeline_mode<synchronous>, transform_indices = @transform_11, window_bounds = array<i64: 1, 64>}, {pipeline_mode = #tpu.pipeline_mode<synchronous>, transform_indices = @transform_12, window_bounds = array<i64: 1, 1>}, {transform_indices = @transform_13, window_bounds = array<i64: 16, 2>}, {transform_indices = @transform_14, window_bounds = array<i64: 16, 1024>}]} {
    %c0 = arith.constant 0 : index
    %c0_0 = arith.constant 0 : index
    %0 = vector.load %arg1[%c0, %c0_0] : memref<16x1280xf32, #tpu.memory_space<vmem>>, vector<16x1280xf32>
    %1 = arith.truncf %0 : vector<16x1280xf32> to vector<16x1280xbf16>
    %c0_1 = arith.constant 0 : index
    %c0_2 = arith.constant 0 : index
    %2 = vector.load %arg2[%c0_1, %c0_2] : memref<1024x1280xbf16, #tpu.memory_space<vmem>>, vector<1024x1280xbf16>
    %cst = arith.constant dense<0.000000e+00> : vector<16x1024xf32>
    %3 = tpu.matmul %1, %2, %cst {dimension_numbers = #tpu.dot_dimension_numbers<[1], [1], [0], [0], [0, 0, 1, 0], [], []>} : vector<16x1280xbf16>, vector<1024x1280xbf16>, vector<16x1024xf32> -> vector<16x1024xf32>
    %c0_3 = arith.constant 0 : index
    %c0_4 = arith.constant 0 : index
    %4 = vector.load %arg3[%c0_3, %c0_4] : memref<1x1024xf32, #tpu.memory_space<vmem>>, vector<1x1024xf32>
    %5 = vector.broadcast %4 : vector<1x1024xf32> to vector<16x1024xf32>
    %6 = arith.addf %3, %5 : vector<16x1024xf32>
    %cst_5 = arith.constant dense<0.000000e+00> : vector<16xf32>
    %7 = vector.multi_reduction <add>, %6, %cst_5 [1] : vector<16x1024xf32> to vector<16xf32>
    %8 = vector.shape_cast %7 : vector<16xf32> to vector<16x1xf32>
    %cst_6 = arith.constant 1.024000e+03 : f32
    %9 = vector.broadcast %cst_6 : f32 to vector<16x1xf32>
    %10 = arith.divf %8, %9 : vector<16x1xf32>
    %11 = arith.mulf %6, %6 : vector<16x1024xf32>
    %cst_7 = arith.constant dense<0.000000e+00> : vector<16xf32>
    %12 = vector.multi_reduction <add>, %11, %cst_7 [1] : vector<16x1024xf32> to vector<16xf32>
    %13 = vector.shape_cast %12 : vector<16xf32> to vector<16x1xf32>
    %cst_8 = arith.constant 1.024000e+03 : f32
    %14 = vector.broadcast %cst_8 : f32 to vector<16x1xf32>
    %15 = arith.divf %13, %14 : vector<16x1xf32>
    %16 = arith.mulf %10, %10 : vector<16x1xf32>
    %17 = arith.subf %15, %16 : vector<16x1xf32>
    %cst_9 = arith.constant 9.99999974E-6 : f32
    %18 = vector.broadcast %cst_9 : f32 to vector<16x1xf32>
    %19 = arith.addf %17, %18 : vector<16x1xf32>
    %20 = math.rsqrt %19 : vector<16x1xf32>
    %21 = vector.broadcast %10 : vector<16x1xf32> to vector<16x1024xf32>
    %22 = arith.subf %6, %21 : vector<16x1024xf32>
    %23 = vector.broadcast %20 : vector<16x1xf32> to vector<16x1024xf32>
    %24 = arith.mulf %22, %23 : vector<16x1024xf32>
    %c0_10 = arith.constant 0 : index
    %c0_11 = arith.constant 0 : index
    %25 = vector.load %arg4[%c0_10, %c0_11] : memref<1x1024xf32, #tpu.memory_space<vmem>>, vector<1x1024xf32>
    %26 = vector.broadcast %25 : vector<1x1024xf32> to vector<16x1024xf32>
    %27 = arith.mulf %24, %26 : vector<16x1024xf32>
    %c0_12 = arith.constant 0 : index
    %c0_13 = arith.constant 0 : index
    %28 = vector.load %arg5[%c0_12, %c0_13] : memref<1x1024xf32, #tpu.memory_space<vmem>>, vector<1x1024xf32>
    %29 = vector.broadcast %28 : vector<1x1024xf32> to vector<16x1024xf32>
    %30 = arith.addf %27, %29 : vector<16x1024xf32>
    %cst_14 = arith.constant 0.000000e+00 : f32
    %31 = vector.broadcast %cst_14 : f32 to vector<16x1024xf32>
    %32 = arith.maximumf %30, %31 : vector<16x1024xf32>
    %c0_15 = arith.constant 0 : index
    %c0_16 = arith.constant 0 : index
    %33 = vector.load %arg15[%c0_15, %c0_16] : memref<16x1024xf32, #tpu.memory_space<vmem>>, vector<16x1024xf32>
    tpu.vector_store %arg15[%c0_15, %c0_16], %32 {strides = array<i32>} : memref<16x1024xf32, #tpu.memory_space<vmem>>, vector<16x1024xf32>,
    %34 = arith.truncf %32 : vector<16x1024xf32> to vector<16x1024xbf16>
    %c0_17 = arith.constant 0 : index
    %c0_18 = arith.constant 0 : index
    %35 = vector.load %arg6[%c0_17, %c0_18] : memref<256x1024xbf16, #tpu.memory_space<vmem>>, vector<256x1024xbf16>
    %cst_19 = arith.constant dense<0.000000e+00> : vector<16x256xf32>
    %36 = tpu.matmul %34, %35, %cst_19 {dimension_numbers = #tpu.dot_dimension_numbers<[1], [1], [0], [0], [0, 0, 1, 0], [], []>} : vector<16x1024xbf16>, vector<256x1024xbf16>, vector<16x256xf32> -> vector<16x256xf32>
    %c0_20 = arith.constant 0 : index
    %c0_21 = arith.constant 0 : index
    %37 = vector.load %arg7[%c0_20, %c0_21] : memref<1x256xf32, #tpu.memory_space<vmem>>, vector<1x256xf32>
    %38 = vector.broadcast %37 : vector<1x256xf32> to vector<16x256xf32>
    %39 = arith.addf %36, %38 : vector<16x256xf32>
    %cst_22 = arith.constant 0.000000e+00 : f32
    %40 = vector.broadcast %cst_22 : f32 to vector<16x256xf32>
    %41 = arith.maximumf %39, %40 : vector<16x256xf32>
    %42 = arith.truncf %41 : vector<16x256xf32> to vector<16x256xbf16>
    %c0_23 = arith.constant 0 : index
    %c0_24 = arith.constant 0 : index
    %43 = vector.load %arg8[%c0_23, %c0_24] : memref<128x256xbf16, #tpu.memory_space<vmem>>, vector<128x256xbf16>
    %cst_25 = arith.constant dense<0.000000e+00> : vector<16x128xf32>
    %44 = tpu.matmul %42, %43, %cst_25 {dimension_numbers = #tpu.dot_dimension_numbers<[1], [1], [0], [0], [0, 0, 1, 0], [], []>} : vector<16x256xbf16>, vector<128x256xbf16>, vector<16x128xf32> -> vector<16x128xf32>
    %c0_26 = arith.constant 0 : index
    %c0_27 = arith.constant 0 : index
    %45 = vector.load %arg9[%c0_26, %c0_27] : memref<1x128xf32, #tpu.memory_space<vmem>>, vector<1x128xf32>
    %46 = vector.broadcast %45 : vector<1x128xf32> to vector<16x128xf32>
    %47 = arith.addf %44, %46 : vector<16x128xf32>
    %cst_28 = arith.constant 0.000000e+00 : f32
    %48 = vector.broadcast %cst_28 : f32 to vector<16x128xf32>
    %49 = arith.maximumf %47, %48 : vector<16x128xf32>
    %50 = arith.truncf %49 : vector<16x128xf32> to vector<16x128xbf16>
    %c0_29 = arith.constant 0 : index
    %c0_30 = arith.constant 0 : index
    %51 = vector.load %arg10[%c0_29, %c0_30] : memref<64x128xbf16, #tpu.memory_space<vmem>>, vector<64x128xbf16>
    %cst_31 = arith.constant dense<0.000000e+00> : vector<16x64xf32>
    %52 = tpu.matmul %50, %51, %cst_31 {dimension_numbers = #tpu.dot_dimension_numbers<[1], [1], [0], [0], [0, 0, 1, 0], [], []>} : vector<16x128xbf16>, vector<64x128xbf16>, vector<16x64xf32> -> vector<16x64xf32>
    %c0_32 = arith.constant 0 : index
    %c0_33 = arith.constant 0 : index
    %53 = vector.load %arg11[%c0_32, %c0_33] : memref<1x64xf32, #tpu.memory_space<vmem>>, vector<1x64xf32>
    %54 = vector.broadcast %53 : vector<1x64xf32> to vector<16x64xf32>
    %55 = arith.addf %52, %54 : vector<16x64xf32>
    %cst_34 = arith.constant 0.000000e+00 : f32
    %56 = vector.broadcast %cst_34 : f32 to vector<16x64xf32>
    %57 = arith.maximumf %55, %56 : vector<16x64xf32>
    %c0_35 = arith.constant 0 : index
    %c0_36 = arith.constant 0 : index
    %58 = vector.load %arg12[%c0_35, %c0_36] : memref<1x64xf32, #tpu.memory_space<vmem>>, vector<1x64xf32>
    %59 = vector.broadcast %58 : vector<1x64xf32> to vector<16x64xf32>
    %60 = arith.mulf %57, %59 : vector<16x64xf32>
    %cst_37 = arith.constant dense<0.000000e+00> : vector<16xf32>
    %61 = vector.multi_reduction <add>, %60, %cst_37 [1] : vector<16x64xf32> to vector<16xf32>
    %62 = vector.shape_cast %61 : vector<16xf32> to vector<16x1xf32>
    %c0_38 = arith.constant 0 : index
    %c0_39 = arith.constant 0 : index
    %63 = vector.load %arg13[%c0_38, %c0_39] : memref<1x1xf32, #tpu.memory_space<vmem>>, vector<1x1xf32>
    %64 = vector.broadcast %63 : vector<1x1xf32> to vector<16x1xf32>
    %65 = arith.addf %62, %64 : vector<16x1xf32>
    %66 = tpu.iota {dimensions = array<i32: 1>} : vector<16x2xi32>
    %c0_i32 = arith.constant 0 : i32
    %67 = vector.broadcast %c0_i32 : i32 to vector<16x2xi32>
    %68 = arith.cmpi eq, %66, %67 : vector<16x2xi32>
    %cst_40 = arith.constant 0.000000e+00 : f32
    %69 = vector.broadcast %cst_40 : f32 to vector<16x1xf32>
    %70 = arith.subf %69, %65 : vector<16x1xf32>
    %71 = vector.shape_cast %70 : vector<16x1xf32> to vector<16x1xf32>
    %72 = vector.broadcast %71 : vector<16x1xf32> to vector<16x2xf32>
    %73 = vector.shape_cast %65 : vector<16x1xf32> to vector<16x1xf32>
    %74 = vector.broadcast %73 : vector<16x1xf32> to vector<16x2xf32>
    %75 = arith.select %68, %72, %74 : vector<16x2xi1>, vector<16x2xf32>
    %76 = arith.negf %75 : vector<16x2xf32>
    %77 = math.exp %76 : vector<16x2xf32>
    %cst_41 = arith.constant 1.000000e+00 : f32
    %78 = vector.broadcast %cst_41 : f32 to vector<16x2xf32>
    %79 = arith.addf %78, %77 : vector<16x2xf32>
    %80 = arith.divf %78, %79 : vector<16x2xf32>
    %c0_42 = arith.constant 0 : index
    %c0_43 = arith.constant 0 : index
    %81 = vector.load %arg14[%c0_42, %c0_43] : memref<16x2xf32, #tpu.memory_space<vmem>>, vector<16x2xf32>
    tpu.vector_store %arg14[%c0_42, %c0_43], %80 {strides = array<i32>} : memref<16x2xf32, #tpu.memory_space<vmem>>, vector<16x2xf32>,
    return
  }
  func.func @transform_0(%arg0: i32) -> (i32, i32) {
    %c0_i32 = arith.constant 0 : i32
    %c0_i32_0 = arith.constant 0 : i32
    return %arg0, %c0_i32 : i32, i32
  }
  func.func @transform_1(%arg0: i32) -> (i32, i32) {
    %c0_i32 = arith.constant 0 : i32
    %c0_i32_0 = arith.constant 0 : i32
    %c0_i32_1 = arith.constant 0 : i32
    return %c0_i32, %c0_i32_0 : i32, i32
  }
  func.func @transform_2(%arg0: i32) -> (i32, i32) {
    %c0_i32 = arith.constant 0 : i32
    %c0_i32_0 = arith.constant 0 : i32
    %c0_i32_1 = arith.constant 0 : i32
    return %c0_i32, %c0_i32_0 : i32, i32
  }
  func.func @transform_3(%arg0: i32) -> (i32, i32) {
    %c0_i32 = arith.constant 0 : i32
    %c0_i32_0 = arith.constant 0 : i32
    %c0_i32_1 = arith.constant 0 : i32
    return %c0_i32, %c0_i32_0 : i32, i32
  }
  func.func @transform_4(%arg0: i32) -> (i32, i32) {
    %c0_i32 = arith.constant 0 : i32
    %c0_i32_0 = arith.constant 0 : i32
    %c0_i32_1 = arith.constant 0 : i32
    return %c0_i32, %c0_i32_0 : i32, i32
  }
  func.func @transform_5(%arg0: i32) -> (i32, i32) {
    %c0_i32 = arith.constant 0 : i32
    %c0_i32_0 = arith.constant 0 : i32
    %c0_i32_1 = arith.constant 0 : i32
    return %c0_i32, %c0_i32_0 : i32, i32
  }
  func.func @transform_6(%arg0: i32) -> (i32, i32) {
    %c0_i32 = arith.constant 0 : i32
    %c0_i32_0 = arith.constant 0 : i32
    %c0_i32_1 = arith.constant 0 : i32
    return %c0_i32, %c0_i32_0 : i32, i32
  }
  func.func @transform_7(%arg0: i32) -> (i32, i32) {
    %c0_i32 = arith.constant 0 : i32
    %c0_i32_0 = arith.constant 0 : i32
    %c0_i32_1 = arith.constant 0 : i32
    return %c0_i32, %c0_i32_0 : i32, i32
  }
  func.func @transform_8(%arg0: i32) -> (i32, i32) {
    %c0_i32 = arith.constant 0 : i32
    %c0_i32_0 = arith.constant 0 : i32
    %c0_i32_1 = arith.constant 0 : i32
    return %c0_i32, %c0_i32_0 : i32, i32
  }
  func.func @transform_9(%arg0: i32) -> (i32, i32) {
    %c0_i32 = arith.constant 0 : i32
    %c0_i32_0 = arith.constant 0 : i32
    %c0_i32_1 = arith.constant 0 : i32
    return %c0_i32, %c0_i32_0 : i32, i32
  }
  func.func @transform_10(%arg0: i32) -> (i32, i32) {
    %c0_i32 = arith.constant 0 : i32
    %c0_i32_0 = arith.constant 0 : i32
    %c0_i32_1 = arith.constant 0 : i32
    return %c0_i32, %c0_i32_0 : i32, i32
  }
  func.func @transform_11(%arg0: i32) -> (i32, i32) {
    %c0_i32 = arith.constant 0 : i32
    %c0_i32_0 = arith.constant 0 : i32
    %c0_i32_1 = arith.constant 0 : i32
    return %c0_i32, %c0_i32_0 : i32, i32
  }
  func.func @transform_12(%arg0: i32) -> (i32, i32) {
    %c0_i32 = arith.constant 0 : i32
    %c0_i32_0 = arith.constant 0 : i32
    %c0_i32_1 = arith.constant 0 : i32
    return %c0_i32, %c0_i32_0 : i32, i32
  }
  func.func @transform_13(%arg0: i32) -> (i32, i32) {
    %c0_i32 = arith.constant 0 : i32
    %c0_i32_0 = arith.constant 0 : i32
    return %arg0, %c0_i32 : i32, i32
  }
  func.func @transform_14(%arg0: i32) -> (i32, i32) {
    %c0_i32 = arith.constant 0 : i32
    %c0_i32_0 = arith.constant 0 : i32
    return %arg0, %c0_i32 : i32, i32
  }
}

</mosaic_0001>

<bundles_post_ra>
// kernel: tpu_custom_call.1
= control target key start
LH: loop header
LB: loop body
LE: loop exit
PB: predicated region body
PF: predicated region fallthrough
CT: control target
= control target key end

     0   :  { %s9356_s0 = inlined_call_operand.hbm [shape: f32[16,1280], index: 0, kind: input, shape index: {}]   ;;  %s9357_s1 = inlined_call_operand.hbm [shape: bf16[1024,1280], index: 1, kind: input, shape index: {}]   ;;  %s9358_s2 = inlined_call_operand.hbm [shape: f32[1,1024], index: 2, kind: input, shape index: {}]   ;;  %s9359_s3 = inlined_call_operand.hbm [shape: f32[1,1024], index: 3, kind: input, shape index: {}]   ;;  %s9360_s4 = inlined_call_operand.hbm [shape: f32[1,1024], index: 4, kind: input, shape index: {}]   ;;  %s9361_s5 = inlined_call_operand.hbm [shape: bf16[256,1024], index: 5, kind: input, shape index: {}]   ;;  %s9362_s6 = inlined_call_operand.hbm [shape: f32[1,256], index: 6, kind: input, shape index: {}]   ;;  %s9363_s7 = inlined_call_operand.hbm [shape: bf16[128,256], index: 7, kind: input, shape index: {}]   ;;  %s9364_s8 = inlined_call_operand.hbm [shape: f32[1,128], index: 8, kind: input, shape index: {}]   ;;  %s9365_s9 = inlined_call_operand.hbm [shape: bf16[64,128], index: 9, kind: input, shape index: {}]   ;;  %s9366_s10 = inlined_call_operand.hbm [shape: f32[1,64], index: 10, kind: input, shape index: {}]   ;;  %s9367_s11 = inlined_call_operand.hbm [shape: f32[1,64], index: 11, kind: input, shape index: {}]   ;;  %s9368_s12 = inlined_call_operand.<no memory space> [shape: f32[1,1], index: 12, kind: input, shape index: {}]   ;;  %s9369_s13 = inlined_call_operand.vmem [shape: f32[16,2], index: 13, kind: output, shape index: {0}]   ;;  %s9370_s14 = inlined_call_operand.hbm [shape: f32[16,1024], index: 14, kind: output, shape index: {1}]  }
   0x1   :  { %v20_v0 = vstv %s9368_s12 }
   0x2   :  { %21 = vst [vmem:[#allocation2] sm:$0x1] %v20_v0 }
   0x3   :  { %22 = vsyncpa [#allocation4], 0 }
   0x4   :  { %23 = vsyncpa [#allocation7], 0 }
   0x5   :  { %24 = vsyncpa [#allocation10], 0 }
   0x6   :  { %25 = vsyncpa [#allocation13], 0 }
   0x7   :  { %26 = vsyncpa [#allocation16], 0 }
   0x8   :  { %27 = vsyncpa [#allocation19], 0 }
   0x9   :  { %28 = vsyncpa [#allocation22], 0 }
   0xa   :  { %29 = vsyncpa [#allocation5], 0  ;;  %s8744_s15 = smov [#allocation6]   ;;  %s8442_s19 = scalar_lea.hbm %s9357_s1, 81920 }
   0xb   :  { %s47_s16 = sshll.u32 %s8744_s15, 4  ;;  %p8443_p0 = scmp.ne.s32.totalorder %s9357_s1, %s8442_s19  ;;  %s48_s16 = int_to_ptr.vmem [resolvable:$true] %s47_s16 }
   0xc   :  { %p8446_p1 = scmp.lt.u32.totalorder %s8442_s19, %s9357_s1 }
   0xe   :  { %p8448_p2 = pnand %p8446_p1, %p8443_p0 }
  0x10   :  { %8451 = shalt.err (!%p8448_p2)
}
  0x11   :  { %s8452_s23 = scalar_lea.vmem %s48_s16, 81920  ;;  %p8457_p4 = scmp.lt.s32.totalorder %s48_s16, %s48_s16 }
  0x12   :  { %p8453_p3 = scmp.ne.s32.totalorder %s48_s16, %s8452_s23  ;;  %p8458_p5 = scmp.lt.s32.totalorder %s8452_s23, %s8452_s23 }
  0x14   :  { %p8459_p6 = por %p8458_p5, %p8457_p4 }
  0x16   :  { %p8460_p7 = pnand %p8459_p6, %p8453_p3 }
  0x18   :  { %8463 = shalt.err (!%p8460_p7)
}
  0x19   :  { %s8745_s24 = smov 640   ;;  %s8746_s25 = smov 40  }
  0x1a   :  { %53 = dma.hbm_to_vmem [thread:$0]  %s9357_s1, 81920, %s48_s16, [#allocation7], %s8745_s24, %s8745_s24, %s8746_s25  }
  0x1b   :  { %s8747_s28 = smov [#allocation9]   ;;  %s8748_s30 = smov [#allocation12]  }
  0x1c   :  { %s70_s29 = sshll.u32 %s8747_s28, 4  ;;  %s89_s15 = sshll.u32 %s8748_s30, 4  ;;  %s71_s29 = int_to_ptr.vmem [resolvable:$true] %s70_s29  ;;  %s90_s15 = int_to_ptr.vmem [resolvable:$true] %s89_s15 }
  0x1d   :  { %s8464_s19 = scalar_lea.hbm %s9359_s3, 128 }
  0x1e   :  { %p8465_p8 = scmp.ne.s32.totalorder %s9359_s3, %s8464_s19  ;;  %p8468_p9 = scmp.lt.u32.totalorder %s8464_s19, %s9359_s3 }
  0x20   :  { %p8470_p10 = pnand %p8468_p9, %p8465_p8 }
  0x22   :  { %8473 = shalt.err (!%p8470_p10)
}
  0x23   :  { %s8474_s1 = scalar_lea.vmem %s71_s29, 128  ;;  %p8479_p12 = scmp.lt.s32.totalorder %s71_s29, %s71_s29 }
  0x24   :  { %p8475_p11 = scmp.ne.s32.totalorder %s71_s29, %s8474_s1  ;;  %p8480_p13 = scmp.lt.s32.totalorder %s8474_s1, %s8474_s1 }
  0x26   :  { %p8481_p0 = por %p8480_p13, %p8479_p12 }
  0x28   :  { %p8482_p1 = pnand %p8481_p0, %p8475_p11 }
  0x2a   :  { %8485 = shalt.err (!%p8482_p1)
}
  0x2b   :  { %73 = dma.hbm_to_vmem [thread:$0]  %s9359_s3, 128, %s71_s29, [#allocation10]  }
  0x2c   :  { %s8486_s26 = scalar_lea.hbm %s9361_s5, 16384 }
  0x2d   :  { %p8487_p2 = scmp.ne.s32.totalorder %s9361_s5, %s8486_s26  ;;  %p8490_p3 = scmp.lt.u32.totalorder %s8486_s26, %s9361_s5 }
  0x2f   :  { %p8492_p4 = pnand %p8490_p3, %p8487_p2 }
  0x31   :  { %8495 = shalt.err (!%p8492_p4)
}
  0x32   :  { %s8496_s18 = scalar_lea.vmem %s90_s15, 16384  ;;  %p8501_p6 = scmp.lt.s32.totalorder %s90_s15, %s90_s15 }
  0x33   :  { %p8497_p5 = scmp.ne.s32.totalorder %s90_s15, %s8496_s18  ;;  %p8502_p7 = scmp.lt.s32.totalorder %s8496_s18, %s8496_s18 }
  0x35   :  { %p8503_p8 = por %p8502_p7, %p8501_p6 }
  0x37   :  { %p8504_p9 = pnand %p8503_p8, %p8497_p5 }
  0x39   :  { %8507 = shalt.err (!%p8504_p9)
}
  0x3a   :  { %s8749_s3 = smov 512   ;;  %s8750_s29 = smov 32  }
  0x3b   :  { %95 = dma.hbm_to_vmem [thread:$0]  %s9361_s5, 16384, %s90_s15, [#allocation13], %s8749_s3, %s8749_s3, %s8750_s29  }
  0x3c   :  { %s8751_s21 = smov [#allocation15]   ;;  %s8508_s16 = scalar_lea.hbm %s9363_s7, 2048 }
  0x3d   :  { %s111_s12 = sshll.u32 %s8751_s21, 4  ;;  %p8509_p10 = scmp.ne.s32.totalorder %s9363_s7, %s8508_s16  ;;  %s112_s12 = int_to_ptr.vmem [resolvable:$true] %s111_s12 }
  0x3e   :  { %p8512_p11 = scmp.lt.u32.totalorder %s8508_s16, %s9363_s7 }
  0x40   :  { %p8514_p12 = pnand %p8512_p11, %p8509_p10 }
  0x42   :  { %8517 = shalt.err (!%p8514_p12)
}
  0x43   :  { %s8518_s27 = scalar_lea.vmem %s112_s12, 2048  ;;  %p8523_p0 = scmp.lt.s32.totalorder %s112_s12, %s112_s12 }
  0x44   :  { %p8519_p13 = scmp.ne.s32.totalorder %s112_s12, %s8518_s27  ;;  %p8524_p1 = scmp.lt.s32.totalorder %s8518_s27, %s8518_s27 }
  0x46   :  { %p8525_p2 = por %p8524_p1, %p8523_p0 }
  0x48   :  { %p8526_p3 = pnand %p8525_p2, %p8519_p13 }
  0x4a   :  { %8529 = shalt.err (!%p8526_p3)
}
  0x4b   :  { %s8752_s5 = smov 128   ;;  %s8753_s15 = smov 8  }
  0x4c   :  { %117 = dma.hbm_to_vmem [thread:$0]  %s9363_s7, 2048, %s112_s12, [#allocation16], %s8752_s5, %s8752_s5, %s8753_s15  }
  0x4d   :  { %s8754_s17 = smov [#allocation18]   ;;  %s8530_s19 = scalar_lea.hbm %s9365_s9, 512 }
  0x4e   :  { %s133_s18 = sshll.u32 %s8754_s17, 4  ;;  %p8531_p4 = scmp.ne.s32.totalorder %s9365_s9, %s8530_s19  ;;  %s134_s18 = int_to_ptr.vmem [resolvable:$true] %s133_s18 }
  0x4f   :  { %p8534_p5 = scmp.lt.u32.totalorder %s8530_s19, %s9365_s9 }
  0x51   :  { %p8536_p6 = pnand %p8534_p5, %p8531_p4 }
  0x53   :  { %8539 = shalt.err (!%p8536_p6)
}
  0x54   :  { %s8540_s16 = scalar_lea.vmem %s134_s18, 512  ;;  %p8545_p8 = scmp.lt.s32.totalorder %s134_s18, %s134_s18 }
  0x55   :  { %p8541_p7 = scmp.ne.s32.totalorder %s134_s18, %s8540_s16  ;;  %p8546_p9 = scmp.lt.s32.totalorder %s8540_s16, %s8540_s16 }
  0x57   :  { %p8547_p10 = por %p8546_p9, %p8545_p8 }
  0x59   :  { %p8548_p11 = pnand %p8547_p10, %p8541_p7 }
  0x5b   :  { %8551 = shalt.err (!%p8548_p11)
}
  0x5c   :  { %s8755_s7 = smov 64   ;;  %s8756_s12 = smov 4  }
  0x5d   :  { %139 = dma.hbm_to_vmem [thread:$0]  %s9365_s9, 512, %s134_s18, [#allocation19], %s8755_s7, %s8755_s7, %s8756_s12  }
  0x5e   :  { %s8757_s25 = smov [#allocation3]   ;;  %s8552_s15 = scalar_lea.hbm %s9356_s0, 2560 }
  0x5f   :  { %s35_s26 = sshll.u32 %s8757_s25, 4  ;;  %p8553_p12 = scmp.ne.s32.totalorder %s9356_s0, %s8552_s15  ;;  %s36_s26 = int_to_ptr.vmem [resolvable:$true] %s35_s26 }
  0x60   :  { %p8556_p13 = scmp.lt.u32.totalorder %s8552_s15, %s9356_s0 }
  0x62   :  { %p8558_p0 = pnand %p8556_p13, %p8553_p12 }
  0x64   :  { %8561 = shalt.err (!%p8558_p0)
}
  0x65   :  { %s8562_s29 = scalar_lea.vmem %s36_s26, 2560  ;;  %p8567_p2 = scmp.lt.s32.totalorder %s36_s26, %s36_s26 }
  0x66   :  { %p8563_p1 = scmp.ne.s32.totalorder %s36_s26, %s8562_s29  ;;  %p8568_p3 = scmp.lt.s32.totalorder %s8562_s29, %s8562_s29 }
  0x68   :  { %p8569_p4 = por %p8568_p3, %p8567_p2 }
  0x6a   :  { %p8570_p5 = pnand %p8569_p4, %p8563_p1 }
  0x6c   :  { %8573 = shalt.err (!%p8570_p5)
}
  0x6d   :  { %s8758_s9 = smov 1280   ;;  %s8759_s18 = smov 80  }
  0x6e   :  { %41 = dma.hbm_to_vmem [thread:$0]  %s9356_s0, 2560, %s36_s26, [#allocation4], %s8758_s9, %s8758_s9, %s8759_s18  }
  0x6f   :  { %s8760_s21 = smov [#allocation8]   ;;  %s8761_s1 = smov [#allocation11]  }
  0x70   :  { %s60_s22 = sshll.u32 %s8760_s21, 4  ;;  %s80_s16 = sshll.u32 %s8761_s1, 4  ;;  %s61_s22 = int_to_ptr.vmem [resolvable:$true] %s60_s22  ;;  %s81_s16 = int_to_ptr.vmem [resolvable:$true] %s80_s16 }
  0x71   :  { %s8574_s24 = scalar_lea.hbm %s9358_s2, 128 }
  0x72   :  { %p8575_p6 = scmp.ne.s32.totalorder %s9358_s2, %s8574_s24  ;;  %p8578_p7 = scmp.lt.u32.totalorder %s8574_s24, %s9358_s2 }
  0x74   :  { %p8580_p8 = pnand %p8578_p7, %p8575_p6 }
  0x76   :  { %8583 = shalt.err (!%p8580_p8)
}
  0x77   :  { %s8584_s0 = scalar_lea.vmem %s61_s22, 128  ;;  %p8589_p10 = scmp.lt.s32.totalorder %s61_s22, %s61_s22 }
  0x78   :  { %p8585_p9 = scmp.ne.s32.totalorder %s61_s22, %s8584_s0  ;;  %p8590_p11 = scmp.lt.s32.totalorder %s8584_s0, %s8584_s0 }
  0x7a   :  { %p8591_p12 = por %p8590_p11, %p8589_p10 }
  0x7c   :  { %p8592_p13 = pnand %p8591_p12, %p8585_p9 }
  0x7e   :  { %8595 = shalt.err (!%p8592_p13)
}
  0x7f   :  { %63 = dma.hbm_to_vmem [thread:$0]  %s9358_s2, 128, %s61_s22, [#allocation7]  }
  0x80   :  { %s8596_s3 = scalar_lea.hbm %s9360_s4, 128 }
  0x81   :  { %p8597_p0 = scmp.ne.s32.totalorder %s9360_s4, %s8596_s3  ;;  %p8600_p1 = scmp.lt.u32.totalorder %s8596_s3, %s9360_s4 }
  0x83   :  { %p8602_p2 = pnand %p8600_p1, %p8597_p0 }
  0x85   :  { %8605 = shalt.err (!%p8602_p2)
}
  0x86   :  { %s8606_s20 = scalar_lea.vmem %s81_s16, 128  ;;  %p8611_p4 = scmp.lt.s32.totalorder %s81_s16, %s81_s16 }
  0x87   :  { %p8607_p3 = scmp.ne.s32.totalorder %s81_s16, %s8606_s20  ;;  %p8612_p5 = scmp.lt.s32.totalorder %s8606_s20, %s8606_s20 }
  0x89   :  { %p8613_p6 = por %p8612_p5, %p8611_p4 }
  0x8b   :  { %p8614_p7 = pnand %p8613_p6, %p8607_p3 }
  0x8d   :  { %8617 = shalt.err (!%p8614_p7)
}
  0x8e   :  { %83 = dma.hbm_to_vmem [thread:$0]  %s9360_s4, 128, %s81_s16, [#allocation10]  }
  0x8f   :  { %s8762_s22 = smov [#allocation14]   ;;  %s8763_s12 = smov [#allocation17]  }
  0x90   :  { %s102_s1 = sshll.u32 %s8762_s22, 4  ;;  %s124_s23 = sshll.u32 %s8763_s12, 4  ;;  %s103_s1 = int_to_ptr.vmem [resolvable:$true] %s102_s1  ;;  %s125_s23 = int_to_ptr.vmem [resolvable:$true] %s124_s23 }
  0x91   :  { %s8618_s27 = scalar_lea.hbm %s9362_s6, 32 }
  0x92   :  { %p8619_p8 = scmp.ne.s32.totalorder %s9362_s6, %s8618_s27  ;;  %p8622_p9 = scmp.lt.u32.totalorder %s8618_s27, %s9362_s6 }
  0x94   :  { %p8624_p10 = pnand %p8622_p9, %p8619_p8 }
  0x96   :  { %8627 = shalt.err (!%p8624_p10)
}
  0x97   :  { %s8628_s4 = scalar_lea.vmem %s103_s1, 32  ;;  %p8633_p12 = scmp.lt.s32.totalorder %s103_s1, %s103_s1 }
  0x98   :  { %p8629_p11 = scmp.ne.s32.totalorder %s103_s1, %s8628_s4  ;;  %p8634_p13 = scmp.lt.s32.totalorder %s8628_s4, %s8628_s4 }
  0x9a   :  { %p8635_p0 = por %p8634_p13, %p8633_p12 }
  0x9c   :  { %p8636_p1 = pnand %p8635_p0, %p8629_p11 }
  0x9e   :  { %8639 = shalt.err (!%p8636_p1)
}
  0x9f   :  { %105 = dma.hbm_to_vmem [thread:$0]  %s9362_s6, 32, %s103_s1, [#allocation13]  }
  0xa0   :  { %s8640_s3 = scalar_lea.hbm %s9364_s8, 16 }
  0xa1   :  { %p8641_p2 = scmp.ne.s32.totalorder %s9364_s8, %s8640_s3  ;;  %p8644_p3 = scmp.lt.u32.totalorder %s8640_s3, %s9364_s8 }
  0xa3   :  { %p8646_p4 = pnand %p8644_p3, %p8641_p2 }
  0xa5   :  { %8649 = shalt.err (!%p8646_p4)
}
  0xa6   :  { %s8650_s20 = scalar_lea.vmem %s125_s23, 16  ;;  %s8654_s2 = scalar_lea.vmem %s125_s23, 32 }
  0xa7   :  { %p8651_p5 = scmp.ne.s32.totalorder %s125_s23, %s8650_s20  ;;  %p8655_p6 = scmp.lt.s32.totalorder %s125_s23, %s125_s23 }
  0xa8   :  { %p8656_p7 = scmp.lt.s32.totalorder %s8654_s2, %s8650_s20 }
  0xaa   :  { %p8657_p8 = por %p8656_p7, %p8655_p6 }
  0xac   :  { %p8658_p9 = pnand %p8657_p8, %p8651_p5 }
  0xae   :  { %8661 = shalt.err (!%p8658_p9)
}
  0xaf   :  { %127 = dma.hbm_to_vmem [thread:$0]  %s9364_s8, 16, %s125_s23, [#allocation16]  }
  0xb0   :  { %s8764_s22 = smov [#allocation20]   ;;  %s8765_s12 = smov [#allocation21]  }
  0xb1   :  { %s146_s1 = sshll.u32 %s8764_s22, 4  ;;  %s156_s24 = sshll.u32 %s8765_s12, 4  ;;  %s147_s1 = int_to_ptr.vmem [resolvable:$true] %s146_s1  ;;  %s157_s24 = int_to_ptr.vmem [resolvable:$true] %s156_s24 }
  0xb2   :  { %s8662_s5 = scalar_lea.hbm %s9366_s10, 16 }
  0xb3   :  { %p8663_p10 = scmp.ne.s32.totalorder %s9366_s10, %s8662_s5  ;;  %p8666_p11 = scmp.lt.u32.totalorder %s8662_s5, %s9366_s10 }
  0xb5   :  { %p8668_p12 = pnand %p8666_p11, %p8663_p10 }
  0xb7   :  { %8671 = shalt.err (!%p8668_p12)
}
  0xb8   :  { %s8672_s8 = scalar_lea.vmem %s147_s1, 16  ;;  %s8676_s23 = scalar_lea.vmem %s147_s1, 32 }
  0xb9   :  { %p8673_p13 = scmp.ne.s32.totalorder %s147_s1, %s8672_s8  ;;  %p8677_p0 = scmp.lt.s32.totalorder %s147_s1, %s147_s1 }
  0xba   :  { %p8678_p1 = scmp.lt.s32.totalorder %s8676_s23, %s8672_s8 }
  0xbc   :  { %p8679_p2 = por %p8678_p1, %p8677_p0 }
  0xbe   :  { %p8680_p3 = pnand %p8679_p2, %p8673_p13 }
  0xc0   :  { %8683 = shalt.err (!%p8680_p3)
}
  0xc1   :  { %149 = dma.hbm_to_vmem [thread:$0]  %s9366_s10, 16, %s147_s1, [#allocation19]  }
  0xc2   :  { %s8684_s3 = scalar_lea.hbm %s9367_s11, 16 }
  0xc3   :  { %p8685_p4 = scmp.ne.s32.totalorder %s9367_s11, %s8684_s3  ;;  %p8688_p5 = scmp.lt.u32.totalorder %s8684_s3, %s9367_s11 }
  0xc5   :  { %p8690_p6 = pnand %p8688_p5, %p8685_p4 }
  0xc7   :  { %8693 = shalt.err (!%p8690_p6)
}
  0xc8   :  { %s8694_s20 = scalar_lea.vmem %s157_s24, 16  ;;  %s8698_s2 = scalar_lea.vmem %s157_s24, 32 }
  0xc9   :  { %p8695_p7 = scmp.ne.s32.totalorder %s157_s24, %s8694_s20  ;;  %p8699_p8 = scmp.lt.s32.totalorder %s157_s24, %s157_s24 }
  0xca   :  { %p8700_p9 = scmp.lt.s32.totalorder %s8698_s2, %s8694_s20 }
  0xcc   :  { %p8701_p10 = por %p8700_p9, %p8699_p8 }
  0xce   :  { %p8702_p11 = pnand %p8701_p10, %p8695_p7 }
  0xd0   :  { %8705 = shalt.err (!%p8702_p11)
}
  0xd1   :  { %159 = dma.hbm_to_vmem [thread:$0]  %s9367_s11, 16, %s157_s24, [#allocation22]  }
  0xd2   :  { %8728 = dma.done.wait [#allocation4], 2560  }
  0xd3   :  { %8729 = vsyncadd [#allocation4], 4294964736 }
  0xd4   :  { %8730 = dma.done.wait [#allocation7], 82048  }
  0xd5   :  { %8731 = vsyncadd [#allocation7], 4294885248 }
  0xd6   :  { %8732 = dma.done.wait [#allocation10], 256  }
  0xd7   :  { %8733 = vsyncadd [#allocation10], 4294967040 }
  0xd8   :  { %8734 = dma.done.wait [#allocation13], 16416  }
  0xd9   :  { %8735 = vsyncadd [#allocation13], 4294950880 }
  0xda   :  { %8736 = dma.done.wait [#allocation16], 2064  }
  0xdb   :  { %8737 = vsyncadd [#allocation16], 4294965232 }
  0xdc   :  { %8738 = dma.done.wait [#allocation19], 528  }
  0xdd   :  { %8739 = vsyncadd [#allocation19], 4294966768 }
  0xde   :  { %8740 = dma.done.wait [#allocation22], 16  }
  0xdf   :  { %8741 = vsyncadd [#allocation22], 4294967280  ;;  %v7441_v1 = vld [vmem:[#allocation6 + $0x4] ss:$40 sps:$4 sm:$0xff]   ;;  %v7443_v2 = vld [vmem:[#allocation6 + $0x14] ss:$40 sps:$4 sm:$0xff]  }
  0xe0   :  { %4111 = vmatprep.subr.bf16.mxu1 %v7441_v1  ;;  %v7445_v3 = vld [vmem:[#allocation6] ss:$40 sps:$4 sm:$0xff]   ;;  %v7446_v4 = vld [vmem:[#allocation6 + $0x10] ss:$40 sps:$4 sm:$0xff]   ;;  %4197 = vmatprep.subr.bf16.mxu0 %v7443_v2  ;;  %v7447_v5 = vld [vmem:[#allocation6 + $0x54] ss:$40 sps:$4 sm:$0xff]  }
  0xe1   :  { %4112 = vmatpush1.bf16.xpose.msra.mxu1 %v7445_v3  ;;  %4198 = vmatpush1.bf16.xpose.msra.mxu0 %v7446_v4  ;;  %v7449_v6 = vld [vmem:[#allocation6 + $0x64] ss:$40 sps:$4 sm:$0xff]   ;;  %v7451_v7 = vld [vmem:[#allocation6 + $0x50] ss:$40 sps:$4 sm:$0xff]   ;;  %v7452_v8 = vld [vmem:[#allocation6 + $0x60] ss:$40 sps:$4 sm:$0xff]  }
  0xe2   :  { %4113 = vmatprep.subr.bf16.mxu1 %v7447_v5  ;;  %4199 = vmatprep.subr.bf16.mxu0 %v7449_v6  ;;  %v7453_v9 = vld [vmem:[#allocation6 + $0xa4] ss:$40 sps:$4 sm:$0xff]   ;;  %v7455_v10 = vld [vmem:[#allocation6 + $0xb4] ss:$40 sps:$4 sm:$0xff]   ;;  %v7457_v11 = vld [vmem:[#allocation6 + $0xa0] ss:$40 sps:$4 sm:$0xff]  }
  0xe3   :  { %v7458_v12 = vld [vmem:[#allocation6 + $0xb0] ss:$40 sps:$4 sm:$0xff]   ;;  %v7459_v13 = vld [vmem:[#allocation6 + $0xf4] ss:$40 sps:$4 sm:$0xff]   ;;  %v7461_v14 = vld [vmem:[#allocation6 + $0x104] ss:$40 sps:$4 sm:$0xff]  }
  0xe4   :  { %v7463_v15 = vld [vmem:[#allocation6 + $0xf0] ss:$40 sps:$4 sm:$0xff]   ;;  %v7464_v16 = vld [vmem:[#allocation6 + $0x100] ss:$40 sps:$4 sm:$0xff]   ;;  %v7465_v17 = vld [vmem:[#allocation6 + $0x144] ss:$40 sps:$4 sm:$0xff]  }
  0xe5   :  { %v7467_v18 = vld [vmem:[#allocation6 + $0x154] ss:$40 sps:$4 sm:$0xff]   ;;  %v7469_v19 = vld [vmem:[#allocation6 + $0x140] ss:$40 sps:$4 sm:$0xff]   ;;  %v7470_v20 = vld [vmem:[#allocation6 + $0x150] ss:$40 sps:$4 sm:$0xff]  }
  0xe6   :  { %v7471_v21 = vld [vmem:[#allocation6 + $0x194] ss:$40 sps:$4 sm:$0xff]   ;;  %v7473_v22 = vld [vmem:[#allocation6 + $0x1a4] ss:$40 sps:$4 sm:$0xff]   ;;  %v7475_v23 = vld [vmem:[#allocation6 + $0x190] ss:$40 sps:$4 sm:$0xff]  }
  0xe7   :  { %v7476_v24 = vld [vmem:[#allocation6 + $0x1a0] ss:$40 sps:$4 sm:$0xff]   ;;  %v7477_v25 = vld [vmem:[#allocation6 + $0x1e4] ss:$40 sps:$4 sm:$0xff]   ;;  %v7479_v26 = vld [vmem:[#allocation6 + $0x1f4] ss:$40 sps:$4 sm:$0xff]  }
  0xe8   :  { %v200_v27 = vld [vmem:[#allocation3 + $0x8] sm:$0xff]  ;;  %v210_v28 = vld [vmem:[#allocation3 + $0x58] sm:$0xff]  ;;  %vm8767_vm0 = vmmov 0   ;;  %vm6420_vm1 = vcmask 523264   ;;  %s8769_s11 = smov [#allocation23]  }
  0xe9   :  { %4114 = vmatpush1.bf16.xpose.msra.mxu1 %v7451_v7  ;;  %4200 = vmatpush1.bf16.xpose.msra.mxu0 %v7452_v8  ;;  %v8995_v29 = vpack.c.bf16 %v210_v28, %v200_v27  ;;  %v204_v30 = vld [vmem:[#allocation3 + $0x28] sm:$0xff]  ;;  %v214_v31 = vld [vmem:[#allocation3 + $0x78] sm:$0xff]  ;;  %s6485_s21 = sshll.u32 %s8769_s11, 4  ;;  %s6486_s21 = int_to_ptr.vmem [resolvable:$true] %s6485_s21 }
  0xea   :  { %4115 = vmatprep.subr.bf16.mxu1 %v7453_v9  ;;  %4201 = vmatprep.subr.bf16.mxu0 %v7455_v10  ;;  %v8998_v32 = vpack.c.bf16 %v214_v31, %v204_v30  ;;  %v7481_v33 = vld [vmem:[#allocation6 + $0x1e0] ss:$40 sps:$4 sm:$0xff]   ;;  %v7482_v34 = vld [vmem:[#allocation6 + $0x1f0] ss:$40 sps:$4 sm:$0xff]   ;;  %v7483_v35 = vld [vmem:[#allocation6 + $0x234] ss:$40 sps:$4 sm:$0xff]   ;;  %p8711_p13 = scmp.lt.s32.totalorder %s6486_s21, %s6486_s21 }
  0xeb   :  { %4143 = vmatprep.mubr.bf16.mxu1 %v8995_v29  ;;  %v7485_v36 = vld [vmem:[#allocation6 + $0x244] ss:$40 sps:$4 sm:$0xff]   ;;  %v7487_v37 = vld [vmem:[#allocation6 + $0x230] ss:$40 sps:$4 sm:$0xff]   ;;  %v7488_v38 = vld [vmem:[#allocation6 + $0x240] ss:$40 sps:$4 sm:$0xff]  }
  0xec   :  { %4229 = vmatprep.mubr.bf16.mxu0 %v8998_v32  ;;  %v7489_v39 = vld [vmem:[#allocation6 + $0x284] ss:$40 sps:$4 sm:$0xff]   ;;  %v7491_v40 = vld [vmem:[#allocation6 + $0x294] ss:$40 sps:$4 sm:$0xff]   ;;  %v7493_v41 = vld [vmem:[#allocation6 + $0x280] ss:$40 sps:$4 sm:$0xff]  }
  0xed   :  { %v7494_v42 = vld [vmem:[#allocation6 + $0x290] ss:$40 sps:$4 sm:$0xff]   ;;  %v7495_v43 = vld [vmem:[#allocation6 + $0x2d4] ss:$40 sps:$4 sm:$0xff]   ;;  %v7497_v44 = vld [vmem:[#allocation6 + $0x2e4] ss:$40 sps:$4 sm:$0xff]  }
  0xee   :  { %v7499_v45 = vld [vmem:[#allocation6 + $0x2d0] ss:$40 sps:$4 sm:$0xff]   ;;  %v7500_v46 = vld [vmem:[#allocation6 + $0x2e0] ss:$40 sps:$4 sm:$0xff]   ;;  %v7501_v47 = vld [vmem:[#allocation6 + $0x324] ss:$40 sps:$4 sm:$0xff]  }
  0xef   :  { %v7503_v48 = vld [vmem:[#allocation6 + $0x334] ss:$40 sps:$4 sm:$0xff]   ;;  %v7505_v49 = vld [vmem:[#allocation6 + $0x320] ss:$40 sps:$4 sm:$0xff]   ;;  %v7506_v50 = vld [vmem:[#allocation6 + $0x330] ss:$40 sps:$4 sm:$0xff]  }
  0xf0   :  { %v7507_v51 = vld [vmem:[#allocation6 + $0x374] ss:$40 sps:$4 sm:$0xff]   ;;  %v7509_v52 = vld [vmem:[#allocation6 + $0x384] ss:$40 sps:$4 sm:$0xff]   ;;  %v7511_v53 = vld [vmem:[#allocation6 + $0x370] ss:$40 sps:$4 sm:$0xff]  }
  0xf1   :  { %4116 = vmatpush1.bf16.xpose.msra.mxu1 %v7457_v11  ;;  %4202 = vmatpush1.bf16.xpose.msra.mxu0 %v7458_v12  ;;  %v7512_v54 = vld [vmem:[#allocation6 + $0x380] ss:$40 sps:$4 sm:$0xff]   ;;  %v7513_v55 = vld [vmem:[#allocation6 + $0x3c4] ss:$40 sps:$4 sm:$0xff]   ;;  %v7515_v56 = vld [vmem:[#allocation6 + $0x3d4] ss:$40 sps:$4 sm:$0xff]  }
  0xf2   :  { %4117 = vmatprep.subr.bf16.mxu1 %v7459_v13  ;;  %4203 = vmatprep.subr.bf16.mxu0 %v7461_v14  ;;  %v7517_v57 = vld [vmem:[#allocation6 + $0x3c0] ss:$40 sps:$4 sm:$0xff]   ;;  %v7518_v58 = vld [vmem:[#allocation6 + $0x3d0] ss:$40 sps:$4 sm:$0xff]   ;;  %v7519_v59 = vld [vmem:[#allocation6 + $0x414] ss:$40 sps:$4 sm:$0xff]  }
  0xf3   :  { %v7521_v60 = vld [vmem:[#allocation6 + $0x424] ss:$40 sps:$4 sm:$0xff]   ;;  %v7523_v61 = vld [vmem:[#allocation6 + $0x410] ss:$40 sps:$4 sm:$0xff]   ;;  %v7524_v62 = vld [vmem:[#allocation6 + $0x420] ss:$40 sps:$4 sm:$0xff]  }
  0xf4   :  { %v7525_v63 = vld [vmem:[#allocation6 + $0x464] ss:$40 sps:$4 sm:$0xff]   ;;  %v7527_v0 = vld [vmem:[#allocation6 + $0x474] ss:$40 sps:$4 sm:$0xff]   ;;  %v7529_v1 = vld [vmem:[#allocation6 + $0x460] ss:$40 sps:$4 sm:$0xff]  }
  0xf5   :  { %v7530_v2 = vld [vmem:[#allocation6 + $0x470] ss:$40 sps:$4 sm:$0xff]   ;;  %v7531_v3 = vld [vmem:[#allocation6 + $0x4b4] ss:$40 sps:$4 sm:$0xff]   ;;  %v7533_v4 = vld [vmem:[#allocation6 + $0x4c4] ss:$40 sps:$4 sm:$0xff]  }
  0xf6   :  { %v7535_v5 = vld [vmem:[#allocation6 + $0x4b0] ss:$40 sps:$4 sm:$0xff]   ;;  %v7536_v6 = vld [vmem:[#allocation6 + $0x4c0] ss:$40 sps:$4 sm:$0xff]   ;;  %v7539_v7 = vld [vmem:[#allocation6 + $0xc] ss:$40 sps:$4 sm:$0xff]  }
  0xf7   :  { %v7542_v8 = vld [vmem:[#allocation6 + $0x1c] ss:$40 sps:$4 sm:$0xff]   ;;  %v209_v10 = vld [vmem:[#allocation3 + $0x50] sm:$0xff]  ;;  %v212_v14 = vld [vmem:[#allocation3 + $0x68] sm:$0xff]  ;;  %s8706_s22 = scalar_lea.vmem %s6486_s21, 2048 }
  0xf8   :  { %v199_v9 = vld [vmem:[#allocation3] sm:$0xff]  ;;  %v213_v12 = vld [vmem:[#allocation3 + $0x70] sm:$0xff]  ;;  %v202_v13 = vld [vmem:[#allocation3 + $0x18] sm:$0xff]  ;;  %p8707_p12 = scmp.ne.s32.totalorder %s6486_s21, %s8706_s22  ;;  %p8712_p0 = scmp.lt.s32.totalorder %s8706_s22, %s8706_s22 }
  0xf9   :  { %4118 = vmatpush1.bf16.xpose.msra.mxu1 %v7463_v15  ;;  %4204 = vmatpush1.bf16.xpose.msra.mxu0 %v7464_v16  ;;  %v203_v11 = vld [vmem:[#allocation3 + $0x20] sm:$0xff]  ;;  %v7537_v15 = vld [vmem:[#allocation6 + $0x8] ss:$40 sps:$4 sm:$0xff]   ;;  %v7551_v27 = vld [vmem:[#allocation6 + $0xac] ss:$40 sps:$4 sm:$0xff]  }
  0xfa   :  { %4119 = vmatprep.subr.bf16.mxu1 %v7465_v17  ;;  %4205 = vmatprep.subr.bf16.mxu0 %v7467_v18  ;;  %v7540_v16 = vld [vmem:[#allocation6 + $0x18] ss:$40 sps:$4 sm:$0xff]   ;;  %v9001_v17 = vpack.c.bf16 %v209_v10, %v199_v9  ;;  %v9003_v18 = vpack.c.bf16 %v213_v12, %v203_v11  ;;  %v7554_v28 = vld [vmem:[#allocation6 + $0xbc] ss:$40 sps:$4 sm:$0xff]   ;;  %v7549_v30 = vld [vmem:[#allocation6 + $0xa8] ss:$40 sps:$4 sm:$0xff]   ;;  %p8713_p1 = por %p8712_p0, %p8711_p13 }
  0xfb   :  { %v7552_v31 = vld [vmem:[#allocation6 + $0xb8] ss:$40 sps:$4 sm:$0xff]   ;;  %v7617_v9 = vld [vmem:[#allocation6 + $0x41c] ss:$40 sps:$4 sm:$0xff]   ;;  %v7620_v10 = vld [vmem:[#allocation6 + $0x42c] ss:$40 sps:$4 sm:$0xff]  }
  0xfc   :  { %v7615_v11 = vld [vmem:[#allocation6 + $0x418] ss:$40 sps:$4 sm:$0xff]   ;;  %v7618_v12 = vld [vmem:[#allocation6 + $0x428] ss:$40 sps:$4 sm:$0xff]   ;;  %p8714_p2 = pnand %p8713_p1, %p8707_p12 }
 0x101   :  { %4120 = vmatpush1.bf16.xpose.msra.mxu1 %v7469_v19  ;;  %4206 = vmatpush1.bf16.xpose.msra.mxu0 %v7470_v20  ;;  %v206_v19 = vld [vmem:[#allocation3 + $0x38] sm:$0xff]  ;;  %v216_v20 = vld [vmem:[#allocation3 + $0x88] sm:$0xff] }
 0x102   :  { %4121 = vmatprep.subr.bf16.mxu1 %v7471_v21  ;;  %4207 = vmatprep.subr.bf16.mxu0 %v7473_v22  ;;  %v7545_v21 = vld [vmem:[#allocation6 + $0x5c] ss:$40 sps:$4 sm:$0xff]   ;;  %v7548_v22 = vld [vmem:[#allocation6 + $0x6c] ss:$40 sps:$4 sm:$0xff]  }
 0x109   :  { %4122 = vmatpush1.bf16.xpose.msra.mxu1 %v7475_v23  ;;  %4208 = vmatpush1.bf16.xpose.msra.mxu0 %v7476_v24  ;;  %v9005_v23 = vpack.c.bf16 %v212_v14, %v202_v13  ;;  %v9007_v24 = vpack.c.bf16 %v216_v20, %v206_v19  ;;  %v7623_v13 = vld [vmem:[#allocation6 + $0x46c] ss:$40 sps:$4 sm:$0xff]   ;;  %v7626_v14 = vld [vmem:[#allocation6 + $0x47c] ss:$40 sps:$4 sm:$0xff]  }
 0x10a   :  { %4123 = vmatprep.subr.bf16.mxu1 %v7477_v25  ;;  %4209 = vmatprep.subr.bf16.mxu0 %v7479_v26  ;;  %v7543_v25 = vld [vmem:[#allocation6 + $0x58] ss:$40 sps:$4 sm:$0xff]   ;;  %v7546_v26 = vld [vmem:[#allocation6 + $0x68] ss:$40 sps:$4 sm:$0xff]   ;;  %v7629_v19 = vld [vmem:[#allocation6 + $0x4bc] ss:$40 sps:$4 sm:$0xff]  }
 0x10b   :  { %v7632_v20 = vld [vmem:[#allocation6 + $0x4cc] ss:$40 sps:$4 sm:$0xff]  }
 0x111   :  { %4124 = vmatpush1.bf16.xpose.msra.mxu1 %v7481_v33  ;;  %4210 = vmatpush1.bf16.xpose.msra.mxu0 %v7482_v34  ;;  %v7557_v33 = vld [vmem:[#allocation6 + $0xfc] ss:$40 sps:$4 sm:$0xff]   ;;  %v7560_v34 = vld [vmem:[#allocation6 + $0x10c] ss:$40 sps:$4 sm:$0xff]  }
 0x112   :  { %4125 = vmatprep.subr.bf16.mxu1 %v7483_v35  ;;  %4211 = vmatprep.subr.bf16.mxu0 %v7485_v36  ;;  %v7555_v35 = vld [vmem:[#allocation6 + $0xf8] ss:$40 sps:$4 sm:$0xff]   ;;  %v7558_v36 = vld [vmem:[#allocation6 + $0x108] ss:$40 sps:$4 sm:$0xff]  }
 0x119   :  { %4126 = vmatpush1.bf16.xpose.msra.mxu1 %v7487_v37  ;;  %4212 = vmatpush1.bf16.xpose.msra.mxu0 %v7488_v38  ;;  %v7563_v37 = vld [vmem:[#allocation6 + $0x14c] ss:$40 sps:$4 sm:$0xff]   ;;  %v7566_v38 = vld [vmem:[#allocation6 + $0x15c] ss:$40 sps:$4 sm:$0xff]  }
 0x11a   :  { %4127 = vmatprep.subr.bf16.mxu1 %v7489_v39  ;;  %4213 = vmatprep.subr.bf16.mxu0 %v7491_v40  ;;  %v7561_v39 = vld [vmem:[#allocation6 + $0x148] ss:$40 sps:$4 sm:$0xff]   ;;  %v7564_v40 = vld [vmem:[#allocation6 + $0x158] ss:$40 sps:$4 sm:$0xff]  }
 0x121   :  { %4128 = vmatpush1.bf16.xpose.msra.mxu1 %v7493_v41  ;;  %4214 = vmatpush1.bf16.xpose.msra.mxu0 %v7494_v42  ;;  %v7569_v41 = vld [vmem:[#allocation6 + $0x19c] ss:$40 sps:$4 sm:$0xff]   ;;  %v7572_v42 = vld [vmem:[#allocation6 + $0x1ac] ss:$40 sps:$4 sm:$0xff]  }
 0x122   :  { %4129 = vmatprep.subr.bf16.mxu1 %v7495_v43  ;;  %4215 = vmatprep.subr.bf16.mxu0 %v7497_v44  ;;  %v7567_v43 = vld [vmem:[#allocation6 + $0x198] ss:$40 sps:$4 sm:$0xff]   ;;  %v7570_v44 = vld [vmem:[#allocation6 + $0x1a8] ss:$40 sps:$4 sm:$0xff]  }
 0x129   :  { %4130 = vmatpush1.bf16.xpose.msra.mxu1 %v7499_v45  ;;  %4216 = vmatpush1.bf16.xpose.msra.mxu0 %v7500_v46  ;;  %v7575_v45 = vld [vmem:[#allocation6 + $0x1ec] ss:$40 sps:$4 sm:$0xff]   ;;  %v7578_v46 = vld [vmem:[#allocation6 + $0x1fc] ss:$40 sps:$4 sm:$0xff]  }
 0x12a   :  { %4131 = vmatprep.subr.bf16.mxu1 %v7501_v47  ;;  %4217 = vmatprep.subr.bf16.mxu0 %v7503_v48  ;;  %v7573_v47 = vld [vmem:[#allocation6 + $0x1e8] ss:$40 sps:$4 sm:$0xff]   ;;  %v7576_v48 = vld [vmem:[#allocation6 + $0x1f8] ss:$40 sps:$4 sm:$0xff]  }
 0x131   :  { %4132 = vmatpush1.bf16.xpose.msra.mxu1 %v7505_v49  ;;  %4218 = vmatpush1.bf16.xpose.msra.mxu0 %v7506_v50  ;;  %v7581_v49 = vld [vmem:[#allocation6 + $0x23c] ss:$40 sps:$4 sm:$0xff]   ;;  %v7584_v50 = vld [vmem:[#allocation6 + $0x24c] ss:$40 sps:$4 sm:$0xff]  }
 0x132   :  { %4133 = vmatprep.subr.bf16.mxu1 %v7507_v51  ;;  %4219 = vmatprep.subr.bf16.mxu0 %v7509_v52  ;;  %v7579_v51 = vld [vmem:[#allocation6 + $0x238] ss:$40 sps:$4 sm:$0xff]   ;;  %v7582_v52 = vld [vmem:[#allocation6 + $0x248] ss:$40 sps:$4 sm:$0xff]  }
 0x139   :  { %4134 = vmatpush1.bf16.xpose.msra.mxu1 %v7511_v53  ;;  %4220 = vmatpush1.bf16.xpose.msra.mxu0 %v7512_v54  ;;  %v7587_v53 = vld [vmem:[#allocation6 + $0x28c] ss:$40 sps:$4 sm:$0xff]   ;;  %v7590_v54 = vld [vmem:[#allocation6 + $0x29c] ss:$40 sps:$4 sm:$0xff]  }
 0x13a   :  { %4135 = vmatprep.subr.bf16.mxu1 %v7513_v55  ;;  %4221 = vmatprep.subr.bf16.mxu0 %v7515_v56  ;;  %v7585_v55 = vld [vmem:[#allocation6 + $0x288] ss:$40 sps:$4 sm:$0xff]   ;;  %v7588_v56 = vld [vmem:[#allocation6 + $0x298] ss:$40 sps:$4 sm:$0xff]  }
 0x141   :  { %4136 = vmatpush1.bf16.xpose.msra.mxu1 %v7517_v57  ;;  %4222 = vmatpush1.bf16.xpose.msra.mxu0 %v7518_v58  ;;  %v7593_v57 = vld [vmem:[#allocation6 + $0x2dc] ss:$40 sps:$4 sm:$0xff]   ;;  %v7596_v58 = vld [vmem:[#allocation6 + $0x2ec] ss:$40 sps:$4 sm:$0xff]  }
 0x142   :  { %4137 = vmatprep.subr.bf16.mxu1 %v7519_v59  ;;  %4223 = vmatprep.subr.bf16.mxu0 %v7521_v60  ;;  %v7591_v59 = vld [vmem:[#allocation6 + $0x2d8] ss:$40 sps:$4 sm:$0xff]   ;;  %v7594_v60 = vld [vmem:[#allocation6 + $0x2e8] ss:$40 sps:$4 sm:$0xff]  }
 0x149   :  { %4138 = vmatpush1.bf16.xpose.msra.mxu1 %v7523_v61  ;;  %4224 = vmatpush1.bf16.xpose.msra.mxu0 %v7524_v62  ;;  %v7599_v61 = vld [vmem:[#allocation6 + $0x32c] ss:$40 sps:$4 sm:$0xff]   ;;  %v7602_v62 = vld [vmem:[#allocation6 + $0x33c] ss:$40 sps:$4 sm:$0xff]  }
 0x14a   :  { %4139 = vmatprep.subr.bf16.mxu1 %v7525_v63  ;;  %4225 = vmatprep.subr.bf16.mxu0 %v7527_v0  ;;  %v7597_v63 = vld [vmem:[#allocation6 + $0x328] ss:$40 sps:$4 sm:$0xff]   ;;  %v7600_v0 = vld [vmem:[#allocation6 + $0x338] ss:$40 sps:$4 sm:$0xff]  }
 0x151   :  { %4140 = vmatpush1.bf16.xpose.msra.mxu1 %v7529_v1  ;;  %4226 = vmatpush1.bf16.xpose.msra.mxu0 %v7530_v2  ;;  %v7605_v1 = vld [vmem:[#allocation6 + $0x37c] ss:$40 sps:$4 sm:$0xff]   ;;  %v7608_v2 = vld [vmem:[#allocation6 + $0x38c] ss:$40 sps:$4 sm:$0xff]  }
 0x152   :  { %4141 = vmatprep.subr.bf16.mxu1 %v7531_v3  ;;  %4227 = vmatprep.subr.bf16.mxu0 %v7533_v4  ;;  %v7603_v3 = vld [vmem:[#allocation6 + $0x378] ss:$40 sps:$4 sm:$0xff]   ;;  %v7606_v4 = vld [vmem:[#allocation6 + $0x388] ss:$40 sps:$4 sm:$0xff]  }
 0x159   :  { %4142 = vmatpush1.bf16.xpose.msra.mxu1 %v7535_v5  ;;  %4228 = vmatpush1.bf16.xpose.msra.mxu0 %v7536_v6  ;;  %v7611_v5 = vld [vmem:[#allocation6 + $0x3cc] ss:$40 sps:$4 sm:$0xff]   ;;  %v7614_v6 = vld [vmem:[#allocation6 + $0x3dc] ss:$40 sps:$4 sm:$0xff]  }
 0x15a   :  { %4154 = vmatprep.subr.bf16.mxu1 %v7539_v7  ;;  %4240 = vmatprep.subr.bf16.mxu0 %v7542_v8  ;;  %v7609_v7 = vld [vmem:[#allocation6 + $0x3c8] ss:$40 sps:$4 sm:$0xff]   ;;  %v7612_v8 = vld [vmem:[#allocation6 + $0x3d8] ss:$40 sps:$4 sm:$0xff]  }
 0x160   :  { %4144 = vmatmul.mubr.bf16.vlgmr.msra.gmra.mrb[0].mxu1 %v9001_v17  ;;  %4230 = vmatmul.mubr.bf16.vlgmr.msra.gmra.mrb[0].mxu0 %v9003_v18 }
 0x161   :  { %4155 = vmatpush1.bf16.xpose.msra.mxu1 %v7537_v15  ;;  %4241 = vmatpush1.bf16.xpose.msra.mxu0 %v7540_v16  ;;  %v7621_v15 = vld [vmem:[#allocation6 + $0x468] ss:$40 sps:$4 sm:$0xff]   ;;  %v7624_v16 = vld [vmem:[#allocation6 + $0x478] ss:$40 sps:$4 sm:$0xff]  }
 0x162   :  { %4156 = vmatprep.subr.bf16.mxu1 %v7545_v21  ;;  %4242 = vmatprep.subr.bf16.mxu0 %v7548_v22  ;;  %v7627_v21 = vld [vmem:[#allocation6 + $0x4b8] ss:$40 sps:$4 sm:$0xff]   ;;  %v7630_v22 = vld [vmem:[#allocation6 + $0x4c8] ss:$40 sps:$4 sm:$0xff]  }
 0x163   :  { %4186 = vmatprep.mubr.bf16.mxu1 %v9005_v23  ;;  %4272 = vmatprep.mubr.bf16.mxu0 %v9007_v24 }
 0x169   :  { %4157 = vmatpush1.bf16.xpose.msra.mxu1 %v7543_v25  ;;  %4243 = vmatpush1.bf16.xpose.msra.mxu0 %v7546_v26  ;;  %v7635_v25 = vld [vmem:[#allocation6 + $0x24] ss:$40 sps:$4 sm:$0xff]  }
 0x16a   :  { %4158 = vmatprep.subr.bf16.mxu1 %v7551_v27  ;;  %4244 = vmatprep.subr.bf16.mxu0 %v7554_v28  ;;  %v7638_v26 = vld [vmem:[#allocation6 + $0x504] ss:$40 sps:$4 sm:$0xff]   ;;  %v201_v27 = vld [vmem:[#allocation3 + $0x10] sm:$0xff] }
 0x16b   :  { %v211_v28 = vld [vmem:[#allocation3 + $0x60] sm:$0xff] }
 0x171   :  { %4159 = vmatpush1.bf16.xpose.msra.mxu1 %v7549_v30  ;;  %4245 = vmatpush1.bf16.xpose.msra.mxu0 %v7552_v31  ;;  %v205_v30 = vld [vmem:[#allocation3 + $0x30] sm:$0xff]  ;;  %v215_v31 = vld [vmem:[#allocation3 + $0x80] sm:$0xff] }
 0x172   :  { %4160 = vmatprep.subr.bf16.mxu1 %v7557_v33  ;;  %4246 = vmatprep.subr.bf16.mxu0 %v7560_v34  ;;  %v208_v33 = vld [vmem:[#allocation3 + $0x48] sm:$0xff]  ;;  %v218_v34 = vld [vmem:[#allocation3 + $0x98] sm:$0xff] }
 0x179   :  { %4161 = vmatpush1.bf16.xpose.msra.mxu1 %v7555_v35  ;;  %4247 = vmatpush1.bf16.xpose.msra.mxu0 %v7558_v36  ;;  %v7633_v35 = vld [vmem:[#allocation6 + $0x20] ss:$40 sps:$4 sm:$0xff]  }
 0x17a   :  { %4162 = vmatprep.subr.bf16.mxu1 %v7563_v37  ;;  %4248 = vmatprep.subr.bf16.mxu0 %v7566_v38  ;;  %v7636_v36 = vld [vmem:[#allocation6 + $0x500] ss:$40 sps:$4 sm:$0xff]   ;;  %v9013_v37 = vpack.c.bf16 %v211_v28, %v201_v27  ;;  %v9015_v38 = vpack.c.bf16 %v215_v31, %v205_v30  ;;  %v7713_v28 = vld [vmem:[#allocation6 + $0x434] ss:$40 sps:$4 sm:$0xff]   ;;  %v7711_v31 = vld [vmem:[#allocation6 + $0x430] ss:$40 sps:$4 sm:$0xff]  }
 0x17b   :  { %v7708_v27 = vld [vmem:[#allocation6 + $0x8c0] ss:$40 sps:$4 sm:$0xff]   ;;  %v7716_v30 = vld [vmem:[#allocation6 + $0x914] ss:$40 sps:$4 sm:$0xff]  }
 0x181   :  { %4163 = vmatpush1.bf16.xpose.msra.mxu1 %v7561_v39  ;;  %4249 = vmatpush1.bf16.xpose.msra.mxu0 %v7564_v40  ;;  %v7641_v39 = vld [vmem:[#allocation6 + $0x74] ss:$40 sps:$4 sm:$0xff]  }
 0x182   :  { %4164 = vmatprep.subr.bf16.mxu1 %v7569_v41  ;;  %4250 = vmatprep.subr.bf16.mxu0 %v7572_v42  ;;  %v7644_v40 = vld [vmem:[#allocation6 + $0x554] ss:$40 sps:$4 sm:$0xff]   ;;  %v9017_v41 = vpack.c.bf16 %v218_v34, %v208_v33  ;;  %v7639_v42 = vld [vmem:[#allocation6 + $0x70] ss:$40 sps:$4 sm:$0xff]   ;;  %v7719_v34 = vld [vmem:[#allocation6 + $0x484] ss:$40 sps:$4 sm:$0xff]  }
 0x183   :  { %v7714_v33 = vld [vmem:[#allocation6 + $0x910] ss:$40 sps:$4 sm:$0xff]  }
 0x189   :  { %4165 = vmatpush1.bf16.xpose.msra.mxu1 %v7567_v43  ;;  %4251 = vmatpush1.bf16.xpose.msra.mxu0 %v7570_v44  ;;  %v7642_v43 = vld [vmem:[#allocation6 + $0x550] ss:$40 sps:$4 sm:$0xff]   ;;  %v7647_v44 = vld [vmem:[#allocation6 + $0xc4] ss:$40 sps:$4 sm:$0xff]  }
 0x18a   :  { %4166 = vmatprep.subr.bf16.mxu1 %v7575_v45  ;;  %4252 = vmatprep.subr.bf16.mxu0 %v7578_v46  ;;  %v7650_v45 = vld [vmem:[#allocation6 + $0x5a4] ss:$40 sps:$4 sm:$0xff]   ;;  %v7645_v46 = vld [vmem:[#allocation6 + $0xc0] ss:$40 sps:$4 sm:$0xff]  }
 0x191   :  { %4167 = vmatpush1.bf16.xpose.msra.mxu1 %v7573_v47  ;;  %4253 = vmatpush1.bf16.xpose.msra.mxu0 %v7576_v48  ;;  %v7648_v47 = vld [vmem:[#allocation6 + $0x5a0] ss:$40 sps:$4 sm:$0xff]   ;;  %v7653_v48 = vld [vmem:[#allocation6 + $0x114] ss:$40 sps:$4 sm:$0xff]  }
 0x192   :  { %4168 = vmatprep.subr.bf16.mxu1 %v7581_v49  ;;  %4254 = vmatprep.subr.bf16.mxu0 %v7584_v50  ;;  %v7656_v49 = vld [vmem:[#allocation6 + $0x5f4] ss:$40 sps:$4 sm:$0xff]   ;;  %v7651_v50 = vld [vmem:[#allocation6 + $0x110] ss:$40 sps:$4 sm:$0xff]  }
 0x199   :  { %4169 = vmatpush1.bf16.xpose.msra.mxu1 %v7579_v51  ;;  %4255 = vmatpush1.bf16.xpose.msra.mxu0 %v7582_v52  ;;  %v7654_v51 = vld [vmem:[#allocation6 + $0x5f0] ss:$40 sps:$4 sm:$0xff]   ;;  %v7659_v52 = vld [vmem:[#allocation6 + $0x164] ss:$40 sps:$4 sm:$0xff]  }
 0x19a   :  { %4170 = vmatprep.subr.bf16.mxu1 %v7587_v53  ;;  %4256 = vmatprep.subr.bf16.mxu0 %v7590_v54  ;;  %v7662_v53 = vld [vmem:[#allocation6 + $0x644] ss:$40 sps:$4 sm:$0xff]   ;;  %v7657_v54 = vld [vmem:[#allocation6 + $0x160] ss:$40 sps:$4 sm:$0xff]  }
 0x1a1   :  { %4171 = vmatpush1.bf16.xpose.msra.mxu1 %v7585_v55  ;;  %4257 = vmatpush1.bf16.xpose.msra.mxu0 %v7588_v56  ;;  %v7660_v55 = vld [vmem:[#allocation6 + $0x640] ss:$40 sps:$4 sm:$0xff]   ;;  %v7665_v56 = vld [vmem:[#allocation6 + $0x1b4] ss:$40 sps:$4 sm:$0xff]  }
 0x1a2   :  { %4172 = vmatprep.subr.bf16.mxu1 %v7593_v57  ;;  %4258 = vmatprep.subr.bf16.mxu0 %v7596_v58  ;;  %v7668_v57 = vld [vmem:[#allocation6 + $0x694] ss:$40 sps:$4 sm:$0xff]   ;;  %v7663_v58 = vld [vmem:[#allocation6 + $0x1b0] ss:$40 sps:$4 sm:$0xff]  }
 0x1a9   :  { %4173 = vmatpush1.bf16.xpose.msra.mxu1 %v7591_v59  ;;  %4259 = vmatpush1.bf16.xpose.msra.mxu0 %v7594_v60  ;;  %v7666_v59 = vld [vmem:[#allocation6 + $0x690] ss:$40 sps:$4 sm:$0xff]   ;;  %v7671_v60 = vld [vmem:[#allocation6 + $0x204] ss:$40 sps:$4 sm:$0xff]  }
 0x1aa   :  { %4174 = vmatprep.subr.bf16.mxu1 %v7599_v61  ;;  %4260 = vmatprep.subr.bf16.mxu0 %v7602_v62  ;;  %v7674_v61 = vld [vmem:[#allocation6 + $0x6e4] ss:$40 sps:$4 sm:$0xff]   ;;  %v7669_v62 = vld [vmem:[#allocation6 + $0x200] ss:$40 sps:$4 sm:$0xff]  }
 0x1b1   :  { %4175 = vmatpush1.bf16.xpose.msra.mxu1 %v7597_v63  ;;  %4261 = vmatpush1.bf16.xpose.msra.mxu0 %v7600_v0  ;;  %v7672_v63 = vld [vmem:[#allocation6 + $0x6e0] ss:$40 sps:$4 sm:$0xff]   ;;  %v7677_v0 = vld [vmem:[#allocation6 + $0x254] ss:$40 sps:$4 sm:$0xff]  }
 0x1b2   :  { %4176 = vmatprep.subr.bf16.mxu1 %v7605_v1  ;;  %4262 = vmatprep.subr.bf16.mxu0 %v7608_v2  ;;  %v7680_v1 = vld [vmem:[#allocation6 + $0x734] ss:$40 sps:$4 sm:$0xff]   ;;  %v7675_v2 = vld [vmem:[#allocation6 + $0x250] ss:$40 sps:$4 sm:$0xff]  }
 0x1b9   :  { %4177 = vmatpush1.bf16.xpose.msra.mxu1 %v7603_v3  ;;  %4263 = vmatpush1.bf16.xpose.msra.mxu0 %v7606_v4  ;;  %v7678_v3 = vld [vmem:[#allocation6 + $0x730] ss:$40 sps:$4 sm:$0xff]   ;;  %v7683_v4 = vld [vmem:[#allocation6 + $0x2a4] ss:$40 sps:$4 sm:$0xff]  }
 0x1ba   :  { %4178 = vmatprep.subr.bf16.mxu1 %v7611_v5  ;;  %4264 = vmatprep.subr.bf16.mxu0 %v7614_v6  ;;  %v7686_v5 = vld [vmem:[#allocation6 + $0x784] ss:$40 sps:$4 sm:$0xff]   ;;  %v7681_v6 = vld [vmem:[#allocation6 + $0x2a0] ss:$40 sps:$4 sm:$0xff]  }
 0x1c1   :  { %4179 = vmatpush1.bf16.xpose.msra.mxu1 %v7609_v7  ;;  %4265 = vmatpush1.bf16.xpose.msra.mxu0 %v7612_v8  ;;  %v7684_v7 = vld [vmem:[#allocation6 + $0x780] ss:$40 sps:$4 sm:$0xff]   ;;  %v7689_v8 = vld [vmem:[#allocation6 + $0x2f4] ss:$40 sps:$4 sm:$0xff]  }
 0x1c2   :  { %4180 = vmatprep.subr.bf16.mxu1 %v7617_v9  ;;  %4266 = vmatprep.subr.bf16.mxu0 %v7620_v10  ;;  %v7692_v9 = vld [vmem:[#allocation6 + $0x7d4] ss:$40 sps:$4 sm:$0xff]   ;;  %v7687_v10 = vld [vmem:[#allocation6 + $0x2f0] ss:$40 sps:$4 sm:$0xff]  }
 0x1c9   :  { %4181 = vmatpush1.bf16.xpose.msra.mxu1 %v7615_v11  ;;  %4267 = vmatpush1.bf16.xpose.msra.mxu0 %v7618_v12  ;;  %v7690_v11 = vld [vmem:[#allocation6 + $0x7d0] ss:$40 sps:$4 sm:$0xff]   ;;  %v7695_v12 = vld [vmem:[#allocation6 + $0x344] ss:$40 sps:$4 sm:$0xff]  }
 0x1ca   :  { %4182 = vmatprep.subr.bf16.mxu1 %v7623_v13  ;;  %4268 = vmatprep.subr.bf16.mxu0 %v7626_v14  ;;  %v7698_v13 = vld [vmem:[#allocation6 + $0x824] ss:$40 sps:$4 sm:$0xff]   ;;  %v7693_v14 = vld [vmem:[#allocation6 + $0x340] ss:$40 sps:$4 sm:$0xff]  }
 0x1d1   :  { %4183 = vmatpush1.bf16.xpose.msra.mxu1 %v7621_v15  ;;  %4269 = vmatpush1.bf16.xpose.msra.mxu0 %v7624_v16  ;;  %v7696_v15 = vld [vmem:[#allocation6 + $0x820] ss:$40 sps:$4 sm:$0xff]   ;;  %v7701_v16 = vld [vmem:[#allocation6 + $0x394] ss:$40 sps:$4 sm:$0xff]  }
 0x1d2   :  { %4184 = vmatprep.subr.bf16.mxu1 %v7629_v19  ;;  %4270 = vmatprep.subr.bf16.mxu0 %v7632_v20  ;;  %v7704_v19 = vld [vmem:[#allocation6 + $0x874] ss:$40 sps:$4 sm:$0xff]   ;;  %v7699_v20 = vld [vmem:[#allocation6 + $0x390] ss:$40 sps:$4 sm:$0xff]  }
 0x1d9   :  { %4185 = vmatpush1.bf16.xpose.msra.mxu1 %v7627_v21  ;;  %4271 = vmatpush1.bf16.xpose.msra.mxu0 %v7630_v22  ;;  %v7702_v21 = vld [vmem:[#allocation6 + $0x870] ss:$40 sps:$4 sm:$0xff]   ;;  %v7707_v22 = vld [vmem:[#allocation6 + $0x3e4] ss:$40 sps:$4 sm:$0xff]  }
 0x1da   :  { %4283 = vmatprep.subr.bf16.mxu0 %v7635_v25  ;;  %4326 = vmatprep.subr.bf16.mxu1 %v7638_v26  ;;  %v7710_v25 = vld [vmem:[#allocation6 + $0x8c4] ss:$40 sps:$4 sm:$0xff]   ;;  %v7705_v26 = vld [vmem:[#allocation6 + $0x3e0] ss:$40 sps:$4 sm:$0xff]  }
 0x1e0   :  { %4187 = vmatmul.mubr.bf16.vlgmr.msra.gmra.mrb[0].mxu1 %v9013_v37  ;;  %4273 = vmatmul.mubr.bf16.vlgmr.msra.gmra.mrb[0].mxu0 %v9015_v38 }
 0x1e1   :  { %4284 = vmatpush1.bf16.xpose.msra.mxu0 %v7633_v35  ;;  %4327 = vmatpush1.bf16.xpose.msra.mxu1 %v7636_v36  ;;  %v7722_v35 = vld [vmem:[#allocation6 + $0x964] ss:$40 sps:$4 sm:$0xff]   ;;  %v7717_v36 = vld [vmem:[#allocation6 + $0x480] ss:$40 sps:$4 sm:$0xff]  }
 0x1e2   :  { %4285 = vmatprep.subr.bf16.mxu0 %v7641_v39  ;;  %4328 = vmatprep.subr.bf16.mxu1 %v7644_v40  ;;  %v7720_v39 = vld [vmem:[#allocation6 + $0x960] ss:$40 sps:$4 sm:$0xff]   ;;  %v7725_v40 = vld [vmem:[#allocation6 + $0x4d4] ss:$40 sps:$4 sm:$0xff]  }
 0x1e3   :  { %4315 = vmatprep.mubr.bf16.mxu0 %v9017_v41  ;;  %4358 = vmatprep.mubr.bf16.mxu1 %v8995_v29 }
 0x1e9   :  { %4286 = vmatpush1.bf16.xpose.msra.mxu0 %v7639_v42  ;;  %4329 = vmatpush1.bf16.xpose.msra.mxu1 %v7642_v43  ;;  %v7728_v42 = vld [vmem:[#allocation6 + $0x9b4] ss:$40 sps:$4 sm:$0xff]   ;;  %v7723_v43 = vld [vmem:[#allocation6 + $0x4d0] ss:$40 sps:$4 sm:$0xff]  }
 0x1ea   :  { %4287 = vmatprep.subr.bf16.mxu0 %v7647_v44  ;;  %4330 = vmatprep.subr.bf16.mxu1 %v7650_v45  ;;  %v7726_v44 = vld [vmem:[#allocation6 + $0x9b0] ss:$40 sps:$4 sm:$0xff]   ;;  %v7731_v45 = vld [vmem:[#allocation6 + $0x50c] ss:$40 sps:$4 sm:$0xff]  }
 0x1f1   :  { %4288 = vmatpush1.bf16.xpose.msra.mxu0 %v7645_v46  ;;  %4331 = vmatpush1.bf16.xpose.msra.mxu1 %v7648_v47  ;;  %v7734_v46 = vld [vmem:[#allocation6 + $0xa04] ss:$40 sps:$4 sm:$0xff]  }
 0x1f2   :  { %4289 = vmatprep.subr.bf16.mxu0 %v7653_v48  ;;  %4332 = vmatprep.subr.bf16.mxu1 %v7656_v49  ;;  %v207_v47 = vld [vmem:[#allocation3 + $0x40] sm:$0xff]  ;;  %v217_v48 = vld [vmem:[#allocation3 + $0x90] sm:$0xff] }
 0x1f3   :  { %v9023_v49 = vpack.c.bf16 %v217_v48, %v207_v47  ;;  %v7801_v47 = vld [vmem:[#allocation6 + $0x8c8] ss:$40 sps:$4 sm:$0xff]  }
 0x1f4   :  { %v7804_v48 = vld [vmem:[#allocation6 + $0xdc0] ss:$40 sps:$4 sm:$0xff]  }
 0x1f9   :  { %4290 = vmatpush1.bf16.xpose.msra.mxu0 %v7651_v50  ;;  %4333 = vmatpush1.bf16.xpose.msra.mxu1 %v7654_v51  ;;  %v7729_v50 = vld [vmem:[#allocation6 + $0x508] ss:$40 sps:$4 sm:$0xff]  }
 0x1fa   :  { %4291 = vmatprep.subr.bf16.mxu0 %v7659_v52  ;;  %4334 = vmatprep.subr.bf16.mxu1 %v7662_v53  ;;  %v7732_v51 = vld [vmem:[#allocation6 + $0xa00] ss:$40 sps:$4 sm:$0xff]   ;;  %v7737_v52 = vld [vmem:[#allocation6 + $0x55c] ss:$40 sps:$4 sm:$0xff]  }
 0x1fb   :  { %v7740_v53 = vld [vmem:[#allocation6 + $0xa54] ss:$40 sps:$4 sm:$0xff]  }
 0x201   :  { %4292 = vmatpush1.bf16.xpose.msra.mxu0 %v7657_v54  ;;  %4335 = vmatpush1.bf16.xpose.msra.mxu1 %v7660_v55  ;;  %v7735_v54 = vld [vmem:[#allocation6 + $0x558] ss:$40 sps:$4 sm:$0xff]  }
 0x202   :  { %4293 = vmatprep.subr.bf16.mxu0 %v7665_v56  ;;  %4336 = vmatprep.subr.bf16.mxu1 %v7668_v57  ;;  %v7738_v55 = vld [vmem:[#allocation6 + $0xa50] ss:$40 sps:$4 sm:$0xff]   ;;  %v7743_v56 = vld [vmem:[#allocation6 + $0x5ac] ss:$40 sps:$4 sm:$0xff]  }
 0x203   :  { %v7746_v57 = vld [vmem:[#allocation6 + $0xaa4] ss:$40 sps:$4 sm:$0xff]  }
 0x209   :  { %4294 = vmatpush1.bf16.xpose.msra.mxu0 %v7663_v58  ;;  %4337 = vmatpush1.bf16.xpose.msra.mxu1 %v7666_v59  ;;  %v7741_v58 = vld [vmem:[#allocation6 + $0x5a8] ss:$40 sps:$4 sm:$0xff]  }
 0x20a   :  { %4295 = vmatprep.subr.bf16.mxu0 %v7671_v60  ;;  %4338 = vmatprep.subr.bf16.mxu1 %v7674_v61  ;;  %v7744_v59 = vld [vmem:[#allocation6 + $0xaa0] ss:$40 sps:$4 sm:$0xff]   ;;  %v7749_v60 = vld [vmem:[#allocation6 + $0x5fc] ss:$40 sps:$4 sm:$0xff]  }
 0x20b   :  { %v7752_v61 = vld [vmem:[#allocation6 + $0xaf4] ss:$40 sps:$4 sm:$0xff]  }
 0x211   :  { %4296 = vmatpush1.bf16.xpose.msra.mxu0 %v7669_v62  ;;  %4339 = vmatpush1.bf16.xpose.msra.mxu1 %v7672_v63  ;;  %v7747_v62 = vld [vmem:[#allocation6 + $0x5f8] ss:$40 sps:$4 sm:$0xff]  }
 0x212   :  { %4297 = vmatprep.subr.bf16.mxu0 %v7677_v0  ;;  %4340 = vmatprep.subr.bf16.mxu1 %v7680_v1  ;;  %v7750_v63 = vld [vmem:[#allocation6 + $0xaf0] ss:$40 sps:$4 sm:$0xff]   ;;  %v7755_v0 = vld [vmem:[#allocation6 + $0x64c] ss:$40 sps:$4 sm:$0xff]  }
 0x213   :  { %v7758_v1 = vld [vmem:[#allocation6 + $0xb44] ss:$40 sps:$4 sm:$0xff]  }
 0x219   :  { %4298 = vmatpush1.bf16.xpose.msra.mxu0 %v7675_v2  ;;  %4341 = vmatpush1.bf16.xpose.msra.mxu1 %v7678_v3  ;;  %v7753_v2 = vld [vmem:[#allocation6 + $0x648] ss:$40 sps:$4 sm:$0xff]  }
 0x21a   :  { %4299 = vmatprep.subr.bf16.mxu0 %v7683_v4  ;;  %4342 = vmatprep.subr.bf16.mxu1 %v7686_v5  ;;  %v7756_v3 = vld [vmem:[#allocation6 + $0xb40] ss:$40 sps:$4 sm:$0xff]   ;;  %v7761_v4 = vld [vmem:[#allocation6 + $0x69c] ss:$40 sps:$4 sm:$0xff]  }
 0x21b   :  { %v7764_v5 = vld [vmem:[#allocation6 + $0xb94] ss:$40 sps:$4 sm:$0xff]  }
 0x221   :  { %4300 = vmatpush1.bf16.xpose.msra.mxu0 %v7681_v6  ;;  %4343 = vmatpush1.bf16.xpose.msra.mxu1 %v7684_v7  ;;  %v7759_v6 = vld [vmem:[#allocation6 + $0x698] ss:$40 sps:$4 sm:$0xff]  }
 0x222   :  { %4301 = vmatprep.subr.bf16.mxu0 %v7689_v8  ;;  %4344 = vmatprep.subr.bf16.mxu1 %v7692_v9  ;;  %v7762_v7 = vld [vmem:[#allocation6 + $0xb90] ss:$40 sps:$4 sm:$0xff]   ;;  %v7767_v8 = vld [vmem:[#allocation6 + $0x6ec] ss:$40 sps:$4 sm:$0xff]  }
 0x223   :  { %v7770_v9 = vld [vmem:[#allocation6 + $0xbe4] ss:$40 sps:$4 sm:$0xff]  }
 0x229   :  { %4302 = vmatpush1.bf16.xpose.msra.mxu0 %v7687_v10  ;;  %4345 = vmatpush1.bf16.xpose.msra.mxu1 %v7690_v11  ;;  %v7765_v10 = vld [vmem:[#allocation6 + $0x6e8] ss:$40 sps:$4 sm:$0xff]  }
 0x22a   :  { %4303 = vmatprep.subr.bf16.mxu0 %v7695_v12  ;;  %4346 = vmatprep.subr.bf16.mxu1 %v7698_v13  ;;  %v7768_v11 = vld [vmem:[#allocation6 + $0xbe0] ss:$40 sps:$4 sm:$0xff]   ;;  %v7773_v12 = vld [vmem:[#allocation6 + $0x73c] ss:$40 sps:$4 sm:$0xff]  }
 0x22b   :  { %v7776_v13 = vld [vmem:[#allocation6 + $0xc34] ss:$40 sps:$4 sm:$0xff]  }
 0x231   :  { %4304 = vmatpush1.bf16.xpose.msra.mxu0 %v7693_v14  ;;  %4347 = vmatpush1.bf16.xpose.msra.mxu1 %v7696_v15  ;;  %v7771_v14 = vld [vmem:[#allocation6 + $0x738] ss:$40 sps:$4 sm:$0xff]  }
 0x232   :  { %4305 = vmatprep.subr.bf16.mxu0 %v7701_v16  ;;  %4348 = vmatprep.subr.bf16.mxu1 %v7704_v19  ;;  %v7774_v15 = vld [vmem:[#allocation6 + $0xc30] ss:$40 sps:$4 sm:$0xff]   ;;  %v7779_v16 = vld [vmem:[#allocation6 + $0x78c] ss:$40 sps:$4 sm:$0xff]  }
 0x233   :  { %v7782_v19 = vld [vmem:[#allocation6 + $0xc84] ss:$40 sps:$4 sm:$0xff]  }
 0x239   :  { %4306 = vmatpush1.bf16.xpose.msra.mxu0 %v7699_v20  ;;  %4349 = vmatpush1.bf16.xpose.msra.mxu1 %v7702_v21  ;;  %v7777_v20 = vld [vmem:[#allocation6 + $0x788] ss:$40 sps:$4 sm:$0xff]  }
 0x23a   :  { %4307 = vmatprep.subr.bf16.mxu0 %v7707_v22  ;;  %4350 = vmatprep.subr.bf16.mxu1 %v7710_v25  ;;  %v7780_v21 = vld [vmem:[#allocation6 + $0xc80] ss:$40 sps:$4 sm:$0xff]   ;;  %v7785_v22 = vld [vmem:[#allocation6 + $0x7dc] ss:$40 sps:$4 sm:$0xff]  }
 0x23b   :  { %v7788_v25 = vld [vmem:[#allocation6 + $0xcd4] ss:$40 sps:$4 sm:$0xff]  }
 0x241   :  { %4308 = vmatpush1.bf16.xpose.msra.mxu0 %v7705_v26  ;;  %4351 = vmatpush1.bf16.xpose.msra.mxu1 %v7708_v27  ;;  %v7783_v26 = vld [vmem:[#allocation6 + $0x7d8] ss:$40 sps:$4 sm:$0xff]  }
 0x242   :  { %4309 = vmatprep.subr.bf16.mxu0 %v7713_v28  ;;  %4352 = vmatprep.subr.bf16.mxu1 %v7716_v30  ;;  %v7786_v27 = vld [vmem:[#allocation6 + $0xcd0] ss:$40 sps:$4 sm:$0xff]   ;;  %v7791_v28 = vld [vmem:[#allocation6 + $0x82c] ss:$40 sps:$4 sm:$0xff]  }
 0x243   :  { %v7794_v30 = vld [vmem:[#allocation6 + $0xd24] ss:$40 sps:$4 sm:$0xff]  }
 0x249   :  { %4310 = vmatpush1.bf16.xpose.msra.mxu0 %v7711_v31  ;;  %4353 = vmatpush1.bf16.xpose.msra.mxu1 %v7714_v33  ;;  %v7789_v31 = vld [vmem:[#allocation6 + $0x828] ss:$40 sps:$4 sm:$0xff]  }
 0x24a   :  { %4311 = vmatprep.subr.bf16.mxu0 %v7719_v34  ;;  %4354 = vmatprep.subr.bf16.mxu1 %v7722_v35  ;;  %v7792_v33 = vld [vmem:[#allocation6 + $0xd20] ss:$40 sps:$4 sm:$0xff]   ;;  %v7797_v34 = vld [vmem:[#allocation6 + $0x87c] ss:$40 sps:$4 sm:$0xff]  }
 0x24b   :  { %v7800_v35 = vld [vmem:[#allocation6 + $0xd74] ss:$40 sps:$4 sm:$0xff]  }
 0x251   :  { %4312 = vmatpush1.bf16.xpose.msra.mxu0 %v7717_v36  ;;  %4355 = vmatpush1.bf16.xpose.msra.mxu1 %v7720_v39 }
 0x252   :  { %4313 = vmatprep.subr.bf16.mxu0 %v7725_v40  ;;  %4356 = vmatprep.subr.bf16.mxu1 %v7728_v42  ;;  %v7795_v42 = vld [vmem:[#allocation6 + $0x878] ss:$40 sps:$4 sm:$0xff]  }
 0x259   :  { %4314 = vmatpush1.bf16.xpose.msra.mxu0 %v7723_v43  ;;  %4357 = vmatpush1.bf16.xpose.msra.mxu1 %v7726_v44  ;;  %v7798_v43 = vld [vmem:[#allocation6 + $0xd70] ss:$40 sps:$4 sm:$0xff]  }
 0x25a   :  { %4369 = vmatprep.subr.bf16.mxu1 %v7731_v45  ;;  %4541 = vmatprep.subr.bf16.mxu0 %v7734_v46  ;;  %v7803_v45 = vld [vmem:[#allocation6 + $0x8cc] ss:$40 sps:$4 sm:$0xff]  }
 0x25b   :  { %v7806_v46 = vld [vmem:[#allocation6 + $0xdc4] ss:$40 sps:$4 sm:$0xff]  }
 0x260   :  { %4316 = vmatmul.mubr.bf16.vlgmr.msra.gmra.mrb[0].mxu0 %v9023_v49  ;;  %4359 = vmatmul.mubr.bf16.vlgmr.msra.gmra.mrb[4].mxu1 %v9001_v17 }
 0x261   :  { %4370 = vmatpush1.bf16.xpose.msra.mxu1 %v7729_v50  ;;  %4542 = vmatpush1.bf16.xpose.msra.mxu0 %v7732_v51  ;;  %v7809_v50 = vld [vmem:[#allocation6 + $0x91c] ss:$40 sps:$4 sm:$0xff]  }
 0x262   :  { %4371 = vmatprep.subr.bf16.mxu1 %v7737_v52  ;;  %4543 = vmatprep.subr.bf16.mxu0 %v7740_v53  ;;  %v7812_v51 = vld [vmem:[#allocation6 + $0xe14] ss:$40 sps:$4 sm:$0xff]   ;;  %v7807_v52 = vld [vmem:[#allocation6 + $0x918] ss:$40 sps:$4 sm:$0xff]  }
 0x263   :  { %4401 = vmatprep.mubr.bf16.mxu1 %v9005_v23  ;;  %4573 = vmatprep.mubr.bf16.mxu0 %v8995_v29  ;;  %v7810_v53 = vld [vmem:[#allocation6 + $0xe10] ss:$40 sps:$4 sm:$0xff]  }
 0x269   :  { %4372 = vmatpush1.bf16.xpose.msra.mxu1 %v7735_v54  ;;  %4544 = vmatpush1.bf16.xpose.msra.mxu0 %v7738_v55  ;;  %v7815_v54 = vld [vmem:[#allocation6 + $0x96c] ss:$40 sps:$4 sm:$0xff]  }
 0x26a   :  { %4373 = vmatprep.subr.bf16.mxu1 %v7743_v56  ;;  %4545 = vmatprep.subr.bf16.mxu0 %v7746_v57  ;;  %v7818_v55 = vld [vmem:[#allocation6 + $0xe64] ss:$40 sps:$4 sm:$0xff]   ;;  %v7813_v56 = vld [vmem:[#allocation6 + $0x968] ss:$40 sps:$4 sm:$0xff]  }
 0x26b   :  { %v7816_v57 = vld [vmem:[#allocation6 + $0xe60] ss:$40 sps:$4 sm:$0xff]  }
 0x271   :  { %4374 = vmatpush1.bf16.xpose.msra.mxu1 %v7741_v58  ;;  %4546 = vmatpush1.bf16.xpose.msra.mxu0 %v7744_v59  ;;  %v7821_v58 = vld [vmem:[#allocation6 + $0x9bc] ss:$40 sps:$4 sm:$0xff]  }
 0x272   :  { %4375 = vmatprep.subr.bf16.mxu1 %v7749_v60  ;;  %4547 = vmatprep.subr.bf16.mxu0 %v7752_v61  ;;  %v7824_v59 = vld [vmem:[#allocation6 + $0xeb4] ss:$40 sps:$4 sm:$0xff]   ;;  %v7819_v60 = vld [vmem:[#allocation6 + $0x9b8] ss:$40 sps:$4 sm:$0xff]  }
 0x273   :  { %v7822_v61 = vld [vmem:[#allocation6 + $0xeb0] ss:$40 sps:$4 sm:$0xff]  }
 0x279   :  { %4376 = vmatpush1.bf16.xpose.msra.mxu1 %v7747_v62  ;;  %4548 = vmatpush1.bf16.xpose.msra.mxu0 %v7750_v63  ;;  %v7827_v62 = vld [vmem:[#allocation6 + $0x514] ss:$40 sps:$4 sm:$0xff]  }
 0x27a   :  { %4377 = vmatprep.subr.bf16.mxu1 %v7755_v0  ;;  %4549 = vmatprep.subr.bf16.mxu0 %v7758_v1  ;;  %v7830_v63 = vld [vmem:[#allocation6 + $0xa0c] ss:$40 sps:$4 sm:$0xff]   ;;  %v7825_v0 = vld [vmem:[#allocation6 + $0x510] ss:$40 sps:$4 sm:$0xff]  }
 0x27b   :  { %v7828_v1 = vld [vmem:[#allocation6 + $0xa08] ss:$40 sps:$4 sm:$0xff]  }
 0x281   :  { %4378 = vmatpush1.bf16.xpose.msra.mxu1 %v7753_v2  ;;  %4550 = vmatpush1.bf16.xpose.msra.mxu0 %v7756_v3  ;;  %v7833_v2 = vld [vmem:[#allocation6 + $0x564] ss:$40 sps:$4 sm:$0xff]  }
 0x282   :  { %4379 = vmatprep.subr.bf16.mxu1 %v7761_v4  ;;  %4551 = vmatprep.subr.bf16.mxu0 %v7764_v5  ;;  %v7836_v3 = vld [vmem:[#allocation6 + $0xa5c] ss:$40 sps:$4 sm:$0xff]   ;;  %v7831_v4 = vld [vmem:[#allocation6 + $0x560] ss:$40 sps:$4 sm:$0xff]  }
 0x283   :  { %v7834_v5 = vld [vmem:[#allocation6 + $0xa58] ss:$40 sps:$4 sm:$0xff]  }
 0x289   :  { %4380 = vmatpush1.bf16.xpose.msra.mxu1 %v7759_v6  ;;  %4552 = vmatpush1.bf16.xpose.msra.mxu0 %v7762_v7  ;;  %v7839_v6 = vld [vmem:[#allocation6 + $0x5b4] ss:$40 sps:$4 sm:$0xff]  }
 0x28a   :  { %4381 = vmatprep.subr.bf16.mxu1 %v7767_v8  ;;  %4553 = vmatprep.subr.bf16.mxu0 %v7770_v9  ;;  %v7842_v7 = vld [vmem:[#allocation6 + $0xaac] ss:$40 sps:$4 sm:$0xff]   ;;  %v7837_v8 = vld [vmem:[#allocation6 + $0x5b0] ss:$40 sps:$4 sm:$0xff]  }
 0x28b   :  { %v7840_v9 = vld [vmem:[#allocation6 + $0xaa8] ss:$40 sps:$4 sm:$0xff]  }
 0x291   :  { %4382 = vmatpush1.bf16.xpose.msra.mxu1 %v7765_v10  ;;  %4554 = vmatpush1.bf16.xpose.msra.mxu0 %v7768_v11  ;;  %v7845_v10 = vld [vmem:[#allocation6 + $0x604] ss:$40 sps:$4 sm:$0xff]  }
 0x292   :  { %4383 = vmatprep.subr.bf16.mxu1 %v7773_v12  ;;  %4555 = vmatprep.subr.bf16.mxu0 %v7776_v13  ;;  %v7848_v11 = vld [vmem:[#allocation6 + $0xafc] ss:$40 sps:$4 sm:$0xff]   ;;  %v7843_v12 = vld [vmem:[#allocation6 + $0x600] ss:$40 sps:$4 sm:$0xff]  }
 0x293   :  { %v7846_v13 = vld [vmem:[#allocation6 + $0xaf8] ss:$40 sps:$4 sm:$0xff]  }
 0x299   :  { %4384 = vmatpush1.bf16.xpose.msra.mxu1 %v7771_v14  ;;  %4556 = vmatpush1.bf16.xpose.msra.mxu0 %v7774_v15  ;;  %v7851_v14 = vld [vmem:[#allocation6 + $0x654] ss:$40 sps:$4 sm:$0xff]  }
 0x29a   :  { %4385 = vmatprep.subr.bf16.mxu1 %v7779_v16  ;;  %4557 = vmatprep.subr.bf16.mxu0 %v7782_v19  ;;  %v7854_v15 = vld [vmem:[#allocation6 + $0xb4c] ss:$40 sps:$4 sm:$0xff]   ;;  %v7849_v16 = vld [vmem:[#allocation6 + $0x650] ss:$40 sps:$4 sm:$0xff]  }
 0x29b   :  { %v7852_v19 = vld [vmem:[#allocation6 + $0xb48] ss:$40 sps:$4 sm:$0xff]  }
 0x2a1   :  { %4386 = vmatpush1.bf16.xpose.msra.mxu1 %v7777_v20  ;;  %4558 = vmatpush1.bf16.xpose.msra.mxu0 %v7780_v21  ;;  %v7857_v20 = vld [vmem:[#allocation6 + $0x6a4] ss:$40 sps:$4 sm:$0xff]  }
 0x2a2   :  { %4387 = vmatprep.subr.bf16.mxu1 %v7785_v22  ;;  %4559 = vmatprep.subr.bf16.mxu0 %v7788_v25  ;;  %v7860_v21 = vld [vmem:[#allocation6 + $0xb9c] ss:$40 sps:$4 sm:$0xff]   ;;  %v7855_v22 = vld [vmem:[#allocation6 + $0x6a0] ss:$40 sps:$4 sm:$0xff]  }
 0x2a3   :  { %v7858_v25 = vld [vmem:[#allocation6 + $0xb98] ss:$40 sps:$4 sm:$0xff]  }
 0x2a9   :  { %4388 = vmatpush1.bf16.xpose.msra.mxu1 %v7783_v26  ;;  %4560 = vmatpush1.bf16.xpose.msra.mxu0 %v7786_v27  ;;  %v7863_v26 = vld [vmem:[#allocation6 + $0x6f4] ss:$40 sps:$4 sm:$0xff]  }
 0x2aa   :  { %4389 = vmatprep.subr.bf16.mxu1 %v7791_v28  ;;  %4561 = vmatprep.subr.bf16.mxu0 %v7794_v30  ;;  %v7866_v27 = vld [vmem:[#allocation6 + $0xbec] ss:$40 sps:$4 sm:$0xff]   ;;  %v7861_v28 = vld [vmem:[#allocation6 + $0x6f0] ss:$40 sps:$4 sm:$0xff]  }
 0x2ab   :  { %v7864_v30 = vld [vmem:[#allocation6 + $0xbe8] ss:$40 sps:$4 sm:$0xff]  }
 0x2b1   :  { %4390 = vmatpush1.bf16.xpose.msra.mxu1 %v7789_v31  ;;  %4562 = vmatpush1.bf16.xpose.msra.mxu0 %v7792_v33  ;;  %v7869_v31 = vld [vmem:[#allocation6 + $0x744] ss:$40 sps:$4 sm:$0xff]  }
 0x2b2   :  { %4391 = vmatprep.subr.bf16.mxu1 %v7797_v34  ;;  %4563 = vmatprep.subr.bf16.mxu0 %v7800_v35  ;;  %v7872_v33 = vld [vmem:[#allocation6 + $0xc3c] ss:$40 sps:$4 sm:$0xff]   ;;  %v7867_v34 = vld [vmem:[#allocation6 + $0x740] ss:$40 sps:$4 sm:$0xff]  }
 0x2b3   :  { %v9029_v36 = vpop.f32.mrb[0].mxu1  ;;  %v7870_v35 = vld [vmem:[#allocation6 + $0xc38] ss:$40 sps:$4 sm:$0xff]  }
 0x2b4   :  { %v9031_v39 = vpop.f32.mrb[1].mxu1 }
 0x2b5   :  { %v9033_v40 = vpop.f32.mrb[2].mxu1 }
 0x2b6   :  { %v9035_v44 = vpop.f32.mrb[3].mxu1 }
 0x2b9   :  { %4392 = vmatpush1.bf16.xpose.msra.mxu1 %v7795_v42  ;;  %4564 = vmatpush1.bf16.xpose.msra.mxu0 %v7798_v43  ;;  %v7875_v42 = vld [vmem:[#allocation6 + $0x794] ss:$40 sps:$4 sm:$0xff]  }
 0x2ba   :  { %4393 = vmatprep.subr.bf16.mxu1 %v7803_v45  ;;  %4565 = vmatprep.subr.bf16.mxu0 %v7806_v46  ;;  %v7878_v43 = vld [vmem:[#allocation6 + $0xc8c] ss:$40 sps:$4 sm:$0xff]   ;;  %v7873_v45 = vld [vmem:[#allocation6 + $0x790] ss:$40 sps:$4 sm:$0xff]  }
 0x2bb   :  { %v7876_v46 = vld [vmem:[#allocation6 + $0xc88] ss:$40 sps:$4 sm:$0xff]  }
 0x2c1   :  { %4394 = vmatpush1.bf16.xpose.msra.mxu1 %v7801_v47  ;;  %4566 = vmatpush1.bf16.xpose.msra.mxu0 %v7804_v48  ;;  %v7881_v47 = vld [vmem:[#allocation6 + $0x7e4] ss:$40 sps:$4 sm:$0xff]  }
 0x2c2   :  { %4395 = vmatprep.subr.bf16.mxu1 %v7809_v50  ;;  %4567 = vmatprep.subr.bf16.mxu0 %v7812_v51  ;;  %v7884_v48 = vld [vmem:[#allocation6 + $0xcdc] ss:$40 sps:$4 sm:$0xff]   ;;  %v871_v50 = vlaneseq  ;;  %v7879_v51 = vld [vmem:[#allocation6 + $0x7e0] ss:$40 sps:$4 sm:$0xff]  }
 0x2c9   :  { %4396 = vmatpush1.bf16.xpose.msra.mxu1 %v7807_v52  ;;  %4568 = vmatpush1.bf16.xpose.msra.mxu0 %v7810_v53  ;;  %v7882_v52 = vld [vmem:[#allocation6 + $0xcd8] ss:$40 sps:$4 sm:$0xff]   ;;  %v9042_v53 = vshrl.u32 %v871_v50, 7 }
 0x2ca   :  { %4397 = vmatprep.subr.bf16.mxu1 %v7815_v54  ;;  %4569 = vmatprep.subr.bf16.mxu0 %v7818_v55  ;;  %v7887_v54 = vld [vmem:[#allocation6 + $0x834] ss:$40 sps:$4 sm:$0xff]  }
 0x2cb   :  { %v7890_v55 = vld [vmem:[#allocation6 + $0xd2c] ss:$40 sps:$4 sm:$0xff]  }
 0x2d1   :  { %4398 = vmatpush1.bf16.xpose.msra.mxu1 %v7813_v56  ;;  %4570 = vmatpush1.bf16.xpose.msra.mxu0 %v7816_v57  ;;  %v9045_v56 = vsub.s32 0, %v9042_v53  ;;  %v869_v57 = vld [vmem:[#allocation8] sm:$0xff] }
 0x2d2   :  { %4399 = vmatprep.subr.bf16.mxu1 %v7821_v58  ;;  %4571 = vmatprep.subr.bf16.mxu0 %v7824_v59  ;;  %v9048_v58 = vsub.s32 1, %v9042_v53  ;;  %v7885_v59 = vld [vmem:[#allocation6 + $0x830] ss:$40 sps:$4 sm:$0xff]  }
 0x2d9   :  { %4400 = vmatpush1.bf16.xpose.msra.mxu1 %v7819_v60  ;;  %4572 = vmatpush1.bf16.xpose.msra.mxu0 %v7822_v61  ;;  %v7888_v60 = vld [vmem:[#allocation6 + $0xd28] ss:$40 sps:$4 sm:$0xff]   ;;  %v874_v61 = vrot.slane %v869_v57, %v9045_v56 }
 0x2da   :  { %4412 = vmatprep.subr.bf16.mxu1 %v7827_v62  ;;  %4584 = vmatprep.subr.bf16.mxu0 %v7830_v63  ;;  %v7893_v62 = vld [vmem:[#allocation6 + $0x884] ss:$40 sps:$4 sm:$0xff]  }
 0x2db   :  { %v7896_v63 = vld [vmem:[#allocation6 + $0xd7c] ss:$40 sps:$4 sm:$0xff]  }
 0x2e0   :  { %4402 = vmatmul.mubr.bf16.vlgmr.msra.gmra.mrb[4].mxu1 %v9013_v37  ;;  %4574 = vmatmul.mubr.bf16.vlgmr.msra.gmra.mrb[4].mxu0 %v9001_v17 }
 0x2e1   :  { %4413 = vmatpush1.bf16.xpose.msra.mxu1 %v7825_v0  ;;  %4585 = vmatpush1.bf16.xpose.msra.mxu0 %v7828_v1  ;;  %v878_v0 = vrot.slane %v869_v57, %v9048_v58  ;;  %v7316_v1 = vadd.f32 %v9029_v36, %v874_v61  ;;  %v7944_v57 = vld [vmem:[#allocation6 + $0xb04] ss:$40 sps:$4 sm:$0xff]  }
 0x2e2   :  { %4414 = vmatprep.subr.bf16.mxu1 %v7833_v2  ;;  %4586 = vmatprep.subr.bf16.mxu0 %v7836_v3 }
 0x2e3   :  { %4444 = vmatprep.mubr.bf16.mxu1 %v8998_v32  ;;  %4616 = vmatprep.mubr.bf16.mxu0 %v9005_v23  ;;  %v7318_v2 = vadd.f32 %v9031_v39, %v878_v0  ;;  %v7897_v39 = vld [vmem:[#allocation6 + $0x8d0] ss:$40 sps:$4 sm:$0xff]  }
 0x2e9   :  { %4415 = vmatpush1.bf16.xpose.msra.mxu1 %v7831_v4  ;;  %4587 = vmatpush1.bf16.xpose.msra.mxu0 %v7834_v5  ;;  %v7320_v4 = vadd.f32 %v9033_v40, %v874_v61  ;;  %v7900_v40 = vld [vmem:[#allocation6 + $0xdc8] ss:$40 sps:$4 sm:$0xff]   ;;  %v7947_v61 = vld [vmem:[#allocation6 + $0x65c] ss:$40 sps:$4 sm:$0xff]  }
 0x2ea   :  { %4416 = vmatprep.subr.bf16.mxu1 %v7839_v6  ;;  %4588 = vmatprep.subr.bf16.mxu0 %v7842_v7  ;;  %v7322_v7 = vadd.f32 %v9035_v44, %v878_v0  ;;  %v7908_v44 = vld [vmem:[#allocation6 + $0xe1c] ss:$40 sps:$4 sm:$0xff]   ;;  %v7948_v0 = vld [vmem:[#allocation6 + $0xb50] ss:$40 sps:$4 sm:$0xff]  }
 0x2f1   :  { %4417 = vmatpush1.bf16.xpose.msra.mxu1 %v7837_v8  ;;  %4589 = vmatpush1.bf16.xpose.msra.mxu0 %v7840_v9 }
 0x2f2   :  { %4418 = vmatprep.subr.bf16.mxu1 %v7845_v10  ;;  %4590 = vmatprep.subr.bf16.mxu0 %v7848_v11  ;;  %v7891_v10 = vld [vmem:[#allocation6 + $0x880] ss:$40 sps:$4 sm:$0xff]  }
 0x2f3   :  { %v7894_v11 = vld [vmem:[#allocation6 + $0xd78] ss:$40 sps:$4 sm:$0xff]  }
 0x2f9   :  { %4419 = vmatpush1.bf16.xpose.msra.mxu1 %v7843_v12  ;;  %4591 = vmatpush1.bf16.xpose.msra.mxu0 %v7846_v13  ;;  %v7899_v13 = vld [vmem:[#allocation6 + $0x8d4] ss:$40 sps:$4 sm:$0xff]  }
 0x2fa   :  { %4420 = vmatprep.subr.bf16.mxu1 %v7851_v14  ;;  %4592 = vmatprep.subr.bf16.mxu0 %v7854_v15  ;;  %v7902_v14 = vld [vmem:[#allocation6 + $0xdcc] ss:$40 sps:$4 sm:$0xff]  }
 0x301   :  { %4421 = vmatpush1.bf16.xpose.msra.mxu1 %v7849_v16  ;;  %4593 = vmatpush1.bf16.xpose.msra.mxu0 %v7852_v19  ;;  %v7905_v16 = vld [vmem:[#allocation6 + $0x924] ss:$40 sps:$4 sm:$0xff]   ;;  %v7903_v19 = vld [vmem:[#allocation6 + $0x920] ss:$40 sps:$4 sm:$0xff]  }
 0x302   :  { %4422 = vmatprep.subr.bf16.mxu1 %v7857_v20  ;;  %4594 = vmatprep.subr.bf16.mxu0 %v7860_v21  ;;  %v7906_v20 = vld [vmem:[#allocation6 + $0xe18] ss:$40 sps:$4 sm:$0xff]   ;;  %v7911_v21 = vld [vmem:[#allocation6 + $0x974] ss:$40 sps:$4 sm:$0xff]  }
 0x309   :  { %4423 = vmatpush1.bf16.xpose.msra.mxu1 %v7855_v22  ;;  %4595 = vmatpush1.bf16.xpose.msra.mxu0 %v7858_v25  ;;  %v7914_v22 = vld [vmem:[#allocation6 + $0xe6c] ss:$40 sps:$4 sm:$0xff]   ;;  %v7909_v25 = vld [vmem:[#allocation6 + $0x970] ss:$40 sps:$4 sm:$0xff]  }
 0x30a   :  { %4424 = vmatprep.subr.bf16.mxu1 %v7863_v26  ;;  %4596 = vmatprep.subr.bf16.mxu0 %v7866_v27  ;;  %v7912_v26 = vld [vmem:[#allocation6 + $0xe68] ss:$40 sps:$4 sm:$0xff]   ;;  %v7917_v27 = vld [vmem:[#allocation6 + $0x9c4] ss:$40 sps:$4 sm:$0xff]  }
 0x311   :  { %4425 = vmatpush1.bf16.xpose.msra.mxu1 %v7861_v28  ;;  %4597 = vmatpush1.bf16.xpose.msra.mxu0 %v7864_v30  ;;  %v7920_v28 = vld [vmem:[#allocation6 + $0xebc] ss:$40 sps:$4 sm:$0xff]   ;;  %v7915_v30 = vld [vmem:[#allocation6 + $0x9c0] ss:$40 sps:$4 sm:$0xff]  }
 0x312   :  { %4426 = vmatprep.subr.bf16.mxu1 %v7869_v31  ;;  %4598 = vmatprep.subr.bf16.mxu0 %v7872_v33  ;;  %v7918_v31 = vld [vmem:[#allocation6 + $0xeb8] ss:$40 sps:$4 sm:$0xff]   ;;  %v7923_v33 = vld [vmem:[#allocation6 + $0x51c] ss:$40 sps:$4 sm:$0xff]  }
 0x319   :  { %4427 = vmatpush1.bf16.xpose.msra.mxu1 %v7867_v34  ;;  %4599 = vmatpush1.bf16.xpose.msra.mxu0 %v7870_v35  ;;  %v7926_v34 = vld [vmem:[#allocation6 + $0xa14] ss:$40 sps:$4 sm:$0xff]   ;;  %v7921_v35 = vld [vmem:[#allocation6 + $0x518] ss:$40 sps:$4 sm:$0xff]  }
 0x31a   :  { %4428 = vmatprep.subr.bf16.mxu1 %v7875_v42  ;;  %4600 = vmatprep.subr.bf16.mxu0 %v7878_v43  ;;  %v7924_v42 = vld [vmem:[#allocation6 + $0xa10] ss:$40 sps:$4 sm:$0xff]   ;;  %v7929_v43 = vld [vmem:[#allocation6 + $0x56c] ss:$40 sps:$4 sm:$0xff]  }
 0x321   :  { %4429 = vmatpush1.bf16.xpose.msra.mxu1 %v7873_v45  ;;  %4601 = vmatpush1.bf16.xpose.msra.mxu0 %v7876_v46  ;;  %v7932_v45 = vld [vmem:[#allocation6 + $0xa64] ss:$40 sps:$4 sm:$0xff]   ;;  %v7927_v46 = vld [vmem:[#allocation6 + $0x568] ss:$40 sps:$4 sm:$0xff]  }
 0x322   :  { %4430 = vmatprep.subr.bf16.mxu1 %v7881_v47  ;;  %4602 = vmatprep.subr.bf16.mxu0 %v7884_v48  ;;  %v7930_v47 = vld [vmem:[#allocation6 + $0xa60] ss:$40 sps:$4 sm:$0xff]   ;;  %v7935_v48 = vld [vmem:[#allocation6 + $0x5bc] ss:$40 sps:$4 sm:$0xff]  }
 0x329   :  { %4431 = vmatpush1.bf16.xpose.msra.mxu1 %v7879_v51  ;;  %4603 = vmatpush1.bf16.xpose.msra.mxu0 %v7882_v52  ;;  %v7938_v51 = vld [vmem:[#allocation6 + $0xab4] ss:$40 sps:$4 sm:$0xff]   ;;  %v7933_v52 = vld [vmem:[#allocation6 + $0x5b8] ss:$40 sps:$4 sm:$0xff]  }
 0x32a   :  { %4432 = vmatprep.subr.bf16.mxu1 %v7887_v54  ;;  %4604 = vmatprep.subr.bf16.mxu0 %v7890_v55  ;;  %v7936_v54 = vld [vmem:[#allocation6 + $0xab0] ss:$40 sps:$4 sm:$0xff]   ;;  %v7941_v55 = vld [vmem:[#allocation6 + $0x60c] ss:$40 sps:$4 sm:$0xff]  }
 0x331   :  { %4433 = vmatpush1.bf16.xpose.msra.mxu1 %v7885_v59  ;;  %4605 = vmatpush1.bf16.xpose.msra.mxu0 %v7888_v60  ;;  %v7939_v59 = vld [vmem:[#allocation6 + $0x608] ss:$40 sps:$4 sm:$0xff]  }
 0x332   :  { %4434 = vmatprep.subr.bf16.mxu1 %v7893_v62  ;;  %4606 = vmatprep.subr.bf16.mxu0 %v7896_v63  ;;  %v7942_v60 = vld [vmem:[#allocation6 + $0xb00] ss:$40 sps:$4 sm:$0xff]   ;;  %v7950_v62 = vld [vmem:[#allocation6 + $0xb54] ss:$40 sps:$4 sm:$0xff]  }
 0x333   :  { %v4317_v3 = vpop.f32.mrb[0].mxu0  ;;  %v7945_v63 = vld [vmem:[#allocation6 + $0x658] ss:$40 sps:$4 sm:$0xff]  }
 0x334   :  { %v9055_v5 = vadd.f32 %v7316_v1, %v4317_v3  ;;  %v4319_v6 = vpop.f32.mrb[1].mxu0  ;;  %v7953_v1 = vld [vmem:[#allocation6 + $0x6ac] ss:$40 sps:$4 sm:$0xff]   ;;  %v7951_v3 = vld [vmem:[#allocation6 + $0x6a8] ss:$40 sps:$4 sm:$0xff]  }
 0x335   :  { %v9058_v8 = vadd.f32 %v7318_v2, %v4319_v6  ;;  %v4321_v9 = vpop.f32.mrb[2].mxu0  ;;  %v7956_v2 = vld [vmem:[#allocation6 + $0xba4] ss:$40 sps:$4 sm:$0xff]  }
 0x336   :  { %v9060_v12 = vadd.f32 %v7320_v4, %v4321_v9  ;;  %v4323_v36 = vpop.f32.mrb[3].mxu0  ;;  %v7954_v4 = vld [vmem:[#allocation6 + $0xba0] ss:$40 sps:$4 sm:$0xff]   ;;  %v7959_v6 = vld [vmem:[#allocation6 + $0x6fc] ss:$40 sps:$4 sm:$0xff]  }
 0x337   :  { %v9062_v15 = vadd.f32 %v7322_v7, %v4323_v36  ;;  %v7962_v7 = vld [vmem:[#allocation6 + $0xbf4] ss:$40 sps:$4 sm:$0xff]   ;;  %v7957_v9 = vld [vmem:[#allocation6 + $0x6f8] ss:$40 sps:$4 sm:$0xff]   ;;  %v7968_v36 = vld [vmem:[#allocation6 + $0xc44] ss:$40 sps:$4 sm:$0xff]  }
 0x339   :  { %4435 = vmatpush1.bf16.xpose.msra.mxu1 %v7891_v10  ;;  %4607 = vmatpush1.bf16.xpose.msra.mxu0 %v7894_v11  ;;  %v7960_v10 = vld [vmem:[#allocation6 + $0xbf0] ss:$40 sps:$4 sm:$0xff]   ;;  %v7965_v11 = vld [vmem:[#allocation6 + $0x74c] ss:$40 sps:$4 sm:$0xff]  }
 0x33a   :  { %4436 = vmatprep.subr.bf16.mxu1 %v7899_v13  ;;  %4608 = vmatprep.subr.bf16.mxu0 %v7902_v14  ;;  %v7963_v13 = vld [vmem:[#allocation6 + $0x748] ss:$40 sps:$4 sm:$0xff]  }
 0x33b   :  { %v7966_v14 = vld [vmem:[#allocation6 + $0xc40] ss:$40 sps:$4 sm:$0xff]  }
 0x341   :  { %4437 = vmatpush1.bf16.xpose.msra.mxu1 %v7897_v39  ;;  %4609 = vmatpush1.bf16.xpose.msra.mxu0 %v7900_v40  ;;  %v7971_v39 = vld [vmem:[#allocation6 + $0x79c] ss:$40 sps:$4 sm:$0xff]  }
 0x342   :  { %4438 = vmatprep.subr.bf16.mxu1 %v7905_v16  ;;  %4610 = vmatprep.subr.bf16.mxu0 %v7908_v44  ;;  %v7974_v40 = vld [vmem:[#allocation6 + $0xc94] ss:$40 sps:$4 sm:$0xff]   ;;  %v7969_v16 = vld [vmem:[#allocation6 + $0x798] ss:$40 sps:$4 sm:$0xff]  }
 0x343   :  { %v7972_v44 = vld [vmem:[#allocation6 + $0xc90] ss:$40 sps:$4 sm:$0xff]  }
 0x349   :  { %4439 = vmatpush1.bf16.xpose.msra.mxu1 %v7903_v19  ;;  %4611 = vmatpush1.bf16.xpose.msra.mxu0 %v7906_v20  ;;  %v7977_v19 = vld [vmem:[#allocation6 + $0x7ec] ss:$40 sps:$4 sm:$0xff]  }
 0x34a   :  { %4440 = vmatprep.subr.bf16.mxu1 %v7911_v21  ;;  %4612 = vmatprep.subr.bf16.mxu0 %v7914_v22  ;;  %v7980_v20 = vld [vmem:[#allocation6 + $0xce4] ss:$40 sps:$4 sm:$0xff]   ;;  %v7975_v21 = vld [vmem:[#allocation6 + $0x7e8] ss:$40 sps:$4 sm:$0xff]  }
 0x34b   :  { %v7978_v22 = vld [vmem:[#allocation6 + $0xce0] ss:$40 sps:$4 sm:$0xff]  }
 0x351   :  { %4441 = vmatpush1.bf16.xpose.msra.mxu1 %v7909_v25  ;;  %4613 = vmatpush1.bf16.xpose.msra.mxu0 %v7912_v26  ;;  %v7983_v25 = vld [vmem:[#allocation6 + $0x83c] ss:$40 sps:$4 sm:$0xff]  }
 0x352   :  { %4442 = vmatprep.subr.bf16.mxu1 %v7917_v27  ;;  %4614 = vmatprep.subr.bf16.mxu0 %v7920_v28  ;;  %v7986_v26 = vld [vmem:[#allocation6 + $0xd34] ss:$40 sps:$4 sm:$0xff]   ;;  %v7981_v27 = vld [vmem:[#allocation6 + $0x838] ss:$40 sps:$4 sm:$0xff]  }
 0x353   :  { %v7984_v28 = vld [vmem:[#allocation6 + $0xd30] ss:$40 sps:$4 sm:$0xff]  }
 0x359   :  { %4443 = vmatpush1.bf16.xpose.msra.mxu1 %v7915_v30  ;;  %4615 = vmatpush1.bf16.xpose.msra.mxu0 %v7918_v31  ;;  %v7989_v30 = vld [vmem:[#allocation6 + $0x88c] ss:$40 sps:$4 sm:$0xff]  }
 0x35a   :  { %4455 = vmatprep.subr.bf16.mxu1 %v7923_v33  ;;  %4627 = vmatprep.subr.bf16.mxu0 %v7926_v34  ;;  %v7992_v31 = vld [vmem:[#allocation6 + $0xd84] ss:$40 sps:$4 sm:$0xff]   ;;  %v7987_v33 = vld [vmem:[#allocation6 + $0x888] ss:$40 sps:$4 sm:$0xff]  }
 0x35b   :  { %v7990_v34 = vld [vmem:[#allocation6 + $0xd80] ss:$40 sps:$4 sm:$0xff]  }
 0x360   :  { %4445 = vmatmul.mubr.bf16.vlgmr.msra.gmra.mrb[4].mxu1 %v9003_v18  ;;  %4617 = vmatmul.mubr.bf16.vlgmr.msra.gmra.mrb[4].mxu0 %v9013_v37 }
 0x361   :  { %4456 = vmatpush1.bf16.xpose.msra.mxu1 %v7921_v35  ;;  %4628 = vmatpush1.bf16.xpose.msra.mxu0 %v7924_v42  ;;  %v7995_v35 = vld [vmem:[#allocation6 + $0x8dc] ss:$40 sps:$4 sm:$0xff]  }
 0x362   :  { %4457 = vmatprep.subr.bf16.mxu1 %v7929_v43  ;;  %4629 = vmatprep.subr.bf16.mxu0 %v7932_v45  ;;  %v7998_v42 = vld [vmem:[#allocation6 + $0xdd4] ss:$40 sps:$4 sm:$0xff]   ;;  %v7993_v43 = vld [vmem:[#allocation6 + $0x8d8] ss:$40 sps:$4 sm:$0xff]  }
 0x363   :  { %4487 = vmatprep.mubr.bf16.mxu1 %v9007_v24  ;;  %4659 = vmatprep.mubr.bf16.mxu0 %v8998_v32  ;;  %v7996_v45 = vld [vmem:[#allocation6 + $0xdd0] ss:$40 sps:$4 sm:$0xff]  }
 0x369   :  { %4458 = vmatpush1.bf16.xpose.msra.mxu1 %v7927_v46  ;;  %4630 = vmatpush1.bf16.xpose.msra.mxu0 %v7930_v47  ;;  %v8001_v46 = vld [vmem:[#allocation6 + $0x92c] ss:$40 sps:$4 sm:$0xff]  }
 0x36a   :  { %4459 = vmatprep.subr.bf16.mxu1 %v7935_v48  ;;  %4631 = vmatprep.subr.bf16.mxu0 %v7938_v51  ;;  %v8004_v47 = vld [vmem:[#allocation6 + $0xe24] ss:$40 sps:$4 sm:$0xff]   ;;  %v7999_v48 = vld [vmem:[#allocation6 + $0x928] ss:$40 sps:$4 sm:$0xff]  }
 0x36b   :  { %v8002_v51 = vld [vmem:[#allocation6 + $0xe20] ss:$40 sps:$4 sm:$0xff]  }
 0x371   :  { %4460 = vmatpush1.bf16.xpose.msra.mxu1 %v7933_v52  ;;  %4632 = vmatpush1.bf16.xpose.msra.mxu0 %v7936_v54  ;;  %v8007_v52 = vld [vmem:[#allocation6 + $0x97c] ss:$40 sps:$4 sm:$0xff]  }
 0x372   :  { %4461 = vmatprep.subr.bf16.mxu1 %v7941_v55  ;;  %4633 = vmatprep.subr.bf16.mxu0 %v7944_v57  ;;  %v8010_v54 = vld [vmem:[#allocation6 + $0xe74] ss:$40 sps:$4 sm:$0xff]   ;;  %v8005_v55 = vld [vmem:[#allocation6 + $0x978] ss:$40 sps:$4 sm:$0xff]  }
 0x373   :  { %v8008_v57 = vld [vmem:[#allocation6 + $0xe70] ss:$40 sps:$4 sm:$0xff]  }
 0x379   :  { %4462 = vmatpush1.bf16.xpose.msra.mxu1 %v7939_v59  ;;  %4634 = vmatpush1.bf16.xpose.msra.mxu0 %v7942_v60  ;;  %v8013_v59 = vld [vmem:[#allocation6 + $0x9cc] ss:$40 sps:$4 sm:$0xff]  }
 0x37a   :  { %4463 = vmatprep.subr.bf16.mxu1 %v7947_v61  ;;  %4635 = vmatprep.subr.bf16.mxu0 %v7950_v62  ;;  %v8016_v60 = vld [vmem:[#allocation6 + $0xec4] ss:$40 sps:$4 sm:$0xff]   ;;  %v8011_v61 = vld [vmem:[#allocation6 + $0x9c8] ss:$40 sps:$4 sm:$0xff]  }
 0x37b   :  { %v8014_v62 = vld [vmem:[#allocation6 + $0xec0] ss:$40 sps:$4 sm:$0xff]  }
 0x381   :  { %4464 = vmatpush1.bf16.xpose.msra.mxu1 %v7945_v63  ;;  %4636 = vmatpush1.bf16.xpose.msra.mxu0 %v7948_v0  ;;  %v8019_v63 = vld [vmem:[#allocation6 + $0x524] ss:$40 sps:$4 sm:$0xff]  }
 0x382   :  { %4465 = vmatprep.subr.bf16.mxu1 %v7953_v1  ;;  %4637 = vmatprep.subr.bf16.mxu0 %v7956_v2  ;;  %v8022_v0 = vld [vmem:[#allocation6 + $0xa1c] ss:$40 sps:$4 sm:$0xff]   ;;  %v8017_v1 = vld [vmem:[#allocation6 + $0x520] ss:$40 sps:$4 sm:$0xff]  }
 0x383   :  { %v8020_v2 = vld [vmem:[#allocation6 + $0xa18] ss:$40 sps:$4 sm:$0xff]  }
 0x389   :  { %4466 = vmatpush1.bf16.xpose.msra.mxu1 %v7951_v3  ;;  %4638 = vmatpush1.bf16.xpose.msra.mxu0 %v7954_v4  ;;  %v8025_v3 = vld [vmem:[#allocation6 + $0x574] ss:$40 sps:$4 sm:$0xff]  }
 0x38a   :  { %4467 = vmatprep.subr.bf16.mxu1 %v7959_v6  ;;  %4639 = vmatprep.subr.bf16.mxu0 %v7962_v7  ;;  %v8028_v4 = vld [vmem:[#allocation6 + $0xa6c] ss:$40 sps:$4 sm:$0xff]   ;;  %v8023_v6 = vld [vmem:[#allocation6 + $0x570] ss:$40 sps:$4 sm:$0xff]  }
 0x38b   :  { %v8026_v7 = vld [vmem:[#allocation6 + $0xa68] ss:$40 sps:$4 sm:$0xff]  }
 0x391   :  { %4468 = vmatpush1.bf16.xpose.msra.mxu1 %v7957_v9  ;;  %4640 = vmatpush1.bf16.xpose.msra.mxu0 %v7960_v10  ;;  %v8031_v9 = vld [vmem:[#allocation6 + $0x5c4] ss:$40 sps:$4 sm:$0xff]  }
 0x392   :  { %4469 = vmatprep.subr.bf16.mxu1 %v7965_v11  ;;  %4641 = vmatprep.subr.bf16.mxu0 %v7968_v36  ;;  %v8034_v10 = vld [vmem:[#allocation6 + $0xabc] ss:$40 sps:$4 sm:$0xff]   ;;  %v8029_v11 = vld [vmem:[#allocation6 + $0x5c0] ss:$40 sps:$4 sm:$0xff]  }
 0x393   :  { %v8032_v36 = vld [vmem:[#allocation6 + $0xab8] ss:$40 sps:$4 sm:$0xff]  }
 0x399   :  { %4470 = vmatpush1.bf16.xpose.msra.mxu1 %v7963_v13  ;;  %4642 = vmatpush1.bf16.xpose.msra.mxu0 %v7966_v14  ;;  %v8037_v13 = vld [vmem:[#allocation6 + $0x614] ss:$40 sps:$4 sm:$0xff]  }
 0x39a   :  { %4471 = vmatprep.subr.bf16.mxu1 %v7971_v39  ;;  %4643 = vmatprep.subr.bf16.mxu0 %v7974_v40  ;;  %v8040_v14 = vld [vmem:[#allocation6 + $0xb0c] ss:$40 sps:$4 sm:$0xff]   ;;  %v8035_v39 = vld [vmem:[#allocation6 + $0x610] ss:$40 sps:$4 sm:$0xff]  }
 0x39b   :  { %v8038_v40 = vld [vmem:[#allocation6 + $0xb08] ss:$40 sps:$4 sm:$0xff]  }
 0x3a1   :  { %4472 = vmatpush1.bf16.xpose.msra.mxu1 %v7969_v16  ;;  %4644 = vmatpush1.bf16.xpose.msra.mxu0 %v7972_v44  ;;  %v8043_v16 = vld [vmem:[#allocation6 + $0x664] ss:$40 sps:$4 sm:$0xff]  }
 0x3a2   :  { %4473 = vmatprep.subr.bf16.mxu1 %v7977_v19  ;;  %4645 = vmatprep.subr.bf16.mxu0 %v7980_v20  ;;  %v8046_v44 = vld [vmem:[#allocation6 + $0xb5c] ss:$40 sps:$4 sm:$0xff]   ;;  %v8041_v19 = vld [vmem:[#allocation6 + $0x660] ss:$40 sps:$4 sm:$0xff]  }
 0x3a3   :  { %v8044_v20 = vld [vmem:[#allocation6 + $0xb58] ss:$40 sps:$4 sm:$0xff]  }
 0x3a9   :  { %4474 = vmatpush1.bf16.xpose.msra.mxu1 %v7975_v21  ;;  %4646 = vmatpush1.bf16.xpose.msra.mxu0 %v7978_v22  ;;  %v8049_v21 = vld [vmem:[#allocation6 + $0x6b4] ss:$40 sps:$4 sm:$0xff]  }
 0x3aa   :  { %4475 = vmatprep.subr.bf16.mxu1 %v7983_v25  ;;  %4647 = vmatprep.subr.bf16.mxu0 %v7986_v26  ;;  %v8052_v22 = vld [vmem:[#allocation6 + $0xbac] ss:$40 sps:$4 sm:$0xff]   ;;  %v8047_v25 = vld [vmem:[#allocation6 + $0x6b0] ss:$40 sps:$4 sm:$0xff]  }
 0x3ab   :  { %v8050_v26 = vld [vmem:[#allocation6 + $0xba8] ss:$40 sps:$4 sm:$0xff]  }
 0x3b1   :  { %4476 = vmatpush1.bf16.xpose.msra.mxu1 %v7981_v27  ;;  %4648 = vmatpush1.bf16.xpose.msra.mxu0 %v7984_v28  ;;  %v8055_v27 = vld [vmem:[#allocation6 + $0x704] ss:$40 sps:$4 sm:$0xff]  }
 0x3b2   :  { %4477 = vmatprep.subr.bf16.mxu1 %v7989_v30  ;;  %4649 = vmatprep.subr.bf16.mxu0 %v7992_v31  ;;  %v8058_v28 = vld [vmem:[#allocation6 + $0xbfc] ss:$40 sps:$4 sm:$0xff]   ;;  %v8053_v30 = vld [vmem:[#allocation6 + $0x700] ss:$40 sps:$4 sm:$0xff]  }
 0x3b3   :  { %v8056_v31 = vld [vmem:[#allocation6 + $0xbf8] ss:$40 sps:$4 sm:$0xff]  }
 0x3b9   :  { %4478 = vmatpush1.bf16.xpose.msra.mxu1 %v7987_v33  ;;  %4650 = vmatpush1.bf16.xpose.msra.mxu0 %v7990_v34  ;;  %v8061_v33 = vld [vmem:[#allocation6 + $0x754] ss:$40 sps:$4 sm:$0xff]  }
 0x3ba   :  { %4479 = vmatprep.subr.bf16.mxu1 %v7995_v35  ;;  %4651 = vmatprep.subr.bf16.mxu0 %v7998_v42  ;;  %v8064_v34 = vld [vmem:[#allocation6 + $0xc4c] ss:$40 sps:$4 sm:$0xff]   ;;  %v8059_v35 = vld [vmem:[#allocation6 + $0x750] ss:$40 sps:$4 sm:$0xff]  }
 0x3bb   :  { %v8062_v42 = vld [vmem:[#allocation6 + $0xc48] ss:$40 sps:$4 sm:$0xff]  }
 0x3c1   :  { %4480 = vmatpush1.bf16.xpose.msra.mxu1 %v7993_v43  ;;  %4652 = vmatpush1.bf16.xpose.msra.mxu0 %v7996_v45  ;;  %v8067_v43 = vld [vmem:[#allocation6 + $0x7a4] ss:$40 sps:$4 sm:$0xff]  }
 0x3c2   :  { %4481 = vmatprep.subr.bf16.mxu1 %v8001_v46  ;;  %4653 = vmatprep.subr.bf16.mxu0 %v8004_v47  ;;  %v8070_v45 = vld [vmem:[#allocation6 + $0xc9c] ss:$40 sps:$4 sm:$0xff]   ;;  %v8065_v46 = vld [vmem:[#allocation6 + $0x7a0] ss:$40 sps:$4 sm:$0xff]  }
 0x3c3   :  { %v8068_v47 = vld [vmem:[#allocation6 + $0xc98] ss:$40 sps:$4 sm:$0xff]  }
 0x3c9   :  { %4482 = vmatpush1.bf16.xpose.msra.mxu1 %v7999_v48  ;;  %4654 = vmatpush1.bf16.xpose.msra.mxu0 %v8002_v51  ;;  %v8073_v48 = vld [vmem:[#allocation6 + $0x7f4] ss:$40 sps:$4 sm:$0xff]  }
 0x3ca   :  { %4483 = vmatprep.subr.bf16.mxu1 %v8007_v52  ;;  %4655 = vmatprep.subr.bf16.mxu0 %v8010_v54  ;;  %v8076_v51 = vld [vmem:[#allocation6 + $0xcec] ss:$40 sps:$4 sm:$0xff]   ;;  %v8071_v52 = vld [vmem:[#allocation6 + $0x7f0] ss:$40 sps:$4 sm:$0xff]  }
 0x3cb   :  { %v8074_v54 = vld [vmem:[#allocation6 + $0xce8] ss:$40 sps:$4 sm:$0xff]  }
 0x3d1   :  { %4484 = vmatpush1.bf16.xpose.msra.mxu1 %v8005_v55  ;;  %4656 = vmatpush1.bf16.xpose.msra.mxu0 %v8008_v57  ;;  %v8079_v55 = vld [vmem:[#allocation6 + $0x844] ss:$40 sps:$4 sm:$0xff]  }
 0x3d2   :  { %4485 = vmatprep.subr.bf16.mxu1 %v8013_v59  ;;  %4657 = vmatprep.subr.bf16.mxu0 %v8016_v60  ;;  %v8082_v57 = vld [vmem:[#allocation6 + $0xd3c] ss:$40 sps:$4 sm:$0xff]   ;;  %v8077_v59 = vld [vmem:[#allocation6 + $0x840] ss:$40 sps:$4 sm:$0xff]  }
 0x3d3   :  { %v8080_v60 = vld [vmem:[#allocation6 + $0xd38] ss:$40 sps:$4 sm:$0xff]  }
 0x3d9   :  { %4486 = vmatpush1.bf16.xpose.msra.mxu1 %v8011_v61  ;;  %4658 = vmatpush1.bf16.xpose.msra.mxu0 %v8014_v62  ;;  %v8085_v61 = vld [vmem:[#allocation6 + $0x894] ss:$40 sps:$4 sm:$0xff]  }
 0x3da   :  { %4498 = vmatprep.subr.bf16.mxu1 %v8019_v63  ;;  %4670 = vmatprep.subr.bf16.mxu0 %v8022_v0  ;;  %v8088_v62 = vld [vmem:[#allocation6 + $0xd8c] ss:$40 sps:$4 sm:$0xff]   ;;  %v8083_v63 = vld [vmem:[#allocation6 + $0x890] ss:$40 sps:$4 sm:$0xff]  }
 0x3db   :  { %v8086_v0 = vld [vmem:[#allocation6 + $0xd88] ss:$40 sps:$4 sm:$0xff]  }
 0x3e0   :  { %4488 = vmatmul.mubr.bf16.vlgmr.msra.gmra.mrb[4].mxu1 %v9015_v38  ;;  %4660 = vmatmul.mubr.bf16.vlgmr.msra.gmra.mrb[4].mxu0 %v9003_v18 }
 0x3e1   :  { %4499 = vmatpush1.bf16.xpose.msra.mxu1 %v8017_v1  ;;  %4671 = vmatpush1.bf16.xpose.msra.mxu0 %v8020_v2  ;;  %v8091_v1 = vld [vmem:[#allocation6 + $0x8e4] ss:$40 sps:$4 sm:$0xff]  }
 0x3e2   :  { %4500 = vmatprep.subr.bf16.mxu1 %v8025_v3  ;;  %4672 = vmatprep.subr.bf16.mxu0 %v8028_v4  ;;  %v8094_v2 = vld [vmem:[#allocation6 + $0xddc] ss:$40 sps:$4 sm:$0xff]   ;;  %v8089_v3 = vld [vmem:[#allocation6 + $0x8e0] ss:$40 sps:$4 sm:$0xff]  }
 0x3e3   :  { %4530 = vmatprep.mubr.bf16.mxu1 %v9017_v41  ;;  %4702 = vmatprep.mubr.bf16.mxu0 %v9007_v24  ;;  %v8092_v4 = vld [vmem:[#allocation6 + $0xdd8] ss:$40 sps:$4 sm:$0xff]  }
 0x3e9   :  { %4501 = vmatpush1.bf16.xpose.msra.mxu1 %v8023_v6  ;;  %4673 = vmatpush1.bf16.xpose.msra.mxu0 %v8026_v7  ;;  %v8097_v6 = vld [vmem:[#allocation6 + $0x934] ss:$40 sps:$4 sm:$0xff]  }
 0x3ea   :  { %4502 = vmatprep.subr.bf16.mxu1 %v8031_v9  ;;  %4674 = vmatprep.subr.bf16.mxu0 %v8034_v10  ;;  %v8100_v7 = vld [vmem:[#allocation6 + $0xe2c] ss:$40 sps:$4 sm:$0xff]   ;;  %v8095_v9 = vld [vmem:[#allocation6 + $0x930] ss:$40 sps:$4 sm:$0xff]  }
 0x3eb   :  { %v8098_v10 = vld [vmem:[#allocation6 + $0xe28] ss:$40 sps:$4 sm:$0xff]  }
 0x3f1   :  { %4503 = vmatpush1.bf16.xpose.msra.mxu1 %v8029_v11  ;;  %4675 = vmatpush1.bf16.xpose.msra.mxu0 %v8032_v36  ;;  %v8103_v11 = vld [vmem:[#allocation6 + $0x984] ss:$40 sps:$4 sm:$0xff]  }
 0x3f2   :  { %4504 = vmatprep.subr.bf16.mxu1 %v8037_v13  ;;  %4676 = vmatprep.subr.bf16.mxu0 %v8040_v14  ;;  %v8106_v36 = vld [vmem:[#allocation6 + $0xe7c] ss:$40 sps:$4 sm:$0xff]   ;;  %v8101_v13 = vld [vmem:[#allocation6 + $0x980] ss:$40 sps:$4 sm:$0xff]  }
 0x3f3   :  { %v8104_v14 = vld [vmem:[#allocation6 + $0xe78] ss:$40 sps:$4 sm:$0xff]  }
 0x3f9   :  { %4505 = vmatpush1.bf16.xpose.msra.mxu1 %v8035_v39  ;;  %4677 = vmatpush1.bf16.xpose.msra.mxu0 %v8038_v40  ;;  %v8109_v39 = vld [vmem:[#allocation6 + $0x9d4] ss:$40 sps:$4 sm:$0xff]  }
 0x3fa   :  { %4506 = vmatprep.subr.bf16.mxu1 %v8043_v16  ;;  %4678 = vmatprep.subr.bf16.mxu0 %v8046_v44  ;;  %v8112_v40 = vld [vmem:[#allocation6 + $0xecc] ss:$40 sps:$4 sm:$0xff]   ;;  %v8107_v16 = vld [vmem:[#allocation6 + $0x9d0] ss:$40 sps:$4 sm:$0xff]  }
 0x3fb   :  { %v8110_v44 = vld [vmem:[#allocation6 + $0xec8] ss:$40 sps:$4 sm:$0xff]  }
 0x401   :  { %4507 = vmatpush1.bf16.xpose.msra.mxu1 %v8041_v19  ;;  %4679 = vmatpush1.bf16.xpose.msra.mxu0 %v8044_v20  ;;  %v8115_v19 = vld [vmem:[#allocation6 + $0xa24] ss:$40 sps:$4 sm:$0xff]  }
 0x402   :  { %4508 = vmatprep.subr.bf16.mxu1 %v8049_v21  ;;  %4680 = vmatprep.subr.bf16.mxu0 %v8052_v22  ;;  %v8118_v20 = vld [vmem:[#allocation6 + $0xf04] ss:$40 sps:$4 sm:$0xff]   ;;  %v8113_v21 = vld [vmem:[#allocation6 + $0xa20] ss:$40 sps:$4 sm:$0xff]  }
 0x403   :  { %v8116_v22 = vld [vmem:[#allocation6 + $0xf00] ss:$40 sps:$4 sm:$0xff]  }
 0x409   :  { %4509 = vmatpush1.bf16.xpose.msra.mxu1 %v8047_v25  ;;  %4681 = vmatpush1.bf16.xpose.msra.mxu0 %v8050_v26  ;;  %v8121_v25 = vld [vmem:[#allocation6 + $0xa74] ss:$40 sps:$4 sm:$0xff]  }
 0x40a   :  { %4510 = vmatprep.subr.bf16.mxu1 %v8055_v27  ;;  %4682 = vmatprep.subr.bf16.mxu0 %v8058_v28  ;;  %v8124_v26 = vld [vmem:[#allocation6 + $0xf54] ss:$40 sps:$4 sm:$0xff]   ;;  %v8119_v27 = vld [vmem:[#allocation6 + $0xa70] ss:$40 sps:$4 sm:$0xff]  }
 0x40b   :  { %v8122_v28 = vld [vmem:[#allocation6 + $0xf50] ss:$40 sps:$4 sm:$0xff]  }
 0x411   :  { %4511 = vmatpush1.bf16.xpose.msra.mxu1 %v8053_v30  ;;  %4683 = vmatpush1.bf16.xpose.msra.mxu0 %v8056_v31  ;;  %v8127_v30 = vld [vmem:[#allocation6 + $0xac4] ss:$40 sps:$4 sm:$0xff]  }
 0x412   :  { %4512 = vmatprep.subr.bf16.mxu1 %v8061_v33  ;;  %4684 = vmatprep.subr.bf16.mxu0 %v8064_v34  ;;  %v8130_v31 = vld [vmem:[#allocation6 + $0xfa4] ss:$40 sps:$4 sm:$0xff]   ;;  %v8125_v33 = vld [vmem:[#allocation6 + $0xac0] ss:$40 sps:$4 sm:$0xff]  }
 0x413   :  { %v8128_v34 = vld [vmem:[#allocation6 + $0xfa0] ss:$40 sps:$4 sm:$0xff]  }
 0x419   :  { %4513 = vmatpush1.bf16.xpose.msra.mxu1 %v8059_v35  ;;  %4685 = vmatpush1.bf16.xpose.msra.mxu0 %v8062_v42  ;;  %v8133_v35 = vld [vmem:[#allocation6 + $0xb14] ss:$40 sps:$4 sm:$0xff]  }
 0x41a   :  { %4514 = vmatprep.subr.bf16.mxu1 %v8067_v43  ;;  %4686 = vmatprep.subr.bf16.mxu0 %v8070_v45  ;;  %v8136_v42 = vld [vmem:[#allocation6 + $0xff4] ss:$40 sps:$4 sm:$0xff]   ;;  %v8131_v43 = vld [vmem:[#allocation6 + $0xb10] ss:$40 sps:$4 sm:$0xff]  }
 0x41b   :  { %v8134_v45 = vld [vmem:[#allocation6 + $0xff0] ss:$40 sps:$4 sm:$0xff]  }
 0x421   :  { %4515 = vmatpush1.bf16.xpose.msra.mxu1 %v8065_v46  ;;  %4687 = vmatpush1.bf16.xpose.msra.mxu0 %v8068_v47  ;;  %v8139_v46 = vld [vmem:[#allocation6 + $0xb64] ss:$40 sps:$4 sm:$0xff]   ;;  %v8137_v47 = vld [vmem:[#allocation6 + $0xb60] ss:$40 sps:$4 sm:$0xff]  }
 0x422   :  { %4516 = vmatprep.subr.bf16.mxu1 %v8073_v48  ;;  %4688 = vmatprep.subr.bf16.mxu0 %v8076_v51  ;;  %v8140_v48 = vld [vmem:[#allocation6 + $0x1040] ss:$40 sps:$4 sm:$0xff]   ;;  %v8145_v51 = vld [vmem:[#allocation6 + $0xbb4] ss:$40 sps:$4 sm:$0xff]  }
 0x429   :  { %4517 = vmatpush1.bf16.xpose.msra.mxu1 %v8071_v52  ;;  %4689 = vmatpush1.bf16.xpose.msra.mxu0 %v8074_v54  ;;  %v8148_v52 = vld [vmem:[#allocation6 + $0x1094] ss:$40 sps:$4 sm:$0xff]   ;;  %v8143_v54 = vld [vmem:[#allocation6 + $0xbb0] ss:$40 sps:$4 sm:$0xff]  }
 0x42a   :  { %4518 = vmatprep.subr.bf16.mxu1 %v8079_v55  ;;  %4690 = vmatprep.subr.bf16.mxu0 %v8082_v57  ;;  %v8146_v55 = vld [vmem:[#allocation6 + $0x1090] ss:$40 sps:$4 sm:$0xff]   ;;  %v8151_v57 = vld [vmem:[#allocation6 + $0xc04] ss:$40 sps:$4 sm:$0xff]  }
 0x431   :  { %4519 = vmatpush1.bf16.xpose.msra.mxu1 %v8077_v59  ;;  %4691 = vmatpush1.bf16.xpose.msra.mxu0 %v8080_v60  ;;  %v8154_v59 = vld [vmem:[#allocation6 + $0x10e4] ss:$40 sps:$4 sm:$0xff]   ;;  %v8149_v60 = vld [vmem:[#allocation6 + $0xc00] ss:$40 sps:$4 sm:$0xff]  }
 0x432   :  { %4520 = vmatprep.subr.bf16.mxu1 %v8085_v61  ;;  %4692 = vmatprep.subr.bf16.mxu0 %v8088_v62  ;;  %v8152_v61 = vld [vmem:[#allocation6 + $0x10e0] ss:$40 sps:$4 sm:$0xff]   ;;  %v8157_v62 = vld [vmem:[#allocation6 + $0xc54] ss:$40 sps:$4 sm:$0xff]  }
 0x439   :  { %4521 = vmatpush1.bf16.xpose.msra.mxu1 %v8083_v63  ;;  %4693 = vmatpush1.bf16.xpose.msra.mxu0 %v8086_v0  ;;  %v8160_v63 = vld [vmem:[#allocation6 + $0x1134] ss:$40 sps:$4 sm:$0xff]   ;;  %v8155_v0 = vld [vmem:[#allocation6 + $0xc50] ss:$40 sps:$4 sm:$0xff]  }
 0x43a   :  { %4522 = vmatprep.subr.bf16.mxu1 %v8091_v1  ;;  %4694 = vmatprep.subr.bf16.mxu0 %v8094_v2  ;;  %v8158_v1 = vld [vmem:[#allocation6 + $0x1130] ss:$40 sps:$4 sm:$0xff]   ;;  %v8163_v2 = vld [vmem:[#allocation6 + $0xca4] ss:$40 sps:$4 sm:$0xff]  }
 0x441   :  { %4523 = vmatpush1.bf16.xpose.msra.mxu1 %v8089_v3  ;;  %4695 = vmatpush1.bf16.xpose.msra.mxu0 %v8092_v4  ;;  %v8166_v3 = vld [vmem:[#allocation6 + $0x1184] ss:$40 sps:$4 sm:$0xff]   ;;  %v8161_v4 = vld [vmem:[#allocation6 + $0xca0] ss:$40 sps:$4 sm:$0xff]  }
 0x442   :  { %4524 = vmatprep.subr.bf16.mxu1 %v8097_v6  ;;  %4696 = vmatprep.subr.bf16.mxu0 %v8100_v7  ;;  %v8164_v6 = vld [vmem:[#allocation6 + $0x1180] ss:$40 sps:$4 sm:$0xff]   ;;  %v8169_v7 = vld [vmem:[#allocation6 + $0xcf4] ss:$40 sps:$4 sm:$0xff]  }
 0x449   :  { %4525 = vmatpush1.bf16.xpose.msra.mxu1 %v8095_v9  ;;  %4697 = vmatpush1.bf16.xpose.msra.mxu0 %v8098_v10  ;;  %v8172_v9 = vld [vmem:[#allocation6 + $0x11d4] ss:$40 sps:$4 sm:$0xff]   ;;  %v8167_v10 = vld [vmem:[#allocation6 + $0xcf0] ss:$40 sps:$4 sm:$0xff]  }
 0x44a   :  { %4526 = vmatprep.subr.bf16.mxu1 %v8103_v11  ;;  %4698 = vmatprep.subr.bf16.mxu0 %v8106_v36  ;;  %v8170_v11 = vld [vmem:[#allocation6 + $0x11d0] ss:$40 sps:$4 sm:$0xff]   ;;  %v8175_v36 = vld [vmem:[#allocation6 + $0xd44] ss:$40 sps:$4 sm:$0xff]  }
 0x451   :  { %4527 = vmatpush1.bf16.xpose.msra.mxu1 %v8101_v13  ;;  %4699 = vmatpush1.bf16.xpose.msra.mxu0 %v8104_v14  ;;  %v8178_v13 = vld [vmem:[#allocation6 + $0x1224] ss:$40 sps:$4 sm:$0xff]   ;;  %v8173_v14 = vld [vmem:[#allocation6 + $0xd40] ss:$40 sps:$4 sm:$0xff]  }
 0x452   :  { %4528 = vmatprep.subr.bf16.mxu1 %v8109_v39  ;;  %4700 = vmatprep.subr.bf16.mxu0 %v8112_v40  ;;  %v8176_v39 = vld [vmem:[#allocation6 + $0x1220] ss:$40 sps:$4 sm:$0xff]   ;;  %v8181_v40 = vld [vmem:[#allocation6 + $0xd94] ss:$40 sps:$4 sm:$0xff]  }
 0x459   :  { %4529 = vmatpush1.bf16.xpose.msra.mxu1 %v8107_v16  ;;  %4701 = vmatpush1.bf16.xpose.msra.mxu0 %v8110_v44  ;;  %v8184_v16 = vld [vmem:[#allocation6 + $0x1274] ss:$40 sps:$4 sm:$0xff]   ;;  %v8179_v44 = vld [vmem:[#allocation6 + $0xd90] ss:$40 sps:$4 sm:$0xff]  }
 0x45a   :  { %4713 = vmatprep.subr.bf16.mxu0 %v8115_v19  ;;  %4756 = vmatprep.subr.bf16.mxu1 %v8118_v20  ;;  %v8182_v19 = vld [vmem:[#allocation6 + $0x1270] ss:$40 sps:$4 sm:$0xff]   ;;  %v8187_v20 = vld [vmem:[#allocation6 + $0xde4] ss:$40 sps:$4 sm:$0xff]  }
 0x460   :  { %4531 = vmatmul.mubr.bf16.vlgmr.msra.gmra.mrb[4].mxu1 %v9023_v49  ;;  %4703 = vmatmul.mubr.bf16.vlgmr.msra.gmra.mrb[4].mxu0 %v9015_v38 }
 0x461   :  { %4714 = vmatpush1.bf16.xpose.msra.mxu0 %v8113_v21  ;;  %4757 = vmatpush1.bf16.xpose.msra.mxu1 %v8116_v22  ;;  %v8190_v21 = vld [vmem:[#allocation6 + $0x12c4] ss:$40 sps:$4 sm:$0xff]   ;;  %v8185_v22 = vld [vmem:[#allocation6 + $0xde0] ss:$40 sps:$4 sm:$0xff]  }
 0x462   :  { %4715 = vmatprep.subr.bf16.mxu0 %v8121_v25  ;;  %4758 = vmatprep.subr.bf16.mxu1 %v8124_v26  ;;  %v8188_v25 = vld [vmem:[#allocation6 + $0x12c0] ss:$40 sps:$4 sm:$0xff]   ;;  %v8193_v26 = vld [vmem:[#allocation6 + $0xe34] ss:$40 sps:$4 sm:$0xff]  }
 0x463   :  { %4745 = vmatprep.mubr.bf16.mxu0 %v9017_v41  ;;  %4788 = vmatprep.mubr.bf16.mxu1 %v8995_v29  ;;  %v8142_v29 = vld [vmem:[#allocation6 + $0x1044] ss:$40 sps:$4 sm:$0xff]  }
 0x469   :  { %4716 = vmatpush1.bf16.xpose.msra.mxu0 %v8119_v27  ;;  %4759 = vmatpush1.bf16.xpose.msra.mxu1 %v8122_v28  ;;  %v8196_v27 = vld [vmem:[#allocation6 + $0x1314] ss:$40 sps:$4 sm:$0xff]   ;;  %v8191_v28 = vld [vmem:[#allocation6 + $0xe30] ss:$40 sps:$4 sm:$0xff]  }
 0x46a   :  { %4717 = vmatprep.subr.bf16.mxu0 %v8127_v30  ;;  %4760 = vmatprep.subr.bf16.mxu1 %v8130_v31  ;;  %v8194_v30 = vld [vmem:[#allocation6 + $0x1310] ss:$40 sps:$4 sm:$0xff]   ;;  %v8199_v31 = vld [vmem:[#allocation6 + $0xe84] ss:$40 sps:$4 sm:$0xff]  }
 0x471   :  { %4718 = vmatpush1.bf16.xpose.msra.mxu0 %v8125_v33  ;;  %4761 = vmatpush1.bf16.xpose.msra.mxu1 %v8128_v34  ;;  %v8202_v33 = vld [vmem:[#allocation6 + $0x1364] ss:$40 sps:$4 sm:$0xff]   ;;  %v8197_v34 = vld [vmem:[#allocation6 + $0xe80] ss:$40 sps:$4 sm:$0xff]  }
 0x472   :  { %4719 = vmatprep.subr.bf16.mxu0 %v8133_v35  ;;  %4762 = vmatprep.subr.bf16.mxu1 %v8136_v42  ;;  %v8200_v35 = vld [vmem:[#allocation6 + $0x1360] ss:$40 sps:$4 sm:$0xff]   ;;  %v8205_v42 = vld [vmem:[#allocation6 + $0xed4] ss:$40 sps:$4 sm:$0xff]  }
 0x479   :  { %4720 = vmatpush1.bf16.xpose.msra.mxu0 %v8131_v43  ;;  %4763 = vmatpush1.bf16.xpose.msra.mxu1 %v8134_v45  ;;  %v8208_v43 = vld [vmem:[#allocation6 + $0x13b4] ss:$40 sps:$4 sm:$0xff]   ;;  %v8203_v45 = vld [vmem:[#allocation6 + $0xed0] ss:$40 sps:$4 sm:$0xff]  }
 0x47a   :  { %4721 = vmatprep.subr.bf16.mxu0 %v8139_v46  ;;  %4764 = vmatprep.subr.bf16.mxu1 %v8142_v29  ;;  %v8206_v46 = vld [vmem:[#allocation6 + $0x13b0] ss:$40 sps:$4 sm:$0xff]   ;;  %v8211_v29 = vld [vmem:[#allocation6 + $0xf0c] ss:$40 sps:$4 sm:$0xff]  }
 0x481   :  { %4722 = vmatpush1.bf16.xpose.msra.mxu0 %v8137_v47  ;;  %4765 = vmatpush1.bf16.xpose.msra.mxu1 %v8140_v48  ;;  %v8209_v47 = vld [vmem:[#allocation6 + $0xf08] ss:$40 sps:$4 sm:$0xff]   ;;  %v8214_v48 = vld [vmem:[#allocation6 + $0xf5c] ss:$40 sps:$4 sm:$0xff]  }
 0x482   :  { %4723 = vmatprep.subr.bf16.mxu0 %v8145_v51  ;;  %4766 = vmatprep.subr.bf16.mxu1 %v8148_v52  ;;  %v8212_v51 = vld [vmem:[#allocation6 + $0xf58] ss:$40 sps:$4 sm:$0xff]   ;;  %v8217_v52 = vld [vmem:[#allocation6 + $0xfac] ss:$40 sps:$4 sm:$0xff]  }
 0x489   :  { %4724 = vmatpush1.bf16.xpose.msra.mxu0 %v8143_v54  ;;  %4767 = vmatpush1.bf16.xpose.msra.mxu1 %v8146_v55  ;;  %v8215_v54 = vld [vmem:[#allocation6 + $0xfa8] ss:$40 sps:$4 sm:$0xff]   ;;  %v8220_v55 = vld [vmem:[#allocation6 + $0xffc] ss:$40 sps:$4 sm:$0xff]  }
 0x48a   :  { %4725 = vmatprep.subr.bf16.mxu0 %v8151_v57  ;;  %4768 = vmatprep.subr.bf16.mxu1 %v8154_v59  ;;  %v8218_v57 = vld [vmem:[#allocation6 + $0xff8] ss:$40 sps:$4 sm:$0xff]   ;;  %v8223_v59 = vld [vmem:[#allocation6 + $0x104c] ss:$40 sps:$4 sm:$0xff]  }
 0x491   :  { %4726 = vmatpush1.bf16.xpose.msra.mxu0 %v8149_v60  ;;  %4769 = vmatpush1.bf16.xpose.msra.mxu1 %v8152_v61  ;;  %v8221_v60 = vld [vmem:[#allocation6 + $0x1048] ss:$40 sps:$4 sm:$0xff]   ;;  %v8226_v61 = vld [vmem:[#allocation6 + $0x109c] ss:$40 sps:$4 sm:$0xff]  }
 0x492   :  { %4727 = vmatprep.subr.bf16.mxu0 %v8157_v62  ;;  %4770 = vmatprep.subr.bf16.mxu1 %v8160_v63  ;;  %v8229_v62 = vld [vmem:[#allocation6 + $0x10ec] ss:$40 sps:$4 sm:$0xff]   ;;  %v8232_v63 = vld [vmem:[#allocation6 + $0x113c] ss:$40 sps:$4 sm:$0xff]  }
 0x499   :  { %4728 = vmatpush1.bf16.xpose.msra.mxu0 %v8155_v0  ;;  %4771 = vmatpush1.bf16.xpose.msra.mxu1 %v8158_v1  ;;  %v8230_v0 = vld [vmem:[#allocation6 + $0x1138] ss:$40 sps:$4 sm:$0xff]   ;;  %v8235_v1 = vld [vmem:[#allocation6 + $0x118c] ss:$40 sps:$4 sm:$0xff]  }
 0x49a   :  { %4729 = vmatprep.subr.bf16.mxu0 %v8163_v2  ;;  %4772 = vmatprep.subr.bf16.mxu1 %v8166_v3  ;;  %v8233_v2 = vld [vmem:[#allocation6 + $0x1188] ss:$40 sps:$4 sm:$0xff]   ;;  %v8238_v3 = vld [vmem:[#allocation6 + $0x11dc] ss:$40 sps:$4 sm:$0xff]  }
 0x4a1   :  { %4730 = vmatpush1.bf16.xpose.msra.mxu0 %v8161_v4  ;;  %4773 = vmatpush1.bf16.xpose.msra.mxu1 %v8164_v6  ;;  %v8236_v4 = vld [vmem:[#allocation6 + $0x11d8] ss:$40 sps:$4 sm:$0xff]   ;;  %v8241_v6 = vld [vmem:[#allocation6 + $0x122c] ss:$40 sps:$4 sm:$0xff]  }
 0x4a2   :  { %4731 = vmatprep.subr.bf16.mxu0 %v8169_v7  ;;  %4774 = vmatprep.subr.bf16.mxu1 %v8172_v9  ;;  %v8239_v7 = vld [vmem:[#allocation6 + $0x1228] ss:$40 sps:$4 sm:$0xff]   ;;  %v8244_v9 = vld [vmem:[#allocation6 + $0x127c] ss:$40 sps:$4 sm:$0xff]  }
 0x4a9   :  { %4732 = vmatpush1.bf16.xpose.msra.mxu0 %v8167_v10  ;;  %4775 = vmatpush1.bf16.xpose.msra.mxu1 %v8170_v11 }
 0x4aa   :  { %4733 = vmatprep.subr.bf16.mxu0 %v8175_v36  ;;  %4776 = vmatprep.subr.bf16.mxu1 %v8178_v13  ;;  %v8242_v13 = vld [vmem:[#allocation6 + $0x1278] ss:$40 sps:$4 sm:$0xff]  }
 0x4b1   :  { %4734 = vmatpush1.bf16.xpose.msra.mxu0 %v8173_v14  ;;  %4777 = vmatpush1.bf16.xpose.msra.mxu1 %v8176_v39  ;;  %v8247_v39 = vld [vmem:[#allocation6 + $0x12cc] ss:$40 sps:$4 sm:$0xff]  }
 0x4b2   :  { %4735 = vmatprep.subr.bf16.mxu0 %v8181_v40  ;;  %4778 = vmatprep.subr.bf16.mxu1 %v8184_v16  ;;  %v8245_v40 = vld [vmem:[#allocation6 + $0x12c8] ss:$40 sps:$4 sm:$0xff]   ;;  %v8250_v16 = vld [vmem:[#allocation6 + $0x131c] ss:$40 sps:$4 sm:$0xff]  }
 0x4b9   :  { %4736 = vmatpush1.bf16.xpose.msra.mxu0 %v8179_v44  ;;  %4779 = vmatpush1.bf16.xpose.msra.mxu1 %v8182_v19  ;;  %v8248_v44 = vld [vmem:[#allocation6 + $0x1318] ss:$40 sps:$4 sm:$0xff]   ;;  %v8253_v19 = vld [vmem:[#allocation6 + $0x136c] ss:$40 sps:$4 sm:$0xff]  }
 0x4ba   :  { %4737 = vmatprep.subr.bf16.mxu0 %v8187_v20  ;;  %4780 = vmatprep.subr.bf16.mxu1 %v8190_v21  ;;  %v8251_v20 = vld [vmem:[#allocation6 + $0x1368] ss:$40 sps:$4 sm:$0xff]   ;;  %v8256_v21 = vld [vmem:[#allocation6 + $0x13bc] ss:$40 sps:$4 sm:$0xff]  }
 0x4c1   :  { %4738 = vmatpush1.bf16.xpose.msra.mxu0 %v8185_v22  ;;  %4781 = vmatpush1.bf16.xpose.msra.mxu1 %v8188_v25  ;;  %v8254_v22 = vld [vmem:[#allocation6 + $0x13b8] ss:$40 sps:$4 sm:$0xff]   ;;  %v8259_v25 = vld [vmem:[#allocation6 + $0xf14] ss:$40 sps:$4 sm:$0xff]  }
 0x4c2   :  { %4739 = vmatprep.subr.bf16.mxu0 %v8193_v26  ;;  %4782 = vmatprep.subr.bf16.mxu1 %v8196_v27  ;;  %v8257_v26 = vld [vmem:[#allocation6 + $0xf10] ss:$40 sps:$4 sm:$0xff]   ;;  %v8262_v27 = vld [vmem:[#allocation6 + $0xf64] ss:$40 sps:$4 sm:$0xff]  }
 0x4c9   :  { %4740 = vmatpush1.bf16.xpose.msra.mxu0 %v8191_v28  ;;  %4783 = vmatpush1.bf16.xpose.msra.mxu1 %v8194_v30  ;;  %v8260_v28 = vld [vmem:[#allocation6 + $0xf60] ss:$40 sps:$4 sm:$0xff]   ;;  %v8265_v30 = vld [vmem:[#allocation6 + $0xfb4] ss:$40 sps:$4 sm:$0xff]  }
 0x4ca   :  { %4741 = vmatprep.subr.bf16.mxu0 %v8199_v31  ;;  %4784 = vmatprep.subr.bf16.mxu1 %v8202_v33  ;;  %v8263_v31 = vld [vmem:[#allocation6 + $0xfb0] ss:$40 sps:$4 sm:$0xff]   ;;  %v8268_v33 = vld [vmem:[#allocation6 + $0x1004] ss:$40 sps:$4 sm:$0xff]  }
 0x4d1   :  { %4742 = vmatpush1.bf16.xpose.msra.mxu0 %v8197_v34  ;;  %4785 = vmatpush1.bf16.xpose.msra.mxu1 %v8200_v35  ;;  %v8266_v34 = vld [vmem:[#allocation6 + $0x1000] ss:$40 sps:$4 sm:$0xff]   ;;  %v8271_v35 = vld [vmem:[#allocation6 + $0x1054] ss:$40 sps:$4 sm:$0xff]  }
 0x4d2   :  { %4743 = vmatprep.subr.bf16.mxu0 %v8205_v42  ;;  %4786 = vmatprep.subr.bf16.mxu1 %v8208_v43  ;;  %v8269_v42 = vld [vmem:[#allocation6 + $0x1050] ss:$40 sps:$4 sm:$0xff]   ;;  %v8274_v43 = vld [vmem:[#allocation6 + $0x10a4] ss:$40 sps:$4 sm:$0xff]  }
 0x4d9   :  { %4744 = vmatpush1.bf16.xpose.msra.mxu0 %v8203_v45  ;;  %4787 = vmatpush1.bf16.xpose.msra.mxu1 %v8206_v46  ;;  %v8277_v45 = vld [vmem:[#allocation6 + $0x10f4] ss:$40 sps:$4 sm:$0xff]   ;;  %v8280_v46 = vld [vmem:[#allocation6 + $0x1144] ss:$40 sps:$4 sm:$0xff]  }
 0x4da   :  { %4799 = vmatprep.subr.bf16.mxu1 %v8211_v29  ;;  %v8278_v29 = vld [vmem:[#allocation6 + $0x1140] ss:$40 sps:$4 sm:$0xff]  }
 0x4e0   :  { %4746 = vmatmul.mubr.bf16.vlgmr.msra.gmra.mrb[4].mxu0 %v9023_v49  ;;  %4789 = vmatmul.mubr.bf16.vlgmr.msra.gmra.mrb[8].mxu1 %v9001_v17  ;;  %v8224_v17 = vld [vmem:[#allocation6 + $0x1098] ss:$40 sps:$4 sm:$0xff]  }
 0x4e1   :  { %4800 = vmatpush1.bf16.xpose.msra.mxu1 %v8209_v47  ;;  %4831 = vmatprep.mubr.bf16.mxu1 %v9005_v23  ;;  %v8227_v23 = vld [vmem:[#allocation6 + $0x10e8] ss:$40 sps:$4 sm:$0xff]   ;;  %v8283_v47 = vld [vmem:[#allocation6 + $0x1194] ss:$40 sps:$4 sm:$0xff]  }
 0x4e2   :  { %4801 = vmatprep.subr.bf16.mxu1 %v8214_v48  ;;  %v8281_v48 = vld [vmem:[#allocation6 + $0x1190] ss:$40 sps:$4 sm:$0xff]  }
 0x4e9   :  { %4802 = vmatpush1.bf16.xpose.msra.mxu1 %v8212_v51  ;;  %v8286_v51 = vld [vmem:[#allocation6 + $0x11e4] ss:$40 sps:$4 sm:$0xff]  }
 0x4ea   :  { %4803 = vmatprep.subr.bf16.mxu1 %v8217_v52  ;;  %v8284_v52 = vld [vmem:[#allocation6 + $0x11e0] ss:$40 sps:$4 sm:$0xff]  }
 0x4f1   :  { %4804 = vmatpush1.bf16.xpose.msra.mxu1 %v8215_v54  ;;  %v8289_v54 = vld [vmem:[#allocation6 + $0x1234] ss:$40 sps:$4 sm:$0xff]  }
 0x4f2   :  { %4805 = vmatprep.subr.bf16.mxu1 %v8220_v55  ;;  %v8287_v55 = vld [vmem:[#allocation6 + $0x1230] ss:$40 sps:$4 sm:$0xff]  }
 0x4f9   :  { %4806 = vmatpush1.bf16.xpose.msra.mxu1 %v8218_v57  ;;  %v8292_v57 = vld [vmem:[#allocation6 + $0x1284] ss:$40 sps:$4 sm:$0xff]  }
 0x4fa   :  { %4807 = vmatprep.subr.bf16.mxu1 %v8223_v59 }
 0x501   :  { %4808 = vmatpush1.bf16.xpose.msra.mxu1 %v8221_v60 }
 0x502   :  { %4809 = vmatprep.subr.bf16.mxu1 %v8226_v61 }
 0x509   :  { %4810 = vmatpush1.bf16.xpose.msra.mxu1 %v8224_v17  ;;  %v8290_v17 = vld [vmem:[#allocation6 + $0x1280] ss:$40 sps:$4 sm:$0xff]  }
 0x50a   :  { %4811 = vmatprep.subr.bf16.mxu1 %v8229_v62 }
 0x511   :  { %4812 = vmatpush1.bf16.xpose.msra.mxu1 %v8227_v23  ;;  %v8295_v23 = vld [vmem:[#allocation6 + $0x12d4] ss:$40 sps:$4 sm:$0xff]  }
 0x512   :  { %4813 = vmatprep.subr.bf16.mxu1 %v8232_v63  ;;  %v8293_v63 = vld [vmem:[#allocation6 + $0x12d0] ss:$40 sps:$4 sm:$0xff]  }
 0x519   :  { %4814 = vmatpush1.bf16.xpose.msra.mxu1 %v8230_v0  ;;  %v8298_v0 = vld [vmem:[#allocation6 + $0x1324] ss:$40 sps:$4 sm:$0xff]  }
 0x51a   :  { %4815 = vmatprep.subr.bf16.mxu1 %v8235_v1  ;;  %v8296_v1 = vld [vmem:[#allocation6 + $0x1320] ss:$40 sps:$4 sm:$0xff]  }
 0x521   :  { %4816 = vmatpush1.bf16.xpose.msra.mxu1 %v8233_v2  ;;  %v8301_v2 = vld [vmem:[#allocation6 + $0x1374] ss:$40 sps:$4 sm:$0xff]  }
 0x522   :  { %4817 = vmatprep.subr.bf16.mxu1 %v8238_v3  ;;  %v8299_v3 = vld [vmem:[#allocation6 + $0x1370] ss:$40 sps:$4 sm:$0xff]  }
 0x529   :  { %4818 = vmatpush1.bf16.xpose.msra.mxu1 %v8236_v4  ;;  %v8304_v4 = vld [vmem:[#allocation6 + $0x13c4] ss:$40 sps:$4 sm:$0xff]  }
 0x52a   :  { %4819 = vmatprep.subr.bf16.mxu1 %v8241_v6  ;;  %v8302_v6 = vld [vmem:[#allocation6 + $0x13c0] ss:$40 sps:$4 sm:$0xff]  }
 0x531   :  { %4820 = vmatpush1.bf16.xpose.msra.mxu1 %v8239_v7  ;;  %v8307_v7 = vld [vmem:[#allocation6 + $0xf1c] ss:$40 sps:$4 sm:$0xff]  }
 0x532   :  { %4821 = vmatprep.subr.bf16.mxu1 %v8244_v9  ;;  %v8305_v9 = vld [vmem:[#allocation6 + $0xf18] ss:$40 sps:$4 sm:$0xff]  }
 0x533   :  { %v9079_v10 = vpop.f32.mrb[4].mxu1 }
 0x534   :  { %v9081_v11 = vpop.f32.mrb[5].mxu1 }
 0x535   :  { %v9083_v36 = vpop.f32.mrb[6].mxu1 }
 0x536   :  { %v9085_v14 = vpop.f32.mrb[7].mxu1 }
 0x539   :  { %4822 = vmatpush1.bf16.xpose.msra.mxu1 %v8242_v13  ;;  %v8310_v13 = vld [vmem:[#allocation6 + $0xf6c] ss:$40 sps:$4 sm:$0xff]  }
 0x53a   :  { %4823 = vmatprep.subr.bf16.mxu1 %v8247_v39  ;;  %v8308_v39 = vld [vmem:[#allocation6 + $0xf68] ss:$40 sps:$4 sm:$0xff]  }
 0x541   :  { %4824 = vmatpush1.bf16.xpose.msra.mxu1 %v8245_v40  ;;  %v8313_v40 = vld [vmem:[#allocation6 + $0xfbc] ss:$40 sps:$4 sm:$0xff]  }
 0x542   :  { %4825 = vmatprep.subr.bf16.mxu1 %v8250_v16  ;;  %v8311_v16 = vld [vmem:[#allocation6 + $0xfb8] ss:$40 sps:$4 sm:$0xff]  }
 0x549   :  { %4826 = vmatpush1.bf16.xpose.msra.mxu1 %v8248_v44  ;;  %v8316_v44 = vld [vmem:[#allocation6 + $0x100c] ss:$40 sps:$4 sm:$0xff]  }
 0x54a   :  { %4827 = vmatprep.subr.bf16.mxu1 %v8253_v19  ;;  %v8314_v19 = vld [vmem:[#allocation6 + $0x1008] ss:$40 sps:$4 sm:$0xff]  }
 0x551   :  { %4828 = vmatpush1.bf16.xpose.msra.mxu1 %v8251_v20  ;;  %v8319_v20 = vld [vmem:[#allocation6 + $0x105c] ss:$40 sps:$4 sm:$0xff]  }
 0x552   :  { %4829 = vmatprep.subr.bf16.mxu1 %v8256_v21  ;;  %v8317_v21 = vld [vmem:[#allocation6 + $0x1058] ss:$40 sps:$4 sm:$0xff]  }
 0x559   :  { %4830 = vmatpush1.bf16.xpose.msra.mxu1 %v8254_v22  ;;  %v8322_v22 = vld [vmem:[#allocation6 + $0x10ac] ss:$40 sps:$4 sm:$0xff]  }
 0x55a   :  { %4842 = vmatprep.subr.bf16.mxu1 %v8259_v25  ;;  %v8325_v25 = vld [vmem:[#allocation6 + $0x10fc] ss:$40 sps:$4 sm:$0xff]  }
 0x560   :  { %4832 = vmatmul.mubr.bf16.vlgmr.msra.gmra.mrb[8].mxu1 %v9013_v37  ;;  %v8272_v37 = vld [vmem:[#allocation6 + $0x10a0] ss:$40 sps:$4 sm:$0xff]  }
 0x561   :  { %4843 = vmatpush1.bf16.xpose.msra.mxu1 %v8257_v26  ;;  %4874 = vmatprep.mubr.bf16.mxu1 %v8998_v32  ;;  %v8275_v32 = vld [vmem:[#allocation6 + $0x10f0] ss:$40 sps:$4 sm:$0xff]   ;;  %v8328_v26 = vld [vmem:[#allocation6 + $0x114c] ss:$40 sps:$4 sm:$0xff]  }
 0x562   :  { %4844 = vmatprep.subr.bf16.mxu1 %v8262_v27  ;;  %v8326_v27 = vld [vmem:[#allocation6 + $0x1148] ss:$40 sps:$4 sm:$0xff]  }
 0x569   :  { %4845 = vmatpush1.bf16.xpose.msra.mxu1 %v8260_v28  ;;  %v8331_v28 = vld [vmem:[#allocation6 + $0x119c] ss:$40 sps:$4 sm:$0xff]  }
 0x56a   :  { %4846 = vmatprep.subr.bf16.mxu1 %v8265_v30  ;;  %v8329_v30 = vld [vmem:[#allocation6 + $0x1198] ss:$40 sps:$4 sm:$0xff]  }
 0x571   :  { %4847 = vmatpush1.bf16.xpose.msra.mxu1 %v8263_v31  ;;  %v8334_v31 = vld [vmem:[#allocation6 + $0x11ec] ss:$40 sps:$4 sm:$0xff]  }
 0x572   :  { %4848 = vmatprep.subr.bf16.mxu1 %v8268_v33  ;;  %v8332_v33 = vld [vmem:[#allocation6 + $0x11e8] ss:$40 sps:$4 sm:$0xff]  }
 0x579   :  { %4849 = vmatpush1.bf16.xpose.msra.mxu1 %v8266_v34  ;;  %v8337_v34 = vld [vmem:[#allocation6 + $0x123c] ss:$40 sps:$4 sm:$0xff]  }
 0x57a   :  { %4850 = vmatprep.subr.bf16.mxu1 %v8271_v35  ;;  %v8335_v35 = vld [vmem:[#allocation6 + $0x1238] ss:$40 sps:$4 sm:$0xff]  }
 0x581   :  { %4851 = vmatpush1.bf16.xpose.msra.mxu1 %v8269_v42  ;;  %v8340_v42 = vld [vmem:[#allocation6 + $0x128c] ss:$40 sps:$4 sm:$0xff]  }
 0x582   :  { %4852 = vmatprep.subr.bf16.mxu1 %v8274_v43  ;;  %v8338_v43 = vld [vmem:[#allocation6 + $0x1288] ss:$40 sps:$4 sm:$0xff]  }
 0x589   :  { %4853 = vmatpush1.bf16.xpose.msra.mxu1 %v8272_v37  ;;  %v8343_v37 = vld [vmem:[#allocation6 + $0x12dc] ss:$40 sps:$4 sm:$0xff]  }
 0x58a   :  { %4854 = vmatprep.subr.bf16.mxu1 %v8277_v45  ;;  %v8341_v45 = vld [vmem:[#allocation6 + $0x12d8] ss:$40 sps:$4 sm:$0xff]  }
 0x591   :  { %4855 = vmatpush1.bf16.xpose.msra.mxu1 %v8275_v32  ;;  %v8346_v32 = vld [vmem:[#allocation6 + $0x132c] ss:$40 sps:$4 sm:$0xff]  }
 0x592   :  { %4856 = vmatprep.subr.bf16.mxu1 %v8280_v46  ;;  %v8344_v46 = vld [vmem:[#allocation6 + $0x1328] ss:$40 sps:$4 sm:$0xff]  }
 0x599   :  { %4857 = vmatpush1.bf16.xpose.msra.mxu1 %v8278_v29  ;;  %v8349_v29 = vld [vmem:[#allocation6 + $0x137c] ss:$40 sps:$4 sm:$0xff]  }
 0x59a   :  { %4858 = vmatprep.subr.bf16.mxu1 %v8283_v47  ;;  %v8347_v47 = vld [vmem:[#allocation6 + $0x1378] ss:$40 sps:$4 sm:$0xff]  }
 0x5a1   :  { %4859 = vmatpush1.bf16.xpose.msra.mxu1 %v8281_v48  ;;  %v8352_v48 = vld [vmem:[#allocation6 + $0x13cc] ss:$40 sps:$4 sm:$0xff]  }
 0x5a2   :  { %4860 = vmatprep.subr.bf16.mxu1 %v8286_v51  ;;  %v8350_v51 = vld [vmem:[#allocation6 + $0x13c8] ss:$40 sps:$4 sm:$0xff]  }
 0x5a9   :  { %4861 = vmatpush1.bf16.xpose.msra.mxu1 %v8284_v52  ;;  %v8355_v52 = vld [vmem:[#allocation6 + $0xf24] ss:$40 sps:$4 sm:$0xff]  }
 0x5aa   :  { %4862 = vmatprep.subr.bf16.mxu1 %v8289_v54  ;;  %v8353_v54 = vld [vmem:[#allocation6 + $0xf20] ss:$40 sps:$4 sm:$0xff]  }
 0x5b1   :  { %4863 = vmatpush1.bf16.xpose.msra.mxu1 %v8287_v55  ;;  %v8358_v55 = vld [vmem:[#allocation6 + $0xf74] ss:$40 sps:$4 sm:$0xff]  }
 0x5b2   :  { %4864 = vmatprep.subr.bf16.mxu1 %v8292_v57  ;;  %v8356_v57 = vld [vmem:[#allocation6 + $0xf70] ss:$40 sps:$4 sm:$0xff]  }
 0x5b3   :  { %v9089_v59 = vpop.f32.mrb[4].mxu0 }
 0x5b4   :  { %v9091_v60 = vpop.f32.mrb[5].mxu0 }
 0x5b5   :  { %v9093_v61 = vpop.f32.mrb[6].mxu0 }
 0x5b6   :  { %v9095_v62 = vpop.f32.mrb[7].mxu0 }
 0x5b9   :  { %4865 = vmatpush1.bf16.xpose.msra.mxu1 %v8290_v17  ;;  %v8361_v17 = vld [vmem:[#allocation6 + $0xfc4] ss:$40 sps:$4 sm:$0xff]  }
 0x5ba   :  { %4866 = vmatprep.subr.bf16.mxu1 %v8295_v23  ;;  %v8359_v23 = vld [vmem:[#allocation6 + $0xfc0] ss:$40 sps:$4 sm:$0xff]  }
 0x5c1   :  { %4867 = vmatpush1.bf16.xpose.msra.mxu1 %v8293_v63  ;;  %v8364_v63 = vld [vmem:[#allocation6 + $0x1014] ss:$40 sps:$4 sm:$0xff]  }
 0x5c2   :  { %4868 = vmatprep.subr.bf16.mxu1 %v8298_v0  ;;  %v8362_v0 = vld [vmem:[#allocation6 + $0x1010] ss:$40 sps:$4 sm:$0xff]  }
 0x5c9   :  { %4869 = vmatpush1.bf16.xpose.msra.mxu1 %v8296_v1  ;;  %v8367_v1 = vld [vmem:[#allocation6 + $0x1064] ss:$40 sps:$4 sm:$0xff]  }
 0x5ca   :  { %4870 = vmatprep.subr.bf16.mxu1 %v8301_v2  ;;  %v8365_v2 = vld [vmem:[#allocation6 + $0x1060] ss:$40 sps:$4 sm:$0xff]  }
 0x5d1   :  { %4871 = vmatpush1.bf16.xpose.msra.mxu1 %v8299_v3  ;;  %v8370_v3 = vld [vmem:[#allocation6 + $0x10b4] ss:$40 sps:$4 sm:$0xff]  }
 0x5d2   :  { %4872 = vmatprep.subr.bf16.mxu1 %v8304_v4  ;;  %v8373_v4 = vld [vmem:[#allocation6 + $0x1104] ss:$40 sps:$4 sm:$0xff]  }
 0x5d9   :  { %4873 = vmatpush1.bf16.xpose.msra.mxu1 %v8302_v6  ;;  %v8376_v6 = vld [vmem:[#allocation6 + $0x1154] ss:$40 sps:$4 sm:$0xff]  }
 0x5da   :  { %4885 = vmatprep.subr.bf16.mxu1 %v8307_v7  ;;  %v8374_v7 = vld [vmem:[#allocation6 + $0x1150] ss:$40 sps:$4 sm:$0xff]  }
 0x5e0   :  { %4875 = vmatmul.mubr.bf16.vlgmr.msra.gmra.mrb[8].mxu1 %v9003_v18  ;;  %v8320_v18 = vld [vmem:[#allocation6 + $0x10a8] ss:$40 sps:$4 sm:$0xff]  }
 0x5e1   :  { %4886 = vmatpush1.bf16.xpose.msra.mxu1 %v8305_v9  ;;  %4917 = vmatprep.mubr.bf16.mxu1 %v9007_v24  ;;  %v8323_v24 = vld [vmem:[#allocation6 + $0x10f8] ss:$40 sps:$4 sm:$0xff]   ;;  %v8379_v9 = vld [vmem:[#allocation6 + $0x11a4] ss:$40 sps:$4 sm:$0xff]  }
 0x5e2   :  { %4887 = vmatprep.subr.bf16.mxu1 %v8310_v13  ;;  %v8377_v13 = vld [vmem:[#allocation6 + $0x11a0] ss:$40 sps:$4 sm:$0xff]  }
 0x5e9   :  { %4888 = vmatpush1.bf16.xpose.msra.mxu1 %v8308_v39  ;;  %v8382_v39 = vld [vmem:[#allocation6 + $0x11f4] ss:$40 sps:$4 sm:$0xff]  }
 0x5ea   :  { %4889 = vmatprep.subr.bf16.mxu1 %v8313_v40  ;;  %v8380_v40 = vld [vmem:[#allocation6 + $0x11f0] ss:$40 sps:$4 sm:$0xff]  }
 0x5f1   :  { %4890 = vmatpush1.bf16.xpose.msra.mxu1 %v8311_v16  ;;  %v8385_v16 = vld [vmem:[#allocation6 + $0x1244] ss:$40 sps:$4 sm:$0xff]  }
 0x5f2   :  { %4891 = vmatprep.subr.bf16.mxu1 %v8316_v44  ;;  %v8383_v44 = vld [vmem:[#allocation6 + $0x1240] ss:$40 sps:$4 sm:$0xff]  }
 0x5f9   :  { %4892 = vmatpush1.bf16.xpose.msra.mxu1 %v8314_v19  ;;  %v8388_v19 = vld [vmem:[#allocation6 + $0x1294] ss:$40 sps:$4 sm:$0xff]  }
 0x5fa   :  { %4893 = vmatprep.subr.bf16.mxu1 %v8319_v20  ;;  %v8386_v20 = vld [vmem:[#allocation6 + $0x1290] ss:$40 sps:$4 sm:$0xff]  }
 0x601   :  { %4894 = vmatpush1.bf16.xpose.msra.mxu1 %v8317_v21  ;;  %v8391_v21 = vld [vmem:[#allocation6 + $0x12e4] ss:$40 sps:$4 sm:$0xff]  }
 0x602   :  { %4895 = vmatprep.subr.bf16.mxu1 %v8322_v22  ;;  %v8389_v22 = vld [vmem:[#allocation6 + $0x12e0] ss:$40 sps:$4 sm:$0xff]  }
 0x609   :  { %4896 = vmatpush1.bf16.xpose.msra.mxu1 %v8320_v18  ;;  %v8394_v18 = vld [vmem:[#allocation6 + $0x1334] ss:$40 sps:$4 sm:$0xff]  }
 0x60a   :  { %4897 = vmatprep.subr.bf16.mxu1 %v8325_v25  ;;  %v8392_v25 = vld [vmem:[#allocation6 + $0x1330] ss:$40 sps:$4 sm:$0xff]  }
 0x611   :  { %4898 = vmatpush1.bf16.xpose.msra.mxu1 %v8323_v24  ;;  %v8397_v24 = vld [vmem:[#allocation6 + $0x1384] ss:$40 sps:$4 sm:$0xff]  }
 0x612   :  { %4899 = vmatprep.subr.bf16.mxu1 %v8328_v26  ;;  %v8395_v26 = vld [vmem:[#allocation6 + $0x1380] ss:$40 sps:$4 sm:$0xff]  }
 0x619   :  { %4900 = vmatpush1.bf16.xpose.msra.mxu1 %v8326_v27  ;;  %v8400_v27 = vld [vmem:[#allocation6 + $0x13d4] ss:$40 sps:$4 sm:$0xff]  }
 0x61a   :  { %4901 = vmatprep.subr.bf16.mxu1 %v8331_v28  ;;  %v8398_v28 = vld [vmem:[#allocation6 + $0x13d0] ss:$40 sps:$4 sm:$0xff]  }
 0x621   :  { %4902 = vmatpush1.bf16.xpose.msra.mxu1 %v8329_v30  ;;  %v5224_v30 = vld [vmem:[#allocation12] sm:$0xff] }
 0x622   :  { %4903 = vmatprep.subr.bf16.mxu1 %v8334_v31  ;;  %v5228_v31 = vld [vmem:[#allocation12 + $0x20] sm:$0xff] }
 0x629   :  { %4904 = vmatpush1.bf16.xpose.msra.mxu1 %v8332_v33  ;;  %v5232_v33 = vld [vmem:[#allocation12 + $0x40] sm:$0xff] }
 0x62a   :  { %4905 = vmatprep.subr.bf16.mxu1 %v8337_v34  ;;  %v7145_v34 = vcombine.low %v5224_v30, %v5228_v31 }
 0x631   :  { %4906 = vmatpush1.bf16.xpose.msra.mxu1 %v8335_v35  ;;  %v7146_v35 = vcombine.high %v5224_v30, %v5228_v31  ;;  %v9103_v30 = vsub.s32 2, %v9042_v53  ;;  %v8441_v31 = vld [vmem:[#allocation8] sm:$0xff] }
 0x632   :  { %4907 = vmatprep.subr.bf16.mxu1 %v8340_v42  ;;  %v5236_v42 = vld [vmem:[#allocation12 + $0x60] sm:$0xff] }
 0x633   :  { %6004 = vmatprep.subr.bf16.mxu0 %v7146_v35  ;;  %v9110_v35 = vsub.s32 4, %v9042_v53 }
 0x634   :  { %6005 = vmatpush1.bf16.xpose.msra.mxu0 %v7145_v34  ;;  %v9107_v34 = vsub.s32 3, %v9042_v53 }
 0x639   :  { %4908 = vmatpush1.bf16.xpose.msra.mxu1 %v8338_v43  ;;  %v7154_v43 = vcombine.high %v5232_v33, %v5236_v42 }
 0x63a   :  { %4909 = vmatprep.subr.bf16.mxu1 %v8343_v37  ;;  %v5240_v37 = vld [vmem:[#allocation12 + $0x80] sm:$0xff] }
 0x63b   :  { %6006 = vmatprep.subr.bf16.mxu0 %v7154_v43  ;;  %v886_v43 = vrot.slane %v8441_v31, %v9107_v34 }
 0x641   :  { %4910 = vmatpush1.bf16.xpose.msra.mxu1 %v8341_v45  ;;  %v5244_v45 = vld [vmem:[#allocation12 + $0xa0] sm:$0xff] }
 0x642   :  { %4911 = vmatprep.subr.bf16.mxu1 %v8346_v32  ;;  %v7153_v32 = vcombine.low %v5232_v33, %v5236_v42  ;;  %v882_v33 = vrot.slane %v8441_v31, %v9103_v30 }
 0x644   :  { %6007 = vmatpush1.bf16.xpose.msra.mxu0 %v7153_v32  ;;  %v9113_v42 = vadd.f32 %v9079_v10, %v882_v33  ;;  %v4993_v32 = vmul.f32 %v9058_v8, %v9058_v8  ;;  %v5000_v10 = vmul.f32 %v9060_v12, %v9060_v12 }
 0x649   :  { %4912 = vmatpush1.bf16.xpose.msra.mxu1 %v8344_v46  ;;  %v7162_v46 = vcombine.high %v5240_v37, %v5244_v45 }
 0x64a   :  { %4913 = vmatprep.subr.bf16.mxu1 %v8349_v29  ;;  %v5248_v29 = vld [vmem:[#allocation12 + $0xc0] sm:$0xff] }
 0x64b   :  { %6008 = vmatprep.subr.bf16.mxu0 %v7162_v46  ;;  %v890_v46 = vrot.slane %v8441_v31, %v9110_v35 }
 0x651   :  { %4914 = vmatpush1.bf16.xpose.msra.mxu1 %v8347_v47  ;;  %v5252_v47 = vld [vmem:[#allocation12 + $0xe0] sm:$0xff] }
 0x652   :  { %4915 = vmatprep.subr.bf16.mxu1 %v8352_v48  ;;  %v7161_v48 = vcombine.low %v5240_v37, %v5244_v45  ;;  %v9117_v37 = vadd.f32 %v9083_v36, %v882_v33  ;;  %v4992_v45 = vmul.f32 %v9055_v5, %v9055_v5  ;;  %v4971_v36 = vadd.f32 %v9058_v8, %v9055_v5 }
 0x654   :  { %6009 = vmatpush1.bf16.xpose.msra.mxu0 %v7161_v48  ;;  %v4994_v48 = vmul.f32 %v9113_v42, %v9113_v42 }
 0x659   :  { %4916 = vmatpush1.bf16.xpose.msra.mxu1 %v8350_v51  ;;  %v5256_v51 = vld [vmem:[#allocation12 + $0x100] sm:$0xff] }
 0x65a   :  { %4928 = vmatprep.subr.bf16.mxu1 %v8355_v52  ;;  %v5260_v52 = vld [vmem:[#allocation12 + $0x120] sm:$0xff] }
 0x660   :  { %4918 = vmatmul.mubr.bf16.vlgmr.msra.gmra.mrb[8].mxu1 %v9015_v38  ;;  %v8368_v38 = vld [vmem:[#allocation6 + $0x10b0] ss:$40 sps:$4 sm:$0xff]  }
 0x661   :  { %4929 = vmatpush1.bf16.xpose.msra.mxu1 %v8353_v54  ;;  %4960 = vmatprep.mubr.bf16.mxu1 %v9017_v41  ;;  %v8371_v41 = vld [vmem:[#allocation6 + $0x1100] ss:$40 sps:$4 sm:$0xff]   ;;  %v7169_v54 = vcombine.low %v5248_v29, %v5252_v47 }
 0x662   :  { %4930 = vmatprep.subr.bf16.mxu1 %v8358_v55  ;;  %v7178_v55 = vcombine.high %v5256_v51, %v5260_v52 }
 0x669   :  { %4931 = vmatpush1.bf16.xpose.msra.mxu1 %v8356_v57  ;;  %v5264_v57 = vld [vmem:[#allocation12 + $0x140] sm:$0xff] }
 0x66a   :  { %4932 = vmatprep.subr.bf16.mxu1 %v8361_v17  ;;  %v5268_v17 = vld [vmem:[#allocation12 + $0x160] sm:$0xff] }
 0x671   :  { %4933 = vmatpush1.bf16.xpose.msra.mxu1 %v8359_v23  ;;  %v7177_v23 = vcombine.low %v5256_v51, %v5260_v52  ;;  %v4980_v51 = vadd.f32 %v9062_v15, %v9060_v12  ;;  %v5002_v52 = vmul.f32 %v9117_v37, %v9117_v37 }
 0x672   :  { %4934 = vmatprep.subr.bf16.mxu1 %v8364_v63  ;;  %v7186_v63 = vcombine.high %v5264_v57, %v5268_v17 }
 0x679   :  { %4935 = vmatpush1.bf16.xpose.msra.mxu1 %v8362_v0  ;;  %v5272_v0 = vld [vmem:[#allocation12 + $0x180] sm:$0xff] }
 0x67a   :  { %4936 = vmatprep.subr.bf16.mxu1 %v8367_v1  ;;  %v5276_v1 = vld [vmem:[#allocation12 + $0x1a0] sm:$0xff] }
 0x681   :  { %4937 = vmatpush1.bf16.xpose.msra.mxu1 %v8365_v2  ;;  %v7185_v2 = vcombine.low %v5264_v57, %v5268_v17  ;;  %v4972_v57 = vadd.f32 %v9113_v42, %v4971_v36  ;;  %v9147_v17 = vadd.f32 %v9089_v59, %v890_v46 }
 0x682   :  { %4938 = vmatprep.subr.bf16.mxu1 %v8370_v3  ;;  %v7194_v3 = vcombine.high %v5272_v0, %v5276_v1 }
 0x689   :  { %4939 = vmatpush1.bf16.xpose.msra.mxu1 %v8368_v38  ;;  %v5280_v38 = vld [vmem:[#allocation12 + $0x1c0] sm:$0xff] }
 0x68a   :  { %4940 = vmatprep.subr.bf16.mxu1 %v8373_v4  ;;  %v5284_v4 = vld [vmem:[#allocation12 + $0x1e0] sm:$0xff] }
 0x691   :  { %4941 = vmatpush1.bf16.xpose.msra.mxu1 %v8371_v41  ;;  %v7193_v41 = vcombine.low %v5272_v0, %v5276_v1  ;;  %v9152_v0 = vadd.f32 %v9093_v61, %v890_v46  ;;  %v4996_v61 = vmul.f32 %v9147_v17, %v9147_v17 }
 0x692   :  { %4942 = vmatprep.subr.bf16.mxu1 %v8376_v6  ;;  %v7202_v6 = vcombine.high %v5280_v38, %v5284_v4 }
 0x699   :  { %4943 = vmatpush1.bf16.xpose.msra.mxu1 %v8374_v7  ;;  %v5288_v7 = vld [vmem:[#allocation12 + $0x200] sm:$0xff] }
 0x69a   :  { %4944 = vmatprep.subr.bf16.mxu1 %v8379_v9  ;;  %v5292_v9 = vld [vmem:[#allocation12 + $0x220] sm:$0xff] }
 0x6a1   :  { %4945 = vmatpush1.bf16.xpose.msra.mxu1 %v8377_v13  ;;  %v7201_v13 = vcombine.low %v5280_v38, %v5284_v4  ;;  %v9162_v38 = vsub.s32 7, %v9042_v53 }
 0x6a2   :  { %4946 = vmatprep.subr.bf16.mxu1 %v8382_v39  ;;  %v7210_v39 = vcombine.high %v5288_v7, %v5292_v9 }
 0x6a9   :  { %4947 = vmatpush1.bf16.xpose.msra.mxu1 %v8380_v40  ;;  %v5296_v40 = vld [vmem:[#allocation12 + $0x240] sm:$0xff] }
 0x6aa   :  { %4948 = vmatprep.subr.bf16.mxu1 %v8385_v16  ;;  %v5300_v16 = vld [vmem:[#allocation12 + $0x260] sm:$0xff] }
 0x6b1   :  { %4949 = vmatpush1.bf16.xpose.msra.mxu1 %v8383_v44  ;;  %v7209_v44 = vcombine.low %v5288_v7, %v5292_v9  ;;  %v5004_v7 = vmul.f32 %v9152_v0, %v9152_v0 }
 0x6b2   :  { %4950 = vmatprep.subr.bf16.mxu1 %v8388_v19  ;;  %v7218_v19 = vcombine.high %v5296_v40, %v5300_v16 }
 0x6b9   :  { %4951 = vmatpush1.bf16.xpose.msra.mxu1 %v8386_v20  ;;  %v5304_v20 = vld [vmem:[#allocation12 + $0x280] sm:$0xff] }
 0x6ba   :  { %4952 = vmatprep.subr.bf16.mxu1 %v8391_v21  ;;  %v5308_v21 = vld [vmem:[#allocation12 + $0x2a0] sm:$0xff] }
 0x6c1   :  { %4953 = vmatpush1.bf16.xpose.msra.mxu1 %v8389_v22  ;;  %v7217_v22 = vcombine.low %v5296_v40, %v5300_v16 }
 0x6c2   :  { %4954 = vmatprep.subr.bf16.mxu1 %v8394_v18  ;;  %v7226_v18 = vcombine.high %v5304_v20, %v5308_v21 }
 0x6c9   :  { %4955 = vmatpush1.bf16.xpose.msra.mxu1 %v8392_v25  ;;  %v5312_v25 = vld [vmem:[#allocation12 + $0x2c0] sm:$0xff] }
 0x6ca   :  { %4956 = vmatprep.subr.bf16.mxu1 %v8397_v24  ;;  %v5316_v24 = vld [vmem:[#allocation12 + $0x2e0] sm:$0xff] }
 0x6d1   :  { %4957 = vmatpush1.bf16.xpose.msra.mxu1 %v8395_v26  ;;  %v7225_v26 = vcombine.low %v5304_v20, %v5308_v21 }
 0x6d2   :  { %4958 = vmatprep.subr.bf16.mxu1 %v8400_v27  ;;  %v7234_v27 = vcombine.high %v5312_v25, %v5316_v24 }
 0x6d9   :  { %4959 = vmatpush1.bf16.xpose.msra.mxu1 %v8398_v28  ;;  %v7233_v28 = vcombine.low %v5312_v25, %v5316_v24 }
 0x6e0   :  { %4961 = vmatmul.mubr.bf16.vlgmr.msra.gmra.mrb[8].mxu1 %v9023_v49  ;;  %v7170_v49 = vcombine.high %v5248_v29, %v5252_v47  ;;  %v9125_v29 = vsub.s32 5, %v9042_v53  ;;  %v5001_v47 = vmul.f32 %v9062_v15, %v9062_v15 }
 0x6e2   :  { %6010 = vmatprep.subr.bf16.mxu0 %v7170_v49  ;;  %v9136_v49 = vadd.f32 %v9081_v11, %v886_v43  ;;  %v4981_v11 = vadd.f32 %v9117_v37, %v4980_v51 }
 0x6e3   :  { %6011 = vmatpush1.bf16.xpose.msra.mxu0 %v7169_v54  ;;  %v9143_v54 = vadd.f32 %v9085_v14, %v886_v43  ;;  %v9157_v14 = vsub.s32 6, %v9042_v53 }
 0x6e4   :  { %6012 = vmatprep.subr.bf16.mxu0 %v7178_v55  ;;  %v5008_v55 = vadd.f32 %v4993_v32, %v4992_v45  ;;  %v4973_v4 = vadd.f32 %v9136_v49, %v4972_v57 }
 0x6e5   :  { %v5003_v59 = vmul.f32 %v9143_v54, %v9143_v54 }
 0x6e6   :  { %v5009_v1 = vadd.f32 %v5008_v55, %v4994_v48  ;;  %v4974_v53 = vadd.f32 %v9147_v17, %v4973_v4  ;;  %v5332_v4 = vld [vmem:[#allocation12 + $0x360] sm:$0xff] }
 0x6eb   :  { %6013 = vmatpush1.bf16.xpose.msra.mxu0 %v7177_v23  ;;  %v894_v23 = vrot.slane %v8441_v31, %v9125_v29 }
 0x6ec   :  { %6014 = vmatprep.subr.bf16.mxu0 %v7186_v63  ;;  %v5017_v63 = vadd.f32 %v5001_v47, %v5000_v10 }
 0x6ed   :  { %v9174_v9 = vadd.f32 %v9095_v62, %v894_v23 }
 0x6ef   :  { %v5005_v21 = vmul.f32 %v9174_v9, %v9174_v9 }
 0x6f3   :  { %6015 = vmatpush1.bf16.xpose.msra.mxu0 %v7185_v2  ;;  %v4995_v2 = vmul.f32 %v9136_v49, %v9136_v49 }
 0x6f4   :  { %6016 = vmatprep.subr.bf16.mxu0 %v7194_v3  ;;  %v5018_v3 = vadd.f32 %v5017_v63, %v5002_v52 }
 0x6f6   :  { %v5019_v40 = vadd.f32 %v5018_v3, %v5003_v59  ;;  %v5328_v59 = vld [vmem:[#allocation12 + $0x340] sm:$0xff] }
 0x6f8   :  { %v5020_v20 = vadd.f32 %v5019_v40, %v5004_v7  ;;  %v5336_v7 = vld [vmem:[#allocation12 + $0x380] sm:$0xff] }
 0x6f9   :  { %v5348_v40 = vld [vmem:[#allocation12 + $0x3e0] sm:$0xff] }
 0x6fa   :  { %v5021_v10 = vadd.f32 %v5020_v20, %v5005_v21  ;;  %v9208_v20 = vld [vmem:[#allocation12 + $0x28] sm:$0xff] }
 0x6fb   :  { %6017 = vmatpush1.bf16.xpose.msra.mxu0 %v7193_v41  ;;  %v9168_v41 = vadd.f32 %v9091_v60, %v894_v23 }
 0x6fc   :  { %6018 = vmatprep.subr.bf16.mxu0 %v7202_v6  ;;  %v4982_v6 = vadd.f32 %v9143_v54, %v4981_v11  ;;  %v5320_v11 = vld [vmem:[#allocation12 + $0x300] sm:$0xff] }
 0x6fd   :  { %v4997_v60 = vmul.f32 %v9168_v41, %v9168_v41  ;;  %v4975_v25 = vadd.f32 %v9168_v41, %v4974_v53  ;;  %v5344_v53 = vld [vmem:[#allocation12 + $0x3c0] sm:$0xff] }
 0x6fe   :  { %v4983_v16 = vadd.f32 %v9152_v0, %v4982_v6  ;;  %v7249_v6 = vcombine.low %v5328_v59, %v5332_v4 }
 0x700   :  { %v4984_v24 = vadd.f32 %v9174_v9, %v4983_v16 }
 0x703   :  { %6019 = vmatpush1.bf16.xpose.msra.mxu0 %v7201_v13  ;;  %v5010_v13 = vadd.f32 %v5009_v1, %v4995_v2  ;;  %v5324_v1 = vld [vmem:[#allocation12 + $0x320] sm:$0xff] }
 0x704   :  { %6020 = vmatprep.subr.bf16.mxu0 %v7210_v39  ;;  %v898_v39 = vrot.slane %v8441_v31, %v9157_v14  ;;  %v7242_v2 = vcombine.high %v5320_v11, %v5324_v1  ;;  %v7241_v3 = vcombine.low %v5320_v11, %v5324_v1 }
 0x70b   :  { %6021 = vmatpush1.bf16.xpose.msra.mxu0 %v7209_v44  ;;  %v902_v44 = vrot.slane %v8441_v31, %v9162_v38 }
 0x70c   :  { %6022 = vmatprep.subr.bf16.mxu0 %v7218_v19  ;;  %v5011_v19 = vadd.f32 %v5010_v13, %v4996_v61  ;;  %v7250_v61 = vcombine.high %v5328_v59, %v5332_v4  ;;  %v5340_v13 = vld [vmem:[#allocation12 + $0x3a0] sm:$0xff] }
 0x70d   :  { %v7257_v16 = vcombine.low %v5336_v7, %v5340_v13 }
 0x70e   :  { %v5012_v45 = vadd.f32 %v5011_v19, %v4997_v60  ;;  %v7265_v60 = vcombine.low %v5344_v53, %v5348_v40  ;;  %v9206_v19 = vld [vmem:[#allocation12 + $0x8] sm:$0xff] }
 0x70f   :  { %v7148_v21 = vcombine.high %v9206_v19, %v9208_v20 }
 0x713   :  { %6023 = vmatpush1.bf16.xpose.msra.mxu0 %v7217_v22 }
 0x714   :  { %6024 = vmatprep.subr.bf16.mxu0 %v7226_v18 }
 0x71b   :  { %6025 = vmatpush1.bf16.xpose.msra.mxu0 %v7225_v26 }
 0x71c   :  { %6026 = vmatprep.subr.bf16.mxu0 %v7234_v27 }
 0x723   :  { %6027 = vmatpush1.bf16.xpose.msra.mxu0 %v7233_v28 }
 0x724   :  { %6028 = vmatprep.subr.bf16.mxu0 %v7242_v2 }
 0x72b   :  { %6029 = vmatpush1.bf16.xpose.msra.mxu0 %v7241_v3 }
 0x72c   :  { %6030 = vmatprep.subr.bf16.mxu0 %v7250_v61 }
 0x733   :  { %6031 = vmatpush1.bf16.xpose.msra.mxu0 %v7249_v6 }
 0x7b3   :  { %v4962_v62 = vpop.f32.mrb[8].mxu1 }
 0x7b4   :  { %v9184_v22 = vadd.f32 %v4962_v62, %v898_v39  ;;  %v4964_v18 = vpop.f32.mrb[9].mxu1  ;;  %v7147_v62 = vcombine.low %v9206_v19, %v9208_v20 }
 0x7b5   :  { %v9188_v26 = vadd.f32 %v4964_v18, %v902_v44  ;;  %v4966_v27 = vpop.f32.mrb[10].mxu1 }
 0x7b6   :  { %v9190_v28 = vadd.f32 %v4966_v27, %v898_v39  ;;  %v4968_v31 = vpop.f32.mrb[11].mxu1  ;;  %v4976_v33 = vadd.f32 %v9184_v22, %v4975_v25  ;;  %v4998_v43 = vmul.f32 %v9184_v22, %v9184_v22  ;;  %v7258_v39 = vcombine.high %v5336_v7, %v5340_v13 }
 0x7b7   :  { %v9195_v32 = vadd.f32 %v4968_v31, %v902_v44  ;;  %v4999_v46 = vmul.f32 %v9188_v26, %v9188_v26  ;;  %v7266_v44 = vcombine.high %v5344_v53, %v5348_v40 }
 0x7b8   :  { %v5006_v47 = vmul.f32 %v9190_v28, %v9190_v28  ;;  %v4977_v36 = vadd.f32 %v9188_v26, %v4976_v33  ;;  %v5013_v48 = vadd.f32 %v5012_v45, %v4998_v43  ;;  %v4985_v51 = vadd.f32 %v9190_v28, %v4984_v24  ;;  %6032 = vmatprep.subr.bf16.mxu0 %v7258_v39 }
 0x7b9   :  { %v5007_v55 = vmul.f32 %v9195_v32, %v9195_v32  ;;  %6033 = vmatpush1.bf16.xpose.msra.mxu0 %v7257_v16 }
 0x7ba   :  { %4978 = vadd.xlane.f32.xlu0 %v4977_v36  ;;  %v5014_v52 = vadd.f32 %v5013_v48, %v4999_v46  ;;  %v5022_v57 = vadd.f32 %v5021_v10, %v5006_v47  ;;  %v4986_v23 = vadd.f32 %v9195_v32, %v4985_v51  ;;  %6034 = vmatprep.subr.bf16.mxu0 %v7266_v44  ;;  %v5068_v48 = vld [vmem:[#allocation9] sm:$0xff]  ;;  %v5126_v51 = vld [vmem:[#allocation11] sm:$0xff] }
 0x7bb   :  { %v9230_v11 = vrot.slane %v5126_v51, %v9110_v35  ;;  %v9233_v1 = vrot.slane %v5068_v48, %v9157_v14  ;;  %v9236_v2 = vrot.slane %v5126_v51, %v9157_v14  ;;  %v5077_v3 = vrot.slane %v5068_v48, %v9048_v58 }
 0x7bc   :  { %5015 = vadd.xlane.f32.xlu1 %v5014_v52  ;;  %v5023_v63 = vadd.f32 %v5022_v57, %v5007_v55  ;;  %v5081_v57 = vrot.slane %v5068_v48, %v9103_v30  ;;  %v5073_v59 = vrot.slane %v5068_v48, %v9045_v56  ;;  %v5135_v4 = vrot.slane %v5126_v51, %v9048_v58 }
 0x7bd   :  { %v5131_v61 = vrot.slane %v5126_v51, %v9045_v56  ;;  %v9245_v6 = vrot.slane %v5068_v48, %v9125_v29  ;;  %v9250_v14 = vrot.slane %v5126_v51, %v9125_v29  ;;  %v9253_v13 = vrot.slane %v5068_v48, %v9162_v38 }
 0x7be   :  { %4987 = vadd.xlane.f32.xlu0 %v4986_v23  ;;  %v9224_v23 = vrot.slane %v5126_v51, %v9103_v30  ;;  %v5085_v30 = vrot.slane %v5068_v48, %v9107_v34  ;;  %v9256_v53 = vrot.slane %v5126_v51, %v9162_v38 }
 0x7c0   :  { %5024 = vadd.xlane.f32.xlu1 %v5023_v63  ;;  %v9227_v63 = vrot.slane %v5068_v48, %v9110_v35  ;;  %v5143_v35 = vrot.slane %v5126_v51, %v9107_v34 }
 0x7c1   :  { %6035 = vmatpush1.bf16.xpose.msra.mxu0 %v7265_v60 }
 0x7c2   :  { %6047 = vmatprep.subr.bf16.mxu0 %v7148_v21 }
 0x847   :  { %v4979_v18 = vpop.xlane.xlu0 %4978 }
 0x848   :  { %v9214_v25 = vmul.f32 0.0009765625, %v4979_v18 }
 0x849   :  { %v5016_v24 = vpop.xlane.xlu1 %5015 }
 0x84a   :  { %v5026_v27 = vmul.f32 0.0009765625, %v5016_v24  ;;  %v5028_v31 = vmul.f32 %v9214_v25, %v9214_v25  ;;  %v5037_v7 = vsub.f32 %v9058_v8, %v9214_v25  ;;  %v5036_v39 = vsub.f32 %v9055_v5, %v9214_v25 }
 0x84b   :  { %v4988_v33 = vpop.xlane.xlu0 %4987  ;;  %v5039_v34 = vsub.f32 %v9136_v49, %v9214_v25  ;;  %v5038_v40 = vsub.f32 %v9113_v42, %v9214_v25  ;;  %v5041_v8 = vsub.f32 %v9168_v41, %v9214_v25  ;;  %v5040_v16 = vsub.f32 %v9147_v17, %v9214_v25 }
 0x84c   :  { %v5030_v43 = vsub.f32 %v5026_v27, %v5028_v31  ;;  %v9218_v45 = vmul.f32 0.0009765625, %v4988_v33  ;;  %v5043_v38 = vsub.f32 %v9188_v26, %v9214_v25  ;;  %v5042_v5 = vsub.f32 %v9184_v22, %v9214_v25 }
 0x84d   :  { %v5025_v46 = vpop.xlane.xlu1 %5024 }
 0x84e   :  { %v5032_v10 = vadd.f32 1e-05, %v5030_v43  ;;  %v5027_v47 = vmul.f32 0.0009765625, %v5025_v46  ;;  %v5029_v36 = vmul.f32 %v9218_v45, %v9218_v45  ;;  %v5045_v29 = vsub.f32 %v9062_v15, %v9218_v45 }
 0x84f   :  { %v5044_v49 = vsub.f32 %v9060_v12, %v9218_v45  ;;  %v5047_v42 = vsub.f32 %v9143_v54, %v9218_v45  ;;  %v5046_v41 = vsub.f32 %v9117_v37, %v9218_v45  ;;  %v5049_v15 = vsub.f32 %v9174_v9, %v9218_v45 }
 0x850   :  { %8429 = vrsqrt.f32 %v5032_v10  ;;  %v5031_v52 = vsub.f32 %v5027_v47, %v5029_v36  ;;  %v5048_v22 = vsub.f32 %v9152_v0, %v9218_v45  ;;  %v5051_v12 = vsub.f32 %v9195_v32, %v9218_v45 }
 0x852   :  { %v5033_v55 = vadd.f32 1e-05, %v5031_v52 }
 0x854   :  { %8431 = vrsqrt.f32 %v5033_v55 }
 0x85a   :  { %v8430_v44 = vpop.eup %8429 }
 0x85b   :  { %v5053_v17 = vmul.f32 %v8430_v44, %v5037_v7  ;;  %v5052_v60 = vmul.f32 %v8430_v44, %v5036_v39  ;;  %v5055_v21 = vmul.f32 %v8430_v44, %v5039_v34  ;;  %v5054_v26 = vmul.f32 %v8430_v44, %v5038_v40 }
 0x85c   :  { %v5057_v18 = vmul.f32 %v8430_v44, %v5041_v8  ;;  %v5056_v25 = vmul.f32 %v8430_v44, %v5040_v16  ;;  %v5059_v43 = vmul.f32 %v8430_v44, %v5043_v38  ;;  %v5058_v46 = vmul.f32 %v8430_v44, %v5042_v5 }
 0x85d   :  { %v5111_v24 = vmul.f32 %v5077_v3, %v5053_v17  ;;  %v5110_v54 = vmul.f32 %v5073_v59, %v5052_v60  ;;  %v5113_v27 = vmul.f32 %v5085_v30, %v5055_v21  ;;  %v5112_v31 = vmul.f32 %v5081_v57, %v5054_v26  ;;  %v5233_v17 = vld [vmem:[#allocation12 + $0x48] sm:$0xff] }
 0x85e   :  { %v9286_v37 = vpop.eup %8431  ;;  %v5115_v9 = vmul.f32 %v9245_v6, %v5057_v18  ;;  %v5114_v33 = vmul.f32 %v9227_v63, %v5056_v25 }
 0x85f   :  { %v5061_v10 = vmul.f32 %v9286_v37, %v5045_v29  ;;  %v5169_v47 = vadd.f32 %v5135_v4, %v5111_v24  ;;  %v5060_v0 = vmul.f32 %v9286_v37, %v5044_v49  ;;  %v5168_v36 = vadd.f32 %v5131_v61, %v5110_v54 }
 0x860   :  { %v5063_v32 = vmul.f32 %v9286_v37, %v5047_v42  ;;  %v5171_v48 = vadd.f32 %v5143_v35, %v5113_v27  ;;  %v5062_v51 = vmul.f32 %v9286_v37, %v5046_v41  ;;  %v5170_v52 = vadd.f32 %v9224_v23, %v5112_v31 }
 0x861   :  { %v5119_v55 = vmul.f32 %v5077_v3, %v5061_v10  ;;  %v5185_v7 = vmax.f32 %v5169_v47, 0.0  ;;  %v5118_v39 = vmul.f32 %v5073_v59, %v5060_v0  ;;  %v5184_v34 = vmax.f32 %v5168_v36, 0.0 }
 0x862   :  { %v5121_v40 = vmul.f32 %v5085_v30, %v5063_v32  ;;  %v5187_v8 = vmax.f32 %v5171_v48, 0.0  ;;  %v5120_v16 = vmul.f32 %v5081_v57, %v5062_v51  ;;  %v5186_v38 = vmax.f32 %v5170_v52, 0.0  ;;  %v5253_v52 = vld [vmem:[#allocation12 + $0xe8] sm:$0xff] }
 0x863   :  { %v5177_v29 = vadd.f32 %v5135_v4, %v5119_v55  ;;  %5201 = vst [vmem:[#allocation23 + $0x8] sm:$0xff] %v5185_v7  ;;  %v5176_v5 = vadd.f32 %v5131_v61, %v5118_v39  ;;  %5200 = vst [vmem:[#allocation23] sm:$0xff] %v5184_v34  ;;  %v5065_v44 = vmul.f32 %v9286_v37, %v5049_v15  ;;  %v5237_v4 = vld [vmem:[#allocation12 + $0x68] sm:$0xff] }
 0x864   :  { %v5173_v49 = vadd.f32 %v9250_v14, %v5115_v9  ;;  %v5179_v42 = vadd.f32 %v5143_v35, %v5121_v40  ;;  %5203 = vst [vmem:[#allocation23 + $0x18] sm:$0xff] %v5187_v8  ;;  %v5178_v41 = vadd.f32 %v9224_v23, %v5120_v16  ;;  %5202 = vst [vmem:[#allocation23 + $0x10] sm:$0xff] %v5186_v38  ;;  %v5261_v39 = vld [vmem:[#allocation12 + $0x128] sm:$0xff] }
 0x865   :  { %v5064_v3 = vmul.f32 %v9286_v37, %v5048_v22  ;;  %v5172_v59 = vadd.f32 %v9230_v11, %v5114_v33  ;;  %v5193_v30 = vmax.f32 %v5177_v29, 0.0  ;;  %v5192_v57 = vmax.f32 %v5176_v5, 0.0  ;;  %v5269_v16 = vld [vmem:[#allocation12 + $0x168] sm:$0xff] }
 0x866   :  { %v5123_v61 = vmul.f32 %v9245_v6, %v5065_v44  ;;  %v5189_v60 = vmax.f32 %v5173_v49, 0.0  ;;  %v5195_v21 = vmax.f32 %v5179_v42, 0.0  ;;  %v5194_v15 = vmax.f32 %v5178_v41, 0.0  ;;  %v5273_v5 = vld [vmem:[#allocation12 + $0x188] sm:$0xff] }
 0x867   :  { %v5122_v26 = vmul.f32 %v9227_v63, %v5064_v3  ;;  %v5188_v35 = vmax.f32 %v5172_v59, 0.0  ;;  %5209 = vst [vmem:[#allocation23 + $0x48] sm:$0xff] %v5193_v30  ;;  %v5217_v18 = vpack.c.bf16 %v5193_v30, %v5185_v7  ;;  %5208 = vst [vmem:[#allocation23 + $0x40] sm:$0xff] %v5192_v57  ;;  %v5216_v23 = vpack.c.bf16 %v5192_v57, %v5184_v34  ;;  %v5277_v44 = vld [vmem:[#allocation12 + $0x1a8] sm:$0xff] }
 0x868   :  { %v5181_v22 = vadd.f32 %v9250_v14, %v5123_v61  ;;  %5205 = vst [vmem:[#allocation23 + $0x28] sm:$0xff] %v5189_v60  ;;  %v5067_v25 = vmul.f32 %v9286_v37, %v5051_v12  ;;  %5211 = vst [vmem:[#allocation23 + $0x58] sm:$0xff] %v5195_v21  ;;  %v7156_v24 = vcombine.high %v5233_v17, %v5237_v4  ;;  %v5281_v41 = vld [vmem:[#allocation12 + $0x1c8] sm:$0xff] }
 0x869   :  { %5210 = vst [vmem:[#allocation23 + $0x50] sm:$0xff] %v5194_v15  ;;  %v9304_v54 = vpack.c.bf16 %v5194_v15, %v5186_v38  ;;  %v5180_v6 = vadd.f32 %v9230_v11, %v5122_v26  ;;  %5204 = vst [vmem:[#allocation23 + $0x20] sm:$0xff] %v5188_v35  ;;  %v5050_v63 = vsub.f32 %v9190_v28, %v9218_v45  ;;  %6036 = vmatprep.mubr.bf16.mxu0 %v5217_v18  ;;  %v5285_v3 = vld [vmem:[#allocation12 + $0x1e8] sm:$0xff] }
 0x86a   :  { %v5219_v27 = vpack.c.bf16 %v5195_v21, %v5187_v8  ;;  %v5197_v31 = vmax.f32 %v5181_v22, 0.0  ;;  %v5117_v9 = vmul.f32 %v9253_v13, %v5059_v43  ;;  %v5125_v14 = vmul.f32 %v9253_v13, %v5067_v25  ;;  %6037 = vmatmul.mubr.bf16.vlgmr.msra.gmra.mrb[8].mxu0 %v5216_v23  ;;  %v5241_v43 = vld [vmem:[#allocation12 + $0x88] sm:$0xff] }
 0x86b   :  { %v5196_v12 = vmax.f32 %v5180_v6, 0.0  ;;  %v5066_v33 = vmul.f32 %v9286_v37, %v5050_v63  ;;  %v5116_v10 = vmul.f32 %v9233_v1, %v5058_v46  ;;  %6048 = vmatpush1.bf16.xpose.msra.mxu0 %v7147_v62  ;;  %v5245_v46 = vld [vmem:[#allocation12 + $0xa8] sm:$0xff]  ;;  %v7155_v62 = vcombine.low %v5233_v17, %v5237_v4 }
 0x86c   :  { %6079 = vmatprep.mubr.bf16.mxu0 %v5219_v27  ;;  %5213 = vst [vmem:[#allocation23 + $0x68] sm:$0xff] %v5197_v31  ;;  %v9316_v28 = vpack.c.bf16 %v5197_v31, %v5189_v60  ;;  %v5175_v45 = vadd.f32 %v9256_v53, %v5117_v9  ;;  %v5183_v11 = vadd.f32 %v9256_v53, %v5125_v14  ;;  %v5265_v8 = vld [vmem:[#allocation12 + $0x148] sm:$0xff] }
 0x86d   :  { %6049 = vmatprep.subr.bf16.mxu0 %v7156_v24  ;;  %5212 = vst [vmem:[#allocation23 + $0x60] sm:$0xff] %v5196_v12  ;;  %v9320_v13 = vpack.c.bf16 %v5196_v12, %v5188_v35  ;;  %v5124_v37 = vmul.f32 %v9233_v1, %v5066_v33  ;;  %v5174_v19 = vadd.f32 %v9236_v2, %v5116_v10  ;;  %v5249_v1 = vld [vmem:[#allocation12 + $0xc8] sm:$0xff] }
 0x86e   :  { %v5191_v47 = vmax.f32 %v5175_v45, 0.0  ;;  %v5199_v0 = vmax.f32 %v5183_v11, 0.0  ;;  %v7164_v32 = vcombine.high %v5241_v43, %v5245_v46  ;;  %v7163_v55 = vcombine.low %v5241_v43, %v5245_v46  ;;  %v5289_v57 = vld [vmem:[#allocation12 + $0x208] sm:$0xff] }
 0x86f   :  { %v5182_v20 = vadd.f32 %v9236_v2, %v5124_v37  ;;  %v5190_v53 = vmax.f32 %v5174_v19, 0.0  ;;  %v7172_v7 = vcombine.high %v5249_v1, %v5253_v52  ;;  %v5257_v2 = vld [vmem:[#allocation12 + $0x108] sm:$0xff]  ;;  %v7171_v34 = vcombine.low %v5249_v1, %v5253_v52  ;;  %v5234_v1 = vld [vmem:[#allocation12 + $0x50] sm:$0xff] }
 0x870   :  { %5207 = vst [vmem:[#allocation23 + $0x38] sm:$0xff] %v5191_v47  ;;  %5215 = vst [vmem:[#allocation23 + $0x78] sm:$0xff] %v5199_v0  ;;  %v9325_v36 = vpack.c.bf16 %v5199_v0, %v5191_v47  ;;  %v7180_v40 = vcombine.high %v5257_v2, %v5261_v39  ;;  %v7179_v38 = vcombine.low %v5257_v2, %v5261_v39  ;;  %v5293_v17 = vld [vmem:[#allocation12 + $0x228] sm:$0xff]  ;;  %v5238_v52 = vld [vmem:[#allocation12 + $0x70] sm:$0xff] }
 0x871   :  { %v5198_v48 = vmax.f32 %v5182_v20, 0.0  ;;  %5206 = vst [vmem:[#allocation23 + $0x30] sm:$0xff] %v5190_v53  ;;  %v7188_v29 = vcombine.high %v5265_v8, %v5269_v16  ;;  %v7187_v49 = vcombine.low %v5265_v8, %v5269_v16  ;;  %v7196_v42 = vcombine.high %v5273_v5, %v5277_v44  ;;  %v5297_v60 = vld [vmem:[#allocation12 + $0x248] sm:$0xff]  ;;  %v5242_v2 = vld [vmem:[#allocation12 + $0x90] sm:$0xff] }
 0x872   :  { %v7195_v59 = vcombine.low %v5273_v5, %v5277_v44  ;;  %v7204_v30 = vcombine.high %v5281_v41, %v5285_v3  ;;  %v7203_v4 = vcombine.low %v5281_v41, %v5285_v3  ;;  %v7212_v61 = vcombine.high %v5289_v57, %v5293_v17  ;;  %v5301_v21 = vld [vmem:[#allocation12 + $0x268] sm:$0xff]  ;;  %v5246_v39 = vld [vmem:[#allocation12 + $0xb0] sm:$0xff] }
 0x873   :  { %5214 = vst [vmem:[#allocation23 + $0x70] sm:$0xff] %v5198_v48  ;;  %v9327_v51 = vpack.c.bf16 %v5198_v48, %v5190_v53  ;;  %6050 = vmatpush1.bf16.xpose.msra.mxu0 %v7155_v62  ;;  %v7211_v15 = vcombine.low %v5289_v57, %v5293_v17  ;;  %v7220_v26 = vcombine.high %v5297_v60, %v5301_v21  ;;  %v5305_v35 = vld [vmem:[#allocation12 + $0x288] sm:$0xff]  ;;  %v5226_v62 = vld [vmem:[#allocation12 + $0x10] sm:$0xff] }
 0x874   :  { %6051 = vmatprep.subr.bf16.mxu0 %v7164_v32  ;;  %v5309_v18 = vld [vmem:[#allocation12 + $0x2a8] sm:$0xff]  ;;  %v7219_v23 = vcombine.low %v5297_v60, %v5301_v21  ;;  %v5230_v53 = vld [vmem:[#allocation12 + $0x30] sm:$0xff] }
 0x875   :  { %v7228_v22 = vcombine.high %v5305_v35, %v5309_v18  ;;  %v5313_v25 = vld [vmem:[#allocation12 + $0x2c8] sm:$0xff]  ;;  %v7227_v6 = vcombine.low %v5305_v35, %v5309_v18  ;;  %v7150_v48 = vcombine.high %v5226_v62, %v5230_v53  ;;  %v5250_v8 = vld [vmem:[#allocation12 + $0xd0] sm:$0xff] }
 0x876   :  { %v5317_v24 = vld [vmem:[#allocation12 + $0x2e8] sm:$0xff]  ;;  %v5254_v16 = vld [vmem:[#allocation12 + $0xf0] sm:$0xff] }
 0x877   :  { %v7236_v63 = vcombine.high %v5313_v25, %v5317_v24  ;;  %v5321_v27 = vld [vmem:[#allocation12 + $0x308] sm:$0xff]  ;;  %v7235_v9 = vcombine.low %v5313_v25, %v5317_v24  ;;  %v5258_v5 = vld [vmem:[#allocation12 + $0x110] sm:$0xff] }
 0x878   :  { %v5325_v31 = vld [vmem:[#allocation12 + $0x328] sm:$0xff]  ;;  %v5262_v44 = vld [vmem:[#allocation12 + $0x130] sm:$0xff] }
 0x879   :  { %v7244_v14 = vcombine.high %v5321_v27, %v5325_v31  ;;  %v5329_v12 = vld [vmem:[#allocation12 + $0x348] sm:$0xff]  ;;  %v7243_v10 = vcombine.low %v5321_v27, %v5325_v31  ;;  %v7181_v41 = vcombine.low %v5258_v5, %v5262_v44 }
 0x87a   :  { %v5333_v33 = vld [vmem:[#allocation12 + $0x368] sm:$0xff] }
 0x87b   :  { %6052 = vmatpush1.bf16.xpose.msra.mxu0 %v7163_v55  ;;  %v7252_v45 = vcombine.high %v5329_v12, %v5333_v33  ;;  %v5337_v11 = vld [vmem:[#allocation12 + $0x388] sm:$0xff]  ;;  %v7251_v43 = vcombine.low %v5329_v12, %v5333_v33  ;;  %v7149_v55 = vcombine.low %v5226_v62, %v5230_v53 }
 0x87c   :  { %6053 = vmatprep.subr.bf16.mxu0 %v7172_v7  ;;  %v5341_v37 = vld [vmem:[#allocation12 + $0x3a8] sm:$0xff]  ;;  %v7158_v7 = vcombine.high %v5234_v1, %v5238_v52 }
 0x87d   :  { %v7260_v46 = vcombine.high %v5337_v11, %v5341_v37  ;;  %v5345_v47 = vld [vmem:[#allocation12 + $0x3c8] sm:$0xff]  ;;  %v7259_v19 = vcombine.low %v5337_v11, %v5341_v37 }
 0x87e   :  { %v5349_v0 = vld [vmem:[#allocation12 + $0x3e8] sm:$0xff] }
 0x87f   :  { %v7268_v20 = vcombine.high %v5345_v47, %v5349_v0  ;;  %v7267_v32 = vcombine.low %v5345_v47, %v5349_v0 }
 0x883   :  { %6054 = vmatpush1.bf16.xpose.msra.mxu0 %v7171_v34  ;;  %v7157_v34 = vcombine.low %v5234_v1, %v5238_v52 }
 0x884   :  { %6055 = vmatprep.subr.bf16.mxu0 %v7180_v40  ;;  %v7166_v40 = vcombine.high %v5242_v2, %v5246_v39 }
 0x88b   :  { %6056 = vmatpush1.bf16.xpose.msra.mxu0 %v7179_v38  ;;  %v7165_v38 = vcombine.low %v5242_v2, %v5246_v39 }
 0x88c   :  { %6057 = vmatprep.subr.bf16.mxu0 %v7188_v29  ;;  %v7174_v29 = vcombine.high %v5250_v8, %v5254_v16 }
 0x893   :  { %6058 = vmatpush1.bf16.xpose.msra.mxu0 %v7187_v49  ;;  %v7173_v49 = vcombine.low %v5250_v8, %v5254_v16 }
 0x894   :  { %6059 = vmatprep.subr.bf16.mxu0 %v7196_v42  ;;  %v5270_v42 = vld [vmem:[#allocation12 + $0x170] sm:$0xff] }
 0x89b   :  { %6060 = vmatpush1.bf16.xpose.msra.mxu0 %v7195_v59  ;;  %v5274_v59 = vld [vmem:[#allocation12 + $0x190] sm:$0xff] }
 0x89c   :  { %6061 = vmatprep.subr.bf16.mxu0 %v7204_v30  ;;  %v5278_v30 = vld [vmem:[#allocation12 + $0x1b0] sm:$0xff] }
 0x89d   :  { %v7198_v17 = vcombine.high %v5274_v59, %v5278_v30  ;;  %v7197_v60 = vcombine.low %v5274_v59, %v5278_v30  ;;  %v5271_v30 = vld [vmem:[#allocation12 + $0x178] sm:$0xff] }
 0x8a3   :  { %6062 = vmatpush1.bf16.xpose.msra.mxu0 %v7203_v4  ;;  %v5282_v4 = vld [vmem:[#allocation12 + $0x1d0] sm:$0xff] }
 0x8a4   :  { %6063 = vmatprep.subr.bf16.mxu0 %v7212_v61  ;;  %v5286_v61 = vld [vmem:[#allocation12 + $0x1f0] sm:$0xff] }
 0x8a5   :  { %v7206_v21 = vcombine.high %v5282_v4, %v5286_v61  ;;  %v7205_v35 = vcombine.low %v5282_v4, %v5286_v61  ;;  %v5275_v4 = vld [vmem:[#allocation12 + $0x198] sm:$0xff] }
 0x8a6   :  { %v5279_v61 = vld [vmem:[#allocation12 + $0x1b8] sm:$0xff] }
 0x8ab   :  { %6064 = vmatpush1.bf16.xpose.msra.mxu0 %v7211_v15  ;;  %v5290_v15 = vld [vmem:[#allocation12 + $0x210] sm:$0xff] }
 0x8ac   :  { %6065 = vmatprep.subr.bf16.mxu0 %v7220_v26  ;;  %v5294_v26 = vld [vmem:[#allocation12 + $0x230] sm:$0xff] }
 0x8ad   :  { %v7214_v18 = vcombine.high %v5290_v15, %v5294_v26  ;;  %v7213_v25 = vcombine.low %v5290_v15, %v5294_v26  ;;  %v5283_v15 = vld [vmem:[#allocation12 + $0x1d8] sm:$0xff] }
 0x8ae   :  { %v5287_v26 = vld [vmem:[#allocation12 + $0x1f8] sm:$0xff] }
 0x8b3   :  { %6066 = vmatpush1.bf16.xpose.msra.mxu0 %v7219_v23  ;;  %v5298_v23 = vld [vmem:[#allocation12 + $0x250] sm:$0xff] }
 0x8b4   :  { %6067 = vmatprep.subr.bf16.mxu0 %v7228_v22  ;;  %v5302_v22 = vld [vmem:[#allocation12 + $0x270] sm:$0xff] }
 0x8b5   :  { %v7222_v24 = vcombine.high %v5298_v23, %v5302_v22  ;;  %v7221_v27 = vcombine.low %v5298_v23, %v5302_v22  ;;  %v5291_v23 = vld [vmem:[#allocation12 + $0x218] sm:$0xff] }
 0x8b6   :  { %v5295_v22 = vld [vmem:[#allocation12 + $0x238] sm:$0xff] }
 0x8bb   :  { %6068 = vmatpush1.bf16.xpose.msra.mxu0 %v7227_v6  ;;  %v5306_v6 = vld [vmem:[#allocation12 + $0x290] sm:$0xff] }
 0x8bc   :  { %6069 = vmatprep.subr.bf16.mxu0 %v7236_v63  ;;  %v5310_v63 = vld [vmem:[#allocation12 + $0x2b0] sm:$0xff] }
 0x8bd   :  { %v7230_v31 = vcombine.high %v5306_v6, %v5310_v63  ;;  %v7229_v12 = vcombine.low %v5306_v6, %v5310_v63  ;;  %v5299_v6 = vld [vmem:[#allocation12 + $0x258] sm:$0xff] }
 0x8be   :  { %v5303_v63 = vld [vmem:[#allocation12 + $0x278] sm:$0xff] }
 0x8c3   :  { %6070 = vmatpush1.bf16.xpose.msra.mxu0 %v7235_v9  ;;  %v5314_v9 = vld [vmem:[#allocation12 + $0x2d0] sm:$0xff] }
 0x8c4   :  { %6071 = vmatprep.subr.bf16.mxu0 %v7244_v14  ;;  %v5318_v14 = vld [vmem:[#allocation12 + $0x2f0] sm:$0xff] }
 0x8c5   :  { %v7238_v33 = vcombine.high %v5314_v9, %v5318_v14  ;;  %v7237_v11 = vcombine.low %v5314_v9, %v5318_v14  ;;  %v5307_v9 = vld [vmem:[#allocation12 + $0x298] sm:$0xff] }
 0x8c6   :  { %v5311_v14 = vld [vmem:[#allocation12 + $0x2b8] sm:$0xff] }
 0x8cb   :  { %6072 = vmatpush1.bf16.xpose.msra.mxu0 %v7243_v10  ;;  %v5322_v10 = vld [vmem:[#allocation12 + $0x310] sm:$0xff] }
 0x8cc   :  { %6073 = vmatprep.subr.bf16.mxu0 %v7252_v45  ;;  %v5326_v45 = vld [vmem:[#allocation12 + $0x330] sm:$0xff] }
 0x8cd   :  { %v7246_v37 = vcombine.high %v5322_v10, %v5326_v45  ;;  %v7245_v47 = vcombine.low %v5322_v10, %v5326_v45  ;;  %v5315_v10 = vld [vmem:[#allocation12 + $0x2d8] sm:$0xff] }
 0x8ce   :  { %v5319_v45 = vld [vmem:[#allocation12 + $0x2f8] sm:$0xff] }
 0x8d3   :  { %6074 = vmatpush1.bf16.xpose.msra.mxu0 %v7251_v43  ;;  %v5330_v43 = vld [vmem:[#allocation12 + $0x350] sm:$0xff] }
 0x8d4   :  { %6075 = vmatprep.subr.bf16.mxu0 %v7260_v46  ;;  %v5334_v46 = vld [vmem:[#allocation12 + $0x370] sm:$0xff] }
 0x8d5   :  { %v7254_v0 = vcombine.high %v5330_v43, %v5334_v46  ;;  %v7253_v62 = vcombine.low %v5330_v43, %v5334_v46  ;;  %v5323_v43 = vld [vmem:[#allocation12 + $0x318] sm:$0xff] }
 0x8d6   :  { %v5327_v46 = vld [vmem:[#allocation12 + $0x338] sm:$0xff] }
 0x8db   :  { %6076 = vmatpush1.bf16.xpose.msra.mxu0 %v7259_v19  ;;  %v5338_v19 = vld [vmem:[#allocation12 + $0x390] sm:$0xff] }
 0x8dc   :  { %6077 = vmatprep.subr.bf16.mxu0 %v7268_v20  ;;  %v5342_v20 = vld [vmem:[#allocation12 + $0x3b0] sm:$0xff] }
 0x8dd   :  { %v7262_v53 = vcombine.high %v5338_v19, %v5342_v20  ;;  %v7261_v1 = vcombine.low %v5338_v19, %v5342_v20  ;;  %v5331_v19 = vld [vmem:[#allocation12 + $0x358] sm:$0xff] }
 0x8de   :  { %v5335_v20 = vld [vmem:[#allocation12 + $0x378] sm:$0xff] }
 0x8e3   :  { %6078 = vmatpush1.bf16.xpose.msra.mxu0 %v7267_v32  ;;  %v5346_v32 = vld [vmem:[#allocation12 + $0x3d0] sm:$0xff] }
 0x8e4   :  { %6090 = vmatprep.subr.bf16.mxu0 %v7150_v48  ;;  %v5350_v48 = vld [vmem:[#allocation12 + $0x3f0] sm:$0xff] }
 0x8e5   :  { %v7270_v52 = vcombine.high %v5346_v32, %v5350_v48  ;;  %v7269_v2 = vcombine.low %v5346_v32, %v5350_v48  ;;  %v5339_v32 = vld [vmem:[#allocation12 + $0x398] sm:$0xff] }
 0x8e6   :  { %v5343_v48 = vld [vmem:[#allocation12 + $0x3b8] sm:$0xff] }
 0x8ea   :  { %6080 = vmatmul.mubr.bf16.vlgmr.msra.gmra.mrb[8].mxu0 %v9304_v54  ;;  %v7182_v54 = vcombine.high %v5258_v5, %v5262_v44 }
 0x8eb   :  { %6091 = vmatpush1.bf16.xpose.msra.mxu0 %v7149_v55  ;;  %6122 = vmatprep.mubr.bf16.mxu0 %v9316_v28  ;;  %v5266_v28 = vld [vmem:[#allocation12 + $0x150] sm:$0xff]  ;;  %v5227_v55 = vld [vmem:[#allocation12 + $0x18] sm:$0xff] }
 0x8ec   :  { %6092 = vmatprep.subr.bf16.mxu0 %v7158_v7  ;;  %v7190_v3 = vcombine.high %v5266_v28, %v5270_v42  ;;  %v7189_v57 = vcombine.low %v5266_v28, %v5270_v42  ;;  %v5231_v7 = vld [vmem:[#allocation12 + $0x38] sm:$0xff] }
 0x8ed   :  { %v7152_v39 = vcombine.high %v5227_v55, %v5231_v7  ;;  %v7151_v8 = vcombine.low %v5227_v55, %v5231_v7  ;;  %v5347_v55 = vld [vmem:[#allocation12 + $0x3d8] sm:$0xff] }
 0x8ee   :  { %v5351_v7 = vld [vmem:[#allocation12 + $0x3f8] sm:$0xff] }
 0x8f3   :  { %6093 = vmatpush1.bf16.xpose.msra.mxu0 %v7157_v34  ;;  %v5235_v34 = vld [vmem:[#allocation12 + $0x58] sm:$0xff] }
 0x8f4   :  { %6094 = vmatprep.subr.bf16.mxu0 %v7166_v40  ;;  %v5239_v40 = vld [vmem:[#allocation12 + $0x78] sm:$0xff] }
 0x8f5   :  { %v7160_v16 = vcombine.high %v5235_v34, %v5239_v40  ;;  %v7159_v5 = vcombine.low %v5235_v34, %v5239_v40  ;;  %v7271_v34 = vcombine.low %v5347_v55, %v5351_v7  ;;  %v8403_v40 = vld [vmem:[#allocation15 + $0x4] ss:$8 sps:$4 sm:$0xff]  }
 0x8fb   :  { %6095 = vmatpush1.bf16.xpose.msra.mxu0 %v7165_v38  ;;  %v5243_v38 = vld [vmem:[#allocation12 + $0x98] sm:$0xff] }
 0x8fc   :  { %6096 = vmatprep.subr.bf16.mxu0 %v7174_v29  ;;  %v5247_v29 = vld [vmem:[#allocation12 + $0xb8] sm:$0xff] }
 0x8fd   :  { %v7168_v44 = vcombine.high %v5243_v38, %v5247_v29  ;;  %v7167_v28 = vcombine.low %v5243_v38, %v5247_v29  ;;  %v8404_v38 = vld [vmem:[#allocation15 + $0x10] ss:$8 sps:$4 sm:$0xff]   ;;  %v8409_v29 = vld [vmem:[#allocation15 + $0x24] ss:$8 sps:$4 sm:$0xff]  }
 0x903   :  { %6097 = vmatpush1.bf16.xpose.msra.mxu0 %v7173_v49  ;;  %v5251_v49 = vld [vmem:[#allocation12 + $0xd8] sm:$0xff] }
 0x904   :  { %6098 = vmatprep.subr.bf16.mxu0 %v7182_v54  ;;  %v5255_v54 = vld [vmem:[#allocation12 + $0xf8] sm:$0xff] }
 0x905   :  { %v7176_v42 = vcombine.high %v5251_v49, %v5255_v54  ;;  %v7175_v59 = vcombine.low %v5251_v49, %v5255_v54  ;;  %v8410_v49 = vld [vmem:[#allocation15 + $0x30] ss:$8 sps:$4 sm:$0xff]   ;;  %v8415_v54 = vld [vmem:[#allocation15 + $0x44] ss:$8 sps:$4 sm:$0xff]  }
 0x90b   :  { %6099 = vmatpush1.bf16.xpose.msra.mxu0 %v7181_v41  ;;  %v5259_v41 = vld [vmem:[#allocation12 + $0x118] sm:$0xff] }
 0x90c   :  { %6100 = vmatprep.subr.bf16.mxu0 %v7190_v3  ;;  %v5263_v3 = vld [vmem:[#allocation12 + $0x138] sm:$0xff] }
 0x913   :  { %6101 = vmatpush1.bf16.xpose.msra.mxu0 %v7189_v57  ;;  %v7183_v57 = vcombine.low %v5259_v41, %v5263_v3 }
 0x914   :  { %6102 = vmatprep.subr.bf16.mxu0 %v7198_v17 }
 0x91b   :  { %6103 = vmatpush1.bf16.xpose.msra.mxu0 %v7197_v60 }
 0x91c   :  { %6104 = vmatprep.subr.bf16.mxu0 %v7206_v21  ;;  %v7200_v21 = vcombine.high %v5275_v4, %v5279_v61 }
 0x923   :  { %6105 = vmatpush1.bf16.xpose.msra.mxu0 %v7205_v35  ;;  %v7199_v35 = vcombine.low %v5275_v4, %v5279_v61  ;;  %v5352_v4 = vld [vmem:[#allocation14] sm:$0x3] }
 0x924   :  { %6106 = vmatprep.subr.bf16.mxu0 %v7214_v18  ;;  %v7208_v18 = vcombine.high %v5283_v15, %v5287_v26  ;;  %v5357_v61 = vrot.slane %v5352_v4, %v9045_v56  ;;  %v7273_v56 = vld [vmem:[#allocation17] ss:$0 sm:$0xff] }
 0x92b   :  { %6107 = vmatpush1.bf16.xpose.msra.mxu0 %v7213_v25  ;;  %v7207_v25 = vcombine.low %v5283_v15, %v5287_v26 }
 0x92c   :  { %6108 = vmatprep.subr.bf16.mxu0 %v7222_v24  ;;  %v7216_v24 = vcombine.high %v5291_v23, %v5295_v22 }
 0x933   :  { %6109 = vmatpush1.bf16.xpose.msra.mxu0 %v7221_v27  ;;  %v7215_v27 = vcombine.low %v5291_v23, %v5295_v22 }
 0x934   :  { %6110 = vmatprep.subr.bf16.mxu0 %v7230_v31  ;;  %v7224_v31 = vcombine.high %v5299_v6, %v5303_v63 }
 0x93b   :  { %6111 = vmatpush1.bf16.xpose.msra.mxu0 %v7229_v12  ;;  %v7223_v12 = vcombine.low %v5299_v6, %v5303_v63 }
 0x93c   :  { %6112 = vmatprep.subr.bf16.mxu0 %v7238_v33  ;;  %v7232_v33 = vcombine.high %v5307_v9, %v5311_v14 }
 0x943   :  { %6113 = vmatpush1.bf16.xpose.msra.mxu0 %v7237_v11  ;;  %v7231_v11 = vcombine.low %v5307_v9, %v5311_v14  ;;  %v8428_v14 = vld [vmem:[#allocation18 + $0x18] sm:$0xff]  }
 0x944   :  { %6114 = vmatprep.subr.bf16.mxu0 %v7246_v37  ;;  %v7240_v37 = vcombine.high %v5315_v10, %v5319_v45 }
 0x94b   :  { %6115 = vmatpush1.bf16.xpose.msra.mxu0 %v7245_v47  ;;  %v7239_v47 = vcombine.low %v5315_v10, %v5319_v45 }
 0x94c   :  { %6116 = vmatprep.subr.bf16.mxu0 %v7254_v0  ;;  %v7248_v0 = vcombine.high %v5323_v43, %v5327_v46 }
 0x953   :  { %6117 = vmatpush1.bf16.xpose.msra.mxu0 %v7253_v62  ;;  %v7247_v62 = vcombine.low %v5323_v43, %v5327_v46 }
 0x954   :  { %6118 = vmatprep.subr.bf16.mxu0 %v7262_v53  ;;  %v7256_v53 = vcombine.high %v5331_v19, %v5335_v20 }
 0x95b   :  { %6119 = vmatpush1.bf16.xpose.msra.mxu0 %v7261_v1  ;;  %v7255_v1 = vcombine.low %v5331_v19, %v5335_v20 }
 0x95c   :  { %6120 = vmatprep.subr.bf16.mxu0 %v7270_v52  ;;  %v7264_v52 = vcombine.high %v5339_v32, %v5343_v48 }
 0x963   :  { %6121 = vmatpush1.bf16.xpose.msra.mxu0 %v7269_v2  ;;  %v7263_v2 = vcombine.low %v5339_v32, %v5343_v48 }
 0x964   :  { %6133 = vmatprep.subr.bf16.mxu0 %v7152_v39  ;;  %v7272_v39 = vcombine.high %v5347_v55, %v5351_v7 }
 0x96a   :  { %6123 = vmatmul.mubr.bf16.vlgmr.msra.gmra.mrb[8].mxu0 %v9320_v13  ;;  %v7184_v13 = vcombine.high %v5259_v41, %v5263_v3  ;;  %v8416_v41 = vld [vmem:[#allocation15 + $0x50] ss:$8 sps:$4 sm:$0xff]   ;;  %v8419_v3 = vld [vmem:[#allocation15 + $0x60] ss:$8 sps:$4 sm:$0xff]  }
 0x96b   :  { %6134 = vmatpush1.bf16.xpose.msra.mxu0 %v7151_v8  ;;  %6165 = vmatprep.mubr.bf16.mxu0 %v9325_v36  ;;  %v5267_v36 = vld [vmem:[#allocation12 + $0x158] sm:$0xff]  ;;  %v8401_v8 = vld [vmem:[#allocation15] ss:$8 sps:$4 sm:$0xff]  }
 0x96c   :  { %6135 = vmatprep.subr.bf16.mxu0 %v7160_v16  ;;  %v7192_v17 = vcombine.high %v5267_v36, %v5271_v30  ;;  %v7191_v60 = vcombine.low %v5267_v36, %v5271_v30  ;;  %v8406_v16 = vld [vmem:[#allocation15 + $0x14] ss:$8 sps:$4 sm:$0xff]   ;;  %v8425_v36 = vld [vmem:[#allocation18] sm:$0xff]   ;;  %v8766_v30 = vmov 0.0  }
 0x96d   :  { %7304 = vmatprep.subr.bf16.mxu1 %v8766_v30  ;;  %7312 = vmatprep.mubr.msk.bf16.mxu1 %vm8767_vm0, %v8766_v30 }
 0x96e   :  { %7305 = vmatpush3.bf16.xpose.msra.mxu1 %v8425_v36 }
 0x96f   :  { %7306 = vmatprep.subr.bf16.mxu1 %v8766_v30 }
 0x973   :  { %6136 = vmatpush1.bf16.xpose.msra.mxu0 %v7159_v5  ;;  %v8407_v5 = vld [vmem:[#allocation15 + $0x20] ss:$8 sps:$4 sm:$0xff]  }
 0x974   :  { %6137 = vmatprep.subr.bf16.mxu0 %v7168_v44  ;;  %v8412_v44 = vld [vmem:[#allocation15 + $0x34] ss:$8 sps:$4 sm:$0xff]  }
 0x97b   :  { %6138 = vmatpush1.bf16.xpose.msra.mxu0 %v7167_v28  ;;  %v8413_v28 = vld [vmem:[#allocation15 + $0x40] ss:$8 sps:$4 sm:$0xff]  }
 0x97c   :  { %6139 = vmatprep.subr.bf16.mxu0 %v7176_v42  ;;  %v8418_v42 = vld [vmem:[#allocation15 + $0x54] ss:$8 sps:$4 sm:$0xff]  }
 0x983   :  { %6140 = vmatpush1.bf16.xpose.msra.mxu0 %v7175_v59  ;;  %v8422_v59 = vld [vmem:[#allocation15 + $0x70] ss:$8 sps:$4 sm:$0xff]  }
 0x984   :  { %6141 = vmatprep.subr.bf16.mxu0 %v7184_v13  ;;  %v8424_v13 = vld [vmem:[#allocation15 + $0x74] ss:$8 sps:$4 sm:$0xff]  }
 0x98b   :  { %6142 = vmatpush1.bf16.xpose.msra.mxu0 %v7183_v57  ;;  %v8426_v57 = vld [vmem:[#allocation18 + $0x8] sm:$0xff]  }
 0x98c   :  { %6143 = vmatprep.subr.bf16.mxu0 %v7192_v17  ;;  %7307 = vmatpush3.bf16.xpose.msra.mxu1 %v8426_v57  ;;  %v8427_v17 = vld [vmem:[#allocation18 + $0x10] sm:$0xff]  }
 0x98d   :  { %7308 = vmatprep.subr.bf16.mxu1 %v8766_v30 }
 0x993   :  { %6144 = vmatpush1.bf16.xpose.msra.mxu0 %v7191_v60  ;;  %v5361_v60 = vrot.slane %v5352_v4, %v9048_v58 }
 0x994   :  { %6145 = vmatprep.subr.bf16.mxu0 %v7200_v21  ;;  %7309 = vmatpush3.bf16.xpose.msra.mxu1 %v8427_v17 }
 0x995   :  { %7310 = vmatprep.subr.bf16.mxu1 %v8766_v30 }
 0x99b   :  { %6146 = vmatpush1.bf16.xpose.msra.mxu0 %v7199_v35 }
 0x99c   :  { %6147 = vmatprep.subr.bf16.mxu0 %v7208_v18  ;;  %7311 = vmatpush3.bf16.xpose.msra.mxu1 %v8428_v14 }
 0x9a3   :  { %6148 = vmatpush1.bf16.xpose.msra.mxu0 %v7207_v25 }
 0x9a4   :  { %6149 = vmatprep.subr.bf16.mxu0 %v7216_v24 }
 0x9ab   :  { %6150 = vmatpush1.bf16.xpose.msra.mxu0 %v7215_v27 }
 0x9ac   :  { %6151 = vmatprep.subr.bf16.mxu0 %v7224_v31 }
 0x9b3   :  { %6152 = vmatpush1.bf16.xpose.msra.mxu0 %v7223_v12 }
 0x9b4   :  { %6153 = vmatprep.subr.bf16.mxu0 %v7232_v33 }
 0x9bb   :  { %6154 = vmatpush1.bf16.xpose.msra.mxu0 %v7231_v11 }
 0x9bc   :  { %6155 = vmatprep.subr.bf16.mxu0 %v7240_v37 }
 0x9c3   :  { %6156 = vmatpush1.bf16.xpose.msra.mxu0 %v7239_v47  ;;  %v7290_v47 = vld [vmem:[#allocation20] ss:$0 sm:$0xff] }
 0x9c4   :  { %6157 = vmatprep.subr.bf16.mxu0 %v7248_v0 }
 0x9cb   :  { %6158 = vmatpush1.bf16.xpose.msra.mxu0 %v7247_v62 }
 0x9cc   :  { %6159 = vmatprep.subr.bf16.mxu0 %v7256_v53  ;;  %v7295_v53 = vld [vmem:[#allocation21] ss:$0 sm:$0xff] }
 0x9d3   :  { %6160 = vmatpush1.bf16.xpose.msra.mxu0 %v7255_v1 }
 0x9d4   :  { %6161 = vmatprep.subr.bf16.mxu0 %v7264_v52 }
 0x9db   :  { %6162 = vmatpush1.bf16.xpose.msra.mxu0 %v7263_v2 }
 0x9dc   :  { %6163 = vmatprep.subr.bf16.mxu0 %v7272_v39 }
 0x9e3   :  { %6164 = vmatpush1.bf16.xpose.msra.mxu0 %v7271_v34  ;;  %v8768_v34 = vmov 0  }
 0x9e4   :  { %6285 = vmatprep.subr.bf16.mxu0 %v8403_v40  ;;  %7440 = vset.pattern.permute.xlu1 %v8768_v34  ;;  %v7296_v40 = vld [vmem:[#allocation2] ss:$0 sm:$0xff] }
 0x9e5   :  { %7439 = vset.pattern.permute.xlu0 %v8768_v34 }
 0x9ea   :  { %6166 = vmatmul.mubr.bf16.vlgmr.msra.gmra.mrb[8].mxu0 %v9327_v51  ;;  %v8421_v51 = vld [vmem:[#allocation15 + $0x64] ss:$8 sps:$4 sm:$0xff]  }
 0x9eb   :  { %6286 = vmatpush1.bf16.xpose.msra.mxu0 %v8401_v8 }
 0x9ec   :  { %6287 = vmatprep.subr.bf16.mxu0 %v8406_v16 }
 0x9f3   :  { %6288 = vmatpush1.bf16.xpose.msra.mxu0 %v8404_v38 }
 0x9f4   :  { %6289 = vmatprep.subr.bf16.mxu0 %v8409_v29 }
 0x9fb   :  { %6290 = vmatpush1.bf16.xpose.msra.mxu0 %v8407_v5 }
 0x9fc   :  { %6291 = vmatprep.subr.bf16.mxu0 %v8412_v44 }
 0xa03   :  { %6292 = vmatpush1.bf16.xpose.msra.mxu0 %v8410_v49 }
 0xa04   :  { %6293 = vmatprep.subr.bf16.mxu0 %v8415_v54 }
 0xa0b   :  { %6294 = vmatpush1.bf16.xpose.msra.mxu0 %v8413_v28 }
 0xa0c   :  { %6295 = vmatprep.subr.bf16.mxu0 %v8418_v42 }
 0xa13   :  { %6296 = vmatpush1.bf16.xpose.msra.mxu0 %v8416_v41 }
 0xa14   :  { %6297 = vmatprep.subr.bf16.mxu0 %v8421_v51 }
 0xa1b   :  { %6298 = vmatpush1.bf16.xpose.msra.mxu0 %v8419_v3 }
 0xa1c   :  { %6299 = vmatprep.subr.bf16.mxu0 %v8424_v13 }
 0xa23   :  { %6300 = vmatpush1.bf16.xpose.msra.mxu0 %v8422_v59 }
 0xabd   :  { %v6167_v21 = vpop.f32.mrb[8].mxu0 }
 0xabe   :  { %v7336_v15 = vadd.f32 %v6167_v21, %v5357_v61  ;;  %v6169_v26 = vpop.f32.mrb[9].mxu0 }
 0xabf   :  { %v7337_v35 = vadd.f32 %v6169_v26, %v5361_v60  ;;  %v6171_v18 = vpop.f32.mrb[10].mxu0 }
 0xac0   :  { %v7338_v23 = vadd.f32 %v6171_v18, %v5357_v61  ;;  %v6173_v22 = vpop.f32.mrb[11].mxu0  ;;  %v6176_v24 = vmax.f32 %v7336_v15, 0.0 }
 0xac1   :  { %v7339_v25 = vadd.f32 %v6173_v22, %v5361_v60  ;;  %v6177_v63 = vmax.f32 %v7337_v35, 0.0 }
 0xac2   :  { %v6178_v6 = vmax.f32 %v7338_v23, 0.0 }
 0xac3   :  { %v6179_v27 = vmax.f32 %v7339_v25, 0.0 }
 0xac4   :  { %v6180_v31 = vpack.c.bf16 %v6178_v6, %v6176_v24 }
 0xac5   :  { %v6181_v9 = vpack.c.bf16 %v6179_v27, %v6177_v63 }
 0xac7   :  { %6317 = vmatprep.mubr.bf16.mxu0 %v6181_v9 }
 0xac8   :  { %6318 = vmatmul.mubr.bf16.vlgmr.msra.gmra.mrb[12].mxu0 %v6180_v31 }
 0xb9b   :  { %v6319_v58 = vpop.f32.mrb[12].mxu0 }
 0xb9c   :  { %v6320_v12 = vadd.f32 %v7273_v56, %v6319_v58  ;;  %v6321_v33 = vpop.f32.mrb[13].mxu0 }
 0xb9d   :  { %v6322_v10 = vpop.f32.mrb[14].mxu0 }
 0xb9e   :  { %v6323_v45 = vadd.f32 %v7273_v56, %v6322_v10  ;;  %v6324_v11 = vpop.f32.mrb[15].mxu0  ;;  %v6326_v37 = vmax.f32 %v6320_v12, 0.0 }
 0xba0   :  { %v6327_v43 = vmax.f32 %v6323_v45, 0.0 }
 0xba2   :  { %v6328_v46 = vpack.c.bf16 %v6327_v43, %v6326_v37 }
 0xba4   :  { %7313 = vmatmul.mubr.bf16.vlgmr.msra.gmra.mrb[12].mxu1 %v6328_v46 }
 0xc77   :  { %v6402_v0 = vpop.f32.mrb[12].mxu1 }
 0xc78   :  { %v6403_v19 = vadd.f32 %v7290_v47, %v6402_v0  ;;  %v7314_v20 = vpop.f32.mrb[13].mxu1 }
 0xc79   :  { %v6405_v62 = vpop.f32.mrb[14].mxu1 }
 0xc7a   :  { %v6409_v32 = vmax.f32 %v6403_v19, 0.0  ;;  %v6406_v48 = vadd.f32 %v7290_v47, %v6405_v62  ;;  %v7315_v1 = vpop.f32.mrb[15].mxu1 }
 0xc7c   :  { %v6410_v52 = vmax.f32 %v6406_v48, 0.0  ;;  %v6418_v55 = vmul.f32 %v7295_v53, %v6409_v32 }
 0xc7e   :  { %v6421_v7 = vsel %vm6420_vm1, %v6418_v55, 0.0  ;;  %v6419_v2 = vmul.f32 %v7295_v53, %v6410_v52 }
 0xc7f   :  { %6422 = vadd.xlane.f32.xlu0 %v6421_v7 }
 0xc80   :  { %v6424_v39 = vsel %vm6420_vm1, %v6419_v2, 0.0 }
 0xc81   :  { %6425 = vadd.xlane.f32.xlu1 %v6424_v39 }
 0xd0c   :  { %v6423_v8 = vpop.xlane.xlu0 %6422 }
 0xd0d   :  { %v6434_v16 = vadd.f32 %v7296_v40, %v6423_v8 }
 0xd0e   :  { %v6426_v38 = vpop.xlane.xlu1 %6425 }
 0xd0f   :  { %v6439_v29 = vsub.f32 0.0, %v6434_v16  ;;  %v6435_v5 = vadd.f32 %v7296_v40, %v6426_v38  ;;  %6453 = vperm.xlu1 %7440, %v6434_v16  }
 0xd11   :  { %v6440_v44 = vsub.f32 0.0, %v6435_v5  ;;  %6443 = vperm.xlu0 %7439, %v6439_v29  }
 0xd13   :  { %6448 = vperm.xlu1 %7440, %v6440_v44  }
 0xd17   :  { %6458 = vperm.xlu1 %7440, %v6435_v5  }
 0xd18   :  { %8717 = shalt.err (!%p8714_p2)
}
 0xd19   :  { %s8718_s24 = scalar_lea.hbm %s9370_s14, 2048 }
 0xd1a   :  { %p8719_p3 = scmp.ne.s32.totalorder %s9370_s14, %s8718_s24  ;;  %p8722_p4 = scmp.lt.u32.totalorder %s8718_s24, %s9370_s14 }
 0xd1c   :  { %p8724_p5 = pnand %p8722_p4, %p8719_p3 }
 0xd1e   :  { %8727 = shalt.err (!%p8724_p5)
}
 0xd1f   :  { %s8770_s0 = smov 1024   ;;  %v6437_v49 = vand.u32 127, %v871_v50  ;;  %vm6475_vm3 = vcmask 15360  }
 0xd20   :  { %6491 = dma.vmem_to_hbm [thread:$0]  %s6486_s21, 2048, %s9370_s14, [#allocation5], %s8770_s0, %s8770_s0, %s8755_s7  }
 0xd21   :  { %vm6438_vm2 = vcmp.eq.s32.totalorder %v6437_v49, 0 }
 0xd8e   :  { %v6454_v54 = vpop.permute.xlu1 %6453 }
 0xd90   :  { %v6444_v28 = vpop.permute.xlu0 %6443 }
 0xd91   :  { %v6461_v42 = vsel %vm6438_vm2, %v6444_v28, %v6454_v54 }
 0xd92   :  { %v7297_v41 = vmul.f32 -1.442695, %v6461_v42  ;;  %v6449_v51 = vpop.permute.xlu1 %6448 }
 0xd94   :  { %8433 = vpow2.f32 %v7297_v41 }
 0xd96   :  { %v6459_v3 = vpop.permute.xlu1 %6458 }
 0xd97   :  { %v6462_v59 = vsel %vm6438_vm2, %v6449_v51, %v6459_v3 }
 0xd98   :  { %v7298_v13 = vmul.f32 -1.442695, %v6462_v59 }
 0xd9a   :  { %8435 = vpow2.f32 %v7298_v13 }
 0xd9e   :  { %v8434_v36 = vpop.eup %8433 }
 0xd9f   :  { %v6469_v30 = vadd.f32 1.0, %v8434_v36 }
 0xda1   :  { %8437 = vrcp.f32 %v6469_v30 }
 0xda4   :  { %v8436_v57 = vpop.eup %8435 }
 0xda5   :  { %v6470_v17 = vadd.f32 1.0, %v8436_v57 }
 0xda7   :  { %8439 = vrcp.f32 %v6470_v17 }
 0xdab   :  { %v8438_v4 = vpop.eup %8437 }
 0xdac   :  { %6476 = vst.msk [vmem:[%s9369_s13] sm:$0xff] %vm6475_vm3, %v8438_v4 }
 0xdb1   :  { %v8440_v50 = vpop.eup %8439 }
 0xdb2   :  { %6477 = vst.msk [vmem:[%s9369_s13 + $0x8] sm:$0xff] %vm6475_vm3, %v8440_v50 }
 0xdb3   :  { %8742 = dma.done.wait [#allocation5], 2048  }
 0xdb4   :  { %8743 = vsyncadd [#allocation5], 4294965248 }
 0xdb5   :  { %6497 = vsyncpa [#allocation4], 1 }
 0xdb6   :  { %6498 = vsyncpa [#allocation7], 1 }
 0xdb7   :  { %6499 = vsyncpa [#allocation10], 1 }
 0xdb8   :  { %6500 = vsyncpa [#allocation13], 1 }
 0xdb9   :  { %6501 = vsyncpa [#allocation16], 1 }
 0xdba   :  { %6502 = vsyncpa [#allocation19], 1 }
 0xdbb   :  { %6503 = vsyncpa [#allocation22], 1 }
 0xdbc   :  { %6504 = vsyncpa [#allocation5], 1 }

// kernel: tpu_custom_call.1
= control target key start
LH: loop header
LB: loop body
LE: loop exit
PB: predicated region body
PF: predicated region fallthrough
CT: control target
= control target key end

     0   :  { %s9356_s0 = inlined_call_operand.hbm [shape: f32[16,1280], index: 0, kind: input, shape index: {}]   ;;  %s9357_s1 = inlined_call_operand.hbm [shape: bf16[1024,1280], index: 1, kind: input, shape index: {}]   ;;  %s9358_s2 = inlined_call_operand.hbm [shape: f32[1,1024], index: 2, kind: input, shape index: {}]   ;;  %s9359_s3 = inlined_call_operand.hbm [shape: f32[1,1024], index: 3, kind: input, shape index: {}]   ;;  %s9360_s4 = inlined_call_operand.hbm [shape: f32[1,1024], index: 4, kind: input, shape index: {}]   ;;  %s9361_s5 = inlined_call_operand.hbm [shape: bf16[256,1024], index: 5, kind: input, shape index: {}]   ;;  %s9362_s6 = inlined_call_operand.hbm [shape: f32[1,256], index: 6, kind: input, shape index: {}]   ;;  %s9363_s7 = inlined_call_operand.hbm [shape: bf16[128,256], index: 7, kind: input, shape index: {}]   ;;  %s9364_s8 = inlined_call_operand.hbm [shape: f32[1,128], index: 8, kind: input, shape index: {}]   ;;  %s9365_s9 = inlined_call_operand.hbm [shape: bf16[64,128], index: 9, kind: input, shape index: {}]   ;;  %s9366_s10 = inlined_call_operand.hbm [shape: f32[1,64], index: 10, kind: input, shape index: {}]   ;;  %s9367_s11 = inlined_call_operand.hbm [shape: f32[1,64], index: 11, kind: input, shape index: {}]   ;;  %s9368_s12 = inlined_call_operand.<no memory space> [shape: f32[1,1], index: 12, kind: input, shape index: {}]   ;;  %s9369_s13 = inlined_call_operand.vmem [shape: f32[16,2], index: 13, kind: output, shape index: {0}]   ;;  %s9370_s14 = inlined_call_operand.hbm [shape: f32[16,1024], index: 14, kind: output, shape index: {1}]  }
   0x1   :  { %v20_v0 = vstv %s9368_s12 }
   0x2   :  { %21 = vst [vmem:[#allocation2] sm:$0x1] %v20_v0 }
   0x3   :  { %22 = vsyncpa [#allocation4], 0 }
   0x4   :  { %23 = vsyncpa [#allocation7], 0 }
   0x5   :  { %24 = vsyncpa [#allocation10], 0 }
   0x6   :  { %25 = vsyncpa [#allocation13], 0 }
   0x7   :  { %26 = vsyncpa [#allocation16], 0 }
   0x8   :  { %27 = vsyncpa [#allocation19], 0 }
   0x9   :  { %28 = vsyncpa [#allocation22], 0 }
   0xa   :  { %29 = vsyncpa [#allocation5], 0  ;;  %s8744_s15 = smov [#allocation6]   ;;  %s8442_s19 = scalar_lea.hbm %s9357_s1, 81920 }
   0xb   :  { %s47_s16 = sshll.u32 %s8744_s15, 4  ;;  %p8443_p0 = scmp.ne.s32.totalorder %s9357_s1, %s8442_s19  ;;  %s48_s16 = int_to_ptr.vmem [resolvable:$true] %s47_s16 }
   0xc   :  { %p8446_p1 = scmp.lt.u32.totalorder %s8442_s19, %s9357_s1 }
   0xe   :  { %p8448_p2 = pnand %p8446_p1, %p8443_p0 }
  0x10   :  { %8451 = shalt.err (!%p8448_p2)
}
  0x11   :  { %s8452_s23 = scalar_lea.vmem %s48_s16, 81920  ;;  %p8457_p4 = scmp.lt.s32.totalorder %s48_s16, %s48_s16 }
  0x12   :  { %p8453_p3 = scmp.ne.s32.totalorder %s48_s16, %s8452_s23  ;;  %p8458_p5 = scmp.lt.s32.totalorder %s8452_s23, %s8452_s23 }
  0x14   :  { %p8459_p6 = por %p8458_p5, %p8457_p4 }
  0x16   :  { %p8460_p7 = pnand %p8459_p6, %p8453_p3 }
  0x18   :  { %8463 = shalt.err (!%p8460_p7)
}
  0x19   :  { %s8745_s24 = smov 640   ;;  %s8746_s25 = smov 40  }
  0x1a   :  { %53 = dma.hbm_to_vmem [thread:$0]  %s9357_s1, 81920, %s48_s16, [#allocation7], %s8745_s24, %s8745_s24, %s8746_s25  }
  0x1b   :  { %s8747_s28 = smov [#allocation9]   ;;  %s8748_s30 = smov [#allocation12]  }
  0x1c   :  { %s70_s29 = sshll.u32 %s8747_s28, 4  ;;  %s89_s15 = sshll.u32 %s8748_s30, 4  ;;  %s71_s29 = int_to_ptr.vmem [resolvable:$true] %s70_s29  ;;  %s90_s15 = int_to_ptr.vmem [resolvable:$true] %s89_s15 }
  0x1d   :  { %s8464_s19 = scalar_lea.hbm %s9359_s3, 128 }
  0x1e   :  { %p8465_p8 = scmp.ne.s32.totalorder %s9359_s3, %s8464_s19  ;;  %p8468_p9 = scmp.lt.u32.totalorder %s8464_s19, %s9359_s3 }
  0x20   :  { %p8470_p10 = pnand %p8468_p9, %p8465_p8 }
  0x22   :  { %8473 = shalt.err (!%p8470_p10)
}
  0x23   :  { %s8474_s1 = scalar_lea.vmem %s71_s29, 128  ;;  %p8479_p12 = scmp.lt.s32.totalorder %s71_s29, %s71_s29 }
  0x24   :  { %p8475_p11 = scmp.ne.s32.totalorder %s71_s29, %s8474_s1  ;;  %p8480_p13 = scmp.lt.s32.totalorder %s8474_s1, %s8474_s1 }
  0x26   :  { %p8481_p0 = por %p8480_p13, %p8479_p12 }
  0x28   :  { %p8482_p1 = pnand %p8481_p0, %p8475_p11 }
  0x2a   :  { %8485 = shalt.err (!%p8482_p1)
}
  0x2b   :  { %73 = dma.hbm_to_vmem [thread:$0]  %s9359_s3, 128, %s71_s29, [#allocation10]  }
  0x2c   :  { %s8486_s26 = scalar_lea.hbm %s9361_s5, 16384 }
  0x2d   :  { %p8487_p2 = scmp.ne.s32.totalorder %s9361_s5, %s8486_s26  ;;  %p8490_p3 = scmp.lt.u32.totalorder %s8486_s26, %s9361_s5 }
  0x2f   :  { %p8492_p4 = pnand %p8490_p3, %p8487_p2 }
  0x31   :  { %8495 = shalt.err (!%p8492_p4)
}
  0x32   :  { %s8496_s18 = scalar_lea.vmem %s90_s15, 16384  ;;  %p8501_p6 = scmp.lt.s32.totalorder %s90_s15, %s90_s15 }
  0x33   :  { %p8497_p5 = scmp.ne.s32.totalorder %s90_s15, %s8496_s18  ;;  %p8502_p7 = scmp.lt.s32.totalorder %s8496_s18, %s8496_s18 }
  0x35   :  { %p8503_p8 = por %p8502_p7, %p8501_p6 }
  0x37   :  { %p8504_p9 = pnand %p8503_p8, %p8497_p5 }
  0x39   :  { %8507 = shalt.err (!%p8504_p9)
}
  0x3a   :  { %s8749_s3 = smov 512   ;;  %s8750_s29 = smov 32  }
  0x3b   :  { %95 = dma.hbm_to_vmem [thread:$0]  %s9361_s5, 16384, %s90_s15, [#allocation13], %s8749_s3, %s8749_s3, %s8750_s29  }
  0x3c   :  { %s8751_s21 = smov [#allocation15]   ;;  %s8508_s16 = scalar_lea.hbm %s9363_s7, 2048 }
  0x3d   :  { %s111_s12 = sshll.u32 %s8751_s21, 4  ;;  %p8509_p10 = scmp.ne.s32.totalorder %s9363_s7, %s8508_s16  ;;  %s112_s12 = int_to_ptr.vmem [resolvable:$true] %s111_s12 }
  0x3e   :  { %p8512_p11 = scmp.lt.u32.totalorder %s8508_s16, %s9363_s7 }
  0x40   :  { %p8514_p12 = pnand %p8512_p11, %p8509_p10 }
  0x42   :  { %8517 = shalt.err (!%p8514_p12)
}
  0x43   :  { %s8518_s27 = scalar_lea.vmem %s112_s12, 2048  ;;  %p8523_p0 = scmp.lt.s32.totalorder %s112_s12, %s112_s12 }
  0x44   :  { %p8519_p13 = scmp.ne.s32.totalorder %s112_s12, %s8518_s27  ;;  %p8524_p1 = scmp.lt.s32.totalorder %s8518_s27, %s8518_s27 }
  0x46   :  { %p8525_p2 = por %p8524_p1, %p8523_p0 }
  0x48   :  { %p8526_p3 = pnand %p8525_p2, %p8519_p13 }
  0x4a   :  { %8529 = shalt.err (!%p8526_p3)
}
  0x4b   :  { %s8752_s5 = smov 128   ;;  %s8753_s15 = smov 8  }
  0x4c   :  { %117 = dma.hbm_to_vmem [thread:$0]  %s9363_s7, 2048, %s112_s12, [#allocation16], %s8752_s5, %s8752_s5, %s8753_s15  }
  0x4d   :  { %s8754_s17 = smov [#allocation18]   ;;  %s8530_s19 = scalar_lea.hbm %s9365_s9, 512 }
  0x4e   :  { %s133_s18 = sshll.u32 %s8754_s17, 4  ;;  %p8531_p4 = scmp.ne.s32.totalorder %s9365_s9, %s8530_s19  ;;  %s134_s18 = int_to_ptr.vmem [resolvable:$true] %s133_s18 }
  0x4f   :  { %p8534_p5 = scmp.lt.u32.totalorder %s8530_s19, %s9365_s9 }
  0x51   :  { %p8536_p6 = pnand %p8534_p5, %p8531_p4 }
  0x53   :  { %8539 = shalt.err (!%p8536_p6)
}
  0x54   :  { %s8540_s16 = scalar_lea.vmem %s134_s18, 512  ;;  %p8545_p8 = scmp.lt.s32.totalorder %s134_s18, %s134_s18 }
  0x55   :  { %p8541_p7 = scmp.ne.s32.totalorder %s134_s18, %s8540_s16  ;;  %p8546_p9 = scmp.lt.s32.totalorder %s8540_s16, %s8540_s16 }
  0x57   :  { %p8547_p10 = por %p8546_p9, %p8545_p8 }
  0x59   :  { %p8548_p11 = pnand %p8547_p10, %p8541_p7 }
  0x5b   :  { %8551 = shalt.err (!%p8548_p11)
}
  0x5c   :  { %s8755_s7 = smov 64   ;;  %s8756_s12 = smov 4  }
  0x5d   :  { %139 = dma.hbm_to_vmem [thread:$0]  %s9365_s9, 512, %s134_s18, [#allocation19], %s8755_s7, %s8755_s7, %s8756_s12  }
  0x5e   :  { %s8757_s25 = smov [#allocation3]   ;;  %s8552_s15 = scalar_lea.hbm %s9356_s0, 2560 }
  0x5f   :  { %s35_s26 = sshll.u32 %s8757_s25, 4  ;;  %p8553_p12 = scmp.ne.s32.totalorder %s9356_s0, %s8552_s15  ;;  %s36_s26 = int_to_ptr.vmem [resolvable:$true] %s35_s26 }
  0x60   :  { %p8556_p13 = scmp.lt.u32.totalorder %s8552_s15, %s9356_s0 }
  0x62   :  { %p8558_p0 = pnand %p8556_p13, %p8553_p12 }
  0x64   :  { %8561 = shalt.err (!%p8558_p0)
}
  0x65   :  { %s8562_s29 = scalar_lea.vmem %s36_s26, 2560  ;;  %p8567_p2 = scmp.lt.s32.totalorder %s36_s26, %s36_s26 }
  0x66   :  { %p8563_p1 = scmp.ne.s32.totalorder %s36_s26, %s8562_s29  ;;  %p8568_p3 = scmp.lt.s32.totalorder %s8562_s29, %s8562_s29 }
  0x68   :  { %p8569_p4 = por %p8568_p3, %p8567_p2 }
  0x6a   :  { %p8570_p5 = pnand %p8569_p4, %p8563_p1 }
  0x6c   :  { %8573 = shalt.err (!%p8570_p5)
}
  0x6d   :  { %s8758_s9 = smov 1280   ;;  %s8759_s18 = smov 80  }
  0x6e   :  { %41 = dma.hbm_to_vmem [thread:$0]  %s9356_s0, 2560, %s36_s26, [#allocation4], %s8758_s9, %s8758_s9, %s8759_s18  }
  0x6f   :  { %s8760_s21 = smov [#allocation8]   ;;  %s8761_s1 = smov [#allocation11]  }
  0x70   :  { %s60_s22 = sshll.u32 %s8760_s21, 4  ;;  %s80_s16 = sshll.u32 %s8761_s1, 4  ;;  %s61_s22 = int_to_ptr.vmem [resolvable:$true] %s60_s22  ;;  %s81_s16 = int_to_ptr.vmem [resolvable:$true] %s80_s16 }
  0x71   :  { %s8574_s24 = scalar_lea.hbm %s9358_s2, 128 }
  0x72   :  { %p8575_p6 = scmp.ne.s32.totalorder %s9358_s2, %s8574_s24  ;;  %p8578_p7 = scmp.lt.u32.totalorder %s8574_s24, %s9358_s2 }
  0x74   :  { %p8580_p8 = pnand %p8578_p7, %p8575_p6 }
  0x76   :  { %8583 = shalt.err (!%p8580_p8)
}
  0x77   :  { %s8584_s0 = scalar_lea.vmem %s61_s22, 128  ;;  %p8589_p10 = scmp.lt.s32.totalorder %s61_s22, %s61_s22 }
  0x78   :  { %p8585_p9 = scmp.ne.s32.totalorder %s61_s22, %s8584_s0  ;;  %p8590_p11 = scmp.lt.s32.totalorder %s8584_s0, %s8584_s0 }
  0x7a   :  { %p8591_p12 = por %p8590_p11, %p8589_p10 }
  0x7c   :  { %p8592_p13 = pnand %p8591_p12, %p8585_p9 }
  0x7e   :  { %8595 = shalt.err (!%p8592_p13)
}
  0x7f   :  { %63 = dma.hbm_to_vmem [thread:$0]  %s9358_s2, 128, %s61_s22, [#allocation7]  }
  0x80   :  { %s8596_s3 = scalar_lea.hbm %s9360_s4, 128 }
  0x81   :  { %p8597_p0 = scmp.ne.s32.totalorder %s9360_s4, %s8596_s3  ;;  %p8600_p1 = scmp.lt.u32.totalorder %s8596_s3, %s9360_s4 }
  0x83   :  { %p8602_p2 = pnand %p8600_p1, %p8597_p0 }
  0x85   :  { %8605 = shalt.err (!%p8602_p2)
}
  0x86   :  { %s8606_s20 = scalar_lea.vmem %s81_s16, 128  ;;  %p8611_p4 = scmp.lt.s32.totalorder %s81_s16, %s81_s16 }
  0x87   :  { %p8607_p3 = scmp.ne.s32.totalorder %s81_s16, %s8606_s20  ;;  %p8612_p5 = scmp.lt.s32.totalorder %s8606_s20, %s8606_s20 }
  0x89   :  { %p8613_p6 = por %p8612_p5, %p8611_p4 }
  0x8b   :  { %p8614_p7 = pnand %p8613_p6, %p8607_p3 }
  0x8d   :  { %8617 = shalt.err (!%p8614_p7)
}
  0x8e   :  { %83 = dma.hbm_to_vmem [thread:$0]  %s9360_s4, 128, %s81_s16, [#allocation10]  }
  0x8f   :  { %s8762_s22 = smov [#allocation14]   ;;  %s8763_s12 = smov [#allocation17]  }
  0x90   :  { %s102_s1 = sshll.u32 %s8762_s22, 4  ;;  %s124_s23 = sshll.u32 %s8763_s12, 4  ;;  %s103_s1 = int_to_ptr.vmem [resolvable:$true] %s102_s1  ;;  %s125_s23 = int_to_ptr.vmem [resolvable:$true] %s124_s23 }
  0x91   :  { %s8618_s27 = scalar_lea.hbm %s9362_s6, 32 }
  0x92   :  { %p8619_p8 = scmp.ne.s32.totalorder %s9362_s6, %s8618_s27  ;;  %p8622_p9 = scmp.lt.u32.totalorder %s8618_s27, %s9362_s6 }
  0x94   :  { %p8624_p10 = pnand %p8622_p9, %p8619_p8 }
  0x96   :  { %8627 = shalt.err (!%p8624_p10)
}
  0x97   :  { %s8628_s4 = scalar_lea.vmem %s103_s1, 32  ;;  %p8633_p12 = scmp.lt.s32.totalorder %s103_s1, %s103_s1 }
  0x98   :  { %p8629_p11 = scmp.ne.s32.totalorder %s103_s1, %s8628_s4  ;;  %p8634_p13 = scmp.lt.s32.totalorder %s8628_s4, %s8628_s4 }
  0x9a   :  { %p8635_p0 = por %p8634_p13, %p8633_p12 }
  0x9c   :  { %p8636_p1 = pnand %p8635_p0, %p8629_p11 }
  0x9e   :  { %8639 = shalt.err (!%p8636_p1)
}
  0x9f   :  { %105 = dma.hbm_to_vmem [thread:$0]  %s9362_s6, 32, %s103_s1, [#allocation13]  }
  0xa0   :  { %s8640_s3 = scalar_lea.hbm %s9364_s8, 16 }
  0xa1   :  { %p8641_p2 = scmp.ne.s32.totalorder %s9364_s8, %s8640_s3  ;;  %p8644_p3 = scmp.lt.u32.totalorder %s8640_s3, %s9364_s8 }
  0xa3   :  { %p8646_p4 = pnand %p8644_p3, %p8641_p2 }
  0xa5   :  { %8649 = shalt.err (!%p8646_p4)
}
  0xa6   :  { %s8650_s20 = scalar_lea.vmem %s125_s23, 16  ;;  %s8654_s2 = scalar_lea.vmem %s125_s23, 32 }
  0xa7   :  { %p8651_p5 = scmp.ne.s32.totalorder %s125_s23, %s8650_s20  ;;  %p8655_p6 = scmp.lt.s32.totalorder %s125_s23, %s125_s23 }
  0xa8   :  { %p8656_p7 = scmp.lt.s32.totalorder %s8654_s2, %s8650_s20 }
  0xaa   :  { %p8657_p8 = por %p8656_p7, %p8655_p6 }
  0xac   :  { %p8658_p9 = pnand %p8657_p8, %p8651_p5 }
  0xae   :  { %8661 = shalt.err (!%p8658_p9)
}
  0xaf   :  { %127 = dma.hbm_to_vmem [thread:$0]  %s9364_s8, 16, %s125_s23, [#allocation16]  }
  0xb0   :  { %s8764_s22 = smov [#allocation20]   ;;  %s8765_s12 = smov [#allocation21]  }
  0xb1   :  { %s146_s1 = sshll.u32 %s8764_s22, 4  ;;  %s156_s24 = sshll.u32 %s8765_s12, 4  ;;  %s147_s1 = int_to_ptr.vmem [resolvable:$true] %s146_s1  ;;  %s157_s24 = int_to_ptr.vmem [resolvable:$true] %s156_s24 }
  0xb2   :  { %s8662_s5 = scalar_lea.hbm %s9366_s10, 16 }
  0xb3   :  { %p8663_p10 = scmp.ne.s32.totalorder %s9366_s10, %s8662_s5  ;;  %p8666_p11 = scmp.lt.u32.totalorder %s8662_s5, %s9366_s10 }
  0xb5   :  { %p8668_p12 = pnand %p8666_p11, %p8663_p10 }
  0xb7   :  { %8671 = shalt.err (!%p8668_p12)
}
  0xb8   :  { %s8672_s8 = scalar_lea.vmem %s147_s1, 16  ;;  %s8676_s23 = scalar_lea.vmem %s147_s1, 32 }
  0xb9   :  { %p8673_p13 = scmp.ne.s32.totalorder %s147_s1, %s8672_s8  ;;  %p8677_p0 = scmp.lt.s32.totalorder %s147_s1, %s147_s1 }
  0xba   :  { %p8678_p1 = scmp.lt.s32.totalorder %s8676_s23, %s8672_s8 }
  0xbc   :  { %p8679_p2 = por %p8678_p1, %p8677_p0 }
  0xbe   :  { %p8680_p3 = pnand %p8679_p2, %p8673_p13 }
  0xc0   :  { %8683 = shalt.err (!%p8680_p3)
}
  0xc1   :  { %149 = dma.hbm_to_vmem [thread:$0]  %s9366_s10, 16, %s147_s1, [#allocation19]  }
  0xc2   :  { %s8684_s3 = scalar_lea.hbm %s9367_s11, 16 }
  0xc3   :  { %p8685_p4 = scmp.ne.s32.totalorder %s9367_s11, %s8684_s3  ;;  %p8688_p5 = scmp.lt.u32.totalorder %s8684_s3, %s9367_s11 }
  0xc5   :  { %p8690_p6 = pnand %p8688_p5, %p8685_p4 }
  0xc7   :  { %8693 = shalt.err (!%p8690_p6)
}
  0xc8   :  { %s8694_s20 = scalar_lea.vmem %s157_s24, 16  ;;  %s8698_s2 = scalar_lea.vmem %s157_s24, 32 }
  0xc9   :  { %p8695_p7 = scmp.ne.s32.totalorder %s157_s24, %s8694_s20  ;;  %p8699_p8 = scmp.lt.s32.totalorder %s157_s24, %s157_s24 }
  0xca   :  { %p8700_p9 = scmp.lt.s32.totalorder %s8698_s2, %s8694_s20 }
  0xcc   :  { %p8701_p10 = por %p8700_p9, %p8699_p8 }
  0xce   :  { %p8702_p11 = pnand %p8701_p10, %p8695_p7 }
  0xd0   :  { %8705 = shalt.err (!%p8702_p11)
}
  0xd1   :  { %159 = dma.hbm_to_vmem [thread:$0]  %s9367_s11, 16, %s157_s24, [#allocation22]  }
  0xd2   :  { %8728 = dma.done.wait [#allocation4], 2560  }
  0xd3   :  { %8729 = vsyncadd [#allocation4], 4294964736 }
  0xd4   :  { %8730 = dma.done.wait [#allocation7], 82048  }
  0xd5   :  { %8731 = vsyncadd [#allocation7], 4294885248 }
  0xd6   :  { %8732 = dma.done.wait [#allocation10], 256  }
  0xd7   :  { %8733 = vsyncadd [#allocation10], 4294967040 }
  0xd8   :  { %8734 = dma.done.wait [#allocation13], 16416  }
  0xd9   :  { %8735 = vsyncadd [#allocation13], 4294950880 }
  0xda   :  { %8736 = dma.done.wait [#allocation16], 2064  }
  0xdb   :  { %8737 = vsyncadd [#allocation16], 4294965232 }
  0xdc   :  { %8738 = dma.done.wait [#allocation19], 528  }
  0xdd   :  { %8739 = vsyncadd [#allocation19], 4294966768 }
  0xde   :  { %8740 = dma.done.wait [#allocation22], 16  }
  0xdf   :  { %8741 = vsyncadd [#allocation22], 4294967280  ;;  %v7441_v1 = vld [vmem:[#allocation6 + $0x4] ss:$40 sps:$4 sm:$0xff]   ;;  %v7443_v2 = vld [vmem:[#allocation6 + $0x14] ss:$40 sps:$4 sm:$0xff]  }
  0xe0   :  { %4111 = vmatprep.subr.bf16.mxu1 %v7441_v1  ;;  %v7445_v3 = vld [vmem:[#allocation6] ss:$40 sps:$4 sm:$0xff]   ;;  %v7446_v4 = vld [vmem:[#allocation6 + $0x10] ss:$40 sps:$4 sm:$0xff]   ;;  %4197 = vmatprep.subr.bf16.mxu0 %v7443_v2  ;;  %v7447_v5 = vld [vmem:[#allocation6 + $0x54] ss:$40 sps:$4 sm:$0xff]  }
  0xe1   :  { %4112 = vmatpush1.bf16.xpose.msra.mxu1 %v7445_v3  ;;  %4198 = vmatpush1.bf16.xpose.msra.mxu0 %v7446_v4  ;;  %v7449_v6 = vld [vmem:[#allocation6 + $0x64] ss:$40 sps:$4 sm:$0xff]   ;;  %v7451_v7 = vld [vmem:[#allocation6 + $0x50] ss:$40 sps:$4 sm:$0xff]   ;;  %v7452_v8 = vld [vmem:[#allocation6 + $0x60] ss:$40 sps:$4 sm:$0xff]  }
  0xe2   :  { %4113 = vmatprep.subr.bf16.mxu1 %v7447_v5  ;;  %4199 = vmatprep.subr.bf16.mxu0 %v7449_v6  ;;  %v7453_v9 = vld [vmem:[#allocation6 + $0xa4] ss:$40 sps:$4 sm:$0xff]   ;;  %v7455_v10 = vld [vmem:[#allocation6 + $0xb4] ss:$40 sps:$4 sm:$0xff]   ;;  %v7457_v11 = vld [vmem:[#allocation6 + $0xa0] ss:$40 sps:$4 sm:$0xff]  }
  0xe3   :  { %v7458_v12 = vld [vmem:[#allocation6 + $0xb0] ss:$40 sps:$4 sm:$0xff]   ;;  %v7459_v13 = vld [vmem:[#allocation6 + $0xf4] ss:$40 sps:$4 sm:$0xff]   ;;  %v7461_v14 = vld [vmem:[#allocation6 + $0x104] ss:$40 sps:$4 sm:$0xff]  }
  0xe4   :  { %v7463_v15 = vld [vmem:[#allocation6 + $0xf0] ss:$40 sps:$4 sm:$0xff]   ;;  %v7464_v16 = vld [vmem:[#allocation6 + $0x100] ss:$40 sps:$4 sm:$0xff]   ;;  %v7465_v17 = vld [vmem:[#allocation6 + $0x144] ss:$40 sps:$4 sm:$0xff]  }
  0xe5   :  { %v7467_v18 = vld [vmem:[#allocation6 + $0x154] ss:$40 sps:$4 sm:$0xff]   ;;  %v7469_v19 = vld [vmem:[#allocation6 + $0x140] ss:$40 sps:$4 sm:$0xff]   ;;  %v7470_v20 = vld [vmem:[#allocation6 + $0x150] ss:$40 sps:$4 sm:$0xff]  }
  0xe6   :  { %v7471_v21 = vld [vmem:[#allocation6 + $0x194] ss:$40 sps:$4 sm:$0xff]   ;;  %v7473_v22 = vld [vmem:[#allocation6 + $0x1a4] ss:$40 sps:$4 sm:$0xff]   ;;  %v7475_v23 = vld [vmem:[#allocation6 + $0x190] ss:$40 sps:$4 sm:$0xff]  }
  0xe7   :  { %v7476_v24 = vld [vmem:[#allocation6 + $0x1a0] ss:$40 sps:$4 sm:$0xff]   ;;  %v7477_v25 = vld [vmem:[#allocation6 + $0x1e4] ss:$40 sps:$4 sm:$0xff]   ;;  %v7479_v26 = vld [vmem:[#allocation6 + $0x1f4] ss:$40 sps:$4 sm:$0xff]  }
  0xe8   :  { %v200_v27 = vld [vmem:[#allocation3 + $0x8] sm:$0xff]  ;;  %v210_v28 = vld [vmem:[#allocation3 + $0x58] sm:$0xff]  ;;  %vm8767_vm0 = vmmov 0   ;;  %vm6420_vm1 = vcmask 523264   ;;  %s8769_s11 = smov [#allocation23]  }
  0xe9   :  { %4114 = vmatpush1.bf16.xpose.msra.mxu1 %v7451_v7  ;;  %4200 = vmatpush1.bf16.xpose.msra.mxu0 %v7452_v8  ;;  %v8995_v29 = vpack.c.bf16 %v210_v28, %v200_v27  ;;  %v204_v30 = vld [vmem:[#allocation3 + $0x28] sm:$0xff]  ;;  %v214_v31 = vld [vmem:[#allocation3 + $0x78] sm:$0xff]  ;;  %s6485_s21 = sshll.u32 %s8769_s11, 4  ;;  %s6486_s21 = int_to_ptr.vmem [resolvable:$true] %s6485_s21 }
  0xea   :  { %4115 = vmatprep.subr.bf16.mxu1 %v7453_v9  ;;  %4201 = vmatprep.subr.bf16.mxu0 %v7455_v10  ;;  %v8998_v32 = vpack.c.bf16 %v214_v31, %v204_v30  ;;  %v7481_v33 = vld [vmem:[#allocation6 + $0x1e0] ss:$40 sps:$4 sm:$0xff]   ;;  %v7482_v34 = vld [vmem:[#allocation6 + $0x1f0] ss:$40 sps:$4 sm:$0xff]   ;;  %v7483_v35 = vld [vmem:[#allocation6 + $0x234] ss:$40 sps:$4 sm:$0xff]   ;;  %p8711_p13 = scmp.lt.s32.totalorder %s6486_s21, %s6486_s21 }
  0xeb   :  { %4143 = vmatprep.mubr.bf16.mxu1 %v8995_v29  ;;  %v7485_v36 = vld [vmem:[#allocation6 + $0x244] ss:$40 sps:$4 sm:$0xff]   ;;  %v7487_v37 = vld [vmem:[#allocation6 + $0x230] ss:$40 sps:$4 sm:$0xff]   ;;  %v7488_v38 = vld [vmem:[#allocation6 + $0x240] ss:$40 sps:$4 sm:$0xff]  }
  0xec   :  { %4229 = vmatprep.mubr.bf16.mxu0 %v8998_v32  ;;  %v7489_v39 = vld [vmem:[#allocation6 + $0x284] ss:$40 sps:$4 sm:$0xff]   ;;  %v7491_v40 = vld [vmem:[#allocation6 + $0x294] ss:$40 sps:$4 sm:$0xff]   ;;  %v7493_v41 = vld [vmem:[#allocation6 + $0x280] ss:$40 sps:$4 sm:$0xff]  }
  0xed   :  { %v7494_v42 = vld [vmem:[#allocation6 + $0x290] ss:$40 sps:$4 sm:$0xff]   ;;  %v7495_v43 = vld [vmem:[#allocation6 + $0x2d4] ss:$40 sps:$4 sm:$0xff]   ;;  %v7497_v44 = vld [vmem:[#allocation6 + $0x2e4] ss:$40 sps:$4 sm:$0xff]  }
  0xee   :  { %v7499_v45 = vld [vmem:[#allocation6 + $0x2d0] ss:$40 sps:$4 sm:$0xff]   ;;  %v7500_v46 = vld [vmem:[#allocation6 + $0x2e0] ss:$40 sps:$4 sm:$0xff]   ;;  %v7501_v47 = vld [vmem:[#allocation6 + $0x324] ss:$40 sps:$4 sm:$0xff]  }
  0xef   :  { %v7503_v48 = vld [vmem:[#allocation6 + $0x334] ss:$40 sps:$4 sm:$0xff]   ;;  %v7505_v49 = vld [vmem:[#allocation6 + $0x320] ss:$40 sps:$4 sm:$0xff]   ;;  %v7506_v50 = vld [vmem:[#allocation6 + $0x330] ss:$40 sps:$4 sm:$0xff]  }
  0xf0   :  { %v7507_v51 = vld [vmem:[#allocation6 + $0x374] ss:$40 sps:$4 sm:$0xff]   ;;  %v7509_v52 = vld [vmem:[#allocation6 + $0x384] ss:$40 sps:$4 sm:$0xff]   ;;  %v7511_v53 = vld [vmem:[#allocation6 + $0x370] ss:$40 sps:$4 sm:$0xff]  }
  0xf1   :  { %4116 = vmatpush1.bf16.xpose.msra.mxu1 %v7457_v11  ;;  %4202 = vmatpush1.bf16.xpose.msra.mxu0 %v7458_v12  ;;  %v7512_v54 = vld [vmem:[#allocation6 + $0x380] ss:$40 sps:$4 sm:$0xff]   ;;  %v7513_v55 = vld [vmem:[#allocation6 + $0x3c4] ss:$40 sps:$4 sm:$0xff]   ;;  %v7515_v56 = vld [vmem:[#allocation6 + $0x3d4] ss:$40 sps:$4 sm:$0xff]  }
  0xf2   :  { %4117 = vmatprep.subr.bf16.mxu1 %v7459_v13  ;;  %4203 = vmatprep.subr.bf16.mxu0 %v7461_v14  ;;  %v7517_v57 = vld [vmem:[#allocation6 + $0x3c0] ss:$40 sps:$4 sm:$0xff]   ;;  %v7518_v58 = vld [vmem:[#allocation6 + $0x3d0] ss:$40 sps:$4 sm:$0xff]   ;;  %v7519_v59 = vld [vmem:[#allocation6 + $0x414] ss:$40 sps:$4 sm:$0xff]  }
  0xf3   :  { %v7521_v60 = vld [vmem:[#allocation6 + $0x424] ss:$40 sps:$4 sm:$0xff]   ;;  %v7523_v61 = vld [vmem:[#allocation6 + $0x410] ss:$40 sps:$4 sm:$0xff]   ;;  %v7524_v62 = vld [vmem:[#allocation6 + $0x420] ss:$40 sps:$4 sm:$0xff]  }
  0xf4   :  { %v7525_v63 = vld [vmem:[#allocation6 + $0x464] ss:$40 sps:$4 sm:$0xff]   ;;  %v7527_v0 = vld [vmem:[#allocation6 + $0x474] ss:$40 sps:$4 sm:$0xff]   ;;  %v7529_v1 = vld [vmem:[#allocation6 + $0x460] ss:$40 sps:$4 sm:$0xff]  }
  0xf5   :  { %v7530_v2 = vld [vmem:[#allocation6 + $0x470] ss:$40 sps:$4 sm:$0xff]   ;;  %v7531_v3 = vld [vmem:[#allocation6 + $0x4b4] ss:$40 sps:$4 sm:$0xff]   ;;  %v7533_v4 = vld [vmem:[#allocation6 + $0x4c4] ss:$40 sps:$4 sm:$0xff]  }
  0xf6   :  { %v7535_v5 = vld [vmem:[#allocation6 + $0x4b0] ss:$40 sps:$4 sm:$0xff]   ;;  %v7536_v6 = vld [vmem:[#allocation6 + $0x4c0] ss:$40 sps:$4 sm:$0xff]   ;;  %v7539_v7 = vld [vmem:[#allocation6 + $0xc] ss:$40 sps:$4 sm:$0xff]  }
  0xf7   :  { %v7542_v8 = vld [vmem:[#allocation6 + $0x1c] ss:$40 sps:$4 sm:$0xff]   ;;  %v209_v10 = vld [vmem:[#allocation3 + $0x50] sm:$0xff]  ;;  %v212_v14 = vld [vmem:[#allocation3 + $0x68] sm:$0xff]  ;;  %s8706_s22 = scalar_lea.vmem %s6486_s21, 2048 }
  0xf8   :  { %v199_v9 = vld [vmem:[#allocation3] sm:$0xff]  ;;  %v213_v12 = vld [vmem:[#allocation3 + $0x70] sm:$0xff]  ;;  %v202_v13 = vld [vmem:[#allocation3 + $0x18] sm:$0xff]  ;;  %p8707_p12 = scmp.ne.s32.totalorder %s6486_s21, %s8706_s22  ;;  %p8712_p0 = scmp.lt.s32.totalorder %s8706_s22, %s8706_s22 }
  0xf9   :  { %4118 = vmatpush1.bf16.xpose.msra.mxu1 %v7463_v15  ;;  %4204 = vmatpush1.bf16.xpose.msra.mxu0 %v7464_v16  ;;  %v203_v11 = vld [vmem:[#allocation3 + $0x20] sm:$0xff]  ;;  %v7537_v15 = vld [vmem:[#allocation6 + $0x8] ss:$40 sps:$4 sm:$0xff]   ;;  %v7551_v27 = vld [vmem:[#allocation6 + $0xac] ss:$40 sps:$4 sm:$0xff]  }
  0xfa   :  { %4119 = vmatprep.subr.bf16.mxu1 %v7465_v17  ;;  %4205 = vmatprep.subr.bf16.mxu0 %v7467_v18  ;;  %v7540_v16 = vld [vmem:[#allocation6 + $0x18] ss:$40 sps:$4 sm:$0xff]   ;;  %v9001_v17 = vpack.c.bf16 %v209_v10, %v199_v9  ;;  %v9003_v18 = vpack.c.bf16 %v213_v12, %v203_v11  ;;  %v7554_v28 = vld [vmem:[#allocation6 + $0xbc] ss:$40 sps:$4 sm:$0xff]   ;;  %v7549_v30 = vld [vmem:[#allocation6 + $0xa8] ss:$40 sps:$4 sm:$0xff]   ;;  %p8713_p1 = por %p8712_p0, %p8711_p13 }
  0xfb   :  { %v7552_v31 = vld [vmem:[#allocation6 + $0xb8] ss:$40 sps:$4 sm:$0xff]   ;;  %v7617_v9 = vld [vmem:[#allocation6 + $0x41c] ss:$40 sps:$4 sm:$0xff]   ;;  %v7620_v10 = vld [vmem:[#allocation6 + $0x42c] ss:$40 sps:$4 sm:$0xff]  }
  0xfc   :  { %v7615_v11 = vld [vmem:[#allocation6 + $0x418] ss:$40 sps:$4 sm:$0xff]   ;;  %v7618_v12 = vld [vmem:[#allocation6 + $0x428] ss:$40 sps:$4 sm:$0xff]   ;;  %p8714_p2 = pnand %p8713_p1, %p8707_p12 }
 0x101   :  { %4120 = vmatpush1.bf16.xpose.msra.mxu1 %v7469_v19  ;;  %4206 = vmatpush1.bf16.xpose.msra.mxu0 %v7470_v20  ;;  %v206_v19 = vld [vmem:[#allocation3 + $0x38] sm:$0xff]  ;;  %v216_v20 = vld [vmem:[#allocation3 + $0x88] sm:$0xff] }
 0x102   :  { %4121 = vmatprep.subr.bf16.mxu1 %v7471_v21  ;;  %4207 = vmatprep.subr.bf16.mxu0 %v7473_v22  ;;  %v7545_v21 = vld [vmem:[#allocation6 + $0x5c] ss:$40 sps:$4 sm:$0xff]   ;;  %v7548_v22 = vld [vmem:[#allocation6 + $0x6c] ss:$40 sps:$4 sm:$0xff]  }
 0x109   :  { %4122 = vmatpush1.bf16.xpose.msra.mxu1 %v7475_v23  ;;  %4208 = vmatpush1.bf16.xpose.msra.mxu0 %v7476_v24  ;;  %v9005_v23 = vpack.c.bf16 %v212_v14, %v202_v13  ;;  %v9007_v24 = vpack.c.bf16 %v216_v20, %v206_v19  ;;  %v7623_v13 = vld [vmem:[#allocation6 + $0x46c] ss:$40 sps:$4 sm:$0xff]   ;;  %v7626_v14 = vld [vmem:[#allocation6 + $0x47c] ss:$40 sps:$4 sm:$0xff]  }
 0x10a   :  { %4123 = vmatprep.subr.bf16.mxu1 %v7477_v25  ;;  %4209 = vmatprep.subr.bf16.mxu0 %v7479_v26  ;;  %v7543_v25 = vld [vmem:[#allocation6 + $0x58] ss:$40 sps:$4 sm:$0xff]   ;;  %v7546_v26 = vld [vmem:[#allocation6 + $0x68] ss:$40 sps:$4 sm:$0xff]   ;;  %v7629_v19 = vld [vmem:[#allocation6 + $0x4bc] ss:$40 sps:$4 sm:$0xff]  }
 0x10b   :  { %v7632_v20 = vld [vmem:[#allocation6 + $0x4cc] ss:$40 sps:$4 sm:$0xff]  }
 0x111   :  { %4124 = vmatpush1.bf16.xpose.msra.mxu1 %v7481_v33  ;;  %4210 = vmatpush1.bf16.xpose.msra.mxu0 %v7482_v34  ;;  %v7557_v33 = vld [vmem:[#allocation6 + $0xfc] ss:$40 sps:$4 sm:$0xff]   ;;  %v7560_v34 = vld [vmem:[#allocation6 + $0x10c] ss:$40 sps:$4 sm:$0xff]  }
 0x112   :  { %4125 = vmatprep.subr.bf16.mxu1 %v7483_v35  ;;  %4211 = vmatprep.subr.bf16.mxu0 %v7485_v36  ;;  %v7555_v35 = vld [vmem:[#allocation6 + $0xf8] ss:$40 sps:$4 sm:$0xff]   ;;  %v7558_v36 = vld [vmem:[#allocation6 + $0x108] ss:$40 sps:$4 sm:$0xff]  }
 0x119   :  { %4126 = vmatpush1.bf16.xpose.msra.mxu1 %v7487_v37  ;;  %4212 = vmatpush1.bf16.xpose.msra.mxu0 %v7488_v38  ;;  %v7563_v37 = vld [vmem:[#allocation6 + $0x14c] ss:$40 sps:$4 sm:$0xff]   ;;  %v7566_v38 = vld [vmem:[#allocation6 + $0x15c] ss:$40 sps:$4 sm:$0xff]  }
 0x11a   :  { %4127 = vmatprep.subr.bf16.mxu1 %v7489_v39  ;;  %4213 = vmatprep.subr.bf16.mxu0 %v7491_v40  ;;  %v7561_v39 = vld [vmem:[#allocation6 + $0x148] ss:$40 sps:$4 sm:$0xff]   ;;  %v7564_v40 = vld [vmem:[#allocation6 + $0x158] ss:$40 sps:$4 sm:$0xff]  }
 0x121   :  { %4128 = vmatpush1.bf16.xpose.msra.mxu1 %v7493_v41  ;;  %4214 = vmatpush1.bf16.xpose.msra.mxu0 %v7494_v42  ;;  %v7569_v41 = vld [vmem:[#allocation6 + $0x19c] ss:$40 sps:$4 sm:$0xff]   ;;  %v7572_v42 = vld [vmem:[#allocation6 + $0x1ac] ss:$40 sps:$4 sm:$0xff]  }
 0x122   :  { %4129 = vmatprep.subr.bf16.mxu1 %v7495_v43  ;;  %4215 = vmatprep.subr.bf16.mxu0 %v7497_v44  ;;  %v7567_v43 = vld [vmem:[#allocation6 + $0x198] ss:$40 sps:$4 sm:$0xff]   ;;  %v7570_v44 = vld [vmem:[#allocation6 + $0x1a8] ss:$40 sps:$4 sm:$0xff]  }
 0x129   :  { %4130 = vmatpush1.bf16.xpose.msra.mxu1 %v7499_v45  ;;  %4216 = vmatpush1.bf16.xpose.msra.mxu0 %v7500_v46  ;;  %v7575_v45 = vld [vmem:[#allocation6 + $0x1ec] ss:$40 sps:$4 sm:$0xff]   ;;  %v7578_v46 = vld [vmem:[#allocation6 + $0x1fc] ss:$40 sps:$4 sm:$0xff]  }
 0x12a   :  { %4131 = vmatprep.subr.bf16.mxu1 %v7501_v47  ;;  %4217 = vmatprep.subr.bf16.mxu0 %v7503_v48  ;;  %v7573_v47 = vld [vmem:[#allocation6 + $0x1e8] ss:$40 sps:$4 sm:$0xff]   ;;  %v7576_v48 = vld [vmem:[#allocation6 + $0x1f8] ss:$40 sps:$4 sm:$0xff]  }
 0x131   :  { %4132 = vmatpush1.bf16.xpose.msra.mxu1 %v7505_v49  ;;  %4218 = vmatpush1.bf16.xpose.msra.mxu0 %v7506_v50  ;;  %v7581_v49 = vld [vmem:[#allocation6 + $0x23c] ss:$40 sps:$4 sm:$0xff]   ;;  %v7584_v50 = vld [vmem:[#allocation6 + $0x24c] ss:$40 sps:$4 sm:$0xff]  }
 0x132   :  { %4133 = vmatprep.subr.bf16.mxu1 %v7507_v51  ;;  %4219 = vmatprep.subr.bf16.mxu0 %v7509_v52  ;;  %v7579_v51 = vld [vmem:[#allocation6 + $0x238] ss:$40 sps:$4 sm:$0xff]   ;;  %v7582_v52 = vld [vmem:[#allocation6 + $0x248] ss:$40 sps:$4 sm:$0xff]  }
 0x139   :  { %4134 = vmatpush1.bf16.xpose.msra.mxu1 %v7511_v53  ;;  %4220 = vmatpush1.bf16.xpose.msra.mxu0 %v7512_v54  ;;  %v7587_v53 = vld [vmem:[#allocation6 + $0x28c] ss:$40 sps:$4 sm:$0xff]   ;;  %v7590_v54 = vld [vmem:[#allocation6 + $0x29c] ss:$40 sps:$4 sm:$0xff]  }
 0x13a   :  { %4135 = vmatprep.subr.bf16.mxu1 %v7513_v55  ;;  %4221 = vmatprep.subr.bf16.mxu0 %v7515_v56  ;;  %v7585_v55 = vld [vmem:[#allocation6 + $0x288] ss:$40 sps:$4 sm:$0xff]   ;;  %v7588_v56 = vld [vmem:[#allocation6 + $0x298] ss:$40 sps:$4 sm:$0xff]  }
 0x141   :  { %4136 = vmatpush1.bf16.xpose.msra.mxu1 %v7517_v57  ;;  %4222 = vmatpush1.bf16.xpose.msra.mxu0 %v7518_v58  ;;  %v7593_v57 = vld [vmem:[#allocation6 + $0x2dc] ss:$40 sps:$4 sm:$0xff]   ;;  %v7596_v58 = vld [vmem:[#allocation6 + $0x2ec] ss:$40 sps:$4 sm:$0xff]  }
 0x142   :  { %4137 = vmatprep.subr.bf16.mxu1 %v7519_v59  ;;  %4223 = vmatprep.subr.bf16.mxu0 %v7521_v60  ;;  %v7591_v59 = vld [vmem:[#allocation6 + $0x2d8] ss:$40 sps:$4 sm:$0xff]   ;;  %v7594_v60 = vld [vmem:[#allocation6 + $0x2e8] ss:$40 sps:$4 sm:$0xff]  }
 0x149   :  { %4138 = vmatpush1.bf16.xpose.msra.mxu1 %v7523_v61  ;;  %4224 = vmatpush1.bf16.xpose.msra.mxu0 %v7524_v62  ;;  %v7599_v61 = vld [vmem:[#allocation6 + $0x32c] ss:$40 sps:$4 sm:$0xff]   ;;  %v7602_v62 = vld [vmem:[#allocation6 + $0x33c] ss:$40 sps:$4 sm:$0xff]  }
 0x14a   :  { %4139 = vmatprep.subr.bf16.mxu1 %v7525_v63  ;;  %4225 = vmatprep.subr.bf16.mxu0 %v7527_v0  ;;  %v7597_v63 = vld [vmem:[#allocation6 + $0x328] ss:$40 sps:$4 sm:$0xff]   ;;  %v7600_v0 = vld [vmem:[#allocation6 + $0x338] ss:$40 sps:$4 sm:$0xff]  }
 0x151   :  { %4140 = vmatpush1.bf16.xpose.msra.mxu1 %v7529_v1  ;;  %4226 = vmatpush1.bf16.xpose.msra.mxu0 %v7530_v2  ;;  %v7605_v1 = vld [vmem:[#allocation6 + $0x37c] ss:$40 sps:$4 sm:$0xff]   ;;  %v7608_v2 = vld [vmem:[#allocation6 + $0x38c] ss:$40 sps:$4 sm:$0xff]  }
 0x152   :  { %4141 = vmatprep.subr.bf16.mxu1 %v7531_v3  ;;  %4227 = vmatprep.subr.bf16.mxu0 %v7533_v4  ;;  %v7603_v3 = vld [vmem:[#allocation6 + $0x378] ss:$40 sps:$4 sm:$0xff]   ;;  %v7606_v4 = vld [vmem:[#allocation6 + $0x388] ss:$40 sps:$4 sm:$0xff]  }
 0x159   :  { %4142 = vmatpush1.bf16.xpose.msra.mxu1 %v7535_v5  ;;  %4228 = vmatpush1.bf16.xpose.msra.mxu0 %v7536_v6  ;;  %v7611_v5 = vld [vmem:[#allocation6 + $0x3cc] ss:$40 sps:$4 sm:$0xff]   ;;  %v7614_v6 = vld [vmem:[#allocation6 + $0x3dc] ss:$40 sps:$4 sm:$0xff]  }
 0x15a   :  { %4154 = vmatprep.subr.bf16.mxu1 %v7539_v7  ;;  %4240 = vmatprep.subr.bf16.mxu0 %v7542_v8  ;;  %v7609_v7 = vld [vmem:[#allocation6 + $0x3c8] ss:$40 sps:$4 sm:$0xff]   ;;  %v7612_v8 = vld [vmem:[#allocation6 + $0x3d8] ss:$40 sps:$4 sm:$0xff]  }
 0x160   :  { %4144 = vmatmul.mubr.bf16.vlgmr.msra.gmra.mrb[0].mxu1 %v9001_v17  ;;  %4230 = vmatmul.mubr.bf16.vlgmr.msra.gmra.mrb[0].mxu0 %v9003_v18 }
 0x161   :  { %4155 = vmatpush1.bf16.xpose.msra.mxu1 %v7537_v15  ;;  %4241 = vmatpush1.bf16.xpose.msra.mxu0 %v7540_v16  ;;  %v7621_v15 = vld [vmem:[#allocation6 + $0x468] ss:$40 sps:$4 sm:$0xff]   ;;  %v7624_v16 = vld [vmem:[#allocation6 + $0x478] ss:$40 sps:$4 sm:$0xff]  }
 0x162   :  { %4156 = vmatprep.subr.bf16.mxu1 %v7545_v21  ;;  %4242 = vmatprep.subr.bf16.mxu0 %v7548_v22  ;;  %v7627_v21 = vld [vmem:[#allocation6 + $0x4b8] ss:$40 sps:$4 sm:$0xff]   ;;  %v7630_v22 = vld [vmem:[#allocation6 + $0x4c8] ss:$40 sps:$4 sm:$0xff]  }
 0x163   :  { %4186 = vmatprep.mubr.bf16.mxu1 %v9005_v23  ;;  %4272 = vmatprep.mubr.bf16.mxu0 %v9007_v24 }
 0x169   :  { %4157 = vmatpush1.bf16.xpose.msra.mxu1 %v7543_v25  ;;  %4243 = vmatpush1.bf16.xpose.msra.mxu0 %v7546_v26  ;;  %v7635_v25 = vld [vmem:[#allocation6 + $0x24] ss:$40 sps:$4 sm:$0xff]  }
 0x16a   :  { %4158 = vmatprep.subr.bf16.mxu1 %v7551_v27  ;;  %4244 = vmatprep.subr.bf16.mxu0 %v7554_v28  ;;  %v7638_v26 = vld [vmem:[#allocation6 + $0x504] ss:$40 sps:$4 sm:$0xff]   ;;  %v201_v27 = vld [vmem:[#allocation3 + $0x10] sm:$0xff] }
 0x16b   :  { %v211_v28 = vld [vmem:[#allocation3 + $0x60] sm:$0xff] }
 0x171   :  { %4159 = vmatpush1.bf16.xpose.msra.mxu1 %v7549_v30  ;;  %4245 = vmatpush1.bf16.xpose.msra.mxu0 %v7552_v31  ;;  %v205_v30 = vld [vmem:[#allocation3 + $0x30] sm:$0xff]  ;;  %v215_v31 = vld [vmem:[#allocation3 + $0x80] sm:$0xff] }
 0x172   :  { %4160 = vmatprep.subr.bf16.mxu1 %v7557_v33  ;;  %4246 = vmatprep.subr.bf16.mxu0 %v7560_v34  ;;  %v208_v33 = vld [vmem:[#allocation3 + $0x48] sm:$0xff]  ;;  %v218_v34 = vld [vmem:[#allocation3 + $0x98] sm:$0xff] }
 0x179   :  { %4161 = vmatpush1.bf16.xpose.msra.mxu1 %v7555_v35  ;;  %4247 = vmatpush1.bf16.xpose.msra.mxu0 %v7558_v36  ;;  %v7633_v35 = vld [vmem:[#allocation6 + $0x20] ss:$40 sps:$4 sm:$0xff]  }
 0x17a   :  { %4162 = vmatprep.subr.bf16.mxu1 %v7563_v37  ;;  %4248 = vmatprep.subr.bf16.mxu0 %v7566_v38  ;;  %v7636_v36 = vld [vmem:[#allocation6 + $0x500] ss:$40 sps:$4 sm:$0xff]   ;;  %v9013_v37 = vpack.c.bf16 %v211_v28, %v201_v27  ;;  %v9015_v38 = vpack.c.bf16 %v215_v31, %v205_v30  ;;  %v7713_v28 = vld [vmem:[#allocation6 + $0x434] ss:$40 sps:$4 sm:$0xff]   ;;  %v7711_v31 = vld [vmem:[#allocation6 + $0x430] ss:$40 sps:$4 sm:$0xff]  }
 0x17b   :  { %v7708_v27 = vld [vmem:[#allocation6 + $0x8c0] ss:$40 sps:$4 sm:$0xff]   ;;  %v7716_v30 = vld [vmem:[#allocation6 + $0x914] ss:$40 sps:$4 sm:$0xff]  }
 0x181   :  { %4163 = vmatpush1.bf16.xpose.msra.mxu1 %v7561_v39  ;;  %4249 = vmatpush1.bf16.xpose.msra.mxu0 %v7564_v40  ;;  %v7641_v39 = vld [vmem:[#allocation6 + $0x74] ss:$40 sps:$4 sm:$0xff]  }
 0x182   :  { %4164 = vmatprep.subr.bf16.mxu1 %v7569_v41  ;;  %4250 = vmatprep.subr.bf16.mxu0 %v7572_v42  ;;  %v7644_v40 = vld [vmem:[#allocation6 + $0x554] ss:$40 sps:$4 sm:$0xff]   ;;  %v9017_v41 = vpack.c.bf16 %v218_v34, %v208_v33  ;;  %v7639_v42 = vld [vmem:[#allocation6 + $0x70] ss:$40 sps:$4 sm:$0xff]   ;;  %v7719_v34 = vld [vmem:[#allocation6 + $0x484] ss:$40 sps:$4 sm:$0xff]  }
 0x183   :  { %v7714_v33 = vld [vmem:[#allocation6 + $0x910] ss:$40 sps:$4 sm:$0xff]  }
 0x189   :  { %4165 = vmatpush1.bf16.xpose.msra.mxu1 %v7567_v43  ;;  %4251 = vmatpush1.bf16.xpose.msra.mxu0 %v7570_v44  ;;  %v7642_v43 = vld [vmem:[#allocation6 + $0x550] ss:$40 sps:$4 sm:$0xff]   ;;  %v7647_v44 = vld [vmem:[#allocation6 + $0xc4] ss:$40 sps:$4 sm:$0xff]  }
 0x18a   :  { %4166 = vmatprep.subr.bf16.mxu1 %v7575_v45  ;;  %4252 = vmatprep.subr.bf16.mxu0 %v7578_v46  ;;  %v7650_v45 = vld [vmem:[#allocation6 + $0x5a4] ss:$40 sps:$4 sm:$0xff]   ;;  %v7645_v46 = vld [vmem:[#allocation6 + $0xc0] ss:$40 sps:$4 sm:$0xff]  }
 0x191   :  { %4167 = vmatpush1.bf16.xpose.msra.mxu1 %v7573_v47  ;;  %4253 = vmatpush1.bf16.xpose.msra.mxu0 %v7576_v48  ;;  %v7648_v47 = vld [vmem:[#allocation6 + $0x5a0] ss:$40 sps:$4 sm:$0xff]   ;;  %v7653_v48 = vld [vmem:[#allocation6 + $0x114] ss:$40 sps:$4 sm:$0xff]  }
 0x192   :  { %4168 = vmatprep.subr.bf16.mxu1 %v7581_v49  ;;  %4254 = vmatprep.subr.bf16.mxu0 %v7584_v50  ;;  %v7656_v49 = vld [vmem:[#allocation6 + $0x5f4] ss:$40 sps:$4 sm:$0xff]   ;;  %v7651_v50 = vld [vmem:[#allocation6 + $0x110] ss:$40 sps:$4 sm:$0xff]  }
 0x199   :  { %4169 = vmatpush1.bf16.xpose.msra.mxu1 %v7579_v51  ;;  %4255 = vmatpush1.bf16.xpose.msra.mxu0 %v7582_v52  ;;  %v7654_v51 = vld [vmem:[#allocation6 + $0x5f0] ss:$40 sps:$4 sm:$0xff]   ;;  %v7659_v52 = vld [vmem:[#allocation6 + $0x164] ss:$40 sps:$4 sm:$0xff]  }
 0x19a   :  { %4170 = vmatprep.subr.bf16.mxu1 %v7587_v53  ;;  %4256 = vmatprep.subr.bf16.mxu0 %v7590_v54  ;;  %v7662_v53 = vld [vmem:[#allocation6 + $0x644] ss:$40 sps:$4 sm:$0xff]   ;;  %v7657_v54 = vld [vmem:[#allocation6 + $0x160] ss:$40 sps:$4 sm:$0xff]  }
 0x1a1   :  { %4171 = vmatpush1.bf16.xpose.msra.mxu1 %v7585_v55  ;;  %4257 = vmatpush1.bf16.xpose.msra.mxu0 %v7588_v56  ;;  %v7660_v55 = vld [vmem:[#allocation6 + $0x640] ss:$40 sps:$4 sm:$0xff]   ;;  %v7665_v56 = vld [vmem:[#allocation6 + $0x1b4] ss:$40 sps:$4 sm:$0xff]  }
 0x1a2   :  { %4172 = vmatprep.subr.bf16.mxu1 %v7593_v57  ;;  %4258 = vmatprep.subr.bf16.mxu0 %v7596_v58  ;;  %v7668_v57 = vld [vmem:[#allocation6 + $0x694] ss:$40 sps:$4 sm:$0xff]   ;;  %v7663_v58 = vld [vmem:[#allocation6 + $0x1b0] ss:$40 sps:$4 sm:$0xff]  }
 0x1a9   :  { %4173 = vmatpush1.bf16.xpose.msra.mxu1 %v7591_v59  ;;  %4259 = vmatpush1.bf16.xpose.msra.mxu0 %v7594_v60  ;;  %v7666_v59 = vld [vmem:[#allocation6 + $0x690] ss:$40 sps:$4 sm:$0xff]   ;;  %v7671_v60 = vld [vmem:[#allocation6 + $0x204] ss:$40 sps:$4 sm:$0xff]  }
 0x1aa   :  { %4174 = vmatprep.subr.bf16.mxu1 %v7599_v61  ;;  %4260 = vmatprep.subr.bf16.mxu0 %v7602_v62  ;;  %v7674_v61 = vld [vmem:[#allocation6 + $0x6e4] ss:$40 sps:$4 sm:$0xff]   ;;  %v7669_v62 = vld [vmem:[#allocation6 + $0x200] ss:$40 sps:$4 sm:$0xff]  }
 0x1b1   :  { %4175 = vmatpush1.bf16.xpose.msra.mxu1 %v7597_v63  ;;  %4261 = vmatpush1.bf16.xpose.msra.mxu0 %v7600_v0  ;;  %v7672_v63 = vld [vmem:[#allocation6 + $0x6e0] ss:$40 sps:$4 sm:$0xff]   ;;  %v7677_v0 = vld [vmem:[#allocation6 + $0x254] ss:$40 sps:$4 sm:$0xff]  }
 0x1b2   :  { %4176 = vmatprep.subr.bf16.mxu1 %v7605_v1  ;;  %4262 = vmatprep.subr.bf16.mxu0 %v7608_v2  ;;  %v7680_v1 = vld [vmem:[#allocation6 + $0x734] ss:$40 sps:$4 sm:$0xff]   ;;  %v7675_v2 = vld [vmem:[#allocation6 + $0x250] ss:$40 sps:$4 sm:$0xff]  }
 0x1b9   :  { %4177 = vmatpush1.bf16.xpose.msra.mxu1 %v7603_v3  ;;  %4263 = vmatpush1.bf16.xpose.msra.mxu0 %v7606_v4  ;;  %v7678_v3 = vld [vmem:[#allocation6 + $0x730] ss:$40 sps:$4 sm:$0xff]   ;;  %v7683_v4 = vld [vmem:[#allocation6 + $0x2a4] ss:$40 sps:$4 sm:$0xff]  }
 0x1ba   :  { %4178 = vmatprep.subr.bf16.mxu1 %v7611_v5  ;;  %4264 = vmatprep.subr.bf16.mxu0 %v7614_v6  ;;  %v7686_v5 = vld [vmem:[#allocation6 + $0x784] ss:$40 sps:$4 sm:$0xff]   ;;  %v7681_v6 = vld [vmem:[#allocation6 + $0x2a0] ss:$40 sps:$4 sm:$0xff]  }
 0x1c1   :  { %4179 = vmatpush1.bf16.xpose.msra.mxu1 %v7609_v7  ;;  %4265 = vmatpush1.bf16.xpose.msra.mxu0 %v7612_v8  ;;  %v7684_v7 = vld [vmem:[#allocation6 + $0x780] ss:$40 sps:$4 sm:$0xff]   ;;  %v7689_v8 = vld [vmem:[#allocation6 + $0x2f4] ss:$40 sps:$4 sm:$0xff]  }
 0x1c2   :  { %4180 = vmatprep.subr.bf16.mxu1 %v7617_v9  ;;  %4266 = vmatprep.subr.bf16.mxu0 %v7620_v10  ;;  %v7692_v9 = vld [vmem:[#allocation6 + $0x7d4] ss:$40 sps:$4 sm:$0xff]   ;;  %v7687_v10 = vld [vmem:[#allocation6 + $0x2f0] ss:$40 sps:$4 sm:$0xff]  }
 0x1c9   :  { %4181 = vmatpush1.bf16.xpose.msra.mxu1 %v7615_v11  ;;  %4267 = vmatpush1.bf16.xpose.msra.mxu0 %v7618_v12  ;;  %v7690_v11 = vld [vmem:[#allocation6 + $0x7d0] ss:$40 sps:$4 sm:$0xff]   ;;  %v7695_v12 = vld [vmem:[#allocation6 + $0x344] ss:$40 sps:$4 sm:$0xff]  }
 0x1ca   :  { %4182 = vmatprep.subr.bf16.mxu1 %v7623_v13  ;;  %4268 = vmatprep.subr.bf16.mxu0 %v7626_v14  ;;  %v7698_v13 = vld [vmem:[#allocation6 + $0x824] ss:$40 sps:$4 sm:$0xff]   ;;  %v7693_v14 = vld [vmem:[#allocation6 + $0x340] ss:$40 sps:$4 sm:$0xff]  }
 0x1d1   :  { %4183 = vmatpush1.bf16.xpose.msra.mxu1 %v7621_v15  ;;  %4269 = vmatpush1.bf16.xpose.msra.mxu0 %v7624_v16  ;;  %v7696_v15 = vld [vmem:[#allocation6 + $0x820] ss:$40 sps:$4 sm:$0xff]   ;;  %v7701_v16 = vld [vmem:[#allocation6 + $0x394] ss:$40 sps:$4 sm:$0xff]  }
 0x1d2   :  { %4184 = vmatprep.subr.bf16.mxu1 %v7629_v19  ;;  %4270 = vmatprep.subr.bf16.mxu0 %v7632_v20  ;;  %v7704_v19 = vld [vmem:[#allocation6 + $0x874] ss:$40 sps:$4 sm:$0xff]   ;;  %v7699_v20 = vld [vmem:[#allocation6 + $0x390] ss:$40 sps:$4 sm:$0xff]  }
 0x1d9   :  { %4185 = vmatpush1.bf16.xpose.msra.mxu1 %v7627_v21  ;;  %4271 = vmatpush1.bf16.xpose.msra.mxu0 %v7630_v22  ;;  %v7702_v21 = vld [vmem:[#allocation6 + $0x870] ss:$40 sps:$4 sm:$0xff]   ;;  %v7707_v22 = vld [vmem:[#allocation6 + $0x3e4] ss:$40 sps:$4 sm:$0xff]  }
 0x1da   :  { %4283 = vmatprep.subr.bf16.mxu0 %v7635_v25  ;;  %4326 = vmatprep.subr.bf16.mxu1 %v7638_v26  ;;  %v7710_v25 = vld [vmem:[#allocation6 + $0x8c4] ss:$40 sps:$4 sm:$0xff]   ;;  %v7705_v26 = vld [vmem:[#allocation6 + $0x3e0] ss:$40 sps:$4 sm:$0xff]  }
 0x1e0   :  { %4187 = vmatmul.mubr.bf16.vlgmr.msra.gmra.mrb[0].mxu1 %v9013_v37  ;;  %4273 = vmatmul.mubr.bf16.vlgmr.msra.gmra.mrb[0].mxu0 %v9015_v38 }
 0x1e1   :  { %4284 = vmatpush1.bf16.xpose.msra.mxu0 %v7633_v35  ;;  %4327 = vmatpush1.bf16.xpose.msra.mxu1 %v7636_v36  ;;  %v7722_v35 = vld [vmem:[#allocation6 + $0x964] ss:$40 sps:$4 sm:$0xff]   ;;  %v7717_v36 = vld [vmem:[#allocation6 + $0x480] ss:$40 sps:$4 sm:$0xff]  }
 0x1e2   :  { %4285 = vmatprep.subr.bf16.mxu0 %v7641_v39  ;;  %4328 = vmatprep.subr.bf16.mxu1 %v7644_v40  ;;  %v7720_v39 = vld [vmem:[#allocation6 + $0x960] ss:$40 sps:$4 sm:$0xff]   ;;  %v7725_v40 = vld [vmem:[#allocation6 + $0x4d4] ss:$40 sps:$4 sm:$0xff]  }
 0x1e3   :  { %4315 = vmatprep.mubr.bf16.mxu0 %v9017_v41  ;;  %4358 = vmatprep.mubr.bf16.mxu1 %v8995_v29 }
 0x1e9   :  { %4286 = vmatpush1.bf16.xpose.msra.mxu0 %v7639_v42  ;;  %4329 = vmatpush1.bf16.xpose.msra.mxu1 %v7642_v43  ;;  %v7728_v42 = vld [vmem:[#allocation6 + $0x9b4] ss:$40 sps:$4 sm:$0xff]   ;;  %v7723_v43 = vld [vmem:[#allocation6 + $0x4d0] ss:$40 sps:$4 sm:$0xff]  }
 0x1ea   :  { %4287 = vmatprep.subr.bf16.mxu0 %v7647_v44  ;;  %4330 = vmatprep.subr.bf16.mxu1 %v7650_v45  ;;  %v7726_v44 = vld [vmem:[#allocation6 + $0x9b0] ss:$40 sps:$4 sm:$0xff]   ;;  %v7731_v45 = vld [vmem:[#allocation6 + $0x50c] ss:$40 sps:$4 sm:$0xff]  }
 0x1f1   :  { %4288 = vmatpush1.bf16.xpose.msra.mxu0 %v7645_v46  ;;  %4331 = vmatpush1.bf16.xpose.msra.mxu1 %v7648_v47  ;;  %v7734_v46 = vld [vmem:[#allocation6 + $0xa04] ss:$40 sps:$4 sm:$0xff]  }
 0x1f2   :  { %4289 = vmatprep.subr.bf16.mxu0 %v7653_v48  ;;  %4332 = vmatprep.subr.bf16.mxu1 %v7656_v49  ;;  %v207_v47 = vld [vmem:[#allocation3 + $0x40] sm:$0xff]  ;;  %v217_v48 = vld [vmem:[#allocation3 + $0x90] sm:$0xff] }
 0x1f3   :  { %v9023_v49 = vpack.c.bf16 %v217_v48, %v207_v47  ;;  %v7801_v47 = vld [vmem:[#allocation6 + $0x8c8] ss:$40 sps:$4 sm:$0xff]  }
 0x1f4   :  { %v7804_v48 = vld [vmem:[#allocation6 + $0xdc0] ss:$40 sps:$4 sm:$0xff]  }
 0x1f9   :  { %4290 = vmatpush1.bf16.xpose.msra.mxu0 %v7651_v50  ;;  %4333 = vmatpush1.bf16.xpose.msra.mxu1 %v7654_v51  ;;  %v7729_v50 = vld [vmem:[#allocation6 + $0x508] ss:$40 sps:$4 sm:$0xff]  }
 0x1fa   :  { %4291 = vmatprep.subr.bf16.mxu0 %v7659_v52  ;;  %4334 = vmatprep.subr.bf16.mxu1 %v7662_v53  ;;  %v7732_v51 = vld [vmem:[#allocation6 + $0xa00] ss:$40 sps:$4 sm:$0xff]   ;;  %v7737_v52 = vld [vmem:[#allocation6 + $0x55c] ss:$40 sps:$4 sm:$0xff]  }
 0x1fb   :  { %v7740_v53 = vld [vmem:[#allocation6 + $0xa54] ss:$40 sps:$4 sm:$0xff]  }
 0x201   :  { %4292 = vmatpush1.bf16.xpose.msra.mxu0 %v7657_v54  ;;  %4335 = vmatpush1.bf16.xpose.msra.mxu1 %v7660_v55  ;;  %v7735_v54 = vld [vmem:[#allocation6 + $0x558] ss:$40 sps:$4 sm:$0xff]  }
 0x202   :  { %4293 = vmatprep.subr.bf16.mxu0 %v7665_v56  ;;  %4336 = vmatprep.subr.bf16.mxu1 %v7668_v57  ;;  %v7738_v55 = vld [vmem:[#allocation6 + $0xa50] ss:$40 sps:$4 sm:$0xff]   ;;  %v7743_v56 = vld [vmem:[#allocation6 + $0x5ac] ss:$40 sps:$4 sm:$0xff]  }
 0x203   :  { %v7746_v57 = vld [vmem:[#allocation6 + $0xaa4] ss:$40 sps:$4 sm:$0xff]  }
 0x209   :  { %4294 = vmatpush1.bf16.xpose.msra.mxu0 %v7663_v58  ;;  %4337 = vmatpush1.bf16.xpose.msra.mxu1 %v7666_v59  ;;  %v7741_v58 = vld [vmem:[#allocation6 + $0x5a8] ss:$40 sps:$4 sm:$0xff]  }
 0x20a   :  { %4295 = vmatprep.subr.bf16.mxu0 %v7671_v60  ;;  %4338 = vmatprep.subr.bf16.mxu1 %v7674_v61  ;;  %v7744_v59 = vld [vmem:[#allocation6 + $0xaa0] ss:$40 sps:$4 sm:$0xff]   ;;  %v7749_v60 = vld [vmem:[#allocation6 + $0x5fc] ss:$40 sps:$4 sm:$0xff]  }
 0x20b   :  { %v7752_v61 = vld [vmem:[#allocation6 + $0xaf4] ss:$40 sps:$4 sm:$0xff]  }
 0x211   :  { %4296 = vmatpush1.bf16.xpose.msra.mxu0 %v7669_v62  ;;  %4339 = vmatpush1.bf16.xpose.msra.mxu1 %v7672_v63  ;;  %v7747_v62 = vld [vmem:[#allocation6 + $0x5f8] ss:$40 sps:$4 sm:$0xff]  }
 0x212   :  { %4297 = vmatprep.subr.bf16.mxu0 %v7677_v0  ;;  %4340 = vmatprep.subr.bf16.mxu1 %v7680_v1  ;;  %v7750_v63 = vld [vmem:[#allocation6 + $0xaf0] ss:$40 sps:$4 sm:$0xff]   ;;  %v7755_v0 = vld [vmem:[#allocation6 + $0x64c] ss:$40 sps:$4 sm:$0xff]  }
 0x213   :  { %v7758_v1 = vld [vmem:[#allocation6 + $0xb44] ss:$40 sps:$4 sm:$0xff]  }
 0x219   :  { %4298 = vmatpush1.bf16.xpose.msra.mxu0 %v7675_v2  ;;  %4341 = vmatpush1.bf16.xpose.msra.mxu1 %v7678_v3  ;;  %v7753_v2 = vld [vmem:[#allocation6 + $0x648] ss:$40 sps:$4 sm:$0xff]  }
 0x21a   :  { %4299 = vmatprep.subr.bf16.mxu0 %v7683_v4  ;;  %4342 = vmatprep.subr.bf16.mxu1 %v7686_v5  ;;  %v7756_v3 = vld [vmem:[#allocation6 + $0xb40] ss:$40 sps:$4 sm:$0xff]   ;;  %v7761_v4 = vld [vmem:[#allocation6 + $0x69c] ss:$40 sps:$4 sm:$0xff]  }
 0x21b   :  { %v7764_v5 = vld [vmem:[#allocation6 + $0xb94] ss:$40 sps:$4 sm:$0xff]  }
 0x221   :  { %4300 = vmatpush1.bf16.xpose.msra.mxu0 %v7681_v6  ;;  %4343 = vmatpush1.bf16.xpose.msra.mxu1 %v7684_v7  ;;  %v7759_v6 = vld [vmem:[#allocation6 + $0x698] ss:$40 sps:$4 sm:$0xff]  }
 0x222   :  { %4301 = vmatprep.subr.bf16.mxu0 %v7689_v8  ;;  %4344 = vmatprep.subr.bf16.mxu1 %v7692_v9  ;;  %v7762_v7 = vld [vmem:[#allocation6 + $0xb90] ss:$40 sps:$4 sm:$0xff]   ;;  %v7767_v8 = vld [vmem:[#allocation6 + $0x6ec] ss:$40 sps:$4 sm:$0xff]  }
 0x223   :  { %v7770_v9 = vld [vmem:[#allocation6 + $0xbe4] ss:$40 sps:$4 sm:$0xff]  }
 0x229   :  { %4302 = vmatpush1.bf16.xpose.msra.mxu0 %v7687_v10  ;;  %4345 = vmatpush1.bf16.xpose.msra.mxu1 %v7690_v11  ;;  %v7765_v10 = vld [vmem:[#allocation6 + $0x6e8] ss:$40 sps:$4 sm:$0xff]  }
 0x22a   :  { %4303 = vmatprep.subr.bf16.mxu0 %v7695_v12  ;;  %4346 = vmatprep.subr.bf16.mxu1 %v7698_v13  ;;  %v7768_v11 = vld [vmem:[#allocation6 + $0xbe0] ss:$40 sps:$4 sm:$0xff]   ;;  %v7773_v12 = vld [vmem:[#allocation6 + $0x73c] ss:$40 sps:$4 sm:$0xff]  }
 0x22b   :  { %v7776_v13 = vld [vmem:[#allocation6 + $0xc34] ss:$40 sps:$4 sm:$0xff]  }
 0x231   :  { %4304 = vmatpush1.bf16.xpose.msra.mxu0 %v7693_v14  ;;  %4347 = vmatpush1.bf16.xpose.msra.mxu1 %v7696_v15  ;;  %v7771_v14 = vld [vmem:[#allocation6 + $0x738] ss:$40 sps:$4 sm:$0xff]  }
 0x232   :  { %4305 = vmatprep.subr.bf16.mxu0 %v7701_v16  ;;  %4348 = vmatprep.subr.bf16.mxu1 %v7704_v19  ;;  %v7774_v15 = vld [vmem:[#allocation6 + $0xc30] ss:$40 sps:$4 sm:$0xff]   ;;  %v7779_v16 = vld [vmem:[#allocation6 + $0x78c] ss:$40 sps:$4 sm:$0xff]  }
 0x233   :  { %v7782_v19 = vld [vmem:[#allocation6 + $0xc84] ss:$40 sps:$4 sm:$0xff]  }
 0x239   :  { %4306 = vmatpush1.bf16.xpose.msra.mxu0 %v7699_v20  ;;  %4349 = vmatpush1.bf16.xpose.msra.mxu1 %v7702_v21  ;;  %v7777_v20 = vld [vmem:[#allocation6 + $0x788] ss:$40 sps:$4 sm:$0xff]  }
 0x23a   :  { %4307 = vmatprep.subr.bf16.mxu0 %v7707_v22  ;;  %4350 = vmatprep.subr.bf16.mxu1 %v7710_v25  ;;  %v7780_v21 = vld [vmem:[#allocation6 + $0xc80] ss:$40 sps:$4 sm:$0xff]   ;;  %v7785_v22 = vld [vmem:[#allocation6 + $0x7dc] ss:$40 sps:$4 sm:$0xff]  }
 0x23b   :  { %v7788_v25 = vld [vmem:[#allocation6 + $0xcd4] ss:$40 sps:$4 sm:$0xff]  }
 0x241   :  { %4308 = vmatpush1.bf16.xpose.msra.mxu0 %v7705_v26  ;;  %4351 = vmatpush1.bf16.xpose.msra.mxu1 %v7708_v27  ;;  %v7783_v26 = vld [vmem:[#allocation6 + $0x7d8] ss:$40 sps:$4 sm:$0xff]  }
 0x242   :  { %4309 = vmatprep.subr.bf16.mxu0 %v7713_v28  ;;  %4352 = vmatprep.subr.bf16.mxu1 %v7716_v30  ;;  %v7786_v27 = vld [vmem:[#allocation6 + $0xcd0] ss:$40 sps:$4 sm:$0xff]   ;;  %v7791_v28 = vld [vmem:[#allocation6 + $0x82c] ss:$40 sps:$4 sm:$0xff]  }
 0x243   :  { %v7794_v30 = vld [vmem:[#allocation6 + $0xd24] ss:$40 sps:$4 sm:$0xff]  }
 0x249   :  { %4310 = vmatpush1.bf16.xpose.msra.mxu0 %v7711_v31  ;;  %4353 = vmatpush1.bf16.xpose.msra.mxu1 %v7714_v33  ;;  %v7789_v31 = vld [vmem:[#allocation6 + $0x828] ss:$40 sps:$4 sm:$0xff]  }
 0x24a   :  { %4311 = vmatprep.subr.bf16.mxu0 %v7719_v34  ;;  %4354 = vmatprep.subr.bf16.mxu1 %v7722_v35  ;;  %v7792_v33 = vld [vmem:[#allocation6 + $0xd20] ss:$40 sps:$4 sm:$0xff]   ;;  %v7797_v34 = vld [vmem:[#allocation6 + $0x87c] ss:$40 sps:$4 sm:$0xff]  }
 0x24b   :  { %v7800_v35 = vld [vmem:[#allocation6 + $0xd74] ss:$40 sps:$4 sm:$0xff]  }
 0x251   :  { %4312 = vmatpush1.bf16.xpose.msra.mxu0 %v7717_v36  ;;  %4355 = vmatpush1.bf16.xpose.msra.mxu1 %v7720_v39 }
 0x252   :  { %4313 = vmatprep.subr.bf16.mxu0 %v7725_v40  ;;  %4356 = vmatprep.subr.bf16.mxu1 %v7728_v42  ;;  %v7795_v42 = vld [vmem:[#allocation6 + $0x878] ss:$40 sps:$4 sm:$0xff]  }
 0x259   :  { %4314 = vmatpush1.bf16.xpose.msra.mxu0 %v7723_v43  ;;  %4357 = vmatpush1.bf16.xpose.msra.mxu1 %v7726_v44  ;;  %v7798_v43 = vld [vmem:[#allocation6 + $0xd70] ss:$40 sps:$4 sm:$0xff]  }
 0x25a   :  { %4369 = vmatprep.subr.bf16.mxu1 %v7731_v45  ;;  %4541 = vmatprep.subr.bf16.mxu0 %v7734_v46  ;;  %v7803_v45 = vld [vmem:[#allocation6 + $0x8cc] ss:$40 sps:$4 sm:$0xff]  }
 0x25b   :  { %v7806_v46 = vld [vmem:[#allocation6 + $0xdc4] ss:$40 sps:$4 sm:$0xff]  }
 0x260   :  { %4316 = vmatmul.mubr.bf16.vlgmr.msra.gmra.mrb[0].mxu0 %v9023_v49  ;;  %4359 = vmatmul.mubr.bf16.vlgmr.msra.gmra.mrb[4].mxu1 %v9001_v17 }
 0x261   :  { %4370 = vmatpush1.bf16.xpose.msra.mxu1 %v7729_v50  ;;  %4542 = vmatpush1.bf16.xpose.msra.mxu0 %v7732_v51  ;;  %v7809_v50 = vld [vmem:[#allocation6 + $0x91c] ss:$40 sps:$4 sm:$0xff]  }
 0x262   :  { %4371 = vmatprep.subr.bf16.mxu1 %v7737_v52  ;;  %4543 = vmatprep.subr.bf16.mxu0 %v7740_v53  ;;  %v7812_v51 = vld [vmem:[#allocation6 + $0xe14] ss:$40 sps:$4 sm:$0xff]   ;;  %v7807_v52 = vld [vmem:[#allocation6 + $0x918] ss:$40 sps:$4 sm:$0xff]  }
 0x263   :  { %4401 = vmatprep.mubr.bf16.mxu1 %v9005_v23  ;;  %4573 = vmatprep.mubr.bf16.mxu0 %v8995_v29  ;;  %v7810_v53 = vld [vmem:[#allocation6 + $0xe10] ss:$40 sps:$4 sm:$0xff]  }
 0x269   :  { %4372 = vmatpush1.bf16.xpose.msra.mxu1 %v7735_v54  ;;  %4544 = vmatpush1.bf16.xpose.msra.mxu0 %v7738_v55  ;;  %v7815_v54 = vld [vmem:[#allocation6 + $0x96c] ss:$40 sps:$4 sm:$0xff]  }
 0x26a   :  { %4373 = vmatprep.subr.bf16.mxu1 %v7743_v56  ;;  %4545 = vmatprep.subr.bf16.mxu0 %v7746_v57  ;;  %v7818_v55 = vld [vmem:[#allocation6 + $0xe64] ss:$40 sps:$4 sm:$0xff]   ;;  %v7813_v56 = vld [vmem:[#allocation6 + $0x968] ss:$40 sps:$4 sm:$0xff]  }
 0x26b   :  { %v7816_v57 = vld [vmem:[#allocation6 + $0xe60] ss:$40 sps:$4 sm:$0xff]  }
 0x271   :  { %4374 = vmatpush1.bf16.xpose.msra.mxu1 %v7741_v58  ;;  %4546 = vmatpush1.bf16.xpose.msra.mxu0 %v7744_v59  ;;  %v7821_v58 = vld [vmem:[#allocation6 + $0x9bc] ss:$40 sps:$4 sm:$0xff]  }
 0x272   :  { %4375 = vmatprep.subr.bf16.mxu1 %v7749_v60  ;;  %4547 = vmatprep.subr.bf16.mxu0 %v7752_v61  ;;  %v7824_v59 = vld [vmem:[#allocation6 + $0xeb4] ss:$40 sps:$4 sm:$0xff]   ;;  %v7819_v60 = vld [vmem:[#allocation6 + $0x9b8] ss:$40 sps:$4 sm:$0xff]  }
 0x273   :  { %v7822_v61 = vld [vmem:[#allocation6 + $0xeb0] ss:$40 sps:$4 sm:$0xff]  }
 0x279   :  { %4376 = vmatpush1.bf16.xpose.msra.mxu1 %v7747_v62  ;;  %4548 = vmatpush1.bf16.xpose.msra.mxu0 %v7750_v63  ;;  %v7827_v62 = vld [vmem:[#allocation6 + $0x514] ss:$40 sps:$4 sm:$0xff]  }
 0x27a   :  { %4377 = vmatprep.subr.bf16.mxu1 %v7755_v0  ;;  %4549 = vmatprep.subr.bf16.mxu0 %v7758_v1  ;;  %v7830_v63 = vld [vmem:[#allocation6 + $0xa0c] ss:$40 sps:$4 sm:$0xff]   ;;  %v7825_v0 = vld [vmem:[#allocation6 + $0x510] ss:$40 sps:$4 sm:$0xff]  }
 0x27b   :  { %v7828_v1 = vld [vmem:[#allocation6 + $0xa08] ss:$40 sps:$4 sm:$0xff]  }
 0x281   :  { %4378 = vmatpush1.bf16.xpose.msra.mxu1 %v7753_v2  ;;  %4550 = vmatpush1.bf16.xpose.msra.mxu0 %v7756_v3  ;;  %v7833_v2 = vld [vmem:[#allocation6 + $0x564] ss:$40 sps:$4 sm:$0xff]  }
 0x282   :  { %4379 = vmatprep.subr.bf16.mxu1 %v7761_v4  ;;  %4551 = vmatprep.subr.bf16.mxu0 %v7764_v5  ;;  %v7836_v3 = vld [vmem:[#allocation6 + $0xa5c] ss:$40 sps:$4 sm:$0xff]   ;;  %v7831_v4 = vld [vmem:[#allocation6 + $0x560] ss:$40 sps:$4 sm:$0xff]  }
 0x283   :  { %v7834_v5 = vld [vmem:[#allocation6 + $0xa58] ss:$40 sps:$4 sm:$0xff]  }
 0x289   :  { %4380 = vmatpush1.bf16.xpose.msra.mxu1 %v7759_v6  ;;  %4552 = vmatpush1.bf16.xpose.msra.mxu0 %v7762_v7  ;;  %v7839_v6 = vld [vmem:[#allocation6 + $0x5b4] ss:$40 sps:$4 sm:$0xff]  }
 0x28a   :  { %4381 = vmatprep.subr.bf16.mxu1 %v7767_v8  ;;  %4553 = vmatprep.subr.bf16.mxu0 %v7770_v9  ;;  %v7842_v7 = vld [vmem:[#allocation6 + $0xaac] ss:$40 sps:$4 sm:$0xff]   ;;  %v7837_v8 = vld [vmem:[#allocation6 + $0x5b0] ss:$40 sps:$4 sm:$0xff]  }
 0x28b   :  { %v7840_v9 = vld [vmem:[#allocation6 + $0xaa8] ss:$40 sps:$4 sm:$0xff]  }
 0x291   :  { %4382 = vmatpush1.bf16.xpose.msra.mxu1 %v7765_v10  ;;  %4554 = vmatpush1.bf16.xpose.msra.mxu0 %v7768_v11  ;;  %v7845_v10 = vld [vmem:[#allocation6 + $0x604] ss:$40 sps:$4 sm:$0xff]  }
 0x292   :  { %4383 = vmatprep.subr.bf16.mxu1 %v7773_v12  ;;  %4555 = vmatprep.subr.bf16.mxu0 %v7776_v13  ;;  %v7848_v11 = vld [vmem:[#allocation6 + $0xafc] ss:$40 sps:$4 sm:$0xff]   ;;  %v7843_v12 = vld [vmem:[#allocation6 + $0x600] ss:$40 sps:$4 sm:$0xff]  }
 0x293   :  { %v7846_v13 = vld [vmem:[#allocation6 + $0xaf8] ss:$40 sps:$4 sm:$0xff]  }
 0x299   :  { %4384 = vmatpush1.bf16.xpose.msra.mxu1 %v7771_v14  ;;  %4556 = vmatpush1.bf16.xpose.msra.mxu0 %v7774_v15  ;;  %v7851_v14 = vld [vmem:[#allocation6 + $0x654] ss:$40 sps:$4 sm:$0xff]  }
 0x29a   :  { %4385 = vmatprep.subr.bf16.mxu1 %v7779_v16  ;;  %4557 = vmatprep.subr.bf16.mxu0 %v7782_v19  ;;  %v7854_v15 = vld [vmem:[#allocation6 + $0xb4c] ss:$40 sps:$4 sm:$0xff]   ;;  %v7849_v16 = vld [vmem:[#allocation6 + $0x650] ss:$40 sps:$4 sm:$0xff]  }
 0x29b   :  { %v7852_v19 = vld [vmem:[#allocation6 + $0xb48] ss:$40 sps:$4 sm:$0xff]  }
 0x2a1   :  { %4386 = vmatpush1.bf16.xpose.msra.mxu1 %v7777_v20  ;;  %4558 = vmatpush1.bf16.xpose.msra.mxu0 %v7780_v21  ;;  %v7857_v20 = vld [vmem:[#allocation6 + $0x6a4] ss:$40 sps:$4 sm:$0xff]  }
 0x2a2   :  { %4387 = vmatprep.subr.bf16.mxu1 %v7785_v22  ;;  %4559 = vmatprep.subr.bf16.mxu0 %v7788_v25  ;;  %v7860_v21 = vld [vmem:[#allocation6 + $0xb9c] ss:$40 sps:$4 sm:$0xff]   ;;  %v7855_v22 = vld [vmem:[#allocation6 + $0x6a0] ss:$40 sps:$4 sm:$0xff]  }
 0x2a3   :  { %v7858_v25 = vld [vmem:[#allocation6 + $0xb98] ss:$40 sps:$4 sm:$0xff]  }
 0x2a9   :  { %4388 = vmatpush1.bf16.xpose.msra.mxu1 %v7783_v26  ;;  %4560 = vmatpush1.bf16.xpose.msra.mxu0 %v7786_v27  ;;  %v7863_v26 = vld [vmem:[#allocation6 + $0x6f4] ss:$40 sps:$4 sm:$0xff]  }
 0x2aa   :  { %4389 = vmatprep.subr.bf16.mxu1 %v7791_v28  ;;  %4561 = vmatprep.subr.bf16.mxu0 %v7794_v30  ;;  %v7866_v27 = vld [vmem:[#allocation6 + $0xbec] ss:$40 sps:$4 sm:$0xff]   ;;  %v7861_v28 = vld [vmem:[#allocation6 + $0x6f0] ss:$40 sps:$4 sm:$0xff]  }
 0x2ab   :  { %v7864_v30 = vld [vmem:[#allocation6 + $0xbe8] ss:$40 sps:$4 sm:$0xff]  }
 0x2b1   :  { %4390 = vmatpush1.bf16.xpose.msra.mxu1 %v7789_v31  ;;  %4562 = vmatpush1.bf16.xpose.msra.mxu0 %v7792_v33  ;;  %v7869_v31 = vld [vmem:[#allocation6 + $0x744] ss:$40 sps:$4 sm:$0xff]  }
 0x2b2   :  { %4391 = vmatprep.subr.bf16.mxu1 %v7797_v34  ;;  %4563 = vmatprep.subr.bf16.mxu0 %v7800_v35  ;;  %v7872_v33 = vld [vmem:[#allocation6 + $0xc3c] ss:$40 sps:$4 sm:$0xff]   ;;  %v7867_v34 = vld [vmem:[#allocation6 + $0x740] ss:$40 sps:$4 sm:$0xff]  }
 0x2b3   :  { %v9029_v36 = vpop.f32.mrb[0].mxu1  ;;  %v7870_v35 = vld [vmem:[#allocation6 + $0xc38] ss:$40 sps:$4 sm:$0xff]  }
 0x2b4   :  { %v9031_v39 = vpop.f32.mrb[1].mxu1 }
 0x2b5   :  { %v9033_v40 = vpop.f32.mrb[2].mxu1 }
 0x2b6   :  { %v9035_v44 = vpop.f32.mrb[3].mxu1 }
 0x2b9   :  { %4392 = vmatpush1.bf16.xpose.msra.mxu1 %v7795_v42  ;;  %4564 = vmatpush1.bf16.xpose.msra.mxu0 %v7798_v43  ;;  %v7875_v42 = vld [vmem:[#allocation6 + $0x794] ss:$40 sps:$4 sm:$0xff]  }
 0x2ba   :  { %4393 = vmatprep.subr.bf16.mxu1 %v7803_v45  ;;  %4565 = vmatprep.subr.bf16.mxu0 %v7806_v46  ;;  %v7878_v43 = vld [vmem:[#allocation6 + $0xc8c] ss:$40 sps:$4 sm:$0xff]   ;;  %v7873_v45 = vld [vmem:[#allocation6 + $0x790] ss:$40 sps:$4 sm:$0xff]  }
 0x2bb   :  { %v7876_v46 = vld [vmem:[#allocation6 + $0xc88] ss:$40 sps:$4 sm:$0xff]  }
 0x2c1   :  { %4394 = vmatpush1.bf16.xpose.msra.mxu1 %v7801_v47  ;;  %4566 = vmatpush1.bf16.xpose.msra.mxu0 %v7804_v48  ;;  %v7881_v47 = vld [vmem:[#allocation6 + $0x7e4] ss:$40 sps:$4 sm:$0xff]  }
 0x2c2   :  { %4395 = vmatprep.subr.bf16.mxu1 %v7809_v50  ;;  %4567 = vmatprep.subr.bf16.mxu0 %v7812_v51  ;;  %v7884_v48 = vld [vmem:[#allocation6 + $0xcdc] ss:$40 sps:$4 sm:$0xff]   ;;  %v871_v50 = vlaneseq  ;;  %v7879_v51 = vld [vmem:[#allocation6 + $0x7e0] ss:$40 sps:$4 sm:$0xff]  }
 0x2c9   :  { %4396 = vmatpush1.bf16.xpose.msra.mxu1 %v7807_v52  ;;  %4568 = vmatpush1.bf16.xpose.msra.mxu0 %v7810_v53  ;;  %v7882_v52 = vld [vmem:[#allocation6 + $0xcd8] ss:$40 sps:$4 sm:$0xff]   ;;  %v9042_v53 = vshrl.u32 %v871_v50, 7 }
 0x2ca   :  { %4397 = vmatprep.subr.bf16.mxu1 %v7815_v54  ;;  %4569 = vmatprep.subr.bf16.mxu0 %v7818_v55  ;;  %v7887_v54 = vld [vmem:[#allocation6 + $0x834] ss:$40 sps:$4 sm:$0xff]  }
 0x2cb   :  { %v7890_v55 = vld [vmem:[#allocation6 + $0xd2c] ss:$40 sps:$4 sm:$0xff]  }
 0x2d1   :  { %4398 = vmatpush1.bf16.xpose.msra.mxu1 %v7813_v56  ;;  %4570 = vmatpush1.bf16.xpose.msra.mxu0 %v7816_v57  ;;  %v9045_v56 = vsub.s32 0, %v9042_v53  ;;  %v869_v57 = vld [vmem:[#allocation8] sm:$0xff] }
 0x2d2   :  { %4399 = vmatprep.subr.bf16.mxu1 %v7821_v58  ;;  %4571 = vmatprep.subr.bf16.mxu0 %v7824_v59  ;;  %v9048_v58 = vsub.s32 1, %v9042_v53  ;;  %v7885_v59 = vld [vmem:[#allocation6 + $0x830] ss:$40 sps:$4 sm:$0xff]  }
 0x2d9   :  { %4400 = vmatpush1.bf16.xpose.msra.mxu1 %v7819_v60  ;;  %4572 = vmatpush1.bf16.xpose.msra.mxu0 %v7822_v61  ;;  %v7888_v60 = vld [vmem:[#allocation6 + $0xd28] ss:$40 sps:$4 sm:$0xff]   ;;  %v874_v61 = vrot.slane %v869_v57, %v9045_v56 }
 0x2da   :  { %4412 = vmatprep.subr.bf16.mxu1 %v7827_v62  ;;  %4584 = vmatprep.subr.bf16.mxu0 %v7830_v63  ;;  %v7893_v62 = vld [vmem:[#allocation6 + $0x884] ss:$40 sps:$4 sm:$0xff]  }
 0x2db   :  { %v7896_v63 = vld [vmem:[#allocation6 + $0xd7c] ss:$40 sps:$4 sm:$0xff]  }
 0x2e0   :  { %4402 = vmatmul.mubr.bf16.vlgmr.msra.gmra.mrb[4].mxu1 %v9013_v37  ;;  %4574 = vmatmul.mubr.bf16.vlgmr.msra.gmra.mrb[4].mxu0 %v9001_v17 }
 0x2e1   :  { %4413 = vmatpush1.bf16.xpose.msra.mxu1 %v7825_v0  ;;  %4585 = vmatpush1.bf16.xpose.msra.mxu0 %v7828_v1  ;;  %v878_v0 = vrot.slane %v869_v57, %v9048_v58  ;;  %v7316_v1 = vadd.f32 %v9029_v36, %v874_v61  ;;  %v7944_v57 = vld [vmem:[#allocation6 + $0xb04] ss:$40 sps:$4 sm:$0xff]  }
 0x2e2   :  { %4414 = vmatprep.subr.bf16.mxu1 %v7833_v2  ;;  %4586 = vmatprep.subr.bf16.mxu0 %v7836_v3 }
 0x2e3   :  { %4444 = vmatprep.mubr.bf16.mxu1 %v8998_v32  ;;  %4616 = vmatprep.mubr.bf16.mxu0 %v9005_v23  ;;  %v7318_v2 = vadd.f32 %v9031_v39, %v878_v0  ;;  %v7897_v39 = vld [vmem:[#allocation6 + $0x8d0] ss:$40 sps:$4 sm:$0xff]  }
 0x2e9   :  { %4415 = vmatpush1.bf16.xpose.msra.mxu1 %v7831_v4  ;;  %4587 = vmatpush1.bf16.xpose.msra.mxu0 %v7834_v5  ;;  %v7320_v4 = vadd.f32 %v9033_v40, %v874_v61  ;;  %v7900_v40 = vld [vmem:[#allocation6 + $0xdc8] ss:$40 sps:$4 sm:$0xff]   ;;  %v7947_v61 = vld [vmem:[#allocation6 + $0x65c] ss:$40 sps:$4 sm:$0xff]  }
 0x2ea   :  { %4416 = vmatprep.subr.bf16.mxu1 %v7839_v6  ;;  %4588 = vmatprep.subr.bf16.mxu0 %v7842_v7  ;;  %v7322_v7 = vadd.f32 %v9035_v44, %v878_v0  ;;  %v7908_v44 = vld [vmem:[#allocation6 + $0xe1c] ss:$40 sps:$4 sm:$0xff]   ;;  %v7948_v0 = vld [vmem:[#allocation6 + $0xb50] ss:$40 sps:$4 sm:$0xff]  }
 0x2f1   :  { %4417 = vmatpush1.bf16.xpose.msra.mxu1 %v7837_v8  ;;  %4589 = vmatpush1.bf16.xpose.msra.mxu0 %v7840_v9 }
 0x2f2   :  { %4418 = vmatprep.subr.bf16.mxu1 %v7845_v10  ;;  %4590 = vmatprep.subr.bf16.mxu0 %v7848_v11  ;;  %v7891_v10 = vld [vmem:[#allocation6 + $0x880] ss:$40 sps:$4 sm:$0xff]  }
 0x2f3   :  { %v7894_v11 = vld [vmem:[#allocation6 + $0xd78] ss:$40 sps:$4 sm:$0xff]  }
 0x2f9   :  { %4419 = vmatpush1.bf16.xpose.msra.mxu1 %v7843_v12  ;;  %4591 = vmatpush1.bf16.xpose.msra.mxu0 %v7846_v13  ;;  %v7899_v13 = vld [vmem:[#allocation6 + $0x8d4] ss:$40 sps:$4 sm:$0xff]  }
 0x2fa   :  { %4420 = vmatprep.subr.bf16.mxu1 %v7851_v14  ;;  %4592 = vmatprep.subr.bf16.mxu0 %v7854_v15  ;;  %v7902_v14 = vld [vmem:[#allocation6 + $0xdcc] ss:$40 sps:$4 sm:$0xff]  }
 0x301   :  { %4421 = vmatpush1.bf16.xpose.msra.mxu1 %v7849_v16  ;;  %4593 = vmatpush1.bf16.xpose.msra.mxu0 %v7852_v19  ;;  %v7905_v16 = vld [vmem:[#allocation6 + $0x924] ss:$40 sps:$4 sm:$0xff]   ;;  %v7903_v19 = vld [vmem:[#allocation6 + $0x920] ss:$40 sps:$4 sm:$0xff]  }
 0x302   :  { %4422 = vmatprep.subr.bf16.mxu1 %v7857_v20  ;;  %4594 = vmatprep.subr.bf16.mxu0 %v7860_v21  ;;  %v7906_v20 = vld [vmem:[#allocation6 + $0xe18] ss:$40 sps:$4 sm:$0xff]   ;;  %v7911_v21 = vld [vmem:[#allocation6 + $0x974] ss:$40 sps:$4 sm:$0xff]  }
 0x309   :  { %4423 = vmatpush1.bf16.xpose.msra.mxu1 %v7855_v22  ;;  %4595 = vmatpush1.bf16.xpose.msra.mxu0 %v7858_v25  ;;  %v7914_v22 = vld [vmem:[#allocation6 + $0xe6c] ss:$40 sps:$4 sm:$0xff]   ;;  %v7909_v25 = vld [vmem:[#allocation6 + $0x970] ss:$40 sps:$4 sm:$0xff]  }
 0x30a   :  { %4424 = vmatprep.subr.bf16.mxu1 %v7863_v26  ;;  %4596 = vmatprep.subr.bf16.mxu0 %v7866_v27  ;;  %v7912_v26 = vld [vmem:[#allocation6 + $0xe68] ss:$40 sps:$4 sm:$0xff]   ;;  %v7917_v27 = vld [vmem:[#allocation6 + $0x9c4] ss:$40 sps:$4 sm:$0xff]  }
 0x311   :  { %4425 = vmatpush1.bf16.xpose.msra.mxu1 %v7861_v28  ;;  %4597 = vmatpush1.bf16.xpose.msra.mxu0 %v7864_v30  ;;  %v7920_v28 = vld [vmem:[#allocation6 + $0xebc] ss:$40 sps:$4 sm:$0xff]   ;;  %v7915_v30 = vld [vmem:[#allocation6 + $0x9c0] ss:$40 sps:$4 sm:$0xff]  }
 0x312   :  { %4426 = vmatprep.subr.bf16.mxu1 %v7869_v31  ;;  %4598 = vmatprep.subr.bf16.mxu0 %v7872_v33  ;;  %v7918_v31 = vld [vmem:[#allocation6 + $0xeb8] ss:$40 sps:$4 sm:$0xff]   ;;  %v7923_v33 = vld [vmem:[#allocation6 + $0x51c] ss:$40 sps:$4 sm:$0xff]  }
 0x319   :  { %4427 = vmatpush1.bf16.xpose.msra.mxu1 %v7867_v34  ;;  %4599 = vmatpush1.bf16.xpose.msra.mxu0 %v7870_v35  ;;  %v7926_v34 = vld [vmem:[#allocation6 + $0xa14] ss:$40 sps:$4 sm:$0xff]   ;;  %v7921_v35 = vld [vmem:[#allocation6 + $0x518] ss:$40 sps:$4 sm:$0xff]  }
 0x31a   :  { %4428 = vmatprep.subr.bf16.mxu1 %v7875_v42  ;;  %4600 = vmatprep.subr.bf16.mxu0 %v7878_v43  ;;  %v7924_v42 = vld [vmem:[#allocation6 + $0xa10] ss:$40 sps:$4 sm:$0xff]   ;;  %v7929_v43 = vld [vmem:[#allocation6 + $0x56c] ss:$40 sps:$4 sm:$0xff]  }
 0x321   :  { %4429 = vmatpush1.bf16.xpose.msra.mxu1 %v7873_v45  ;;  %4601 = vmatpush1.bf16.xpose.msra.mxu0 %v7876_v46  ;;  %v7932_v45 = vld [vmem:[#allocation6 + $0xa64] ss:$40 sps:$4 sm:$0xff]   ;;  %v7927_v46 = vld [vmem:[#allocation6 + $0x568] ss:$40 sps:$4 sm:$0xff]  }
 0x322   :  { %4430 = vmatprep.subr.bf16.mxu1 %v7881_v47  ;;  %4602 = vmatprep.subr.bf16.mxu0 %v7884_v48  ;;  %v7930_v47 = vld [vmem:[#allocation6 + $0xa60] ss:$40 sps:$4 sm:$0xff]   ;;  %v7935_v48 = vld [vmem:[#allocation6 + $0x5bc] ss:$40 sps:$4 sm:$0xff]  }
 0x329   :  { %4431 = vmatpush1.bf16.xpose.msra.mxu1 %v7879_v51  ;;  %4603 = vmatpush1.bf16.xpose.msra.mxu0 %v7882_v52  ;;  %v7938_v51 = vld [vmem:[#allocation6 + $0xab4] ss:$40 sps:$4 sm:$0xff]   ;;  %v7933_v52 = vld [vmem:[#allocation6 + $0x5b8] ss:$40 sps:$4 sm:$0xff]  }
 0x32a   :  { %4432 = vmatprep.subr.bf16.mxu1 %v7887_v54  ;;  %4604 = vmatprep.subr.bf16.mxu0 %v7890_v55  ;;  %v7936_v54 = vld [vmem:[#allocation6 + $0xab0] ss:$40 sps:$4 sm:$0xff]   ;;  %v7941_v55 = vld [vmem:[#allocation6 + $0x60c] ss:$40 sps:$4 sm:$0xff]  }
 0x331   :  { %4433 = vmatpush1.bf16.xpose.msra.mxu1 %v7885_v59  ;;  %4605 = vmatpush1.bf16.xpose.msra.mxu0 %v7888_v60  ;;  %v7939_v59 = vld [vmem:[#allocation6 + $0x608] ss:$40 sps:$4 sm:$0xff]  }
 0x332   :  { %4434 = vmatprep.subr.bf16.mxu1 %v7893_v62  ;;  %4606 = vmatprep.subr.bf16.mxu0 %v7896_v63  ;;  %v7942_v60 = vld [vmem:[#allocation6 + $0xb00] ss:$40 sps:$4 sm:$0xff]   ;;  %v7950_v62 = vld [vmem:[#allocation6 + $0xb54] ss:$40 sps:$4 sm:$0xff]  }
 0x333   :  { %v4317_v3 = vpop.f32.mrb[0].mxu0  ;;  %v7945_v63 = vld [vmem:[#allocation6 + $0x658] ss:$40 sps:$4 sm:$0xff]  }
 0x334   :  { %v9055_v5 = vadd.f32 %v7316_v1, %v4317_v3  ;;  %v4319_v6 = vpop.f32.mrb[1].mxu0  ;;  %v7953_v1 = vld [vmem:[#allocation6 + $0x6ac] ss:$40 sps:$4 sm:$0xff]   ;;  %v7951_v3 = vld [vmem:[#allocation6 + $0x6a8] ss:$40 sps:$4 sm:$0xff]  }
 0x335   :  { %v9058_v8 = vadd.f32 %v7318_v2, %v4319_v6  ;;  %v4321_v9 = vpop.f32.mrb[2].mxu0  ;;  %v7956_v2 = vld [vmem:[#allocation6 + $0xba4] ss:$40 sps:$4 sm:$0xff]  }
 0x336   :  { %v9060_v12 = vadd.f32 %v7320_v4, %v4321_v9  ;;  %v4323_v36 = vpop.f32.mrb[3].mxu0  ;;  %v7954_v4 = vld [vmem:[#allocation6 + $0xba0] ss:$40 sps:$4 sm:$0xff]   ;;  %v7959_v6 = vld [vmem:[#allocation6 + $0x6fc] ss:$40 sps:$4 sm:$0xff]  }
 0x337   :  { %v9062_v15 = vadd.f32 %v7322_v7, %v4323_v36  ;;  %v7962_v7 = vld [vmem:[#allocation6 + $0xbf4] ss:$40 sps:$4 sm:$0xff]   ;;  %v7957_v9 = vld [vmem:[#allocation6 + $0x6f8] ss:$40 sps:$4 sm:$0xff]   ;;  %v7968_v36 = vld [vmem:[#allocation6 + $0xc44] ss:$40 sps:$4 sm:$0xff]  }
 0x339   :  { %4435 = vmatpush1.bf16.xpose.msra.mxu1 %v7891_v10  ;;  %4607 = vmatpush1.bf16.xpose.msra.mxu0 %v7894_v11  ;;  %v7960_v10 = vld [vmem:[#allocation6 + $0xbf0] ss:$40 sps:$4 sm:$0xff]   ;;  %v7965_v11 = vld [vmem:[#allocation6 + $0x74c] ss:$40 sps:$4 sm:$0xff]  }
 0x33a   :  { %4436 = vmatprep.subr.bf16.mxu1 %v7899_v13  ;;  %4608 = vmatprep.subr.bf16.mxu0 %v7902_v14  ;;  %v7963_v13 = vld [vmem:[#allocation6 + $0x748] ss:$40 sps:$4 sm:$0xff]  }
 0x33b   :  { %v7966_v14 = vld [vmem:[#allocation6 + $0xc40] ss:$40 sps:$4 sm:$0xff]  }
 0x341   :  { %4437 = vmatpush1.bf16.xpose.msra.mxu1 %v7897_v39  ;;  %4609 = vmatpush1.bf16.xpose.msra.mxu0 %v7900_v40  ;;  %v7971_v39 = vld [vmem:[#allocation6 + $0x79c] ss:$40 sps:$4 sm:$0xff]  }
 0x342   :  { %4438 = vmatprep.subr.bf16.mxu1 %v7905_v16  ;;  %4610 = vmatprep.subr.bf16.mxu0 %v7908_v44  ;;  %v7974_v40 = vld [vmem:[#allocation6 + $0xc94] ss:$40 sps:$4 sm:$0xff]   ;;  %v7969_v16 = vld [vmem:[#allocation6 + $0x798] ss:$40 sps:$4 sm:$0xff]  }
 0x343   :  { %v7972_v44 = vld [vmem:[#allocation6 + $0xc90] ss:$40 sps:$4 sm:$0xff]  }
 0x349   :  { %4439 = vmatpush1.bf16.xpose.msra.mxu1 %v7903_v19  ;;  %4611 = vmatpush1.bf16.xpose.msra.mxu0 %v7906_v20  ;;  %v7977_v19 = vld [vmem:[#allocation6 + $0x7ec] ss:$40 sps:$4 sm:$0xff]  }
 0x34a   :  { %4440 = vmatprep.subr.bf16.mxu1 %v7911_v21  ;;  %4612 = vmatprep.subr.bf16.mxu0 %v7914_v22  ;;  %v7980_v20 = vld [vmem:[#allocation6 + $0xce4] ss:$40 sps:$4 sm:$0xff]   ;;  %v7975_v21 = vld [vmem:[#allocation6 + $0x7e8] ss:$40 sps:$4 sm:$0xff]  }
 0x34b   :  { %v7978_v22 = vld [vmem:[#allocation6 + $0xce0] ss:$40 sps:$4 sm:$0xff]  }
 0x351   :  { %4441 = vmatpush1.bf16.xpose.msra.mxu1 %v7909_v25  ;;  %4613 = vmatpush1.bf16.xpose.msra.mxu0 %v7912_v26  ;;  %v7983_v25 = vld [vmem:[#allocation6 + $0x83c] ss:$40 sps:$4 sm:$0xff]  }
 0x352   :  { %4442 = vmatprep.subr.bf16.mxu1 %v7917_v27  ;;  %4614 = vmatprep.subr.bf16.mxu0 %v7920_v28  ;;  %v7986_v26 = vld [vmem:[#allocation6 + $0xd34] ss:$40 sps:$4 sm:$0xff]   ;;  %v7981_v27 = vld [vmem:[#allocation6 + $0x838] ss:$40 sps:$4 sm:$0xff]  }
 0x353   :  { %v7984_v28 = vld [vmem:[#allocation6 + $0xd30] ss:$40 sps:$4 sm:$0xff]  }
 0x359   :  { %4443 = vmatpush1.bf16.xpose.msra.mxu1 %v7915_v30  ;;  %4615 = vmatpush1.bf16.xpose.msra.mxu0 %v7918_v31  ;;  %v7989_v30 = vld [vmem:[#allocation6 + $0x88c] ss:$40 sps:$4 sm:$0xff]  }
 0x35a   :  { %4455 = vmatprep.subr.bf16.mxu1 %v7923_v33  ;;  %4627 = vmatprep.subr.bf16.mxu0 %v7926_v34  ;;  %v7992_v31 = vld [vmem:[#allocation6 + $0xd84] ss:$40 sps:$4 sm:$0xff]   ;;  %v7987_v33 = vld [vmem:[#allocation6 + $0x888] ss:$40 sps:$4 sm:$0xff]  }
 0x35b   :  { %v7990_v34 = vld [vmem:[#allocation6 + $0xd80] ss:$40 sps:$4 sm:$0xff]  }
 0x360   :  { %4445 = vmatmul.mubr.bf16.vlgmr.msra.gmra.mrb[4].mxu1 %v9003_v18  ;;  %4617 = vmatmul.mubr.bf16.vlgmr.msra.gmra.mrb[4].mxu0 %v9013_v37 }
 0x361   :  { %4456 = vmatpush1.bf16.xpose.msra.mxu1 %v7921_v35  ;;  %4628 = vmatpush1.bf16.xpose.msra.mxu0 %v7924_v42  ;;  %v7995_v35 = vld [vmem:[#allocation6 + $0x8dc] ss:$40 sps:$4 sm:$0xff]  }
 0x362   :  { %4457 = vmatprep.subr.bf16.mxu1 %v7929_v43  ;;  %4629 = vmatprep.subr.bf16.mxu0 %v7932_v45  ;;  %v7998_v42 = vld [vmem:[#allocation6 + $0xdd4] ss:$40 sps:$4 sm:$0xff]   ;;  %v7993_v43 = vld [vmem:[#allocation6 + $0x8d8] ss:$40 sps:$4 sm:$0xff]  }
 0x363   :  { %4487 = vmatprep.mubr.bf16.mxu1 %v9007_v24  ;;  %4659 = vmatprep.mubr.bf16.mxu0 %v8998_v32  ;;  %v7996_v45 = vld [vmem:[#allocation6 + $0xdd0] ss:$40 sps:$4 sm:$0xff]  }
 0x369   :  { %4458 = vmatpush1.bf16.xpose.msra.mxu1 %v7927_v46  ;;  %4630 = vmatpush1.bf16.xpose.msra.mxu0 %v7930_v47  ;;  %v8001_v46 = vld [vmem:[#allocation6 + $0x92c] ss:$40 sps:$4 sm:$0xff]  }
 0x36a   :  { %4459 = vmatprep.subr.bf16.mxu1 %v7935_v48  ;;  %4631 = vmatprep.subr.bf16.mxu0 %v7938_v51  ;;  %v8004_v47 = vld [vmem:[#allocation6 + $0xe24] ss:$40 sps:$4 sm:$0xff]   ;;  %v7999_v48 = vld [vmem:[#allocation6 + $0x928] ss:$40 sps:$4 sm:$0xff]  }
 0x36b   :  { %v8002_v51 = vld [vmem:[#allocation6 + $0xe20] ss:$40 sps:$4 sm:$0xff]  }
 0x371   :  { %4460 = vmatpush1.bf16.xpose.msra.mxu1 %v7933_v52  ;;  %4632 = vmatpush1.bf16.xpose.msra.mxu0 %v7936_v54  ;;  %v8007_v52 = vld [vmem:[#allocation6 + $0x97c] ss:$40 sps:$4 sm:$0xff]  }
 0x372   :  { %4461 = vmatprep.subr.bf16.mxu1 %v7941_v55  ;;  %4633 = vmatprep.subr.bf16.mxu0 %v7944_v57  ;;  %v8010_v54 = vld [vmem:[#allocation6 + $0xe74] ss:$40 sps:$4 sm:$0xff]   ;;  %v8005_v55 = vld [vmem:[#allocation6 + $0x978] ss:$40 sps:$4 sm:$0xff]  }
 0x373   :  { %v8008_v57 = vld [vmem:[#allocation6 + $0xe70] ss:$40 sps:$4 sm:$0xff]  }
 0x379   :  { %4462 = vmatpush1.bf16.xpose.msra.mxu1 %v7939_v59  ;;  %4634 = vmatpush1.bf16.xpose.msra.mxu0 %v7942_v60  ;;  %v8013_v59 = vld [vmem:[#allocation6 + $0x9cc] ss:$40 sps:$4 sm:$0xff]  }
 0x37a   :  { %4463 = vmatprep.subr.bf16.mxu1 %v7947_v61  ;;  %4635 = vmatprep.subr.bf16.mxu0 %v7950_v62  ;;  %v8016_v60 = vld [vmem:[#allocation6 + $0xec4] ss:$40 sps:$4 sm:$0xff]   ;;  %v8011_v61 = vld [vmem:[#allocation6 + $0x9c8] ss:$40 sps:$4 sm:$0xff]  }
 0x37b   :  { %v8014_v62 = vld [vmem:[#allocation6 + $0xec0] ss:$40 sps:$4 sm:$0xff]  }
 0x381   :  { %4464 = vmatpush1.bf16.xpose.msra.mxu1 %v7945_v63  ;;  %4636 = vmatpush1.bf16.xpose.msra.mxu0 %v7948_v0  ;;  %v8019_v63 = vld [vmem:[#allocation6 + $0x524] ss:$40 sps:$4 sm:$0xff]  }
 0x382   :  { %4465 = vmatprep.subr.bf16.mxu1 %v7953_v1  ;;  %4637 = vmatprep.subr.bf16.mxu0 %v7956_v2  ;;  %v8022_v0 = vld [vmem:[#allocation6 + $0xa1c] ss:$40 sps:$4 sm:$0xff]   ;;  %v8017_v1 = vld [vmem:[#allocation6 + $0x520] ss:$40 sps:$4 sm:$0xff]  }
 0x383   :  { %v8020_v2 = vld [vmem:[#allocation6 + $0xa18] ss:$40 sps:$4 sm:$0xff]  }
 0x389   :  { %4466 = vmatpush1.bf16.xpose.msra.mxu1 %v7951_v3  ;;  %4638 = vmatpush1.bf16.xpose.msra.mxu0 %v7954_v4  ;;  %v8025_v3 = vld [vmem:[#allocation6 + $0x574] ss:$40 sps:$4 sm:$0xff]  }
 0x38a   :  { %4467 = vmatprep.subr.bf16.mxu1 %v7959_v6  ;;  %4639 = vmatprep.subr.bf16.mxu0 %v7962_v7  ;;  %v8028_v4 = vld [vmem:[#allocation6 + $0xa6c] ss:$40 sps:$4 sm:$0xff]   ;;  %v8023_v6 = vld [vmem:[#allocation6 + $0x570] ss:$40 sps:$4 sm:$0xff]  }
 0x38b   :  { %v8026_v7 = vld [vmem:[#allocation6 + $0xa68] ss:$40 sps:$4 sm:$0xff]  }
 0x391   :  { %4468 = vmatpush1.bf16.xpose.msra.mxu1 %v7957_v9  ;;  %4640 = vmatpush1.bf16.xpose.msra.mxu0 %v7960_v10  ;;  %v8031_v9 = vld [vmem:[#allocation6 + $0x5c4] ss:$40 sps:$4 sm:$0xff]  }
 0x392   :  { %4469 = vmatprep.subr.bf16.mxu1 %v7965_v11  ;;  %4641 = vmatprep.subr.bf16.mxu0 %v7968_v36  ;;  %v8034_v10 = vld [vmem:[#allocation6 + $0xabc] ss:$40 sps:$4 sm:$0xff]   ;;  %v8029_v11 = vld [vmem:[#allocation6 + $0x5c0] ss:$40 sps:$4 sm:$0xff]  }
 0x393   :  { %v8032_v36 = vld [vmem:[#allocation6 + $0xab8] ss:$40 sps:$4 sm:$0xff]  }
 0x399   :  { %4470 = vmatpush1.bf16.xpose.msra.mxu1 %v7963_v13  ;;  %4642 = vmatpush1.bf16.xpose.msra.mxu0 %v7966_v14  ;;  %v8037_v13 = vld [vmem:[#allocation6 + $0x614] ss:$40 sps:$4 sm:$0xff]  }
 0x39a   :  { %4471 = vmatprep.subr.bf16.mxu1 %v7971_v39  ;;  %4643 = vmatprep.subr.bf16.mxu0 %v7974_v40  ;;  %v8040_v14 = vld [vmem:[#allocation6 + $0xb0c] ss:$40 sps:$4 sm:$0xff]   ;;  %v8035_v39 = vld [vmem:[#allocation6 + $0x610] ss:$40 sps:$4 sm:$0xff]  }
 0x39b   :  { %v8038_v40 = vld [vmem:[#allocation6 + $0xb08] ss:$40 sps:$4 sm:$0xff]  }
 0x3a1   :  { %4472 = vmatpush1.bf16.xpose.msra.mxu1 %v7969_v16  ;;  %4644 = vmatpush1.bf16.xpose.msra.mxu0 %v7972_v44  ;;  %v8043_v16 = vld [vmem:[#allocation6 + $0x664] ss:$40 sps:$4 sm:$0xff]  }
 0x3a2   :  { %4473 = vmatprep.subr.bf16.mxu1 %v7977_v19  ;;  %4645 = vmatprep.subr.bf16.mxu0 %v7980_v20  ;;  %v8046_v44 = vld [vmem:[#allocation6 + $0xb5c] ss:$40 sps:$4 sm:$0xff]   ;;  %v8041_v19 = vld [vmem:[#allocation6 + $0x660] ss:$40 sps:$4 sm:$0xff]  }
 0x3a3   :  { %v8044_v20 = vld [vmem:[#allocation6 + $0xb58] ss:$40 sps:$4 sm:$0xff]  }
 0x3a9   :  { %4474 = vmatpush1.bf16.xpose.msra.mxu1 %v7975_v21  ;;  %4646 = vmatpush1.bf16.xpose.msra.mxu0 %v7978_v22  ;;  %v8049_v21 = vld [vmem:[#allocation6 + $0x6b4] ss:$40 sps:$4 sm:$0xff]  }
 0x3aa   :  { %4475 = vmatprep.subr.bf16.mxu1 %v7983_v25  ;;  %4647 = vmatprep.subr.bf16.mxu0 %v7986_v26  ;;  %v8052_v22 = vld [vmem:[#allocation6 + $0xbac] ss:$40 sps:$4 sm:$0xff]   ;;  %v8047_v25 = vld [vmem:[#allocation6 + $0x6b0] ss:$40 sps:$4 sm:$0xff]  }
 0x3ab   :  { %v8050_v26 = vld [vmem:[#allocation6 + $0xba8] ss:$40 sps:$4 sm:$0xff]  }
 0x3b1   :  { %4476 = vmatpush1.bf16.xpose.msra.mxu1 %v7981_v27  ;;  %4648 = vmatpush1.bf16.xpose.msra.mxu0 %v7984_v28  ;;  %v8055_v27 = vld [vmem:[#allocation6 + $0x704] ss:$40 sps:$4 sm:$0xff]  }
 0x3b2   :  { %4477 = vmatprep.subr.bf16.mxu1 %v7989_v30  ;;  %4649 = vmatprep.subr.bf16.mxu0 %v7992_v31  ;;  %v8058_v28 = vld [vmem:[#allocation6 + $0xbfc] ss:$40 sps:$4 sm:$0xff]   ;;  %v8053_v30 = vld [vmem:[#allocation6 + $0x700] ss:$40 sps:$4 sm:$0xff]  }
 0x3b3   :  { %v8056_v31 = vld [vmem:[#allocation6 + $0xbf8] ss:$40 sps:$4 sm:$0xff]  }
 0x3b9   :  { %4478 = vmatpush1.bf16.xpose.msra.mxu1 %v7987_v33  ;;  %4650 = vmatpush1.bf16.xpose.msra.mxu0 %v7990_v34  ;;  %v8061_v33 = vld [vmem:[#allocation6 + $0x754] ss:$40 sps:$4 sm:$0xff]  }
 0x3ba   :  { %4479 = vmatprep.subr.bf16.mxu1 %v7995_v35  ;;  %4651 = vmatprep.subr.bf16.mxu0 %v7998_v42  ;;  %v8064_v34 = vld [vmem:[#allocation6 + $0xc4c] ss:$40 sps:$4 sm:$0xff]   ;;  %v8059_v35 = vld [vmem:[#allocation6 + $0x750] ss:$40 sps:$4 sm:$0xff]  }
 0x3bb   :  { %v8062_v42 = vld [vmem:[#allocation6 + $0xc48] ss:$40 sps:$4 sm:$0xff]  }
 0x3c1   :  { %4480 = vmatpush1.bf16.xpose.msra.mxu1 %v7993_v43  ;;  %4652 = vmatpush1.bf16.xpose.msra.mxu0 %v7996_v45  ;;  %v8067_v43 = vld [vmem:[#allocation6 + $0x7a4] ss:$40 sps:$4 sm:$0xff]  }
 0x3c2   :  { %4481 = vmatprep.subr.bf16.mxu1 %v8001_v46  ;;  %4653 = vmatprep.subr.bf16.mxu0 %v8004_v47  ;;  %v8070_v45 = vld [vmem:[#allocation6 + $0xc9c] ss:$40 sps:$4 sm:$0xff]   ;;  %v8065_v46 = vld [vmem:[#allocation6 + $0x7a0] ss:$40 sps:$4 sm:$0xff]  }
 0x3c3   :  { %v8068_v47 = vld [vmem:[#allocation6 + $0xc98] ss:$40 sps:$4 sm:$0xff]  }
 0x3c9   :  { %4482 = vmatpush1.bf16.xpose.msra.mxu1 %v7999_v48  ;;  %4654 = vmatpush1.bf16.xpose.msra.mxu0 %v8002_v51  ;;  %v8073_v48 = vld [vmem:[#allocation6 + $0x7f4] ss:$40 sps:$4 sm:$0xff]  }
 0x3ca   :  { %4483 = vmatprep.subr.bf16.mxu1 %v8007_v52  ;;  %4655 = vmatprep.subr.bf16.mxu0 %v8010_v54  ;;  %v8076_v51 = vld [vmem:[#allocation6 + $0xcec] ss:$40 sps:$4 sm:$0xff]   ;;  %v8071_v52 = vld [vmem:[#allocation6 + $0x7f0] ss:$40 sps:$4 sm:$0xff]  }
 0x3cb   :  { %v8074_v54 = vld [vmem:[#allocation6 + $0xce8] ss:$40 sps:$4 sm:$0xff]  }
 0x3d1   :  { %4484 = vmatpush1.bf16.xpose.msra.mxu1 %v8005_v55  ;;  %4656 = vmatpush1.bf16.xpose.msra.mxu0 %v8008_v57  ;;  %v8079_v55 = vld [vmem:[#allocation6 + $0x844] ss:$40 sps:$4 sm:$0xff]  }
 0x3d2   :  { %4485 = vmatprep.subr.bf16.mxu1 %v8013_v59  ;;  %4657 = vmatprep.subr.bf16.mxu0 %v8016_v60  ;;  %v8082_v57 = vld [vmem:[#allocation6 + $0xd3c] ss:$40 sps:$4 sm:$0xff]   ;;  %v8077_v59 = vld [vmem:[#allocation6 + $0x840] ss:$40 sps:$4 sm:$0xff]  }
 0x3d3   :  { %v8080_v60 = vld [vmem:[#allocation6 + $0xd38] ss:$40 sps:$4 sm:$0xff]  }
 0x3d9   :  { %4486 = vmatpush1.bf16.xpose.msra.mxu1 %v8011_v61  ;;  %4658 = vmatpush1.bf16.xpose.msra.mxu0 %v8014_v62  ;;  %v8085_v61 = vld [vmem:[#allocation6 + $0x894] ss:$40 sps:$4 sm:$0xff]  }
 0x3da   :  { %4498 = vmatprep.subr.bf16.mxu1 %v8019_v63  ;;  %4670 = vmatprep.subr.bf16.mxu0 %v8022_v0  ;;  %v8088_v62 = vld [vmem:[#allocation6 + $0xd8c] ss:$40 sps:$4 sm:$0xff]   ;;  %v8083_v63 = vld [vmem:[#allocation6 + $0x890] ss:$40 sps:$4 sm:$0xff]  }
 0x3db   :  { %v8086_v0 = vld [vmem:[#allocation6 + $0xd88] ss:$40 sps:$4 sm:$0xff]  }
 0x3e0   :  { %4488 = vmatmul.mubr.bf16.vlgmr.msra.gmra.mrb[4].mxu1 %v9015_v38  ;;  %4660 = vmatmul.mubr.bf16.vlgmr.msra.gmra.mrb[4].mxu0 %v9003_v18 }
 0x3e1   :  { %4499 = vmatpush1.bf16.xpose.msra.mxu1 %v8017_v1  ;;  %4671 = vmatpush1.bf16.xpose.msra.mxu0 %v8020_v2  ;;  %v8091_v1 = vld [vmem:[#allocation6 + $0x8e4] ss:$40 sps:$4 sm:$0xff]  }
 0x3e2   :  { %4500 = vmatprep.subr.bf16.mxu1 %v8025_v3  ;;  %4672 = vmatprep.subr.bf16.mxu0 %v8028_v4  ;;  %v8094_v2 = vld [vmem:[#allocation6 + $0xddc] ss:$40 sps:$4 sm:$0xff]   ;;  %v8089_v3 = vld [vmem:[#allocation6 + $0x8e0] ss:$40 sps:$4 sm:$0xff]  }
 0x3e3   :  { %4530 = vmatprep.mubr.bf16.mxu1 %v9017_v41  ;;  %4702 = vmatprep.mubr.bf16.mxu0 %v9007_v24  ;;  %v8092_v4 = vld [vmem:[#allocation6 + $0xdd8] ss:$40 sps:$4 sm:$0xff]  }
 0x3e9   :  { %4501 = vmatpush1.bf16.xpose.msra.mxu1 %v8023_v6  ;;  %4673 = vmatpush1.bf16.xpose.msra.mxu0 %v8026_v7  ;;  %v8097_v6 = vld [vmem:[#allocation6 + $0x934] ss:$40 sps:$4 sm:$0xff]  }
 0x3ea   :  { %4502 = vmatprep.subr.bf16.mxu1 %v8031_v9  ;;  %4674 = vmatprep.subr.bf16.mxu0 %v8034_v10  ;;  %v8100_v7 = vld [vmem:[#allocation6 + $0xe2c] ss:$40 sps:$4 sm:$0xff]   ;;  %v8095_v9 = vld [vmem:[#allocation6 + $0x930] ss:$40 sps:$4 sm:$0xff]  }
 0x3eb   :  { %v8098_v10 = vld [vmem:[#allocation6 + $0xe28] ss:$40 sps:$4 sm:$0xff]  }
 0x3f1   :  { %4503 = vmatpush1.bf16.xpose.msra.mxu1 %v8029_v11  ;;  %4675 = vmatpush1.bf16.xpose.msra.mxu0 %v8032_v36  ;;  %v8103_v11 = vld [vmem:[#allocation6 + $0x984] ss:$40 sps:$4 sm:$0xff]  }
 0x3f2   :  { %4504 = vmatprep.subr.bf16.mxu1 %v8037_v13  ;;  %4676 = vmatprep.subr.bf16.mxu0 %v8040_v14  ;;  %v8106_v36 = vld [vmem:[#allocation6 + $0xe7c] ss:$40 sps:$4 sm:$0xff]   ;;  %v8101_v13 = vld [vmem:[#allocation6 + $0x980] ss:$40 sps:$4 sm:$0xff]  }
 0x3f3   :  { %v8104_v14 = vld [vmem:[#allocation6 + $0xe78] ss:$40 sps:$4 sm:$0xff]  }
 0x3f9   :  { %4505 = vmatpush1.bf16.xpose.msra.mxu1 %v8035_v39  ;;  %4677 = vmatpush1.bf16.xpose.msra.mxu0 %v8038_v40  ;;  %v8109_v39 = vld [vmem:[#allocation6 + $0x9d4] ss:$40 sps:$4 sm:$0xff]  }
 0x3fa   :  { %4506 = vmatprep.subr.bf16.mxu1 %v8043_v16  ;;  %4678 = vmatprep.subr.bf16.mxu0 %v8046_v44  ;;  %v8112_v40 = vld [vmem:[#allocation6 + $0xecc] ss:$40 sps:$4 sm:$0xff]   ;;  %v8107_v16 = vld [vmem:[#allocation6 + $0x9d0] ss:$40 sps:$4 sm:$0xff]  }
 0x3fb   :  { %v8110_v44 = vld [vmem:[#allocation6 + $0xec8] ss:$40 sps:$4 sm:$0xff]  }
 0x401   :  { %4507 = vmatpush1.bf16.xpose.msra.mxu1 %v8041_v19  ;;  %4679 = vmatpush1.bf16.xpose.msra.mxu0 %v8044_v20  ;;  %v8115_v19 = vld [vmem:[#allocation6 + $0xa24] ss:$40 sps:$4 sm:$0xff]  }
 0x402   :  { %4508 = vmatprep.subr.bf16.mxu1 %v8049_v21  ;;  %4680 = vmatprep.subr.bf16.mxu0 %v8052_v22  ;;  %v8118_v20 = vld [vmem:[#allocation6 + $0xf04] ss:$40 sps:$4 sm:$0xff]   ;;  %v8113_v21 = vld [vmem:[#allocation6 + $0xa20] ss:$40 sps:$4 sm:$0xff]  }
 0x403   :  { %v8116_v22 = vld [vmem:[#allocation6 + $0xf00] ss:$40 sps:$4 sm:$0xff]  }
 0x409   :  { %4509 = vmatpush1.bf16.xpose.msra.mxu1 %v8047_v25  ;;  %4681 = vmatpush1.bf16.xpose.msra.mxu0 %v8050_v26  ;;  %v8121_v25 = vld [vmem:[#allocation6 + $0xa74] ss:$40 sps:$4 sm:$0xff]  }
 0x40a   :  { %4510 = vmatprep.subr.bf16.mxu1 %v8055_v27  ;;  %4682 = vmatprep.subr.bf16.mxu0 %v8058_v28  ;;  %v8124_v26 = vld [vmem:[#allocation6 + $0xf54] ss:$40 sps:$4 sm:$0xff]   ;;  %v8119_v27 = vld [vmem:[#allocation6 + $0xa70] ss:$40 sps:$4 sm:$0xff]  }
 0x40b   :  { %v8122_v28 = vld [vmem:[#allocation6 + $0xf50] ss:$40 sps:$4 sm:$0xff]  }
 0x411   :  { %4511 = vmatpush1.bf16.xpose.msra.mxu1 %v8053_v30  ;;  %4683 = vmatpush1.bf16.xpose.msra.mxu0 %v8056_v31  ;;  %v8127_v30 = vld [vmem:[#allocation6 + $0xac4] ss:$40 sps:$4 sm:$0xff]  }
 0x412   :  { %4512 = vmatprep.subr.bf16.mxu1 %v8061_v33  ;;  %4684 = vmatprep.subr.bf16.mxu0 %v8064_v34  ;;  %v8130_v31 = vld [vmem:[#allocation6 + $0xfa4] ss:$40 sps:$4 sm:$0xff]   ;;  %v8125_v33 = vld [vmem:[#allocation6 + $0xac0] ss:$40 sps:$4 sm:$0xff]  }
 0x413   :  { %v8128_v34 = vld [vmem:[#allocation6 + $0xfa0] ss:$40 sps:$4 sm:$0xff]  }
 0x419   :  { %4513 = vmatpush1.bf16.xpose.msra.mxu1 %v8059_v35  ;;  %4685 = vmatpush1.bf16.xpose.msra.mxu0 %v8062_v42  ;;  %v8133_v35 = vld [vmem:[#allocation6 + $0xb14] ss:$40 sps:$4 sm:$0xff]  }
 0x41a   :  { %4514 = vmatprep.subr.bf16.mxu1 %v8067_v43  ;;  %4686 = vmatprep.subr.bf16.mxu0 %v8070_v45  ;;  %v8136_v42 = vld [vmem:[#allocation6 + $0xff4] ss:$40 sps:$4 sm:$0xff]   ;;  %v8131_v43 = vld [vmem:[#allocation6 + $0xb10] ss:$40 sps:$4 sm:$0xff]  }
 0x41b   :  { %v8134_v45 = vld [vmem:[#allocation6 + $0xff0] ss:$40 sps:$4 sm:$0xff]  }
 0x421   :  { %4515 = vmatpush1.bf16.xpose.msra.mxu1 %v8065_v46  ;;  %4687 = vmatpush1.bf16.xpose.msra.mxu0 %v8068_v47  ;;  %v8139_v46 = vld [vmem:[#allocation6 + $0xb64] ss:$40 sps:$4 sm:$0xff]   ;;  %v8137_v47 = vld [vmem:[#allocation6 + $0xb60] ss:$40 sps:$4 sm:$0xff]  }
 0x422   :  { %4516 = vmatprep.subr.bf16.mxu1 %v8073_v48  ;;  %4688 = vmatprep.subr.bf16.mxu0 %v8076_v51  ;;  %v8140_v48 = vld [vmem:[#allocation6 + $0x1040] ss:$40 sps:$4 sm:$0xff]   ;;  %v8145_v51 = vld [vmem:[#allocation6 + $0xbb4] ss:$40 sps:$4 sm:$0xff]  }
 0x429   :  { %4517 = vmatpush1.bf16.xpose.msra.mxu1 %v8071_v52  ;;  %4689 = vmatpush1.bf16.xpose.msra.mxu0 %v8074_v54  ;;  %v8148_v52 = vld [vmem:[#allocation6 + $0x1094] ss:$40 sps:$4 sm:$0xff]   ;;  %v8143_v54 = vld [vmem:[#allocation6 + $0xbb0] ss:$40 sps:$4 sm:$0xff]  }
 0x42a   :  { %4518 = vmatprep.subr.bf16.mxu1 %v8079_v55  ;;  %4690 = vmatprep.subr.bf16.mxu0 %v8082_v57  ;;  %v8146_v55 = vld [vmem:[#allocation6 + $0x1090] ss:$40 sps:$4 sm:$0xff]   ;;  %v8151_v57 = vld [vmem:[#allocation6 + $0xc04] ss:$40 sps:$4 sm:$0xff]  }
 0x431   :  { %4519 = vmatpush1.bf16.xpose.msra.mxu1 %v8077_v59  ;;  %4691 = vmatpush1.bf16.xpose.msra.mxu0 %v8080_v60  ;;  %v8154_v59 = vld [vmem:[#allocation6 + $0x10e4] ss:$40 sps:$4 sm:$0xff]   ;;  %v8149_v60 = vld [vmem:[#allocation6 + $0xc00] ss:$40 sps:$4 sm:$0xff]  }
 0x432   :  { %4520 = vmatprep.subr.bf16.mxu1 %v8085_v61  ;;  %4692 = vmatprep.subr.bf16.mxu0 %v8088_v62  ;;  %v8152_v61 = vld [vmem:[#allocation6 + $0x10e0] ss:$40 sps:$4 sm:$0xff]   ;;  %v8157_v62 = vld [vmem:[#allocation6 + $0xc54] ss:$40 sps:$4 sm:$0xff]  }
 0x439   :  { %4521 = vmatpush1.bf16.xpose.msra.mxu1 %v8083_v63  ;;  %4693 = vmatpush1.bf16.xpose.msra.mxu0 %v8086_v0  ;;  %v8160_v63 = vld [vmem:[#allocation6 + $0x1134] ss:$40 sps:$4 sm:$0xff]   ;;  %v8155_v0 = vld [vmem:[#allocation6 + $0xc50] ss:$40 sps:$4 sm:$0xff]  }
 0x43a   :  { %4522 = vmatprep.subr.bf16.mxu1 %v8091_v1  ;;  %4694 = vmatprep.subr.bf16.mxu0 %v8094_v2  ;;  %v8158_v1 = vld [vmem:[#allocation6 + $0x1130] ss:$40 sps:$4 sm:$0xff]   ;;  %v8163_v2 = vld [vmem:[#allocation6 + $0xca4] ss:$40 sps:$4 sm:$0xff]  }
 0x441   :  { %4523 = vmatpush1.bf16.xpose.msra.mxu1 %v8089_v3  ;;  %4695 = vmatpush1.bf16.xpose.msra.mxu0 %v8092_v4  ;;  %v8166_v3 = vld [vmem:[#allocation6 + $0x1184] ss:$40 sps:$4 sm:$0xff]   ;;  %v8161_v4 = vld [vmem:[#allocation6 + $0xca0] ss:$40 sps:$4 sm:$0xff]  }
 0x442   :  { %4524 = vmatprep.subr.bf16.mxu1 %v8097_v6  ;;  %4696 = vmatprep.subr.bf16.mxu0 %v8100_v7  ;;  %v8164_v6 = vld [vmem:[#allocation6 + $0x1180] ss:$40 sps:$4 sm:$0xff]   ;;  %v8169_v7 = vld [vmem:[#allocation6 + $0xcf4] ss:$40 sps:$4 sm:$0xff]  }
 0x449   :  { %4525 = vmatpush1.bf16.xpose.msra.mxu1 %v8095_v9  ;;  %4697 = vmatpush1.bf16.xpose.msra.mxu0 %v8098_v10  ;;  %v8172_v9 = vld [vmem:[#allocation6 + $0x11d4] ss:$40 sps:$4 sm:$0xff]   ;;  %v8167_v10 = vld [vmem:[#allocation6 + $0xcf0] ss:$40 sps:$4 sm:$0xff]  }
 0x44a   :  { %4526 = vmatprep.subr.bf16.mxu1 %v8103_v11  ;;  %4698 = vmatprep.subr.bf16.mxu0 %v8106_v36  ;;  %v8170_v11 = vld [vmem:[#allocation6 + $0x11d0] ss:$40 sps:$4 sm:$0xff]   ;;  %v8175_v36 = vld [vmem:[#allocation6 + $0xd44] ss:$40 sps:$4 sm:$0xff]  }
 0x451   :  { %4527 = vmatpush1.bf16.xpose.msra.mxu1 %v8101_v13  ;;  %4699 = vmatpush1.bf16.xpose.msra.mxu0 %v8104_v14  ;;  %v8178_v13 = vld [vmem:[#allocation6 + $0x1224] ss:$40 sps:$4 sm:$0xff]   ;;  %v8173_v14 = vld [vmem:[#allocation6 + $0xd40] ss:$40 sps:$4 sm:$0xff]  }
 0x452   :  { %4528 = vmatprep.subr.bf16.mxu1 %v8109_v39  ;;  %4700 = vmatprep.subr.bf16.mxu0 %v8112_v40  ;;  %v8176_v39 = vld [vmem:[#allocation6 + $0x1220] ss:$40 sps:$4 sm:$0xff]   ;;  %v8181_v40 = vld [vmem:[#allocation6 + $0xd94] ss:$40 sps:$4 sm:$0xff]  }
 0x459   :  { %4529 = vmatpush1.bf16.xpose.msra.mxu1 %v8107_v16  ;;  %4701 = vmatpush1.bf16.xpose.msra.mxu0 %v8110_v44  ;;  %v8184_v16 = vld [vmem:[#allocation6 + $0x1274] ss:$40 sps:$4 sm:$0xff]   ;;  %v8179_v44 = vld [vmem:[#allocation6 + $0xd90] ss:$40 sps:$4 sm:$0xff]  }
 0x45a   :  { %4713 = vmatprep.subr.bf16.mxu0 %v8115_v19  ;;  %4756 = vmatprep.subr.bf16.mxu1 %v8118_v20  ;;  %v8182_v19 = vld [vmem:[#allocation6 + $0x1270] ss:$40 sps:$4 sm:$0xff]   ;;  %v8187_v20 = vld [vmem:[#allocation6 + $0xde4] ss:$40 sps:$4 sm:$0xff]  }
 0x460   :  { %4531 = vmatmul.mubr.bf16.vlgmr.msra.gmra.mrb[4].mxu1 %v9023_v49  ;;  %4703 = vmatmul.mubr.bf16.vlgmr.msra.gmra.mrb[4].mxu0 %v9015_v38 }
 0x461   :  { %4714 = vmatpush1.bf16.xpose.msra.mxu0 %v8113_v21  ;;  %4757 = vmatpush1.bf16.xpose.msra.mxu1 %v8116_v22  ;;  %v8190_v21 = vld [vmem:[#allocation6 + $0x12c4] ss:$40 sps:$4 sm:$0xff]   ;;  %v8185_v22 = vld [vmem:[#allocation6 + $0xde0] ss:$40 sps:$4 sm:$0xff]  }
 0x462   :  { %4715 = vmatprep.subr.bf16.mxu0 %v8121_v25  ;;  %4758 = vmatprep.subr.bf16.mxu1 %v8124_v26  ;;  %v8188_v25 = vld [vmem:[#allocation6 + $0x12c0] ss:$40 sps:$4 sm:$0xff]   ;;  %v8193_v26 = vld [vmem:[#allocation6 + $0xe34] ss:$40 sps:$4 sm:$0xff]  }
 0x463   :  { %4745 = vmatprep.mubr.bf16.mxu0 %v9017_v41  ;;  %4788 = vmatprep.mubr.bf16.mxu1 %v8995_v29  ;;  %v8142_v29 = vld [vmem:[#allocation6 + $0x1044] ss:$40 sps:$4 sm:$0xff]  }
 0x469   :  { %4716 = vmatpush1.bf16.xpose.msra.mxu0 %v8119_v27  ;;  %4759 = vmatpush1.bf16.xpose.msra.mxu1 %v8122_v28  ;;  %v8196_v27 = vld [vmem:[#allocation6 + $0x1314] ss:$40 sps:$4 sm:$0xff]   ;;  %v8191_v28 = vld [vmem:[#allocation6 + $0xe30] ss:$40 sps:$4 sm:$0xff]  }
 0x46a   :  { %4717 = vmatprep.subr.bf16.mxu0 %v8127_v30  ;;  %4760 = vmatprep.subr.bf16.mxu1 %v8130_v31  ;;  %v8194_v30 = vld [vmem:[#allocation6 + $0x1310] ss:$40 sps:$4 sm:$0xff]   ;;  %v8199_v31 = vld [vmem:[#allocation6 + $0xe84] ss:$40 sps:$4 sm:$0xff]  }
 0x471   :  { %4718 = vmatpush1.bf16.xpose.msra.mxu0 %v8125_v33  ;;  %4761 = vmatpush1.bf16.xpose.msra.mxu1 %v8128_v34  ;;  %v8202_v33 = vld [vmem:[#allocation6 + $0x1364] ss:$40 sps:$4 sm:$0xff]   ;;  %v8197_v34 = vld [vmem:[#allocation6 + $0xe80] ss:$40 sps:$4 sm:$0xff]  }
 0x472   :  { %4719 = vmatprep.subr.bf16.mxu0 %v8133_v35  ;;  %4762 = vmatprep.subr.bf16.mxu1 %v8136_v42  ;;  %v8200_v35 = vld [vmem:[#allocation6 + $0x1360] ss:$40 sps:$4 sm:$0xff]   ;;  %v8205_v42 = vld [vmem:[#allocation6 + $0xed4] ss:$40 sps:$4 sm:$0xff]  }
 0x479   :  { %4720 = vmatpush1.bf16.xpose.msra.mxu0 %v8131_v43  ;;  %4763 = vmatpush1.bf16.xpose.msra.mxu1 %v8134_v45  ;;  %v8208_v43 = vld [vmem:[#allocation6 + $0x13b4] ss:$40 sps:$4 sm:$0xff]   ;;  %v8203_v45 = vld [vmem:[#allocation6 + $0xed0] ss:$40 sps:$4 sm:$0xff]  }
 0x47a   :  { %4721 = vmatprep.subr.bf16.mxu0 %v8139_v46  ;;  %4764 = vmatprep.subr.bf16.mxu1 %v8142_v29  ;;  %v8206_v46 = vld [vmem:[#allocation6 + $0x13b0] ss:$40 sps:$4 sm:$0xff]   ;;  %v8211_v29 = vld [vmem:[#allocation6 + $0xf0c] ss:$40 sps:$4 sm:$0xff]  }
 0x481   :  { %4722 = vmatpush1.bf16.xpose.msra.mxu0 %v8137_v47  ;;  %4765 = vmatpush1.bf16.xpose.msra.mxu1 %v8140_v48  ;;  %v8209_v47 = vld [vmem:[#allocation6 + $0xf08] ss:$40 sps:$4 sm:$0xff]   ;;  %v8214_v48 = vld [vmem:[#allocation6 + $0xf5c] ss:$40 sps:$4 sm:$0xff]  }
 0x482   :  { %4723 = vmatprep.subr.bf16.mxu0 %v8145_v51  ;;  %4766 = vmatprep.subr.bf16.mxu1 %v8148_v52  ;;  %v8212_v51 = vld [vmem:[#allocation6 + $0xf58] ss:$40 sps:$4 sm:$0xff]   ;;  %v8217_v52 = vld [vmem:[#allocation6 + $0xfac] ss:$40 sps:$4 sm:$0xff]  }
 0x489   :  { %4724 = vmatpush1.bf16.xpose.msra.mxu0 %v8143_v54  ;;  %4767 = vmatpush1.bf16.xpose.msra.mxu1 %v8146_v55  ;;  %v8215_v54 = vld [vmem:[#allocation6 + $0xfa8] ss:$40 sps:$4 sm:$0xff]   ;;  %v8220_v55 = vld [vmem:[#allocation6 + $0xffc] ss:$40 sps:$4 sm:$0xff]  }
 0x48a   :  { %4725 = vmatprep.subr.bf16.mxu0 %v8151_v57  ;;  %4768 = vmatprep.subr.bf16.mxu1 %v8154_v59  ;;  %v8218_v57 = vld [vmem:[#allocation6 + $0xff8] ss:$40 sps:$4 sm:$0xff]   ;;  %v8223_v59 = vld [vmem:[#allocation6 + $0x104c] ss:$40 sps:$4 sm:$0xff]  }
 0x491   :  { %4726 = vmatpush1.bf16.xpose.msra.mxu0 %v8149_v60  ;;  %4769 = vmatpush1.bf16.xpose.msra.mxu1 %v8152_v61  ;;  %v8221_v60 = vld [vmem:[#allocation6 + $0x1048] ss:$40 sps:$4 sm:$0xff]   ;;  %v8226_v61 = vld [vmem:[#allocation6 + $0x109c] ss:$40 sps:$4 sm:$0xff]  }
 0x492   :  { %4727 = vmatprep.subr.bf16.mxu0 %v8157_v62  ;;  %4770 = vmatprep.subr.bf16.mxu1 %v8160_v63  ;;  %v8229_v62 = vld [vmem:[#allocation6 + $0x10ec] ss:$40 sps:$4 sm:$0xff]   ;;  %v8232_v63 = vld [vmem:[#allocation6 + $0x113c] ss:$40 sps:$4 sm:$0xff]  }
 0x499   :  { %4728 = vmatpush1.bf16.xpose.msra.mxu0 %v8155_v0  ;;  %4771 = vmatpush1.bf16.xpose.msra.mxu1 %v8158_v1  ;;  %v8230_v0 = vld [vmem:[#allocation6 + $0x1138] ss:$40 sps:$4 sm:$0xff]   ;;  %v8235_v1 = vld [vmem:[#allocation6 + $0x118c] ss:$40 sps:$4 sm:$0xff]  }
 0x49a   :  { %4729 = vmatprep.subr.bf16.mxu0 %v8163_v2  ;;  %4772 = vmatprep.subr.bf16.mxu1 %v8166_v3  ;;  %v8233_v2 = vld [vmem:[#allocation6 + $0x1188] ss:$40 sps:$4 sm:$0xff]   ;;  %v8238_v3 = vld [vmem:[#allocation6 + $0x11dc] ss:$40 sps:$4 sm:$0xff]  }
 0x4a1   :  { %4730 = vmatpush1.bf16.xpose.msra.mxu0 %v8161_v4  ;;  %4773 = vmatpush1.bf16.xpose.msra.mxu1 %v8164_v6  ;;  %v8236_v4 = vld [vmem:[#allocation6 + $0x11d8] ss:$40 sps:$4 sm:$0xff]   ;;  %v8241_v6 = vld [vmem:[#allocation6 + $0x122c] ss:$40 sps:$4 sm:$0xff]  }
 0x4a2   :  { %4731 = vmatprep.subr.bf16.mxu0 %v8169_v7  ;;  %4774 = vmatprep.subr.bf16.mxu1 %v8172_v9  ;;  %v8239_v7 = vld [vmem:[#allocation6 + $0x1228] ss:$40 sps:$4 sm:$0xff]   ;;  %v8244_v9 = vld [vmem:[#allocation6 + $0x127c] ss:$40 sps:$4 sm:$0xff]  }
 0x4a9   :  { %4732 = vmatpush1.bf16.xpose.msra.mxu0 %v8167_v10  ;;  %4775 = vmatpush1.bf16.xpose.msra.mxu1 %v8170_v11 }
 0x4aa   :  { %4733 = vmatprep.subr.bf16.mxu0 %v8175_v36  ;;  %4776 = vmatprep.subr.bf16.mxu1 %v8178_v13  ;;  %v8242_v13 = vld [vmem:[#allocation6 + $0x1278] ss:$40 sps:$4 sm:$0xff]  }
 0x4b1   :  { %4734 = vmatpush1.bf16.xpose.msra.mxu0 %v8173_v14  ;;  %4777 = vmatpush1.bf16.xpose.msra.mxu1 %v8176_v39  ;;  %v8247_v39 = vld [vmem:[#allocation6 + $0x12cc] ss:$40 sps:$4 sm:$0xff]  }
 0x4b2   :  { %4735 = vmatprep.subr.bf16.mxu0 %v8181_v40  ;;  %4778 = vmatprep.subr.bf16.mxu1 %v8184_v16  ;;  %v8245_v40 = vld [vmem:[#allocation6 + $0x12c8] ss:$40 sps:$4 sm:$0xff]   ;;  %v8250_v16 = vld [vmem:[#allocation6 + $0x131c] ss:$40 sps:$4 sm:$0xff]  }
 0x4b9   :  { %4736 = vmatpush1.bf16.xpose.msra.mxu0 %v8179_v44  ;;  %4779 = vmatpush1.bf16.xpose.msra.mxu1 %v8182_v19  ;;  %v8248_v44 = vld [vmem:[#allocation6 + $0x1318] ss:$40 sps:$4 sm:$0xff]   ;;  %v8253_v19 = vld [vmem:[#allocation6 + $0x136c] ss:$40 sps:$4 sm:$0xff]  }
 0x4ba   :  { %4737 = vmatprep.subr.bf16.mxu0 %v8187_v20  ;;  %4780 = vmatprep.subr.bf16.mxu1 %v8190_v21  ;;  %v8251_v20 = vld [vmem:[#allocation6 + $0x1368] ss:$40 sps:$4 sm:$0xff]   ;;  %v8256_v21 = vld [vmem:[#allocation6 + $0x13bc] ss:$40 sps:$4 sm:$0xff]  }
 0x4c1   :  { %4738 = vmatpush1.bf16.xpose.msra.mxu0 %v8185_v22  ;;  %4781 = vmatpush1.bf16.xpose.msra.mxu1 %v8188_v25  ;;  %v8254_v22 = vld [vmem:[#allocation6 + $0x13b8] ss:$40 sps:$4 sm:$0xff]   ;;  %v8259_v25 = vld [vmem:[#allocation6 + $0xf14] ss:$40 sps:$4 sm:$0xff]  }
 0x4c2   :  { %4739 = vmatprep.subr.bf16.mxu0 %v8193_v26  ;;  %4782 = vmatprep.subr.bf16.mxu1 %v8196_v27  ;;  %v8257_v26 = vld [vmem:[#allocation6 + $0xf10] ss:$40 sps:$4 sm:$0xff]   ;;  %v8262_v27 = vld [vmem:[#allocation6 + $0xf64] ss:$40 sps:$4 sm:$0xff]  }
 0x4c9   :  { %4740 = vmatpush1.bf16.xpose.msra.mxu0 %v8191_v28  ;;  %4783 = vmatpush1.bf16.xpose.msra.mxu1 %v8194_v30  ;;  %v8260_v28 = vld [vmem:[#allocation6 + $0xf60] ss:$40 sps:$4 sm:$0xff]   ;;  %v8265_v30 = vld [vmem:[#allocation6 + $0xfb4] ss:$40 sps:$4 sm:$0xff]  }
 0x4ca   :  { %4741 = vmatprep.subr.bf16.mxu0 %v8199_v31  ;;  %4784 = vmatprep.subr.bf16.mxu1 %v8202_v33  ;;  %v8263_v31 = vld [vmem:[#allocation6 + $0xfb0] ss:$40 sps:$4 sm:$0xff]   ;;  %v8268_v33 = vld [vmem:[#allocation6 + $0x1004] ss:$40 sps:$4 sm:$0xff]  }
 0x4d1   :  { %4742 = vmatpush1.bf16.xpose.msra.mxu0 %v8197_v34  ;;  %4785 = vmatpush1.bf16.xpose.msra.mxu1 %v8200_v35  ;;  %v8266_v34 = vld [vmem:[#allocation6 + $0x1000] ss:$40 sps:$4 sm:$0xff]   ;;  %v8271_v35 = vld [vmem:[#allocation6 + $0x1054] ss:$40 sps:$4 sm:$0xff]  }
 0x4d2   :  { %4743 = vmatprep.subr.bf16.mxu0 %v8205_v42  ;;  %4786 = vmatprep.subr.bf16.mxu1 %v8208_v43  ;;  %v8269_v42 = vld [vmem:[#allocation6 + $0x1050] ss:$40 sps:$4 sm:$0xff]   ;;  %v8274_v43 = vld [vmem:[#allocation6 + $0x10a4] ss:$40 sps:$4 sm:$0xff]  }
 0x4d9   :  { %4744 = vmatpush1.bf16.xpose.msra.mxu0 %v8203_v45  ;;  %4787 = vmatpush1.bf16.xpose.msra.mxu1 %v8206_v46  ;;  %v8277_v45 = vld [vmem:[#allocation6 + $0x10f4] ss:$40 sps:$4 sm:$0xff]   ;;  %v8280_v46 = vld [vmem:[#allocation6 + $0x1144] ss:$40 sps:$4 sm:$0xff]  }
 0x4da   :  { %4799 = vmatprep.subr.bf16.mxu1 %v8211_v29  ;;  %v8278_v29 = vld [vmem:[#allocation6 + $0x1140] ss:$40 sps:$4 sm:$0xff]  }
 0x4e0   :  { %4746 = vmatmul.mubr.bf16.vlgmr.msra.gmra.mrb[4].mxu0 %v9023_v49  ;;  %4789 = vmatmul.mubr.bf16.vlgmr.msra.gmra.mrb[8].mxu1 %v9001_v17  ;;  %v8224_v17 = vld [vmem:[#allocation6 + $0x1098] ss:$40 sps:$4 sm:$0xff]  }
 0x4e1   :  { %4800 = vmatpush1.bf16.xpose.msra.mxu1 %v8209_v47  ;;  %4831 = vmatprep.mubr.bf16.mxu1 %v9005_v23  ;;  %v8227_v23 = vld [vmem:[#allocation6 + $0x10e8] ss:$40 sps:$4 sm:$0xff]   ;;  %v8283_v47 = vld [vmem:[#allocation6 + $0x1194] ss:$40 sps:$4 sm:$0xff]  }
 0x4e2   :  { %4801 = vmatprep.subr.bf16.mxu1 %v8214_v48  ;;  %v8281_v48 = vld [vmem:[#allocation6 + $0x1190] ss:$40 sps:$4 sm:$0xff]  }
 0x4e9   :  { %4802 = vmatpush1.bf16.xpose.msra.mxu1 %v8212_v51  ;;  %v8286_v51 = vld [vmem:[#allocation6 + $0x11e4] ss:$40 sps:$4 sm:$0xff]  }
 0x4ea   :  { %4803 = vmatprep.subr.bf16.mxu1 %v8217_v52  ;;  %v8284_v52 = vld [vmem:[#allocation6 + $0x11e0] ss:$40 sps:$4 sm:$0xff]  }
 0x4f1   :  { %4804 = vmatpush1.bf16.xpose.msra.mxu1 %v8215_v54  ;;  %v8289_v54 = vld [vmem:[#allocation6 + $0x1234] ss:$40 sps:$4 sm:$0xff]  }
 0x4f2   :  { %4805 = vmatprep.subr.bf16.mxu1 %v8220_v55  ;;  %v8287_v55 = vld [vmem:[#allocation6 + $0x1230] ss:$40 sps:$4 sm:$0xff]  }
 0x4f9   :  { %4806 = vmatpush1.bf16.xpose.msra.mxu1 %v8218_v57  ;;  %v8292_v57 = vld [vmem:[#allocation6 + $0x1284] ss:$40 sps:$4 sm:$0xff]  }
 0x4fa   :  { %4807 = vmatprep.subr.bf16.mxu1 %v8223_v59 }
 0x501   :  { %4808 = vmatpush1.bf16.xpose.msra.mxu1 %v8221_v60 }
 0x502   :  { %4809 = vmatprep.subr.bf16.mxu1 %v8226_v61 }
 0x509   :  { %4810 = vmatpush1.bf16.xpose.msra.mxu1 %v8224_v17  ;;  %v8290_v17 = vld [vmem:[#allocation6 + $0x1280] ss:$40 sps:$4 sm:$0xff]  }
 0x50a   :  { %4811 = vmatprep.subr.bf16.mxu1 %v8229_v62 }
 0x511   :  { %4812 = vmatpush1.bf16.xpose.msra.mxu1 %v8227_v23  ;;  %v8295_v23 = vld [vmem:[#allocation6 + $0x12d4] ss:$40 sps:$4 sm:$0xff]  }
 0x512   :  { %4813 = vmatprep.subr.bf16.mxu1 %v8232_v63  ;;  %v8293_v63 = vld [vmem:[#allocation6 + $0x12d0] ss:$40 sps:$4 sm:$0xff]  }
 0x519   :  { %4814 = vmatpush1.bf16.xpose.msra.mxu1 %v8230_v0  ;;  %v8298_v0 = vld [vmem:[#allocation6 + $0x1324] ss:$40 sps:$4 sm:$0xff]  }
 0x51a   :  { %4815 = vmatprep.subr.bf16.mxu1 %v8235_v1  ;;  %v8296_v1 = vld [vmem:[#allocation6 + $0x1320] ss:$40 sps:$4 sm:$0xff]  }
 0x521   :  { %4816 = vmatpush1.bf16.xpose.msra.mxu1 %v8233_v2  ;;  %v8301_v2 = vld [vmem:[#allocation6 + $0x1374] ss:$40 sps:$4 sm:$0xff]  }
 0x522   :  { %4817 = vmatprep.subr.bf16.mxu1 %v8238_v3  ;;  %v8299_v3 = vld [vmem:[#allocation6 + $0x1370] ss:$40 sps:$4 sm:$0xff]  }
 0x529   :  { %4818 = vmatpush1.bf16.xpose.msra.mxu1 %v8236_v4  ;;  %v8304_v4 = vld [vmem:[#allocation6 + $0x13c4] ss:$40 sps:$4 sm:$0xff]  }
 0x52a   :  { %4819 = vmatprep.subr.bf16.mxu1 %v8241_v6  ;;  %v8302_v6 = vld [vmem:[#allocation6 + $0x13c0] ss:$40 sps:$4 sm:$0xff]  }
 0x531   :  { %4820 = vmatpush1.bf16.xpose.msra.mxu1 %v8239_v7  ;;  %v8307_v7 = vld [vmem:[#allocation6 + $0xf1c] ss:$40 sps:$4 sm:$0xff]  }
 0x532   :  { %4821 = vmatprep.subr.bf16.mxu1 %v8244_v9  ;;  %v8305_v9 = vld [vmem:[#allocation6 + $0xf18] ss:$40 sps:$4 sm:$0xff]  }
 0x533   :  { %v9079_v10 = vpop.f32.mrb[4].mxu1 }
 0x534   :  { %v9081_v11 = vpop.f32.mrb[5].mxu1 }
 0x535   :  { %v9083_v36 = vpop.f32.mrb[6].mxu1 }
 0x536   :  { %v9085_v14 = vpop.f32.mrb[7].mxu1 }
 0x539   :  { %4822 = vmatpush1.bf16.xpose.msra.mxu1 %v8242_v13  ;;  %v8310_v13 = vld [vmem:[#allocation6 + $0xf6c] ss:$40 sps:$4 sm:$0xff]  }
 0x53a   :  { %4823 = vmatprep.subr.bf16.mxu1 %v8247_v39  ;;  %v8308_v39 = vld [vmem:[#allocation6 + $0xf68] ss:$40 sps:$4 sm:$0xff]  }
 0x541   :  { %4824 = vmatpush1.bf16.xpose.msra.mxu1 %v8245_v40  ;;  %v8313_v40 = vld [vmem:[#allocation6 + $0xfbc] ss:$40 sps:$4 sm:$0xff]  }
 0x542   :  { %4825 = vmatprep.subr.bf16.mxu1 %v8250_v16  ;;  %v8311_v16 = vld [vmem:[#allocation6 + $0xfb8] ss:$40 sps:$4 sm:$0xff]  }
 0x549   :  { %4826 = vmatpush1.bf16.xpose.msra.mxu1 %v8248_v44  ;;  %v8316_v44 = vld [vmem:[#allocation6 + $0x100c] ss:$40 sps:$4 sm:$0xff]  }
 0x54a   :  { %4827 = vmatprep.subr.bf16.mxu1 %v8253_v19  ;;  %v8314_v19 = vld [vmem:[#allocation6 + $0x1008] ss:$40 sps:$4 sm:$0xff]  }
 0x551   :  { %4828 = vmatpush1.bf16.xpose.msra.mxu1 %v8251_v20  ;;  %v8319_v20 = vld [vmem:[#allocation6 + $0x105c] ss:$40 sps:$4 sm:$0xff]  }
 0x552   :  { %4829 = vmatprep.subr.bf16.mxu1 %v8256_v21  ;;  %v8317_v21 = vld [vmem:[#allocation6 + $0x1058] ss:$40 sps:$4 sm:$0xff]  }
 0x559   :  { %4830 = vmatpush1.bf16.xpose.msra.mxu1 %v8254_v22  ;;  %v8322_v22 = vld [vmem:[#allocation6 + $0x10ac] ss:$40 sps:$4 sm:$0xff]  }
 0x55a   :  { %4842 = vmatprep.subr.bf16.mxu1 %v8259_v25  ;;  %v8325_v25 = vld [vmem:[#allocation6 + $0x10fc] ss:$40 sps:$4 sm:$0xff]  }
 0x560   :  { %4832 = vmatmul.mubr.bf16.vlgmr.msra.gmra.mrb[8].mxu1 %v9013_v37  ;;  %v8272_v37 = vld [vmem:[#allocation6 + $0x10a0] ss:$40 sps:$4 sm:$0xff]  }
 0x561   :  { %4843 = vmatpush1.bf16.xpose.msra.mxu1 %v8257_v26  ;;  %4874 = vmatprep.mubr.bf16.mxu1 %v8998_v32  ;;  %v8275_v32 = vld [vmem:[#allocation6 + $0x10f0] ss:$40 sps:$4 sm:$0xff]   ;;  %v8328_v26 = vld [vmem:[#allocation6 + $0x114c] ss:$40 sps:$4 sm:$0xff]  }
 0x562   :  { %4844 = vmatprep.subr.bf16.mxu1 %v8262_v27  ;;  %v8326_v27 = vld [vmem:[#allocation6 + $0x1148] ss:$40 sps:$4 sm:$0xff]  }
 0x569   :  { %4845 = vmatpush1.bf16.xpose.msra.mxu1 %v8260_v28  ;;  %v8331_v28 = vld [vmem:[#allocation6 + $0x119c] ss:$40 sps:$4 sm:$0xff]  }
 0x56a   :  { %4846 = vmatprep.subr.bf16.mxu1 %v8265_v30  ;;  %v8329_v30 = vld [vmem:[#allocation6 + $0x1198] ss:$40 sps:$4 sm:$0xff]  }
 0x571   :  { %4847 = vmatpush1.bf16.xpose.msra.mxu1 %v8263_v31  ;;  %v8334_v31 = vld [vmem:[#allocation6 + $0x11ec] ss:$40 sps:$4 sm:$0xff]  }
 0x572   :  { %4848 = vmatprep.subr.bf16.mxu1 %v8268_v33  ;;  %v8332_v33 = vld [vmem:[#allocation6 + $0x11e8] ss:$40 sps:$4 sm:$0xff]  }
 0x579   :  { %4849 = vmatpush1.bf16.xpose.msra.mxu1 %v8266_v34  ;;  %v8337_v34 = vld [vmem:[#allocation6 + $0x123c] ss:$40 sps:$4 sm:$0xff]  }
 0x57a   :  { %4850 = vmatprep.subr.bf16.mxu1 %v8271_v35  ;;  %v8335_v35 = vld [vmem:[#allocation6 + $0x1238] ss:$40 sps:$4 sm:$0xff]  }
 0x581   :  { %4851 = vmatpush1.bf16.xpose.msra.mxu1 %v8269_v42  ;;  %v8340_v42 = vld [vmem:[#allocation6 + $0x128c] ss:$40 sps:$4 sm:$0xff]  }
 0x582   :  { %4852 = vmatprep.subr.bf16.mxu1 %v8274_v43  ;;  %v8338_v43 = vld [vmem:[#allocation6 + $0x1288] ss:$40 sps:$4 sm:$0xff]  }
 0x589   :  { %4853 = vmatpush1.bf16.xpose.msra.mxu1 %v8272_v37  ;;  %v8343_v37 = vld [vmem:[#allocation6 + $0x12dc] ss:$40 sps:$4 sm:$0xff]  }
 0x58a   :  { %4854 = vmatprep.subr.bf16.mxu1 %v8277_v45  ;;  %v8341_v45 = vld [vmem:[#allocation6 + $0x12d8] ss:$40 sps:$4 sm:$0xff]  }
 0x591   :  { %4855 = vmatpush1.bf16.xpose.msra.mxu1 %v8275_v32  ;;  %v8346_v32 = vld [vmem:[#allocation6 + $0x132c] ss:$40 sps:$4 sm:$0xff]  }
 0x592   :  { %4856 = vmatprep.subr.bf16.mxu1 %v8280_v46  ;;  %v8344_v46 = vld [vmem:[#allocation6 + $0x1328] ss:$40 sps:$4 sm:$0xff]  }
 0x599   :  { %4857 = vmatpush1.bf16.xpose.msra.mxu1 %v8278_v29  ;;  %v8349_v29 = vld [vmem:[#allocation6 + $0x137c] ss:$40 sps:$4 sm:$0xff]  }
 0x59a   :  { %4858 = vmatprep.subr.bf16.mxu1 %v8283_v47  ;;  %v8347_v47 = vld [vmem:[#allocation6 + $0x1378] ss:$40 sps:$4 sm:$0xff]  }
 0x5a1   :  { %4859 = vmatpush1.bf16.xpose.msra.mxu1 %v8281_v48  ;;  %v8352_v48 = vld [vmem:[#allocation6 + $0x13cc] ss:$40 sps:$4 sm:$0xff]  }
 0x5a2   :  { %4860 = vmatprep.subr.bf16.mxu1 %v8286_v51  ;;  %v8350_v51 = vld [vmem:[#allocation6 + $0x13c8] ss:$40 sps:$4 sm:$0xff]  }
 0x5a9   :  { %4861 = vmatpush1.bf16.xpose.msra.mxu1 %v8284_v52  ;;  %v8355_v52 = vld [vmem:[#allocation6 + $0xf24] ss:$40 sps:$4 sm:$0xff]  }
 0x5aa   :  { %4862 = vmatprep.subr.bf16.mxu1 %v8289_v54  ;;  %v8353_v54 = vld [vmem:[#allocation6 + $0xf20] ss:$40 sps:$4 sm:$0xff]  }
 0x5b1   :  { %4863 = vmatpush1.bf16.xpose.msra.mxu1 %v8287_v55  ;;  %v8358_v55 = vld [vmem:[#allocation6 + $0xf74] ss:$40 sps:$4 sm:$0xff]  }
 0x5b2   :  { %4864 = vmatprep.subr.bf16.mxu1 %v8292_v57  ;;  %v8356_v57 = vld [vmem:[#allocation6 + $0xf70] ss:$40 sps:$4 sm:$0xff]  }
 0x5b3   :  { %v9089_v59 = vpop.f32.mrb[4].mxu0 }
 0x5b4   :  { %v9091_v60 = vpop.f32.mrb[5].mxu0 }
 0x5b5   :  { %v9093_v61 = vpop.f32.mrb[6].mxu0 }
 0x5b6   :  { %v9095_v62 = vpop.f32.mrb[7].mxu0 }
 0x5b9   :  { %4865 = vmatpush1.bf16.xpose.msra.mxu1 %v8290_v17  ;;  %v8361_v17 = vld [vmem:[#allocation6 + $0xfc4] ss:$40 sps:$4 sm:$0xff]  }
 0x5ba   :  { %4866 = vmatprep.subr.bf16.mxu1 %v8295_v23  ;;  %v8359_v23 = vld [vmem:[#allocation6 + $0xfc0] ss:$40 sps:$4 sm:$0xff]  }
 0x5c1   :  { %4867 = vmatpush1.bf16.xpose.msra.mxu1 %v8293_v63  ;;  %v8364_v63 = vld [vmem:[#allocation6 + $0x1014] ss:$40 sps:$4 sm:$0xff]  }
 0x5c2   :  { %4868 = vmatprep.subr.bf16.mxu1 %v8298_v0  ;;  %v8362_v0 = vld [vmem:[#allocation6 + $0x1010] ss:$40 sps:$4 sm:$0xff]  }
 0x5c9   :  { %4869 = vmatpush1.bf16.xpose.msra.mxu1 %v8296_v1  ;;  %v8367_v1 = vld [vmem:[#allocation6 + $0x1064] ss:$40 sps:$4 sm:$0xff]  }
 0x5ca   :  { %4870 = vmatprep.subr.bf16.mxu1 %v8301_v2  ;;  %v8365_v2 = vld [vmem:[#allocation6 + $0x1060] ss:$40 sps:$4 sm:$0xff]  }
 0x5d1   :  { %4871 = vmatpush1.bf16.xpose.msra.mxu1 %v8299_v3  ;;  %v8370_v3 = vld [vmem:[#allocation6 + $0x10b4] ss:$40 sps:$4 sm:$0xff]  }
 0x5d2   :  { %4872 = vmatprep.subr.bf16.mxu1 %v8304_v4  ;;  %v8373_v4 = vld [vmem:[#allocation6 + $0x1104] ss:$40 sps:$4 sm:$0xff]  }
 0x5d9   :  { %4873 = vmatpush1.bf16.xpose.msra.mxu1 %v8302_v6  ;;  %v8376_v6 = vld [vmem:[#allocation6 + $0x1154] ss:$40 sps:$4 sm:$0xff]  }
 0x5da   :  { %4885 = vmatprep.subr.bf16.mxu1 %v8307_v7  ;;  %v8374_v7 = vld [vmem:[#allocation6 + $0x1150] ss:$40 sps:$4 sm:$0xff]  }
 0x5e0   :  { %4875 = vmatmul.mubr.bf16.vlgmr.msra.gmra.mrb[8].mxu1 %v9003_v18  ;;  %v8320_v18 = vld [vmem:[#allocation6 + $0x10a8] ss:$40 sps:$4 sm:$0xff]  }
 0x5e1   :  { %4886 = vmatpush1.bf16.xpose.msra.mxu1 %v8305_v9  ;;  %4917 = vmatprep.mubr.bf16.mxu1 %v9007_v24  ;;  %v8323_v24 = vld [vmem:[#allocation6 + $0x10f8] ss:$40 sps:$4 sm:$0xff]   ;;  %v8379_v9 = vld [vmem:[#allocation6 + $0x11a4] ss:$40 sps:$4 sm:$0xff]  }
 0x5e2   :  { %4887 = vmatprep.subr.bf16.mxu1 %v8310_v13  ;;  %v8377_v13 = vld [vmem:[#allocation6 + $0x11a0] ss:$40 sps:$4 sm:$0xff]  }
 0x5e9   :  { %4888 = vmatpush1.bf16.xpose.msra.mxu1 %v8308_v39  ;;  %v8382_v39 = vld [vmem:[#allocation6 + $0x11f4] ss:$40 sps:$4 sm:$0xff]  }
 0x5ea   :  { %4889 = vmatprep.subr.bf16.mxu1 %v8313_v40  ;;  %v8380_v40 = vld [vmem:[#allocation6 + $0x11f0] ss:$40 sps:$4 sm:$0xff]  }
 0x5f1   :  { %4890 = vmatpush1.bf16.xpose.msra.mxu1 %v8311_v16  ;;  %v8385_v16 = vld [vmem:[#allocation6 + $0x1244] ss:$40 sps:$4 sm:$0xff]  }
 0x5f2   :  { %4891 = vmatprep.subr.bf16.mxu1 %v8316_v44  ;;  %v8383_v44 = vld [vmem:[#allocation6 + $0x1240] ss:$40 sps:$4 sm:$0xff]  }
 0x5f9   :  { %4892 = vmatpush1.bf16.xpose.msra.mxu1 %v8314_v19  ;;  %v8388_v19 = vld [vmem:[#allocation6 + $0x1294] ss:$40 sps:$4 sm:$0xff]  }
 0x5fa   :  { %4893 = vmatprep.subr.bf16.mxu1 %v8319_v20  ;;  %v8386_v20 = vld [vmem:[#allocation6 + $0x1290] ss:$40 sps:$4 sm:$0xff]  }
 0x601   :  { %4894 = vmatpush1.bf16.xpose.msra.mxu1 %v8317_v21  ;;  %v8391_v21 = vld [vmem:[#allocation6 + $0x12e4] ss:$40 sps:$4 sm:$0xff]  }
 0x602   :  { %4895 = vmatprep.subr.bf16.mxu1 %v8322_v22  ;;  %v8389_v22 = vld [vmem:[#allocation6 + $0x12e0] ss:$40 sps:$4 sm:$0xff]  }
 0x609   :  { %4896 = vmatpush1.bf16.xpose.msra.mxu1 %v8320_v18  ;;  %v8394_v18 = vld [vmem:[#allocation6 + $0x1334] ss:$40 sps:$4 sm:$0xff]  }
 0x60a   :  { %4897 = vmatprep.subr.bf16.mxu1 %v8325_v25  ;;  %v8392_v25 = vld [vmem:[#allocation6 + $0x1330] ss:$40 sps:$4 sm:$0xff]  }
 0x611   :  { %4898 = vmatpush1.bf16.xpose.msra.mxu1 %v8323_v24  ;;  %v8397_v24 = vld [vmem:[#allocation6 + $0x1384] ss:$40 sps:$4 sm:$0xff]  }
 0x612   :  { %4899 = vmatprep.subr.bf16.mxu1 %v8328_v26  ;;  %v8395_v26 = vld [vmem:[#allocation6 + $0x1380] ss:$40 sps:$4 sm:$0xff]  }
 0x619   :  { %4900 = vmatpush1.bf16.xpose.msra.mxu1 %v8326_v27  ;;  %v8400_v27 = vld [vmem:[#allocation6 + $0x13d4] ss:$40 sps:$4 sm:$0xff]  }
 0x61a   :  { %4901 = vmatprep.subr.bf16.mxu1 %v8331_v28  ;;  %v8398_v28 = vld [vmem:[#allocation6 + $0x13d0] ss:$40 sps:$4 sm:$0xff]  }
 0x621   :  { %4902 = vmatpush1.bf16.xpose.msra.mxu1 %v8329_v30  ;;  %v5224_v30 = vld [vmem:[#allocation12] sm:$0xff] }
 0x622   :  { %4903 = vmatprep.subr.bf16.mxu1 %v8334_v31  ;;  %v5228_v31 = vld [vmem:[#allocation12 + $0x20] sm:$0xff] }
 0x629   :  { %4904 = vmatpush1.bf16.xpose.msra.mxu1 %v8332_v33  ;;  %v5232_v33 = vld [vmem:[#allocation12 + $0x40] sm:$0xff] }
 0x62a   :  { %4905 = vmatprep.subr.bf16.mxu1 %v8337_v34  ;;  %v7145_v34 = vcombine.low %v5224_v30, %v5228_v31 }
 0x631   :  { %4906 = vmatpush1.bf16.xpose.msra.mxu1 %v8335_v35  ;;  %v7146_v35 = vcombine.high %v5224_v30, %v5228_v31  ;;  %v9103_v30 = vsub.s32 2, %v9042_v53  ;;  %v8441_v31 = vld [vmem:[#allocation8] sm:$0xff] }
 0x632   :  { %4907 = vmatprep.subr.bf16.mxu1 %v8340_v42  ;;  %v5236_v42 = vld [vmem:[#allocation12 + $0x60] sm:$0xff] }
 0x633   :  { %6004 = vmatprep.subr.bf16.mxu0 %v7146_v35  ;;  %v9110_v35 = vsub.s32 4, %v9042_v53 }
 0x634   :  { %6005 = vmatpush1.bf16.xpose.msra.mxu0 %v7145_v34  ;;  %v9107_v34 = vsub.s32 3, %v9042_v53 }
 0x639   :  { %4908 = vmatpush1.bf16.xpose.msra.mxu1 %v8338_v43  ;;  %v7154_v43 = vcombine.high %v5232_v33, %v5236_v42 }
 0x63a   :  { %4909 = vmatprep.subr.bf16.mxu1 %v8343_v37  ;;  %v5240_v37 = vld [vmem:[#allocation12 + $0x80] sm:$0xff] }
 0x63b   :  { %6006 = vmatprep.subr.bf16.mxu0 %v7154_v43  ;;  %v886_v43 = vrot.slane %v8441_v31, %v9107_v34 }
 0x641   :  { %4910 = vmatpush1.bf16.xpose.msra.mxu1 %v8341_v45  ;;  %v5244_v45 = vld [vmem:[#allocation12 + $0xa0] sm:$0xff] }
 0x642   :  { %4911 = vmatprep.subr.bf16.mxu1 %v8346_v32  ;;  %v7153_v32 = vcombine.low %v5232_v33, %v5236_v42  ;;  %v882_v33 = vrot.slane %v8441_v31, %v9103_v30 }
 0x644   :  { %6007 = vmatpush1.bf16.xpose.msra.mxu0 %v7153_v32  ;;  %v9113_v42 = vadd.f32 %v9079_v10, %v882_v33  ;;  %v4993_v32 = vmul.f32 %v9058_v8, %v9058_v8  ;;  %v5000_v10 = vmul.f32 %v9060_v12, %v9060_v12 }
 0x649   :  { %4912 = vmatpush1.bf16.xpose.msra.mxu1 %v8344_v46  ;;  %v7162_v46 = vcombine.high %v5240_v37, %v5244_v45 }
 0x64a   :  { %4913 = vmatprep.subr.bf16.mxu1 %v8349_v29  ;;  %v5248_v29 = vld [vmem:[#allocation12 + $0xc0] sm:$0xff] }
 0x64b   :  { %6008 = vmatprep.subr.bf16.mxu0 %v7162_v46  ;;  %v890_v46 = vrot.slane %v8441_v31, %v9110_v35 }
 0x651   :  { %4914 = vmatpush1.bf16.xpose.msra.mxu1 %v8347_v47  ;;  %v5252_v47 = vld [vmem:[#allocation12 + $0xe0] sm:$0xff] }
 0x652   :  { %4915 = vmatprep.subr.bf16.mxu1 %v8352_v48  ;;  %v7161_v48 = vcombine.low %v5240_v37, %v5244_v45  ;;  %v9117_v37 = vadd.f32 %v9083_v36, %v882_v33  ;;  %v4992_v45 = vmul.f32 %v9055_v5, %v9055_v5  ;;  %v4971_v36 = vadd.f32 %v9058_v8, %v9055_v5 }
 0x654   :  { %6009 = vmatpush1.bf16.xpose.msra.mxu0 %v7161_v48  ;;  %v4994_v48 = vmul.f32 %v9113_v42, %v9113_v42 }
 0x659   :  { %4916 = vmatpush1.bf16.xpose.msra.mxu1 %v8350_v51  ;;  %v5256_v51 = vld [vmem:[#allocation12 + $0x100] sm:$0xff] }
 0x65a   :  { %4928 = vmatprep.subr.bf16.mxu1 %v8355_v52  ;;  %v5260_v52 = vld [vmem:[#allocation12 + $0x120] sm:$0xff] }
 0x660   :  { %4918 = vmatmul.mubr.bf16.vlgmr.msra.gmra.mrb[8].mxu1 %v9015_v38  ;;  %v8368_v38 = vld [vmem:[#allocation6 + $0x10b0] ss:$40 sps:$4 sm:$0xff]  }
 0x661   :  { %4929 = vmatpush1.bf16.xpose.msra.mxu1 %v8353_v54  ;;  %4960 = vmatprep.mubr.bf16.mxu1 %v9017_v41  ;;  %v8371_v41 = vld [vmem:[#allocation6 + $0x1100] ss:$40 sps:$4 sm:$0xff]   ;;  %v7169_v54 = vcombine.low %v5248_v29, %v5252_v47 }
 0x662   :  { %4930 = vmatprep.subr.bf16.mxu1 %v8358_v55  ;;  %v7178_v55 = vcombine.high %v5256_v51, %v5260_v52 }
 0x669   :  { %4931 = vmatpush1.bf16.xpose.msra.mxu1 %v8356_v57  ;;  %v5264_v57 = vld [vmem:[#allocation12 + $0x140] sm:$0xff] }
 0x66a   :  { %4932 = vmatprep.subr.bf16.mxu1 %v8361_v17  ;;  %v5268_v17 = vld [vmem:[#allocation12 + $0x160] sm:$0xff] }
 0x671   :  { %4933 = vmatpush1.bf16.xpose.msra.mxu1 %v8359_v23  ;;  %v7177_v23 = vcombine.low %v5256_v51, %v5260_v52  ;;  %v4980_v51 = vadd.f32 %v9062_v15, %v9060_v12  ;;  %v5002_v52 = vmul.f32 %v9117_v37, %v9117_v37 }
 0x672   :  { %4934 = vmatprep.subr.bf16.mxu1 %v8364_v63  ;;  %v7186_v63 = vcombine.high %v5264_v57, %v5268_v17 }
 0x679   :  { %4935 = vmatpush1.bf16.xpose.msra.mxu1 %v8362_v0  ;;  %v5272_v0 = vld [vmem:[#allocation12 + $0x180] sm:$0xff] }
 0x67a   :  { %4936 = vmatprep.subr.bf16.mxu1 %v8367_v1  ;;  %v5276_v1 = vld [vmem:[#allocation12 + $0x1a0] sm:$0xff] }
 0x681   :  { %4937 = vmatpush1.bf16.xpose.msra.mxu1 %v8365_v2  ;;  %v7185_v2 = vcombine.low %v5264_v57, %v5268_v17  ;;  %v4972_v57 = vadd.f32 %v9113_v42, %v4971_v36  ;;  %v9147_v17 = vadd.f32 %v9089_v59, %v890_v46 }
 0x682   :  { %4938 = vmatprep.subr.bf16.mxu1 %v8370_v3  ;;  %v7194_v3 = vcombine.high %v5272_v0, %v5276_v1 }
 0x689   :  { %4939 = vmatpush1.bf16.xpose.msra.mxu1 %v8368_v38  ;;  %v5280_v38 = vld [vmem:[#allocation12 + $0x1c0] sm:$0xff] }
 0x68a   :  { %4940 = vmatprep.subr.bf16.mxu1 %v8373_v4  ;;  %v5284_v4 = vld [vmem:[#allocation12 + $0x1e0] sm:$0xff] }
 0x691   :  { %4941 = vmatpush1.bf16.xpose.msra.mxu1 %v8371_v41  ;;  %v7193_v41 = vcombine.low %v5272_v0, %v5276_v1  ;;  %v9152_v0 = vadd.f32 %v9093_v61, %v890_v46  ;;  %v4996_v61 = vmul.f32 %v9147_v17, %v9147_v17 }
 0x692   :  { %4942 = vmatprep.subr.bf16.mxu1 %v8376_v6  ;;  %v7202_v6 = vcombine.high %v5280_v38, %v5284_v4 }
 0x699   :  { %4943 = vmatpush1.bf16.xpose.msra.mxu1 %v8374_v7  ;;  %v5288_v7 = vld [vmem:[#allocation12 + $0x200] sm:$0xff] }
 0x69a   :  { %4944 = vmatprep.subr.bf16.mxu1 %v8379_v9  ;;  %v5292_v9 = vld [vmem:[#allocation12 + $0x220] sm:$0xff] }
 0x6a1   :  { %4945 = vmatpush1.bf16.xpose.msra.mxu1 %v8377_v13  ;;  %v7201_v13 = vcombine.low %v5280_v38, %v5284_v4  ;;  %v9162_v38 = vsub.s32 7, %v9042_v53 }
 0x6a2   :  { %4946 = vmatprep.subr.bf16.mxu1 %v8382_v39  ;;  %v7210_v39 = vcombine.high %v5288_v7, %v5292_v9 }
 0x6a9   :  { %4947 = vmatpush1.bf16.xpose.msra.mxu1 %v8380_v40  ;;  %v5296_v40 = vld [vmem:[#allocation12 + $0x240] sm:$0xff] }
 0x6aa   :  { %4948 = vmatprep.subr.bf16.mxu1 %v8385_v16  ;;  %v5300_v16 = vld [vmem:[#allocation12 + $0x260] sm:$0xff] }
 0x6b1   :  { %4949 = vmatpush1.bf16.xpose.msra.mxu1 %v8383_v44  ;;  %v7209_v44 = vcombine.low %v5288_v7, %v5292_v9  ;;  %v5004_v7 = vmul.f32 %v9152_v0, %v9152_v0 }
 0x6b2   :  { %4950 = vmatprep.subr.bf16.mxu1 %v8388_v19  ;;  %v7218_v19 = vcombine.high %v5296_v40, %v5300_v16 }
 0x6b9   :  { %4951 = vmatpush1.bf16.xpose.msra.mxu1 %v8386_v20  ;;  %v5304_v20 = vld [vmem:[#allocation12 + $0x280] sm:$0xff] }
 0x6ba   :  { %4952 = vmatprep.subr.bf16.mxu1 %v8391_v21  ;;  %v5308_v21 = vld [vmem:[#allocation12 + $0x2a0] sm:$0xff] }
 0x6c1   :  { %4953 = vmatpush1.bf16.xpose.msra.mxu1 %v8389_v22  ;;  %v7217_v22 = vcombine.low %v5296_v40, %v5300_v16 }
 0x6c2   :  { %4954 = vmatprep.subr.bf16.mxu1 %v8394_v18  ;;  %v7226_v18 = vcombine.high %v5304_v20, %v5308_v21 }
 0x6c9   :  { %4955 = vmatpush1.bf16.xpose.msra.mxu1 %v8392_v25  ;;  %v5312_v25 = vld [vmem:[#allocation12 + $0x2c0] sm:$0xff] }
 0x6ca   :  { %4956 = vmatprep.subr.bf16.mxu1 %v8397_v24  ;;  %v5316_v24 = vld [vmem:[#allocation12 + $0x2e0] sm:$0xff] }
 0x6d1   :  { %4957 = vmatpush1.bf16.xpose.msra.mxu1 %v8395_v26  ;;  %v7225_v26 = vcombine.low %v5304_v20, %v5308_v21 }
 0x6d2   :  { %4958 = vmatprep.subr.bf16.mxu1 %v8400_v27  ;;  %v7234_v27 = vcombine.high %v5312_v25, %v5316_v24 }
 0x6d9   :  { %4959 = vmatpush1.bf16.xpose.msra.mxu1 %v8398_v28  ;;  %v7233_v28 = vcombine.low %v5312_v25, %v5316_v24 }
 0x6e0   :  { %4961 = vmatmul.mubr.bf16.vlgmr.msra.gmra.mrb[8].mxu1 %v9023_v49  ;;  %v7170_v49 = vcombine.high %v5248_v29, %v5252_v47  ;;  %v9125_v29 = vsub.s32 5, %v9042_v53  ;;  %v5001_v47 = vmul.f32 %v9062_v15, %v9062_v15 }
 0x6e2   :  { %6010 = vmatprep.subr.bf16.mxu0 %v7170_v49  ;;  %v9136_v49 = vadd.f32 %v9081_v11, %v886_v43  ;;  %v4981_v11 = vadd.f32 %v9117_v37, %v4980_v51 }
 0x6e3   :  { %6011 = vmatpush1.bf16.xpose.msra.mxu0 %v7169_v54  ;;  %v9143_v54 = vadd.f32 %v9085_v14, %v886_v43  ;;  %v9157_v14 = vsub.s32 6, %v9042_v53 }
 0x6e4   :  { %6012 = vmatprep.subr.bf16.mxu0 %v7178_v55  ;;  %v5008_v55 = vadd.f32 %v4993_v32, %v4992_v45  ;;  %v4973_v4 = vadd.f32 %v9136_v49, %v4972_v57 }
 0x6e5   :  { %v5003_v59 = vmul.f32 %v9143_v54, %v9143_v54 }
 0x6e6   :  { %v5009_v1 = vadd.f32 %v5008_v55, %v4994_v48  ;;  %v4974_v53 = vadd.f32 %v9147_v17, %v4973_v4  ;;  %v5332_v4 = vld [vmem:[#allocation12 + $0x360] sm:$0xff] }
 0x6eb   :  { %6013 = vmatpush1.bf16.xpose.msra.mxu0 %v7177_v23  ;;  %v894_v23 = vrot.slane %v8441_v31, %v9125_v29 }
 0x6ec   :  { %6014 = vmatprep.subr.bf16.mxu0 %v7186_v63  ;;  %v5017_v63 = vadd.f32 %v5001_v47, %v5000_v10 }
 0x6ed   :  { %v9174_v9 = vadd.f32 %v9095_v62, %v894_v23 }
 0x6ef   :  { %v5005_v21 = vmul.f32 %v9174_v9, %v9174_v9 }
 0x6f3   :  { %6015 = vmatpush1.bf16.xpose.msra.mxu0 %v7185_v2  ;;  %v4995_v2 = vmul.f32 %v9136_v49, %v9136_v49 }
 0x6f4   :  { %6016 = vmatprep.subr.bf16.mxu0 %v7194_v3  ;;  %v5018_v3 = vadd.f32 %v5017_v63, %v5002_v52 }
 0x6f6   :  { %v5019_v40 = vadd.f32 %v5018_v3, %v5003_v59  ;;  %v5328_v59 = vld [vmem:[#allocation12 + $0x340] sm:$0xff] }
 0x6f8   :  { %v5020_v20 = vadd.f32 %v5019_v40, %v5004_v7  ;;  %v5336_v7 = vld [vmem:[#allocation12 + $0x380] sm:$0xff] }
 0x6f9   :  { %v5348_v40 = vld [vmem:[#allocation12 + $0x3e0] sm:$0xff] }
 0x6fa   :  { %v5021_v10 = vadd.f32 %v5020_v20, %v5005_v21  ;;  %v9208_v20 = vld [vmem:[#allocation12 + $0x28] sm:$0xff] }
 0x6fb   :  { %6017 = vmatpush1.bf16.xpose.msra.mxu0 %v7193_v41  ;;  %v9168_v41 = vadd.f32 %v9091_v60, %v894_v23 }
 0x6fc   :  { %6018 = vmatprep.subr.bf16.mxu0 %v7202_v6  ;;  %v4982_v6 = vadd.f32 %v9143_v54, %v4981_v11  ;;  %v5320_v11 = vld [vmem:[#allocation12 + $0x300] sm:$0xff] }
 0x6fd   :  { %v4997_v60 = vmul.f32 %v9168_v41, %v9168_v41  ;;  %v4975_v25 = vadd.f32 %v9168_v41, %v4974_v53  ;;  %v5344_v53 = vld [vmem:[#allocation12 + $0x3c0] sm:$0xff] }
 0x6fe   :  { %v4983_v16 = vadd.f32 %v9152_v0, %v4982_v6  ;;  %v7249_v6 = vcombine.low %v5328_v59, %v5332_v4 }
 0x700   :  { %v4984_v24 = vadd.f32 %v9174_v9, %v4983_v16 }
 0x703   :  { %6019 = vmatpush1.bf16.xpose.msra.mxu0 %v7201_v13  ;;  %v5010_v13 = vadd.f32 %v5009_v1, %v4995_v2  ;;  %v5324_v1 = vld [vmem:[#allocation12 + $0x320] sm:$0xff] }
 0x704   :  { %6020 = vmatprep.subr.bf16.mxu0 %v7210_v39  ;;  %v898_v39 = vrot.slane %v8441_v31, %v9157_v14  ;;  %v7242_v2 = vcombine.high %v5320_v11, %v5324_v1  ;;  %v7241_v3 = vcombine.low %v5320_v11, %v5324_v1 }
 0x70b   :  { %6021 = vmatpush1.bf16.xpose.msra.mxu0 %v7209_v44  ;;  %v902_v44 = vrot.slane %v8441_v31, %v9162_v38 }
 0x70c   :  { %6022 = vmatprep.subr.bf16.mxu0 %v7218_v19  ;;  %v5011_v19 = vadd.f32 %v5010_v13, %v4996_v61  ;;  %v7250_v61 = vcombine.high %v5328_v59, %v5332_v4  ;;  %v5340_v13 = vld [vmem:[#allocation12 + $0x3a0] sm:$0xff] }
 0x70d   :  { %v7257_v16 = vcombine.low %v5336_v7, %v5340_v13 }
 0x70e   :  { %v5012_v45 = vadd.f32 %v5011_v19, %v4997_v60  ;;  %v7265_v60 = vcombine.low %v5344_v53, %v5348_v40  ;;  %v9206_v19 = vld [vmem:[#allocation12 + $0x8] sm:$0xff] }
 0x70f   :  { %v7148_v21 = vcombine.high %v9206_v19, %v9208_v20 }
 0x713   :  { %6023 = vmatpush1.bf16.xpose.msra.mxu0 %v7217_v22 }
 0x714   :  { %6024 = vmatprep.subr.bf16.mxu0 %v7226_v18 }
 0x71b   :  { %6025 = vmatpush1.bf16.xpose.msra.mxu0 %v7225_v26 }
 0x71c   :  { %6026 = vmatprep.subr.bf16.mxu0 %v7234_v27 }
 0x723   :  { %6027 = vmatpush1.bf16.xpose.msra.mxu0 %v7233_v28 }
 0x724   :  { %6028 = vmatprep.subr.bf16.mxu0 %v7242_v2 }
 0x72b   :  { %6029 = vmatpush1.bf16.xpose.msra.mxu0 %v7241_v3 }
 0x72c   :  { %6030 = vmatprep.subr.bf16.mxu0 %v7250_v61 }
 0x733   :  { %6031 = vmatpush1.bf16.xpose.msra.mxu0 %v7249_v6 }
 0x7b3   :  { %v4962_v62 = vpop.f32.mrb[8].mxu1 }
 0x7b4   :  { %v9184_v22 = vadd.f32 %v4962_v62, %v898_v39  ;;  %v4964_v18 = vpop.f32.mrb[9].mxu1  ;;  %v7147_v62 = vcombine.low %v9206_v19, %v9208_v20 }
 0x7b5   :  { %v9188_v26 = vadd.f32 %v4964_v18, %v902_v44  ;;  %v4966_v27 = vpop.f32.mrb[10].mxu1 }
 0x7b6   :  { %v9190_v28 = vadd.f32 %v4966_v27, %v898_v39  ;;  %v4968_v31 = vpop.f32.mrb[11].mxu1  ;;  %v4976_v33 = vadd.f32 %v9184_v22, %v4975_v25  ;;  %v4998_v43 = vmul.f32 %v9184_v22, %v9184_v22  ;;  %v7258_v39 = vcombine.high %v5336_v7, %v5340_v13 }
 0x7b7   :  { %v9195_v32 = vadd.f32 %v4968_v31, %v902_v44  ;;  %v4999_v46 = vmul.f32 %v9188_v26, %v9188_v26  ;;  %v7266_v44 = vcombine.high %v5344_v53, %v5348_v40 }
 0x7b8   :  { %v5006_v47 = vmul.f32 %v9190_v28, %v9190_v28  ;;  %v4977_v36 = vadd.f32 %v9188_v26, %v4976_v33  ;;  %v5013_v48 = vadd.f32 %v5012_v45, %v4998_v43  ;;  %v4985_v51 = vadd.f32 %v9190_v28, %v4984_v24  ;;  %6032 = vmatprep.subr.bf16.mxu0 %v7258_v39 }
 0x7b9   :  { %v5007_v55 = vmul.f32 %v9195_v32, %v9195_v32  ;;  %6033 = vmatpush1.bf16.xpose.msra.mxu0 %v7257_v16 }
 0x7ba   :  { %4978 = vadd.xlane.f32.xlu0 %v4977_v36  ;;  %v5014_v52 = vadd.f32 %v5013_v48, %v4999_v46  ;;  %v5022_v57 = vadd.f32 %v5021_v10, %v5006_v47  ;;  %v4986_v23 = vadd.f32 %v9195_v32, %v4985_v51  ;;  %6034 = vmatprep.subr.bf16.mxu0 %v7266_v44  ;;  %v5068_v48 = vld [vmem:[#allocation9] sm:$0xff]  ;;  %v5126_v51 = vld [vmem:[#allocation11] sm:$0xff] }
 0x7bb   :  { %v9230_v11 = vrot.slane %v5126_v51, %v9110_v35  ;;  %v9233_v1 = vrot.slane %v5068_v48, %v9157_v14  ;;  %v9236_v2 = vrot.slane %v5126_v51, %v9157_v14  ;;  %v5077_v3 = vrot.slane %v5068_v48, %v9048_v58 }
 0x7bc   :  { %5015 = vadd.xlane.f32.xlu1 %v5014_v52  ;;  %v5023_v63 = vadd.f32 %v5022_v57, %v5007_v55  ;;  %v5081_v57 = vrot.slane %v5068_v48, %v9103_v30  ;;  %v5073_v59 = vrot.slane %v5068_v48, %v9045_v56  ;;  %v5135_v4 = vrot.slane %v5126_v51, %v9048_v58 }
 0x7bd   :  { %v5131_v61 = vrot.slane %v5126_v51, %v9045_v56  ;;  %v9245_v6 = vrot.slane %v5068_v48, %v9125_v29  ;;  %v9250_v14 = vrot.slane %v5126_v51, %v9125_v29  ;;  %v9253_v13 = vrot.slane %v5068_v48, %v9162_v38 }
 0x7be   :  { %4987 = vadd.xlane.f32.xlu0 %v4986_v23  ;;  %v9224_v23 = vrot.slane %v5126_v51, %v9103_v30  ;;  %v5085_v30 = vrot.slane %v5068_v48, %v9107_v34  ;;  %v9256_v53 = vrot.slane %v5126_v51, %v9162_v38 }
 0x7c0   :  { %5024 = vadd.xlane.f32.xlu1 %v5023_v63  ;;  %v9227_v63 = vrot.slane %v5068_v48, %v9110_v35  ;;  %v5143_v35 = vrot.slane %v5126_v51, %v9107_v34 }
 0x7c1   :  { %6035 = vmatpush1.bf16.xpose.msra.mxu0 %v7265_v60 }
 0x7c2   :  { %6047 = vmatprep.subr.bf16.mxu0 %v7148_v21 }
 0x847   :  { %v4979_v18 = vpop.xlane.xlu0 %4978 }
 0x848   :  { %v9214_v25 = vmul.f32 0.0009765625, %v4979_v18 }
 0x849   :  { %v5016_v24 = vpop.xlane.xlu1 %5015 }
 0x84a   :  { %v5026_v27 = vmul.f32 0.0009765625, %v5016_v24  ;;  %v5028_v31 = vmul.f32 %v9214_v25, %v9214_v25  ;;  %v5037_v7 = vsub.f32 %v9058_v8, %v9214_v25  ;;  %v5036_v39 = vsub.f32 %v9055_v5, %v9214_v25 }
 0x84b   :  { %v4988_v33 = vpop.xlane.xlu0 %4987  ;;  %v5039_v34 = vsub.f32 %v9136_v49, %v9214_v25  ;;  %v5038_v40 = vsub.f32 %v9113_v42, %v9214_v25  ;;  %v5041_v8 = vsub.f32 %v9168_v41, %v9214_v25  ;;  %v5040_v16 = vsub.f32 %v9147_v17, %v9214_v25 }
 0x84c   :  { %v5030_v43 = vsub.f32 %v5026_v27, %v5028_v31  ;;  %v9218_v45 = vmul.f32 0.0009765625, %v4988_v33  ;;  %v5043_v38 = vsub.f32 %v9188_v26, %v9214_v25  ;;  %v5042_v5 = vsub.f32 %v9184_v22, %v9214_v25 }
 0x84d   :  { %v5025_v46 = vpop.xlane.xlu1 %5024 }
 0x84e   :  { %v5032_v10 = vadd.f32 1e-05, %v5030_v43  ;;  %v5027_v47 = vmul.f32 0.0009765625, %v5025_v46  ;;  %v5029_v36 = vmul.f32 %v9218_v45, %v9218_v45  ;;  %v5045_v29 = vsub.f32 %v9062_v15, %v9218_v45 }
 0x84f   :  { %v5044_v49 = vsub.f32 %v9060_v12, %v9218_v45  ;;  %v5047_v42 = vsub.f32 %v9143_v54, %v9218_v45  ;;  %v5046_v41 = vsub.f32 %v9117_v37, %v9218_v45  ;;  %v5049_v15 = vsub.f32 %v9174_v9, %v9218_v45 }
 0x850   :  { %8429 = vrsqrt.f32 %v5032_v10  ;;  %v5031_v52 = vsub.f32 %v5027_v47, %v5029_v36  ;;  %v5048_v22 = vsub.f32 %v9152_v0, %v9218_v45  ;;  %v5051_v12 = vsub.f32 %v9195_v32, %v9218_v45 }
 0x852   :  { %v5033_v55 = vadd.f32 1e-05, %v5031_v52 }
 0x854   :  { %8431 = vrsqrt.f32 %v5033_v55 }
 0x85a   :  { %v8430_v44 = vpop.eup %8429 }
 0x85b   :  { %v5053_v17 = vmul.f32 %v8430_v44, %v5037_v7  ;;  %v5052_v60 = vmul.f32 %v8430_v44, %v5036_v39  ;;  %v5055_v21 = vmul.f32 %v8430_v44, %v5039_v34  ;;  %v5054_v26 = vmul.f32 %v8430_v44, %v5038_v40 }
 0x85c   :  { %v5057_v18 = vmul.f32 %v8430_v44, %v5041_v8  ;;  %v5056_v25 = vmul.f32 %v8430_v44, %v5040_v16  ;;  %v5059_v43 = vmul.f32 %v8430_v44, %v5043_v38  ;;  %v5058_v46 = vmul.f32 %v8430_v44, %v5042_v5 }
 0x85d   :  { %v5111_v24 = vmul.f32 %v5077_v3, %v5053_v17  ;;  %v5110_v54 = vmul.f32 %v5073_v59, %v5052_v60  ;;  %v5113_v27 = vmul.f32 %v5085_v30, %v5055_v21  ;;  %v5112_v31 = vmul.f32 %v5081_v57, %v5054_v26  ;;  %v5233_v17 = vld [vmem:[#allocation12 + $0x48] sm:$0xff] }
 0x85e   :  { %v9286_v37 = vpop.eup %8431  ;;  %v5115_v9 = vmul.f32 %v9245_v6, %v5057_v18  ;;  %v5114_v33 = vmul.f32 %v9227_v63, %v5056_v25 }
 0x85f   :  { %v5061_v10 = vmul.f32 %v9286_v37, %v5045_v29  ;;  %v5169_v47 = vadd.f32 %v5135_v4, %v5111_v24  ;;  %v5060_v0 = vmul.f32 %v9286_v37, %v5044_v49  ;;  %v5168_v36 = vadd.f32 %v5131_v61, %v5110_v54 }
 0x860   :  { %v5063_v32 = vmul.f32 %v9286_v37, %v5047_v42  ;;  %v5171_v48 = vadd.f32 %v5143_v35, %v5113_v27  ;;  %v5062_v51 = vmul.f32 %v9286_v37, %v5046_v41  ;;  %v5170_v52 = vadd.f32 %v9224_v23, %v5112_v31 }
 0x861   :  { %v5119_v55 = vmul.f32 %v5077_v3, %v5061_v10  ;;  %v5185_v7 = vmax.f32 %v5169_v47, 0.0  ;;  %v5118_v39 = vmul.f32 %v5073_v59, %v5060_v0  ;;  %v5184_v34 = vmax.f32 %v5168_v36, 0.0 }
 0x862   :  { %v5121_v40 = vmul.f32 %v5085_v30, %v5063_v32  ;;  %v5187_v8 = vmax.f32 %v5171_v48, 0.0  ;;  %v5120_v16 = vmul.f32 %v5081_v57, %v5062_v51  ;;  %v5186_v38 = vmax.f32 %v5170_v52, 0.0  ;;  %v5253_v52 = vld [vmem:[#allocation12 + $0xe8] sm:$0xff] }
 0x863   :  { %v5177_v29 = vadd.f32 %v5135_v4, %v5119_v55  ;;  %5201 = vst [vmem:[#allocation23 + $0x8] sm:$0xff] %v5185_v7  ;;  %v5176_v5 = vadd.f32 %v5131_v61, %v5118_v39  ;;  %5200 = vst [vmem:[#allocation23] sm:$0xff] %v5184_v34  ;;  %v5065_v44 = vmul.f32 %v9286_v37, %v5049_v15  ;;  %v5237_v4 = vld [vmem:[#allocation12 + $0x68] sm:$0xff] }
 0x864   :  { %v5173_v49 = vadd.f32 %v9250_v14, %v5115_v9  ;;  %v5179_v42 = vadd.f32 %v5143_v35, %v5121_v40  ;;  %5203 = vst [vmem:[#allocation23 + $0x18] sm:$0xff] %v5187_v8  ;;  %v5178_v41 = vadd.f32 %v9224_v23, %v5120_v16  ;;  %5202 = vst [vmem:[#allocation23 + $0x10] sm:$0xff] %v5186_v38  ;;  %v5261_v39 = vld [vmem:[#allocation12 + $0x128] sm:$0xff] }
 0x865   :  { %v5064_v3 = vmul.f32 %v9286_v37, %v5048_v22  ;;  %v5172_v59 = vadd.f32 %v9230_v11, %v5114_v33  ;;  %v5193_v30 = vmax.f32 %v5177_v29, 0.0  ;;  %v5192_v57 = vmax.f32 %v5176_v5, 0.0  ;;  %v5269_v16 = vld [vmem:[#allocation12 + $0x168] sm:$0xff] }
 0x866   :  { %v5123_v61 = vmul.f32 %v9245_v6, %v5065_v44  ;;  %v5189_v60 = vmax.f32 %v5173_v49, 0.0  ;;  %v5195_v21 = vmax.f32 %v5179_v42, 0.0  ;;  %v5194_v15 = vmax.f32 %v5178_v41, 0.0  ;;  %v5273_v5 = vld [vmem:[#allocation12 + $0x188] sm:$0xff] }
 0x867   :  { %v5122_v26 = vmul.f32 %v9227_v63, %v5064_v3  ;;  %v5188_v35 = vmax.f32 %v5172_v59, 0.0  ;;  %5209 = vst [vmem:[#allocation23 + $0x48] sm:$0xff] %v5193_v30  ;;  %v5217_v18 = vpack.c.bf16 %v5193_v30, %v5185_v7  ;;  %5208 = vst [vmem:[#allocation23 + $0x40] sm:$0xff] %v5192_v57  ;;  %v5216_v23 = vpack.c.bf16 %v5192_v57, %v5184_v34  ;;  %v5277_v44 = vld [vmem:[#allocation12 + $0x1a8] sm:$0xff] }
 0x868   :  { %v5181_v22 = vadd.f32 %v9250_v14, %v5123_v61  ;;  %5205 = vst [vmem:[#allocation23 + $0x28] sm:$0xff] %v5189_v60  ;;  %v5067_v25 = vmul.f32 %v9286_v37, %v5051_v12  ;;  %5211 = vst [vmem:[#allocation23 + $0x58] sm:$0xff] %v5195_v21  ;;  %v7156_v24 = vcombine.high %v5233_v17, %v5237_v4  ;;  %v5281_v41 = vld [vmem:[#allocation12 + $0x1c8] sm:$0xff] }
 0x869   :  { %5210 = vst [vmem:[#allocation23 + $0x50] sm:$0xff] %v5194_v15  ;;  %v9304_v54 = vpack.c.bf16 %v5194_v15, %v5186_v38  ;;  %v5180_v6 = vadd.f32 %v9230_v11, %v5122_v26  ;;  %5204 = vst [vmem:[#allocation23 + $0x20] sm:$0xff] %v5188_v35  ;;  %v5050_v63 = vsub.f32 %v9190_v28, %v9218_v45  ;;  %6036 = vmatprep.mubr.bf16.mxu0 %v5217_v18  ;;  %v5285_v3 = vld [vmem:[#allocation12 + $0x1e8] sm:$0xff] }
 0x86a   :  { %v5219_v27 = vpack.c.bf16 %v5195_v21, %v5187_v8  ;;  %v5197_v31 = vmax.f32 %v5181_v22, 0.0  ;;  %v5117_v9 = vmul.f32 %v9253_v13, %v5059_v43  ;;  %v5125_v14 = vmul.f32 %v9253_v13, %v5067_v25  ;;  %6037 = vmatmul.mubr.bf16.vlgmr.msra.gmra.mrb[8].mxu0 %v5216_v23  ;;  %v5241_v43 = vld [vmem:[#allocation12 + $0x88] sm:$0xff] }
 0x86b   :  { %v5196_v12 = vmax.f32 %v5180_v6, 0.0  ;;  %v5066_v33 = vmul.f32 %v9286_v37, %v5050_v63  ;;  %v5116_v10 = vmul.f32 %v9233_v1, %v5058_v46  ;;  %6048 = vmatpush1.bf16.xpose.msra.mxu0 %v7147_v62  ;;  %v5245_v46 = vld [vmem:[#allocation12 + $0xa8] sm:$0xff]  ;;  %v7155_v62 = vcombine.low %v5233_v17, %v5237_v4 }
 0x86c   :  { %6079 = vmatprep.mubr.bf16.mxu0 %v5219_v27  ;;  %5213 = vst [vmem:[#allocation23 + $0x68] sm:$0xff] %v5197_v31  ;;  %v9316_v28 = vpack.c.bf16 %v5197_v31, %v5189_v60  ;;  %v5175_v45 = vadd.f32 %v9256_v53, %v5117_v9  ;;  %v5183_v11 = vadd.f32 %v9256_v53, %v5125_v14  ;;  %v5265_v8 = vld [vmem:[#allocation12 + $0x148] sm:$0xff] }
 0x86d   :  { %6049 = vmatprep.subr.bf16.mxu0 %v7156_v24  ;;  %5212 = vst [vmem:[#allocation23 + $0x60] sm:$0xff] %v5196_v12  ;;  %v9320_v13 = vpack.c.bf16 %v5196_v12, %v5188_v35  ;;  %v5124_v37 = vmul.f32 %v9233_v1, %v5066_v33  ;;  %v5174_v19 = vadd.f32 %v9236_v2, %v5116_v10  ;;  %v5249_v1 = vld [vmem:[#allocation12 + $0xc8] sm:$0xff] }
 0x86e   :  { %v5191_v47 = vmax.f32 %v5175_v45, 0.0  ;;  %v5199_v0 = vmax.f32 %v5183_v11, 0.0  ;;  %v7164_v32 = vcombine.high %v5241_v43, %v5245_v46  ;;  %v7163_v55 = vcombine.low %v5241_v43, %v5245_v46  ;;  %v5289_v57 = vld [vmem:[#allocation12 + $0x208] sm:$0xff] }
 0x86f   :  { %v5182_v20 = vadd.f32 %v9236_v2, %v5124_v37  ;;  %v5190_v53 = vmax.f32 %v5174_v19, 0.0  ;;  %v7172_v7 = vcombine.high %v5249_v1, %v5253_v52  ;;  %v5257_v2 = vld [vmem:[#allocation12 + $0x108] sm:$0xff]  ;;  %v7171_v34 = vcombine.low %v5249_v1, %v5253_v52  ;;  %v5234_v1 = vld [vmem:[#allocation12 + $0x50] sm:$0xff] }
 0x870   :  { %5207 = vst [vmem:[#allocation23 + $0x38] sm:$0xff] %v5191_v47  ;;  %5215 = vst [vmem:[#allocation23 + $0x78] sm:$0xff] %v5199_v0  ;;  %v9325_v36 = vpack.c.bf16 %v5199_v0, %v5191_v47  ;;  %v7180_v40 = vcombine.high %v5257_v2, %v5261_v39  ;;  %v7179_v38 = vcombine.low %v5257_v2, %v5261_v39  ;;  %v5293_v17 = vld [vmem:[#allocation12 + $0x228] sm:$0xff]  ;;  %v5238_v52 = vld [vmem:[#allocation12 + $0x70] sm:$0xff] }
 0x871   :  { %v5198_v48 = vmax.f32 %v5182_v20, 0.0  ;;  %5206 = vst [vmem:[#allocation23 + $0x30] sm:$0xff] %v5190_v53  ;;  %v7188_v29 = vcombine.high %v5265_v8, %v5269_v16  ;;  %v7187_v49 = vcombine.low %v5265_v8, %v5269_v16  ;;  %v7196_v42 = vcombine.high %v5273_v5, %v5277_v44  ;;  %v5297_v60 = vld [vmem:[#allocation12 + $0x248] sm:$0xff]  ;;  %v5242_v2 = vld [vmem:[#allocation12 + $0x90] sm:$0xff] }
 0x872   :  { %v7195_v59 = vcombine.low %v5273_v5, %v5277_v44  ;;  %v7204_v30 = vcombine.high %v5281_v41, %v5285_v3  ;;  %v7203_v4 = vcombine.low %v5281_v41, %v5285_v3  ;;  %v7212_v61 = vcombine.high %v5289_v57, %v5293_v17  ;;  %v5301_v21 = vld [vmem:[#allocation12 + $0x268] sm:$0xff]  ;;  %v5246_v39 = vld [vmem:[#allocation12 + $0xb0] sm:$0xff] }
 0x873   :  { %5214 = vst [vmem:[#allocation23 + $0x70] sm:$0xff] %v5198_v48  ;;  %v9327_v51 = vpack.c.bf16 %v5198_v48, %v5190_v53  ;;  %6050 = vmatpush1.bf16.xpose.msra.mxu0 %v7155_v62  ;;  %v7211_v15 = vcombine.low %v5289_v57, %v5293_v17  ;;  %v7220_v26 = vcombine.high %v5297_v60, %v5301_v21  ;;  %v5305_v35 = vld [vmem:[#allocation12 + $0x288] sm:$0xff]  ;;  %v5226_v62 = vld [vmem:[#allocation12 + $0x10] sm:$0xff] }
 0x874   :  { %6051 = vmatprep.subr.bf16.mxu0 %v7164_v32  ;;  %v5309_v18 = vld [vmem:[#allocation12 + $0x2a8] sm:$0xff]  ;;  %v7219_v23 = vcombine.low %v5297_v60, %v5301_v21  ;;  %v5230_v53 = vld [vmem:[#allocation12 + $0x30] sm:$0xff] }
 0x875   :  { %v7228_v22 = vcombine.high %v5305_v35, %v5309_v18  ;;  %v5313_v25 = vld [vmem:[#allocation12 + $0x2c8] sm:$0xff]  ;;  %v7227_v6 = vcombine.low %v5305_v35, %v5309_v18  ;;  %v7150_v48 = vcombine.high %v5226_v62, %v5230_v53  ;;  %v5250_v8 = vld [vmem:[#allocation12 + $0xd0] sm:$0xff] }
 0x876   :  { %v5317_v24 = vld [vmem:[#allocation12 + $0x2e8] sm:$0xff]  ;;  %v5254_v16 = vld [vmem:[#allocation12 + $0xf0] sm:$0xff] }
 0x877   :  { %v7236_v63 = vcombine.high %v5313_v25, %v5317_v24  ;;  %v5321_v27 = vld [vmem:[#allocation12 + $0x308] sm:$0xff]  ;;  %v7235_v9 = vcombine.low %v5313_v25, %v5317_v24  ;;  %v5258_v5 = vld [vmem:[#allocation12 + $0x110] sm:$0xff] }
 0x878   :  { %v5325_v31 = vld [vmem:[#allocation12 + $0x328] sm:$0xff]  ;;  %v5262_v44 = vld [vmem:[#allocation12 + $0x130] sm:$0xff] }
 0x879   :  { %v7244_v14 = vcombine.high %v5321_v27, %v5325_v31  ;;  %v5329_v12 = vld [vmem:[#allocation12 + $0x348] sm:$0xff]  ;;  %v7243_v10 = vcombine.low %v5321_v27, %v5325_v31  ;;  %v7181_v41 = vcombine.low %v5258_v5, %v5262_v44 }
 0x87a   :  { %v5333_v33 = vld [vmem:[#allocation12 + $0x368] sm:$0xff] }
 0x87b   :  { %6052 = vmatpush1.bf16.xpose.msra.mxu0 %v7163_v55  ;;  %v7252_v45 = vcombine.high %v5329_v12, %v5333_v33  ;;  %v5337_v11 = vld [vmem:[#allocation12 + $0x388] sm:$0xff]  ;;  %v7251_v43 = vcombine.low %v5329_v12, %v5333_v33  ;;  %v7149_v55 = vcombine.low %v5226_v62, %v5230_v53 }
 0x87c   :  { %6053 = vmatprep.subr.bf16.mxu0 %v7172_v7  ;;  %v5341_v37 = vld [vmem:[#allocation12 + $0x3a8] sm:$0xff]  ;;  %v7158_v7 = vcombine.high %v5234_v1, %v5238_v52 }
 0x87d   :  { %v7260_v46 = vcombine.high %v5337_v11, %v5341_v37  ;;  %v5345_v47 = vld [vmem:[#allocation12 + $0x3c8] sm:$0xff]  ;;  %v7259_v19 = vcombine.low %v5337_v11, %v5341_v37 }
 0x87e   :  { %v5349_v0 = vld [vmem:[#allocation12 + $0x3e8] sm:$0xff] }
 0x87f   :  { %v7268_v20 = vcombine.high %v5345_v47, %v5349_v0  ;;  %v7267_v32 = vcombine.low %v5345_v47, %v5349_v0 }
 0x883   :  { %6054 = vmatpush1.bf16.xpose.msra.mxu0 %v7171_v34  ;;  %v7157_v34 = vcombine.low %v5234_v1, %v5238_v52 }
 0x884   :  { %6055 = vmatprep.subr.bf16.mxu0 %v7180_v40  ;;  %v7166_v40 = vcombine.high %v5242_v2, %v5246_v39 }
 0x88b   :  { %6056 = vmatpush1.bf16.xpose.msra.mxu0 %v7179_v38  ;;  %v7165_v38 = vcombine.low %v5242_v2, %v5246_v39 }
 0x88c   :  { %6057 = vmatprep.subr.bf16.mxu0 %v7188_v29  ;;  %v7174_v29 = vcombine.high %v5250_v8, %v5254_v16 }
 0x893   :  { %6058 = vmatpush1.bf16.xpose.msra.mxu0 %v7187_v49  ;;  %v7173_v49 = vcombine.low %v5250_v8, %v5254_v16 }
 0x894   :  { %6059 = vmatprep.subr.bf16.mxu0 %v7196_v42  ;;  %v5270_v42 = vld [vmem:[#allocation12 + $0x170] sm:$0xff] }
 0x89b   :  { %6060 = vmatpush1.bf16.xpose.msra.mxu0 %v7195_v59  ;;  %v5274_v59 = vld [vmem:[#allocation12 + $0x190] sm:$0xff] }
 0x89c   :  { %6061 = vmatprep.subr.bf16.mxu0 %v7204_v30  ;;  %v5278_v30 = vld [vmem:[#allocation12 + $0x1b0] sm:$0xff] }
 0x89d   :  { %v7198_v17 = vcombine.high %v5274_v59, %v5278_v30  ;;  %v7197_v60 = vcombine.low %v5274_v59, %v5278_v30  ;;  %v5271_v30 = vld [vmem:[#allocation12 + $0x178] sm:$0xff] }
 0x8a3   :  { %6062 = vmatpush1.bf16.xpose.msra.mxu0 %v7203_v4  ;;  %v5282_v4 = vld [vmem:[#allocation12 + $0x1d0] sm:$0xff] }
 0x8a4   :  { %6063 = vmatprep.subr.bf16.mxu0 %v7212_v61  ;;  %v5286_v61 = vld [vmem:[#allocation12 + $0x1f0] sm:$0xff] }
 0x8a5   :  { %v7206_v21 = vcombine.high %v5282_v4, %v5286_v61  ;;  %v7205_v35 = vcombine.low %v5282_v4, %v5286_v61  ;;  %v5275_v4 = vld [vmem:[#allocation12 + $0x198] sm:$0xff] }
 0x8a6   :  { %v5279_v61 = vld [vmem:[#allocation12 + $0x1b8] sm:$0xff] }
 0x8ab   :  { %6064 = vmatpush1.bf16.xpose.msra.mxu0 %v7211_v15  ;;  %v5290_v15 = vld [vmem:[#allocation12 + $0x210] sm:$0xff] }
 0x8ac   :  { %6065 = vmatprep.subr.bf16.mxu0 %v7220_v26  ;;  %v5294_v26 = vld [vmem:[#allocation12 + $0x230] sm:$0xff] }
 0x8ad   :  { %v7214_v18 = vcombine.high %v5290_v15, %v5294_v26  ;;  %v7213_v25 = vcombine.low %v5290_v15, %v5294_v26  ;;  %v5283_v15 = vld [vmem:[#allocation12 + $0x1d8] sm:$0xff] }
 0x8ae   :  { %v5287_v26 = vld [vmem:[#allocation12 + $0x1f8] sm:$0xff] }
 0x8b3   :  { %6066 = vmatpush1.bf16.xpose.msra.mxu0 %v7219_v23  ;;  %v5298_v23 = vld [vmem:[#allocation12 + $0x250] sm:$0xff] }
 0x8b4   :  { %6067 = vmatprep.subr.bf16.mxu0 %v7228_v22  ;;  %v5302_v22 = vld [vmem:[#allocation12 + $0x270] sm:$0xff] }
 0x8b5   :  { %v7222_v24 = vcombine.high %v5298_v23, %v5302_v22  ;;  %v7221_v27 = vcombine.low %v5298_v23, %v5302_v22  ;;  %v5291_v23 = vld [vmem:[#allocation12 + $0x218] sm:$0xff] }
 0x8b6   :  { %v5295_v22 = vld [vmem:[#allocation12 + $0x238] sm:$0xff] }
 0x8bb   :  { %6068 = vmatpush1.bf16.xpose.msra.mxu0 %v7227_v6  ;;  %v5306_v6 = vld [vmem:[#allocation12 + $0x290] sm:$0xff] }
 0x8bc   :  { %6069 = vmatprep.subr.bf16.mxu0 %v7236_v63  ;;  %v5310_v63 = vld [vmem:[#allocation12 + $0x2b0] sm:$0xff] }
 0x8bd   :  { %v7230_v31 = vcombine.high %v5306_v6, %v5310_v63  ;;  %v7229_v12 = vcombine.low %v5306_v6, %v5310_v63  ;;  %v5299_v6 = vld [vmem:[#allocation12 + $0x258] sm:$0xff] }
 0x8be   :  { %v5303_v63 = vld [vmem:[#allocation12 + $0x278] sm:$0xff] }
 0x8c3   :  { %6070 = vmatpush1.bf16.xpose.msra.mxu0 %v7235_v9  ;;  %v5314_v9 = vld [vmem:[#allocation12 + $0x2d0] sm:$0xff] }
 0x8c4   :  { %6071 = vmatprep.subr.bf16.mxu0 %v7244_v14  ;;  %v5318_v14 = vld [vmem:[#allocation12 + $0x2f0] sm:$0xff] }
 0x8c5   :  { %v7238_v33 = vcombine.high %v5314_v9, %v5318_v14  ;;  %v7237_v11 = vcombine.low %v5314_v9, %v5318_v14  ;;  %v5307_v9 = vld [vmem:[#allocation12 + $0x298] sm:$0xff] }
 0x8c6   :  { %v5311_v14 = vld [vmem:[#allocation12 + $0x2b8] sm:$0xff] }
 0x8cb   :  { %6072 = vmatpush1.bf16.xpose.msra.mxu0 %v7243_v10  ;;  %v5322_v10 = vld [vmem:[#allocation12 + $0x310] sm:$0xff] }
 0x8cc   :  { %6073 = vmatprep.subr.bf16.mxu0 %v7252_v45  ;;  %v5326_v45 = vld [vmem:[#allocation12 + $0x330] sm:$0xff] }
 0x8cd   :  { %v7246_v37 = vcombine.high %v5322_v10, %v5326_v45  ;;  %v7245_v47 = vcombine.low %v5322_v10, %v5326_v45  ;;  %v5315_v10 = vld [vmem:[#allocation12 + $0x2d8] sm:$0xff] }
 0x8ce   :  { %v5319_v45 = vld [vmem:[#allocation12 + $0x2f8] sm:$0xff] }
 0x8d3   :  { %6074 = vmatpush1.bf16.xpose.msra.mxu0 %v7251_v43  ;;  %v5330_v43 = vld [vmem:[#allocation12 + $0x350] sm:$0xff] }
 0x8d4   :  { %6075 = vmatprep.subr.bf16.mxu0 %v7260_v46  ;;  %v5334_v46 = vld [vmem:[#allocation12 + $0x370] sm:$0xff] }
 0x8d5   :  { %v7254_v0 = vcombine.high %v5330_v43, %v5334_v46  ;;  %v7253_v62 = vcombine.low %v5330_v43, %v5334_v46  ;;  %v5323_v43 = vld [vmem:[#allocation12 + $0x318] sm:$0xff] }
 0x8d6   :  { %v5327_v46 = vld [vmem:[#allocation12 + $0x338] sm:$0xff] }
 0x8db   :  { %6076 = vmatpush1.bf16.xpose.msra.mxu0 %v7259_v19  ;;  %v5338_v19 = vld [vmem:[#allocation12 + $0x390] sm:$0xff] }
 0x8dc   :  { %6077 = vmatprep.subr.bf16.mxu0 %v7268_v20  ;;  %v5342_v20 = vld [vmem:[#allocation12 + $0x3b0] sm:$0xff] }
 0x8dd   :  { %v7262_v53 = vcombine.high %v5338_v19, %v5342_v20  ;;  %v7261_v1 = vcombine.low %v5338_v19, %v5342_v20  ;;  %v5331_v19 = vld [vmem:[#allocation12 + $0x358] sm:$0xff] }
 0x8de   :  { %v5335_v20 = vld [vmem:[#allocation12 + $0x378] sm:$0xff] }
 0x8e3   :  { %6078 = vmatpush1.bf16.xpose.msra.mxu0 %v7267_v32  ;;  %v5346_v32 = vld [vmem:[#allocation12 + $0x3d0] sm:$0xff] }
 0x8e4   :  { %6090 = vmatprep.subr.bf16.mxu0 %v7150_v48  ;;  %v5350_v48 = vld [vmem:[#allocation12 + $0x3f0] sm:$0xff] }
 0x8e5   :  { %v7270_v52 = vcombine.high %v5346_v32, %v5350_v48  ;;  %v7269_v2 = vcombine.low %v5346_v32, %v5350_v48  ;;  %v5339_v32 = vld [vmem:[#allocation12 + $0x398] sm:$0xff] }
 0x8e6   :  { %v5343_v48 = vld [vmem:[#allocation12 + $0x3b8] sm:$0xff] }
 0x8ea   :  { %6080 = vmatmul.mubr.bf16.vlgmr.msra.gmra.mrb[8].mxu0 %v9304_v54  ;;  %v7182_v54 = vcombine.high %v5258_v5, %v5262_v44 }
 0x8eb   :  { %6091 = vmatpush1.bf16.xpose.msra.mxu0 %v7149_v55  ;;  %6122 = vmatprep.mubr.bf16.mxu0 %v9316_v28  ;;  %v5266_v28 = vld [vmem:[#allocation12 + $0x150] sm:$0xff]  ;;  %v5227_v55 = vld [vmem:[#allocation12 + $0x18] sm:$0xff] }
 0x8ec   :  { %6092 = vmatprep.subr.bf16.mxu0 %v7158_v7  ;;  %v7190_v3 = vcombine.high %v5266_v28, %v5270_v42  ;;  %v7189_v57 = vcombine.low %v5266_v28, %v5270_v42  ;;  %v5231_v7 = vld [vmem:[#allocation12 + $0x38] sm:$0xff] }
 0x8ed   :  { %v7152_v39 = vcombine.high %v5227_v55, %v5231_v7  ;;  %v7151_v8 = vcombine.low %v5227_v55, %v5231_v7  ;;  %v5347_v55 = vld [vmem:[#allocation12 + $0x3d8] sm:$0xff] }
 0x8ee   :  { %v5351_v7 = vld [vmem:[#allocation12 + $0x3f8] sm:$0xff] }
 0x8f3   :  { %6093 = vmatpush1.bf16.xpose.msra.mxu0 %v7157_v34  ;;  %v5235_v34 = vld [vmem:[#allocation12 + $0x58] sm:$0xff] }
 0x8f4   :  { %6094 = vmatprep.subr.bf16.mxu0 %v7166_v40  ;;  %v5239_v40 = vld [vmem:[#allocation12 + $0x78] sm:$0xff] }
 0x8f5   :  { %v7160_v16 = vcombine.high %v5235_v34, %v5239_v40  ;;  %v7159_v5 = vcombine.low %v5235_v34, %v5239_v40  ;;  %v7271_v34 = vcombine.low %v5347_v55, %v5351_v7  ;;  %v8403_v40 = vld [vmem:[#allocation15 + $0x4] ss:$8 sps:$4 sm:$0xff]  }
 0x8fb   :  { %6095 = vmatpush1.bf16.xpose.msra.mxu0 %v7165_v38  ;;  %v5243_v38 = vld [vmem:[#allocation12 + $0x98] sm:$0xff] }
 0x8fc   :  { %6096 = vmatprep.subr.bf16.mxu0 %v7174_v29  ;;  %v5247_v29 = vld [vmem:[#allocation12 + $0xb8] sm:$0xff] }
 0x8fd   :  { %v7168_v44 = vcombine.high %v5243_v38, %v5247_v29  ;;  %v7167_v28 = vcombine.low %v5243_v38, %v5247_v29  ;;  %v8404_v38 = vld [vmem:[#allocation15 + $0x10] ss:$8 sps:$4 sm:$0xff]   ;;  %v8409_v29 = vld [vmem:[#allocation15 + $0x24] ss:$8 sps:$4 sm:$0xff]  }
 0x903   :  { %6097 = vmatpush1.bf16.xpose.msra.mxu0 %v7173_v49  ;;  %v5251_v49 = vld [vmem:[#allocation12 + $0xd8] sm:$0xff] }
 0x904   :  { %6098 = vmatprep.subr.bf16.mxu0 %v7182_v54  ;;  %v5255_v54 = vld [vmem:[#allocation12 + $0xf8] sm:$0xff] }
 0x905   :  { %v7176_v42 = vcombine.high %v5251_v49, %v5255_v54  ;;  %v7175_v59 = vcombine.low %v5251_v49, %v5255_v54  ;;  %v8410_v49 = vld [vmem:[#allocation15 + $0x30] ss:$8 sps:$4 sm:$0xff]   ;;  %v8415_v54 = vld [vmem:[#allocation15 + $0x44] ss:$8 sps:$4 sm:$0xff]  }
 0x90b   :  { %6099 = vmatpush1.bf16.xpose.msra.mxu0 %v7181_v41  ;;  %v5259_v41 = vld [vmem:[#allocation12 + $0x118] sm:$0xff] }
 0x90c   :  { %6100 = vmatprep.subr.bf16.mxu0 %v7190_v3  ;;  %v5263_v3 = vld [vmem:[#allocation12 + $0x138] sm:$0xff] }
 0x913   :  { %6101 = vmatpush1.bf16.xpose.msra.mxu0 %v7189_v57  ;;  %v7183_v57 = vcombine.low %v5259_v41, %v5263_v3 }
 0x914   :  { %6102 = vmatprep.subr.bf16.mxu0 %v7198_v17 }
 0x91b   :  { %6103 = vmatpush1.bf16.xpose.msra.mxu0 %v7197_v60 }
 0x91c   :  { %6104 = vmatprep.subr.bf16.mxu0 %v7206_v21  ;;  %v7200_v21 = vcombine.high %v5275_v4, %v5279_v61 }
 0x923   :  { %6105 = vmatpush1.bf16.xpose.msra.mxu0 %v7205_v35  ;;  %v7199_v35 = vcombine.low %v5275_v4, %v5279_v61  ;;  %v5352_v4 = vld [vmem:[#allocation14] sm:$0x3] }
 0x924   :  { %6106 = vmatprep.subr.bf16.mxu0 %v7214_v18  ;;  %v7208_v18 = vcombine.high %v5283_v15, %v5287_v26  ;;  %v5357_v61 = vrot.slane %v5352_v4, %v9045_v56  ;;  %v7273_v56 = vld [vmem:[#allocation17] ss:$0 sm:$0xff] }
 0x92b   :  { %6107 = vmatpush1.bf16.xpose.msra.mxu0 %v7213_v25  ;;  %v7207_v25 = vcombine.low %v5283_v15, %v5287_v26 }
 0x92c   :  { %6108 = vmatprep.subr.bf16.mxu0 %v7222_v24  ;;  %v7216_v24 = vcombine.high %v5291_v23, %v5295_v22 }
 0x933   :  { %6109 = vmatpush1.bf16.xpose.msra.mxu0 %v7221_v27  ;;  %v7215_v27 = vcombine.low %v5291_v23, %v5295_v22 }
 0x934   :  { %6110 = vmatprep.subr.bf16.mxu0 %v7230_v31  ;;  %v7224_v31 = vcombine.high %v5299_v6, %v5303_v63 }
 0x93b   :  { %6111 = vmatpush1.bf16.xpose.msra.mxu0 %v7229_v12  ;;  %v7223_v12 = vcombine.low %v5299_v6, %v5303_v63 }
 0x93c   :  { %6112 = vmatprep.subr.bf16.mxu0 %v7238_v33  ;;  %v7232_v33 = vcombine.high %v5307_v9, %v5311_v14 }
 0x943   :  { %6113 = vmatpush1.bf16.xpose.msra.mxu0 %v7237_v11  ;;  %v7231_v11 = vcombine.low %v5307_v9, %v5311_v14  ;;  %v8428_v14 = vld [vmem:[#allocation18 + $0x18] sm:$0xff]  }
 0x944   :  { %6114 = vmatprep.subr.bf16.mxu0 %v7246_v37  ;;  %v7240_v37 = vcombine.high %v5315_v10, %v5319_v45 }
 0x94b   :  { %6115 = vmatpush1.bf16.xpose.msra.mxu0 %v7245_v47  ;;  %v7239_v47 = vcombine.low %v5315_v10, %v5319_v45 }
 0x94c   :  { %6116 = vmatprep.subr.bf16.mxu0 %v7254_v0  ;;  %v7248_v0 = vcombine.high %v5323_v43, %v5327_v46 }
 0x953   :  { %6117 = vmatpush1.bf16.xpose.msra.mxu0 %v7253_v62  ;;  %v7247_v62 = vcombine.low %v5323_v43, %v5327_v46 }
 0x954   :  { %6118 = vmatprep.subr.bf16.mxu0 %v7262_v53  ;;  %v7256_v53 = vcombine.high %v5331_v19, %v5335_v20 }
 0x95b   :  { %6119 = vmatpush1.bf16.xpose.msra.mxu0 %v7261_v1  ;;  %v7255_v1 = vcombine.low %v5331_v19, %v5335_v20 }
 0x95c   :  { %6120 = vmatprep.subr.bf16.mxu0 %v7270_v52  ;;  %v7264_v52 = vcombine.high %v5339_v32, %v5343_v48 }
 0x963   :  { %6121 = vmatpush1.bf16.xpose.msra.mxu0 %v7269_v2  ;;  %v7263_v2 = vcombine.low %v5339_v32, %v5343_v48 }
 0x964   :  { %6133 = vmatprep.subr.bf16.mxu0 %v7152_v39  ;;  %v7272_v39 = vcombine.high %v5347_v55, %v5351_v7 }
 0x96a   :  { %6123 = vmatmul.mubr.bf16.vlgmr.msra.gmra.mrb[8].mxu0 %v9320_v13  ;;  %v7184_v13 = vcombine.high %v5259_v41, %v5263_v3  ;;  %v8416_v41 = vld [vmem:[#allocation15 + $0x50] ss:$8 sps:$4 sm:$0xff]   ;;  %v8419_v3 = vld [vmem:[#allocation15 + $0x60] ss:$8 sps:$4 sm:$0xff]  }
 0x96b   :  { %6134 = vmatpush1.bf16.xpose.msra.mxu0 %v7151_v8  ;;  %6165 = vmatprep.mubr.bf16.mxu0 %v9325_v36  ;;  %v5267_v36 = vld [vmem:[#allocation12 + $0x158] sm:$0xff]  ;;  %v8401_v8 = vld [vmem:[#allocation15] ss:$8 sps:$4 sm:$0xff]  }
 0x96c   :  { %6135 = vmatprep.subr.bf16.mxu0 %v7160_v16  ;;  %v7192_v17 = vcombine.high %v5267_v36, %v5271_v30  ;;  %v7191_v60 = vcombine.low %v5267_v36, %v5271_v30  ;;  %v8406_v16 = vld [vmem:[#allocation15 + $0x14] ss:$8 sps:$4 sm:$0xff]   ;;  %v8425_v36 = vld [vmem:[#allocation18] sm:$0xff]   ;;  %v8766_v30 = vmov 0.0  }
 0x96d   :  { %7304 = vmatprep.subr.bf16.mxu1 %v8766_v30  ;;  %7312 = vmatprep.mubr.msk.bf16.mxu1 %vm8767_vm0, %v8766_v30 }
 0x96e   :  { %7305 = vmatpush3.bf16.xpose.msra.mxu1 %v8425_v36 }
 0x96f   :  { %7306 = vmatprep.subr.bf16.mxu1 %v8766_v30 }
 0x973   :  { %6136 = vmatpush1.bf16.xpose.msra.mxu0 %v7159_v5  ;;  %v8407_v5 = vld [vmem:[#allocation15 + $0x20] ss:$8 sps:$4 sm:$0xff]  }
 0x974   :  { %6137 = vmatprep.subr.bf16.mxu0 %v7168_v44  ;;  %v8412_v44 = vld [vmem:[#allocation15 + $0x34] ss:$8 sps:$4 sm:$0xff]  }
 0x97b   :  { %6138 = vmatpush1.bf16.xpose.msra.mxu0 %v7167_v28  ;;  %v8413_v28 = vld [vmem:[#allocation15 + $0x40] ss:$8 sps:$4 sm:$0xff]  }
 0x97c   :  { %6139 = vmatprep.subr.bf16.mxu0 %v7176_v42  ;;  %v8418_v42 = vld [vmem:[#allocation15 + $0x54] ss:$8 sps:$4 sm:$0xff]  }
 0x983   :  { %6140 = vmatpush1.bf16.xpose.msra.mxu0 %v7175_v59  ;;  %v8422_v59 = vld [vmem:[#allocation15 + $0x70] ss:$8 sps:$4 sm:$0xff]  }
 0x984   :  { %6141 = vmatprep.subr.bf16.mxu0 %v7184_v13  ;;  %v8424_v13 = vld [vmem:[#allocation15 + $0x74] ss:$8 sps:$4 sm:$0xff]  }
 0x98b   :  { %6142 = vmatpush1.bf16.xpose.msra.mxu0 %v7183_v57  ;;  %v8426_v57 = vld [vmem:[#allocation18 + $0x8] sm:$0xff]  }
 0x98c   :  { %6143 = vmatprep.subr.bf16.mxu0 %v7192_v17  ;;  %7307 = vmatpush3.bf16.xpose.msra.mxu1 %v8426_v57  ;;  %v8427_v17 = vld [vmem:[#allocation18 + $0x10] sm:$0xff]  }
 0x98d   :  { %7308 = vmatprep.subr.bf16.mxu1 %v8766_v30 }
 0x993   :  { %6144 = vmatpush1.bf16.xpose.msra.mxu0 %v7191_v60  ;;  %v5361_v60 = vrot.slane %v5352_v4, %v9048_v58 }
 0x994   :  { %6145 = vmatprep.subr.bf16.mxu0 %v7200_v21  ;;  %7309 = vmatpush3.bf16.xpose.msra.mxu1 %v8427_v17 }
 0x995   :  { %7310 = vmatprep.subr.bf16.mxu1 %v8766_v30 }
 0x99b   :  { %6146 = vmatpush1.bf16.xpose.msra.mxu0 %v7199_v35 }
 0x99c   :  { %6147 = vmatprep.subr.bf16.mxu0 %v7208_v18  ;;  %7311 = vmatpush3.bf16.xpose.msra.mxu1 %v8428_v14 }
 0x9a3   :  { %6148 = vmatpush1.bf16.xpose.msra.mxu0 %v7207_v25 }
 0x9a4   :  { %6149 = vmatprep.subr.bf16.mxu0 %v7216_v24 }
 0x9ab   :  { %6150 = vmatpush1.bf16.xpose.msra.mxu0 %v7215_v27 }
 0x9ac   :  { %6151 = vmatprep.subr.bf16.mxu0 %v7224_v31 }
 0x9b3   :  { %6152 = vmatpush1.bf16.xpose.msra.mxu0 %v7223_v12 }
 0x9b4   :  { %6153 = vmatprep.subr.bf16.mxu0 %v7232_v33 }
 0x9bb   :  { %6154 = vmatpush1.bf16.xpose.msra.mxu0 %v7231_v11 }
 0x9bc   :  { %6155 = vmatprep.subr.bf16.mxu0 %v7240_v37 }
 0x9c3   :  { %6156 = vmatpush1.bf16.xpose.msra.mxu0 %v7239_v47  ;;  %v7290_v47 = vld [vmem:[#allocation20] ss:$0 sm:$0xff] }
 0x9c4   :  { %6157 = vmatprep.subr.bf16.mxu0 %v7248_v0 }
 0x9cb   :  { %6158 = vmatpush1.bf16.xpose.msra.mxu0 %v7247_v62 }
 0x9cc   :  { %6159 = vmatprep.subr.bf16.mxu0 %v7256_v53  ;;  %v7295_v53 = vld [vmem:[#allocation21] ss:$0 sm:$0xff] }
 0x9d3   :  { %6160 = vmatpush1.bf16.xpose.msra.mxu0 %v7255_v1 }
 0x9d4   :  { %6161 = vmatprep.subr.bf16.mxu0 %v7264_v52 }
 0x9db   :  { %6162 = vmatpush1.bf16.xpose.msra.mxu0 %v7263_v2 }
 0x9dc   :  { %6163 = vmatprep.subr.bf16.mxu0 %v7272_v39 }
 0x9e3   :  { %6164 = vmatpush1.bf16.xpose.msra.mxu0 %v7271_v34  ;;  %v8768_v34 = vmov 0  }
 0x9e4   :  { %6285 = vmatprep.subr.bf16.mxu0 %v8403_v40  ;;  %7440 = vset.pattern.permute.xlu1 %v8768_v34  ;;  %v7296_v40 = vld [vmem:[#allocation2] ss:$0 sm:$0xff] }
 0x9e5   :  { %7439 = vset.pattern.permute.xlu0 %v8768_v34 }
 0x9ea   :  { %6166 = vmatmul.mubr.bf16.vlgmr.msra.gmra.mrb[8].mxu0 %v9327_v51  ;;  %v8421_v51 = vld [vmem:[#allocation15 + $0x64] ss:$8 sps:$4 sm:$0xff]  }
 0x9eb   :  { %6286 = vmatpush1.bf16.xpose.msra.mxu0 %v8401_v8 }
 0x9ec   :  { %6287 = vmatprep.subr.bf16.mxu0 %v8406_v16 }
 0x9f3   :  { %6288 = vmatpush1.bf16.xpose.msra.mxu0 %v8404_v38 }
 0x9f4   :  { %6289 = vmatprep.subr.bf16.mxu0 %v8409_v29 }
 0x9fb   :  { %6290 = vmatpush1.bf16.xpose.msra.mxu0 %v8407_v5 }
 0x9fc   :  { %6291 = vmatprep.subr.bf16.mxu0 %v8412_v44 }
 0xa03   :  { %6292 = vmatpush1.bf16.xpose.msra.mxu0 %v8410_v49 }
 0xa04   :  { %6293 = vmatprep.subr.bf16.mxu0 %v8415_v54 }
 0xa0b   :  { %6294 = vmatpush1.bf16.xpose.msra.mxu0 %v8413_v28 }
 0xa0c   :  { %6295 = vmatprep.subr.bf16.mxu0 %v8418_v42 }
 0xa13   :  { %6296 = vmatpush1.bf16.xpose.msra.mxu0 %v8416_v41 }
 0xa14   :  { %6297 = vmatprep.subr.bf16.mxu0 %v8421_v51 }
 0xa1b   :  { %6298 = vmatpush1.bf16.xpose.msra.mxu0 %v8419_v3 }
 0xa1c   :  { %6299 = vmatprep.subr.bf16.mxu0 %v8424_v13 }
 0xa23   :  { %6300 = vmatpush1.bf16.xpose.msra.mxu0 %v8422_v59 }
 0xabd   :  { %v6167_v21 = vpop.f32.mrb[8].mxu0 }
 0xabe   :  { %v7336_v15 = vadd.f32 %v6167_v21, %v5357_v61  ;;  %v6169_v26 = vpop.f32.mrb[9].mxu0 }
 0xabf   :  { %v7337_v35 = vadd.f32 %v6169_v26, %v5361_v60  ;;  %v6171_v18 = vpop.f32.mrb[10].mxu0 }
 0xac0   :  { %v7338_v23 = vadd.f32 %v6171_v18, %v5357_v61  ;;  %v6173_v22 = vpop.f32.mrb[11].mxu0  ;;  %v6176_v24 = vmax.f32 %v7336_v15, 0.0 }
 0xac1   :  { %v7339_v25 = vadd.f32 %v6173_v22, %v5361_v60  ;;  %v6177_v63 = vmax.f32 %v7337_v35, 0.0 }
 0xac2   :  { %v6178_v6 = vmax.f32 %v7338_v23, 0.0 }
 0xac3   :  { %v6179_v27 = vmax.f32 %v7339_v25, 0.0 }
 0xac4   :  { %v6180_v31 = vpack.c.bf16 %v6178_v6, %v6176_v24 }
 0xac5   :  { %v6181_v9 = vpack.c.bf16 %v6179_v27, %v6177_v63 }
 0xac7   :  { %6317 = vmatprep.mubr.bf16.mxu0 %v6181_v9 }
 0xac8   :  { %6318 = vmatmul.mubr.bf16.vlgmr.msra.gmra.mrb[12].mxu0 %v6180_v31 }
 0xb9b   :  { %v6319_v58 = vpop.f32.mrb[12].mxu0 }
 0xb9c   :  { %v6320_v12 = vadd.f32 %v7273_v56, %v6319_v58  ;;  %v6321_v33 = vpop.f32.mrb[13].mxu0 }
 0xb9d   :  { %v6322_v10 = vpop.f32.mrb[14].mxu0 }
 0xb9e   :  { %v6323_v45 = vadd.f32 %v7273_v56, %v6322_v10  ;;  %v6324_v11 = vpop.f32.mrb[15].mxu0  ;;  %v6326_v37 = vmax.f32 %v6320_v12, 0.0 }
 0xba0   :  { %v6327_v43 = vmax.f32 %v6323_v45, 0.0 }
 0xba2   :  { %v6328_v46 = vpack.c.bf16 %v6327_v43, %v6326_v37 }
 0xba4   :  { %7313 = vmatmul.mubr.bf16.vlgmr.msra.gmra.mrb[12].mxu1 %v6328_v46 }
 0xc77   :  { %v6402_v0 = vpop.f32.mrb[12].mxu1 }
 0xc78   :  { %v6403_v19 = vadd.f32 %v7290_v47, %v6402_v0  ;;  %v7314_v20 = vpop.f32.mrb[13].mxu1 }
 0xc79   :  { %v6405_v62 = vpop.f32.mrb[14].mxu1 }
 0xc7a   :  { %v6409_v32 = vmax.f32 %v6403_v19, 0.0  ;;  %v6406_v48 = vadd.f32 %v7290_v47, %v6405_v62  ;;  %v7315_v1 = vpop.f32.mrb[15].mxu1 }
 0xc7c   :  { %v6410_v52 = vmax.f32 %v6406_v48, 0.0  ;;  %v6418_v55 = vmul.f32 %v7295_v53, %v6409_v32 }
 0xc7e   :  { %v6421_v7 = vsel %vm6420_vm1, %v6418_v55, 0.0  ;;  %v6419_v2 = vmul.f32 %v7295_v53, %v6410_v52 }
 0xc7f   :  { %6422 = vadd.xlane.f32.xlu0 %v6421_v7 }
 0xc80   :  { %v6424_v39 = vsel %vm6420_vm1, %v6419_v2, 0.0 }
 0xc81   :  { %6425 = vadd.xlane.f32.xlu1 %v6424_v39 }
 0xd0c   :  { %v6423_v8 = vpop.xlane.xlu0 %6422 }
 0xd0d   :  { %v6434_v16 = vadd.f32 %v7296_v40, %v6423_v8 }
 0xd0e   :  { %v6426_v38 = vpop.xlane.xlu1 %6425 }
 0xd0f   :  { %v6439_v29 = vsub.f32 0.0, %v6434_v16  ;;  %v6435_v5 = vadd.f32 %v7296_v40, %v6426_v38  ;;  %6453 = vperm.xlu1 %7440, %v6434_v16  }
 0xd11   :  { %v6440_v44 = vsub.f32 0.0, %v6435_v5  ;;  %6443 = vperm.xlu0 %7439, %v6439_v29  }
 0xd13   :  { %6448 = vperm.xlu1 %7440, %v6440_v44  }
 0xd17   :  { %6458 = vperm.xlu1 %7440, %v6435_v5  }
 0xd18   :  { %8717 = shalt.err (!%p8714_p2)
}
 0xd19   :  { %s8718_s24 = scalar_lea.hbm %s9370_s14, 2048 }
 0xd1a   :  { %p8719_p3 = scmp.ne.s32.totalorder %s9370_s14, %s8718_s24  ;;  %p8722_p4 = scmp.lt.u32.totalorder %s8718_s24, %s9370_s14 }
 0xd1c   :  { %p8724_p5 = pnand %p8722_p4, %p8719_p3 }
 0xd1e   :  { %8727 = shalt.err (!%p8724_p5)
}
 0xd1f   :  { %s8770_s0 = smov 1024   ;;  %v6437_v49 = vand.u32 127, %v871_v50  ;;  %vm6475_vm3 = vcmask 15360  }
 0xd20   :  { %6491 = dma.vmem_to_hbm [thread:$0]  %s6486_s21, 2048, %s9370_s14, [#allocation5], %s8770_s0, %s8770_s0, %s8755_s7  }
 0xd21   :  { %vm6438_vm2 = vcmp.eq.s32.totalorder %v6437_v49, 0 }
 0xd8e   :  { %v6454_v54 = vpop.permute.xlu1 %6453 }
 0xd90   :  { %v6444_v28 = vpop.permute.xlu0 %6443 }
 0xd91   :  { %v6461_v42 = vsel %vm6438_vm2, %v6444_v28, %v6454_v54 }
 0xd92   :  { %v7297_v41 = vmul.f32 -1.442695, %v6461_v42  ;;  %v6449_v51 = vpop.permute.xlu1 %6448 }
 0xd94   :  { %8433 = vpow2.f32 %v7297_v41 }
 0xd96   :  { %v6459_v3 = vpop.permute.xlu1 %6458 }
 0xd97   :  { %v6462_v59 = vsel %vm6438_vm2, %v6449_v51, %v6459_v3 }
 0xd98   :  { %v7298_v13 = vmul.f32 -1.442695, %v6462_v59 }
 0xd9a   :  { %8435 = vpow2.f32 %v7298_v13 }
 0xd9e   :  { %v8434_v36 = vpop.eup %8433 }
 0xd9f   :  { %v6469_v30 = vadd.f32 1.0, %v8434_v36 }
 0xda1   :  { %8437 = vrcp.f32 %v6469_v30 }
 0xda4   :  { %v8436_v57 = vpop.eup %8435 }
 0xda5   :  { %v6470_v17 = vadd.f32 1.0, %v8436_v57 }
 0xda7   :  { %8439 = vrcp.f32 %v6470_v17 }
 0xdab   :  { %v8438_v4 = vpop.eup %8437 }
 0xdac   :  { %6476 = vst.msk [vmem:[%s9369_s13] sm:$0xff] %vm6475_vm3, %v8438_v4 }
 0xdb1   :  { %v8440_v50 = vpop.eup %8439 }
 0xdb2   :  { %6477 = vst.msk [vmem:[%s9369_s13 + $0x8] sm:$0xff] %vm6475_vm3, %v8440_v50 }
 0xdb3   :  { %8742 = dma.done.wait [#allocation5], 2048  }
 0xdb4   :  { %8743 = vsyncadd [#allocation5], 4294965248 }
 0xdb5   :  { %6497 = vsyncpa [#allocation4], 1 }
 0xdb6   :  { %6498 = vsyncpa [#allocation7], 1 }
 0xdb7   :  { %6499 = vsyncpa [#allocation10], 1 }
 0xdb8   :  { %6500 = vsyncpa [#allocation13], 1 }
 0xdb9   :  { %6501 = vsyncpa [#allocation16], 1 }
 0xdba   :  { %6502 = vsyncpa [#allocation19], 1 }
 0xdbb   :  { %6503 = vsyncpa [#allocation22], 1 }
 0xdbc   :  { %6504 = vsyncpa [#allocation5], 1 }

</bundles_post_ra>
